<compile_context>
chip_gen: v7x
topology: tpu7x:2x2x1
jax: 0.10.0
libtpu: 0.0.40
codegen_flags: <defaults>
</compile_context>

<pallas_src>
import functools
import math

import jax
import jax.numpy as jnp
from jax.experimental import pallas as pl
from jax.experimental.pallas import tpu as pltpu


def _round_up(x, m):
    return (x + m - 1) // m * m


def _value_net_fused_kernel(x_ref, mask_ref, w0_ref, wmid_ref, wlast_ref,
                            affine_ref, blast_ref, o_ref, *, Wp):
    """Whole ValueNet forward for one batch-block, fully VMEM-resident.

    x_ref:      (1, Rb)              flattened zero-padded boards (f32)
    mask_ref:   (1, Rb)              1.0 at real board cells, 0.0 elsewhere
    w0_ref:     (9, C, 1)   f32      first conv, per-tap (Cout, Cin=1)
    wmid_ref:   (depth, 9, C, C) bf16 middle convs, per-tap (Cout, Cin)
    wlast_ref:  (9, 8, C)   bf16     last conv (out-ch 0 real, 1..7 zero pad)
    affine_ref: (depth+1, C, 3) f32  lanes: [conv bias, BN scale, BN shift]
    blast_ref:  (1, 1)      f32      last conv bias
    o_ref:      (1, Rb)              padded/flattened network output
    """
    Rb = x_ref.shape[1]                     # lanes in this block (mult of 128)
    C = w0_ref.shape[1]                     # hidden channels
    depth = wmid_ref.shape[0]               # number of C->C conv layers

    mask = mask_ref[...]                    # (1, Rb)

    # Flattened-board offsets of the 9 taps of a 3x3 stencil.
    offsets = [(ki - 1) * Wp + (kj - 1) for ki in range(3) for kj in range(3)]

    def tap(act, o):
        # tap[:, p] = act[:, p + o]; wrap-around only pollutes padding/slack
        # lanes that the mask re-zeroes (and the wrapper strips at the end).
        return act if o == 0 else pltpu.roll(act, shift=(-o) % Rb, axis=1)

    def bias_relu_bn(y, layer):
        a = affine_ref[layer]                              # (C, 3)
        y = jnp.maximum(y + a[:, 0:1], 0.0)                # conv bias + ReLU
        y = y * a[:, 1:2] + a[:, 2:3]                      # eval-mode BN affine
        return y * mask                                    # re-zero padding ring

    # ---- layer 0: Conv(1 -> C).  Cin == 1 -> 9 VPU outer products. ----
    x = x_ref[...].astype(jnp.float32)                     # (1, Rb)
    acc = jnp.zeros((C, Rb), jnp.float32)
    for t, o in enumerate(offsets):
        acc = acc + w0_ref[t] * tap(x, o)                  # (C,1)*(1,Rb)
    act = bias_relu_bn(acc, 0)

    # ---- layers 1..depth: Conv(C -> C) as 9 accumulating MXU dots. ----
    for l in range(depth):
        acc = jnp.zeros((C, Rb), jnp.float32)
        for t, o in enumerate(offsets):
            acc = acc + jnp.dot(wmid_ref[l, t],
                                tap(act, o).astype(jnp.bfloat16),
                                preferred_element_type=jnp.float32)
        act = bias_relu_bn(acc, l + 1)

    # ---- last layer: Conv(C -> 1) (out-ch padded to 8), no ReLU / BN. ----
    acc = jnp.zeros((8, Rb), jnp.float32)
    for t, o in enumerate(offsets):
        acc = acc + jnp.dot(wlast_ref[t],
                            tap(act, o).astype(jnp.bfloat16),
                            preferred_element_type=jnp.float32)
    o_ref[...] = (acc[0:1, :] + blast_ref[...]).astype(o_ref.dtype)


def pack_value_net_params(convs, bns, eps=1e-5):
    """Fold/transpose per-layer params into the kernel's stacked layouts."""
    assert len(convs) >= 3, "need first conv, >=1 middle conv, last conv"
    (w0, b0) = convs[0]                    # (3,3,1,C)
    mid = convs[1:-1]                      # each (3,3,C,C)
    (wl, bl) = convs[-1]                   # (3,3,C,1)
    C = w0.shape[-1]

    # Per-tap (Cout, Cin) layouts; weights that hit the MXU are bf16.
    w0_p = jnp.transpose(w0.reshape(9, 1, C), (0, 2, 1)).astype(jnp.float32)
    wmid_p = jnp.stack([jnp.transpose(w.reshape(9, C, C), (0, 2, 1))
                        for (w, _) in mid]).astype(jnp.bfloat16)
    wl_p = jnp.transpose(wl.reshape(9, C, 1), (0, 2, 1))          # (9, 1, C)
    wlast_p = jnp.concatenate(
        [wl_p, jnp.zeros((9, 7, C), wl_p.dtype)], axis=1).astype(jnp.bfloat16)
    blast = bl.reshape(1, 1).astype(jnp.float32)

    # Stack [conv bias, BN scale, BN shift] per layer as (L, C, 3):
    # channels on sublanes, the 3 coefficients on lanes (minimal lane padding).
    biases = [b0] + [b for (_, b) in mid]
    rows = []
    for (gamma, beta, mean, var), b in zip(bns, biases):
        scale = gamma / jnp.sqrt(var + eps)
        shift = beta - mean * scale
        rows.append(jnp.stack([b, scale, shift], axis=1))          # (C, 3)
    affine = jnp.stack(rows).astype(jnp.float32)                   # (L, C, 3)

    return dict(w0=w0_p, wmid=wmid_p, wlast=wlast_p, affine=affine, blast=blast)


def _auto_images_per_block(N, S, target_lanes=4096):
    """Largest divisor of N with NB*S <= target, preferring >=2 grid steps."""
    divs = [d for d in range(1, N + 1) if N % d == 0]
    fitting = [d for d in divs if d * S <= target_lanes] or [1]
    nb = max(fitting)
    if N // nb < 2:                      # keep both v7x TCs fed when possible
        smaller = [d for d in fitting if N // d >= 2]
        if smaller:
            nb = max(smaller)
    return nb


def _default_vmem_limit_bytes():
    """~3/4 of physical VMEM, capped at 96 MiB (safe on v5e/v6e/v7x)."""
    try:
        cap = int(pltpu.get_tpu_info().vmem_capacity_bytes)
    except Exception:
        cap = 64 * 1024 * 1024
    return max(32 * 1024 * 1024, min((cap * 3) // 4, 96 * 1024 * 1024))


def value_net_forward(x_nchw, packed, *, images_per_block=None):
    """Forward pass. Input NCHW (PyTorch convention); output NCHW."""
    N, cin, H, W = x_nchw.shape
    assert cin == 1
    Hp, Wp = H + 2, W + 2
    S = _round_up(Hp * Wp, 128)            # lane-aligned per-image stride
    NB = images_per_block or _auto_images_per_block(N, S)
    assert N % NB == 0
    Rb = NB * S

    # --- input plumbing (once for the whole net): NCHW -> zero-padded,
    #     flattened, lane-aligned (1, N*S) slab ---
    xp = jnp.pad(x_nchw[:, 0].astype(jnp.float32), ((0, 0), (1, 1), (1, 1)))
    xp = xp.reshape(N, Hp * Wp)
    xp = jnp.pad(xp, ((0, 0), (0, S - Hp * Wp)))
    x_flat = xp.reshape(1, N * S)

    # interior mask for one block of NB images (trace-time constant)
    idx = jnp.arange(Hp * Wp, dtype=jnp.int32)
    pi, pj = idx // Wp, idx % Wp
    interior = (pi >= 1) & (pi < Hp - 1) & (pj >= 1) & (pj < Wp - 1)
    m1 = jnp.pad(interior.astype(jnp.float32), (0, S - Hp * Wp))   # (S,)
    mask = jnp.tile(m1, NB).reshape(1, Rb)

    kernel = functools.partial(_value_net_fused_kernel, Wp=Wp)

    out = pl.pallas_call(
        kernel,
        out_shape=jax.ShapeDtypeStruct((1, N * S), jnp.float32),
        grid=(N // NB,),
        in_specs=[
            pl.BlockSpec((1, Rb), lambda i: (0, i)),                     # x
            pl.BlockSpec((1, Rb), lambda i: (0, 0)),                     # mask
            pl.BlockSpec(packed["w0"].shape, lambda i: (0, 0, 0)),       # w0
            pl.BlockSpec(packed["wmid"].shape, lambda i: (0, 0, 0, 0)),  # wmid
            pl.BlockSpec(packed["wlast"].shape, lambda i: (0, 0, 0)),    # wlast
            pl.BlockSpec(packed["affine"].shape, lambda i: (0, 0, 0)),   # affine
            pl.BlockSpec(packed["blast"].shape, lambda i: (0, 0)),       # blast
        ],
        out_specs=pl.BlockSpec((1, Rb), lambda i: (0, i)),
        compiler_params=pltpu.CompilerParams(
            dimension_semantics=("parallel",),
            vmem_limit_bytes=_default_vmem_limit_bytes()),
    )(x_flat, mask, packed["w0"], packed["wmid"], packed["wlast"],
      packed["affine"], packed["blast"])

    # --- output plumbing: strip per-image lane padding + spatial border ---
    out = out.reshape(N, S)[:, :Hp * Wp].reshape(N, Hp, Wp)
    return out[:, 1:H + 1, 1:W + 1][:, None, :, :]


def init_value_net_params(key, channels=64, depth=5):
    """Deterministic parameter init mirroring ValueNet.__init__ shapes/init."""
    assert depth >= 1
    conv_io = [(1, channels)] + [(channels, channels)] * depth + [(channels, 1)]
    convs = []
    for cin, cout in conv_io:
        key, wk, bk = jax.random.split(key, 3)
        std = math.sqrt(2.0 / (3 * 3 * cout))        # weight.normal_(0, sqrt(2/n))
        w = std * jax.random.normal(wk, (3, 3, cin, cout), jnp.float32)
        bound = 1.0 / math.sqrt(9 * cin)             # PyTorch Conv2d default bias
        b = jax.random.uniform(bk, (cout,), jnp.float32, -bound, bound)
        convs.append((w, b))

    # BatchNorm2d (eval-mode).  Non-trivial stats so the folded-affine path is
    # exercised numerically (a fresh module would be gamma=1/beta=0/mean=0/var=1).
    bns = []
    for _ in range(depth + 1):
        key, k1, k2, k3, k4 = jax.random.split(key, 5)
        gamma = 1.0 + 0.1 * jax.random.normal(k1, (channels,), jnp.float32)
        beta = 0.1 * jax.random.normal(k2, (channels,), jnp.float32)
        mean = 0.1 * jax.random.normal(k3, (channels,), jnp.float32)
        var = jax.random.uniform(k4, (channels,), jnp.float32, 0.5, 1.5)
        bns.append((gamma, beta, mean, var))
    return convs, bns


def value_net_reference(x_nchw, convs, bns, eps=1e-5):
    """Pure-JAX/XLA reference: Conv -> (+bias) -> ReLU -> BN per block."""
    x = x_nchw.astype(jnp.float32)
    n_layers = len(convs)
    for i, (w, b) in enumerate(convs):
        x = jax.lax.conv_general_dilated(
            x, w, window_strides=(1, 1), padding=((1, 1), (1, 1)),
            dimension_numbers=("NCHW", "HWIO", "NCHW"),
            precision=jax.lax.Precision.HIGHEST)
        x = x + b[None, :, None, None]
        if i < n_layers - 1:
            gamma, beta, mean, var = bns[i]
            x = jnp.maximum(x, 0.0)
            x = (x - mean[None, :, None, None]) / jnp.sqrt(
                var[None, :, None, None] + eps)
            x = x * gamma[None, :, None, None] + beta[None, :, None, None]
    return x


if __name__ == "__main__":
    key = jax.random.PRNGKey(0)
    key, xk = jax.random.split(key)

    # Small, module-consistent shapes: 8x8 Othello board, 1 input channel,
    # channels=32, depth=3 (module defaults are channels=64, depth=5).
    # Batch 8 so the auto image-blocking exercises NB>1 AND a multi-step grid.
    N, H, W = 8, 8, 8
    channels, depth = 32, 3

    x = jax.random.normal(xk, (N, 1, H, W), jnp.float32)       # NCHW, like PyTorch
    convs, bns = init_value_net_params(key, channels=channels, depth=depth)
    packed = pack_value_net_params(convs, bns)

    fwd = jax.jit(lambda inp: value_net_forward(inp, packed))
    out = jax.block_until_ready(fwd(x))

    assert out.shape == (N, 1, H, W), out.shape
    assert out.dtype == jnp.float32

    # Correctness vs the pure-JAX reference (tolerance covers bf16 MXU operands).
    ref = value_net_reference(x, convs, bns)
    rel_err = float(jnp.max(jnp.abs(out - ref)) / (jnp.max(jnp.abs(ref)) + 1e-6))
    assert rel_err < 2e-2, f"relative error too large: {rel_err}"

    print("KERNEL_OK")
</pallas_src>

<mosaic_0001>
module attributes {stable_mosaic.version = 11 : i64} {
  func.func @_value_net_fused_kernel(%arg0: i32, %arg1: memref<1x512xf32, #tpu.memory_space<vmem>>, %arg2: memref<1x512xf32, #tpu.memory_space<vmem>>, %arg3: memref<9x32x1xf32, #tpu.memory_space<vmem>>, %arg4: memref<3x9x32x32xbf16, #tpu.memory_space<vmem>>, %arg5: memref<9x8x32xbf16, #tpu.memory_space<vmem>>, %arg6: memref<4x32x3xf32, #tpu.memory_space<vmem>>, %arg7: memref<1x1xf32, #tpu.memory_space<vmem>>, %arg8: memref<1x512xf32, #tpu.memory_space<vmem>>) attributes {dimension_semantics = [#tpu.dimension_semantics<parallel>], iteration_bounds = array<i64: 2>, scalar_prefetch = 0 : i64, scratch_operands = 0 : i64, tpu.core_type = #tpu.core_type<tc>, window_params = [{transform_indices = @transform_0, window_bounds = array<i64: 1, 512>}, {pipeline_mode = #tpu.pipeline_mode<synchronous>, transform_indices = @transform_1, window_bounds = array<i64: 1, 512>}, {pipeline_mode = #tpu.pipeline_mode<synchronous>, transform_indices = @transform_2, window_bounds = array<i64: 9, 32, 1>}, {pipeline_mode = #tpu.pipeline_mode<synchronous>, transform_indices = @transform_3, window_bounds = array<i64: 3, 9, 32, 32>}, {pipeline_mode = #tpu.pipeline_mode<synchronous>, transform_indices = @transform_4, window_bounds = array<i64: 9, 8, 32>}, {pipeline_mode = #tpu.pipeline_mode<synchronous>, transform_indices = @transform_5, window_bounds = array<i64: 4, 32, 3>}, {pipeline_mode = #tpu.pipeline_mode<synchronous>, transform_indices = @transform_6, window_bounds = array<i64: 1, 1>}, {transform_indices = @transform_7, window_bounds = array<i64: 1, 512>}]} {
    %c0 = arith.constant 0 : index
    %c0_0 = arith.constant 0 : index
    %0 = vector.load %arg2[%c0, %c0_0] : memref<1x512xf32, #tpu.memory_space<vmem>>, vector<1x512xf32>
    %c0_1 = arith.constant 0 : index
    %c0_2 = arith.constant 0 : index
    %1 = vector.load %arg1[%c0_1, %c0_2] : memref<1x512xf32, #tpu.memory_space<vmem>>, vector<1x512xf32>
    %cst = arith.constant 0.000000e+00 : f32
    %2 = vector.broadcast %cst : f32 to vector<32x512xf32>
    %c0_3 = arith.constant 0 : index
    %c0_4 = arith.constant 0 : index
    %c0_5 = arith.constant 0 : index
    %3 = vector.load %arg3[%c0_3, %c0_4, %c0_5] : memref<9x32x1xf32, #tpu.memory_space<vmem>>, vector<1x32x1xf32>
    %4 = vector.shape_cast %3 : vector<1x32x1xf32> to vector<32x1xf32>
    %c11_i32 = arith.constant 11 : i32
    %5 = tpu.dynamic_rotate %1 by %c11_i32 dim 1 : vector<1x512xf32>, i32 -> vector<1x512xf32>
    %6 = vector.broadcast %4 : vector<32x1xf32> to vector<32x512xf32>
    %7 = vector.broadcast %5 : vector<1x512xf32> to vector<32x512xf32>
    %8 = arith.mulf %6, %7 : vector<32x512xf32>
    %9 = arith.addf %2, %8 : vector<32x512xf32>
    %c1 = arith.constant 1 : index
    %c0_6 = arith.constant 0 : index
    %c0_7 = arith.constant 0 : index
    %10 = vector.load %arg3[%c1, %c0_6, %c0_7] : memref<9x32x1xf32, #tpu.memory_space<vmem>>, vector<1x32x1xf32>
    %11 = vector.shape_cast %10 : vector<1x32x1xf32> to vector<32x1xf32>
    %c10_i32 = arith.constant 10 : i32
    %12 = tpu.dynamic_rotate %1 by %c10_i32 dim 1 : vector<1x512xf32>, i32 -> vector<1x512xf32>
    %13 = vector.broadcast %11 : vector<32x1xf32> to vector<32x512xf32>
    %14 = vector.broadcast %12 : vector<1x512xf32> to vector<32x512xf32>
    %15 = arith.mulf %13, %14 : vector<32x512xf32>
    %16 = arith.addf %9, %15 : vector<32x512xf32>
    %c2 = arith.constant 2 : index
    %c0_8 = arith.constant 0 : index
    %c0_9 = arith.constant 0 : index
    %17 = vector.load %arg3[%c2, %c0_8, %c0_9] : memref<9x32x1xf32, #tpu.memory_space<vmem>>, vector<1x32x1xf32>
    %18 = vector.shape_cast %17 : vector<1x32x1xf32> to vector<32x1xf32>
    %c9_i32 = arith.constant 9 : i32
    %19 = tpu.dynamic_rotate %1 by %c9_i32 dim 1 : vector<1x512xf32>, i32 -> vector<1x512xf32>
    %20 = vector.broadcast %18 : vector<32x1xf32> to vector<32x512xf32>
    %21 = vector.broadcast %19 : vector<1x512xf32> to vector<32x512xf32>
    %22 = arith.mulf %20, %21 : vector<32x512xf32>
    %23 = arith.addf %16, %22 : vector<32x512xf32>
    %c3 = arith.constant 3 : index
    %c0_10 = arith.constant 0 : index
    %c0_11 = arith.constant 0 : index
    %24 = vector.load %arg3[%c3, %c0_10, %c0_11] : memref<9x32x1xf32, #tpu.memory_space<vmem>>, vector<1x32x1xf32>
    %25 = vector.shape_cast %24 : vector<1x32x1xf32> to vector<32x1xf32>
    %c1_i32 = arith.constant 1 : i32
    %26 = tpu.dynamic_rotate %1 by %c1_i32 dim 1 : vector<1x512xf32>, i32 -> vector<1x512xf32>
    %27 = vector.broadcast %25 : vector<32x1xf32> to vector<32x512xf32>
    %28 = vector.broadcast %26 : vector<1x512xf32> to vector<32x512xf32>
    %29 = arith.mulf %27, %28 : vector<32x512xf32>
    %30 = arith.addf %23, %29 : vector<32x512xf32>
    %c4 = arith.constant 4 : index
    %c0_12 = arith.constant 0 : index
    %c0_13 = arith.constant 0 : index
    %31 = vector.load %arg3[%c4, %c0_12, %c0_13] : memref<9x32x1xf32, #tpu.memory_space<vmem>>, vector<1x32x1xf32>
    %32 = vector.shape_cast %31 : vector<1x32x1xf32> to vector<32x1xf32>
    %33 = vector.broadcast %32 : vector<32x1xf32> to vector<32x512xf32>
    %34 = vector.broadcast %1 : vector<1x512xf32> to vector<32x512xf32>
    %35 = arith.mulf %33, %34 : vector<32x512xf32>
    %36 = arith.addf %30, %35 : vector<32x512xf32>
    %c5 = arith.constant 5 : index
    %c0_14 = arith.constant 0 : index
    %c0_15 = arith.constant 0 : index
    %37 = vector.load %arg3[%c5, %c0_14, %c0_15] : memref<9x32x1xf32, #tpu.memory_space<vmem>>, vector<1x32x1xf32>
    %38 = vector.shape_cast %37 : vector<1x32x1xf32> to vector<32x1xf32>
    %c511_i32 = arith.constant 511 : i32
    %39 = tpu.dynamic_rotate %1 by %c511_i32 dim 1 : vector<1x512xf32>, i32 -> vector<1x512xf32>
    %40 = vector.broadcast %38 : vector<32x1xf32> to vector<32x512xf32>
    %41 = vector.broadcast %39 : vector<1x512xf32> to vector<32x512xf32>
    %42 = arith.mulf %40, %41 : vector<32x512xf32>
    %43 = arith.addf %36, %42 : vector<32x512xf32>
    %c6 = arith.constant 6 : index
    %c0_16 = arith.constant 0 : index
    %c0_17 = arith.constant 0 : index
    %44 = vector.load %arg3[%c6, %c0_16, %c0_17] : memref<9x32x1xf32, #tpu.memory_space<vmem>>, vector<1x32x1xf32>
    %45 = vector.shape_cast %44 : vector<1x32x1xf32> to vector<32x1xf32>
    %c503_i32 = arith.constant 503 : i32
    %46 = tpu.dynamic_rotate %1 by %c503_i32 dim 1 : vector<1x512xf32>, i32 -> vector<1x512xf32>
    %47 = vector.broadcast %45 : vector<32x1xf32> to vector<32x512xf32>
    %48 = vector.broadcast %46 : vector<1x512xf32> to vector<32x512xf32>
    %49 = arith.mulf %47, %48 : vector<32x512xf32>
    %50 = arith.addf %43, %49 : vector<32x512xf32>
    %c7 = arith.constant 7 : index
    %c0_18 = arith.constant 0 : index
    %c0_19 = arith.constant 0 : index
    %51 = vector.load %arg3[%c7, %c0_18, %c0_19] : memref<9x32x1xf32, #tpu.memory_space<vmem>>, vector<1x32x1xf32>
    %52 = vector.shape_cast %51 : vector<1x32x1xf32> to vector<32x1xf32>
    %c502_i32 = arith.constant 502 : i32
    %53 = tpu.dynamic_rotate %1 by %c502_i32 dim 1 : vector<1x512xf32>, i32 -> vector<1x512xf32>
    %54 = vector.broadcast %52 : vector<32x1xf32> to vector<32x512xf32>
    %55 = vector.broadcast %53 : vector<1x512xf32> to vector<32x512xf32>
    %56 = arith.mulf %54, %55 : vector<32x512xf32>
    %57 = arith.addf %50, %56 : vector<32x512xf32>
    %c8 = arith.constant 8 : index
    %c0_20 = arith.constant 0 : index
    %c0_21 = arith.constant 0 : index
    %58 = vector.load %arg3[%c8, %c0_20, %c0_21] : memref<9x32x1xf32, #tpu.memory_space<vmem>>, vector<1x32x1xf32>
    %59 = vector.shape_cast %58 : vector<1x32x1xf32> to vector<32x1xf32>
    %c501_i32 = arith.constant 501 : i32
    %60 = tpu.dynamic_rotate %1 by %c501_i32 dim 1 : vector<1x512xf32>, i32 -> vector<1x512xf32>
    %61 = vector.broadcast %59 : vector<32x1xf32> to vector<32x512xf32>
    %62 = vector.broadcast %60 : vector<1x512xf32> to vector<32x512xf32>
    %63 = arith.mulf %61, %62 : vector<32x512xf32>
    %64 = arith.addf %57, %63 : vector<32x512xf32>
    %c0_22 = arith.constant 0 : index
    %c0_23 = arith.constant 0 : index
    %c0_24 = arith.constant 0 : index
    %65 = vector.load %arg6[%c0_22, %c0_23, %c0_24] : memref<4x32x3xf32, #tpu.memory_space<vmem>>, vector<1x32x3xf32>
    %66 = vector.shape_cast %65 : vector<1x32x3xf32> to vector<32x3xf32>
    %67 = vector.extract_strided_slice %66 {offsets = [0, 0], sizes = [32, 1], strides = [1, 1]} : vector<32x3xf32> to vector<32x1xf32>
    %68 = vector.broadcast %67 : vector<32x1xf32> to vector<32x512xf32>
    %69 = arith.addf %64, %68 : vector<32x512xf32>
    %cst_25 = arith.constant 0.000000e+00 : f32
    %70 = vector.broadcast %cst_25 : f32 to vector<32x512xf32>
    %71 = arith.maximumf %69, %70 : vector<32x512xf32>
    %72 = vector.extract_strided_slice %66 {offsets = [0, 1], sizes = [32, 1], strides = [1, 1]} : vector<32x3xf32> to vector<32x1xf32>
    %73 = vector.broadcast %72 : vector<32x1xf32> to vector<32x512xf32>
    %74 = arith.mulf %71, %73 : vector<32x512xf32>
    %75 = vector.extract_strided_slice %66 {offsets = [0, 2], sizes = [32, 1], strides = [1, 1]} : vector<32x3xf32> to vector<32x1xf32>
    %76 = vector.broadcast %75 : vector<32x1xf32> to vector<32x512xf32>
    %77 = arith.addf %74, %76 : vector<32x512xf32>
    %78 = vector.broadcast %0 : vector<1x512xf32> to vector<32x512xf32>
    %79 = arith.mulf %77, %78 : vector<32x512xf32>
    %cst_26 = arith.constant 0.000000e+00 : f32
    %80 = vector.broadcast %cst_26 : f32 to vector<32x512xf32>
    %c0_27 = arith.constant 0 : index
    %c0_28 = arith.constant 0 : index
    %c0_29 = arith.constant 0 : index
    %c0_30 = arith.constant 0 : index
    %81 = vector.load %arg4[%c0_27, %c0_28, %c0_29, %c0_30] : memref<3x9x32x32xbf16, #tpu.memory_space<vmem>>, vector<1x1x32x32xbf16>
    %82 = vector.shape_cast %81 : vector<1x1x32x32xbf16> to vector<32x32xbf16>
    %c11_i32_31 = arith.constant 11 : i32
    %83 = tpu.dynamic_rotate %79 by %c11_i32_31 dim 1 : vector<32x512xf32>, i32 -> vector<32x512xf32>
    %84 = arith.truncf %83 : vector<32x512xf32> to vector<32x512xbf16>
    %cst_32 = arith.constant dense<0.000000e+00> : vector<32x512xf32>
    %85 = tpu.matmul %82, %84, %cst_32 {dimension_numbers = #tpu.dot_dimension_numbers<[1], [0], [0], [1], [0, 0, 1, 1], [], []>} : vector<32x32xbf16>, vector<32x512xbf16>, vector<32x512xf32> -> vector<32x512xf32>
    %86 = arith.addf %80, %85 : vector<32x512xf32>
    %c0_33 = arith.constant 0 : index
    %c1_34 = arith.constant 1 : index
    %c0_35 = arith.constant 0 : index
    %c0_36 = arith.constant 0 : index
    %87 = vector.load %arg4[%c0_33, %c1_34, %c0_35, %c0_36] : memref<3x9x32x32xbf16, #tpu.memory_space<vmem>>, vector<1x1x32x32xbf16>
    %88 = vector.shape_cast %87 : vector<1x1x32x32xbf16> to vector<32x32xbf16>
    %c10_i32_37 = arith.constant 10 : i32
    %89 = tpu.dynamic_rotate %79 by %c10_i32_37 dim 1 : vector<32x512xf32>, i32 -> vector<32x512xf32>
    %90 = arith.truncf %89 : vector<32x512xf32> to vector<32x512xbf16>
    %cst_38 = arith.constant dense<0.000000e+00> : vector<32x512xf32>
    %91 = tpu.matmul %88, %90, %cst_38 {dimension_numbers = #tpu.dot_dimension_numbers<[1], [0], [0], [1], [0, 0, 1, 1], [], []>} : vector<32x32xbf16>, vector<32x512xbf16>, vector<32x512xf32> -> vector<32x512xf32>
    %92 = arith.addf %86, %91 : vector<32x512xf32>
    %c0_39 = arith.constant 0 : index
    %c2_40 = arith.constant 2 : index
    %c0_41 = arith.constant 0 : index
    %c0_42 = arith.constant 0 : index
    %93 = vector.load %arg4[%c0_39, %c2_40, %c0_41, %c0_42] : memref<3x9x32x32xbf16, #tpu.memory_space<vmem>>, vector<1x1x32x32xbf16>
    %94 = vector.shape_cast %93 : vector<1x1x32x32xbf16> to vector<32x32xbf16>
    %c9_i32_43 = arith.constant 9 : i32
    %95 = tpu.dynamic_rotate %79 by %c9_i32_43 dim 1 : vector<32x512xf32>, i32 -> vector<32x512xf32>
    %96 = arith.truncf %95 : vector<32x512xf32> to vector<32x512xbf16>
    %cst_44 = arith.constant dense<0.000000e+00> : vector<32x512xf32>
    %97 = tpu.matmul %94, %96, %cst_44 {dimension_numbers = #tpu.dot_dimension_numbers<[1], [0], [0], [1], [0, 0, 1, 1], [], []>} : vector<32x32xbf16>, vector<32x512xbf16>, vector<32x512xf32> -> vector<32x512xf32>
    %98 = arith.addf %92, %97 : vector<32x512xf32>
    %c0_45 = arith.constant 0 : index
    %c3_46 = arith.constant 3 : index
    %c0_47 = arith.constant 0 : index
    %c0_48 = arith.constant 0 : index
    %99 = vector.load %arg4[%c0_45, %c3_46, %c0_47, %c0_48] : memref<3x9x32x32xbf16, #tpu.memory_space<vmem>>, vector<1x1x32x32xbf16>
    %100 = vector.shape_cast %99 : vector<1x1x32x32xbf16> to vector<32x32xbf16>
    %c1_i32_49 = arith.constant 1 : i32
    %101 = tpu.dynamic_rotate %79 by %c1_i32_49 dim 1 : vector<32x512xf32>, i32 -> vector<32x512xf32>
    %102 = arith.truncf %101 : vector<32x512xf32> to vector<32x512xbf16>
    %cst_50 = arith.constant dense<0.000000e+00> : vector<32x512xf32>
    %103 = tpu.matmul %100, %102, %cst_50 {dimension_numbers = #tpu.dot_dimension_numbers<[1], [0], [0], [1], [0, 0, 1, 1], [], []>} : vector<32x32xbf16>, vector<32x512xbf16>, vector<32x512xf32> -> vector<32x512xf32>
    %104 = arith.addf %98, %103 : vector<32x512xf32>
    %c0_51 = arith.constant 0 : index
    %c4_52 = arith.constant 4 : index
    %c0_53 = arith.constant 0 : index
    %c0_54 = arith.constant 0 : index
    %105 = vector.load %arg4[%c0_51, %c4_52, %c0_53, %c0_54] : memref<3x9x32x32xbf16, #tpu.memory_space<vmem>>, vector<1x1x32x32xbf16>
    %106 = vector.shape_cast %105 : vector<1x1x32x32xbf16> to vector<32x32xbf16>
    %107 = arith.truncf %79 : vector<32x512xf32> to vector<32x512xbf16>
    %cst_55 = arith.constant dense<0.000000e+00> : vector<32x512xf32>
    %108 = tpu.matmul %106, %107, %cst_55 {dimension_numbers = #tpu.dot_dimension_numbers<[1], [0], [0], [1], [0, 0, 1, 1], [], []>} : vector<32x32xbf16>, vector<32x512xbf16>, vector<32x512xf32> -> vector<32x512xf32>
    %109 = arith.addf %104, %108 : vector<32x512xf32>
    %c0_56 = arith.constant 0 : index
    %c5_57 = arith.constant 5 : index
    %c0_58 = arith.constant 0 : index
    %c0_59 = arith.constant 0 : index
    %110 = vector.load %arg4[%c0_56, %c5_57, %c0_58, %c0_59] : memref<3x9x32x32xbf16, #tpu.memory_space<vmem>>, vector<1x1x32x32xbf16>
    %111 = vector.shape_cast %110 : vector<1x1x32x32xbf16> to vector<32x32xbf16>
    %c511_i32_60 = arith.constant 511 : i32
    %112 = tpu.dynamic_rotate %79 by %c511_i32_60 dim 1 : vector<32x512xf32>, i32 -> vector<32x512xf32>
    %113 = arith.truncf %112 : vector<32x512xf32> to vector<32x512xbf16>
    %cst_61 = arith.constant dense<0.000000e+00> : vector<32x512xf32>
    %114 = tpu.matmul %111, %113, %cst_61 {dimension_numbers = #tpu.dot_dimension_numbers<[1], [0], [0], [1], [0, 0, 1, 1], [], []>} : vector<32x32xbf16>, vector<32x512xbf16>, vector<32x512xf32> -> vector<32x512xf32>
    %115 = arith.addf %109, %114 : vector<32x512xf32>
    %c0_62 = arith.constant 0 : index
    %c6_63 = arith.constant 6 : index
    %c0_64 = arith.constant 0 : index
    %c0_65 = arith.constant 0 : index
    %116 = vector.load %arg4[%c0_62, %c6_63, %c0_64, %c0_65] : memref<3x9x32x32xbf16, #tpu.memory_space<vmem>>, vector<1x1x32x32xbf16>
    %117 = vector.shape_cast %116 : vector<1x1x32x32xbf16> to vector<32x32xbf16>
    %c503_i32_66 = arith.constant 503 : i32
    %118 = tpu.dynamic_rotate %79 by %c503_i32_66 dim 1 : vector<32x512xf32>, i32 -> vector<32x512xf32>
    %119 = arith.truncf %118 : vector<32x512xf32> to vector<32x512xbf16>
    %cst_67 = arith.constant dense<0.000000e+00> : vector<32x512xf32>
    %120 = tpu.matmul %117, %119, %cst_67 {dimension_numbers = #tpu.dot_dimension_numbers<[1], [0], [0], [1], [0, 0, 1, 1], [], []>} : vector<32x32xbf16>, vector<32x512xbf16>, vector<32x512xf32> -> vector<32x512xf32>
    %121 = arith.addf %115, %120 : vector<32x512xf32>
    %c0_68 = arith.constant 0 : index
    %c7_69 = arith.constant 7 : index
    %c0_70 = arith.constant 0 : index
    %c0_71 = arith.constant 0 : index
    %122 = vector.load %arg4[%c0_68, %c7_69, %c0_70, %c0_71] : memref<3x9x32x32xbf16, #tpu.memory_space<vmem>>, vector<1x1x32x32xbf16>
    %123 = vector.shape_cast %122 : vector<1x1x32x32xbf16> to vector<32x32xbf16>
    %c502_i32_72 = arith.constant 502 : i32
    %124 = tpu.dynamic_rotate %79 by %c502_i32_72 dim 1 : vector<32x512xf32>, i32 -> vector<32x512xf32>
    %125 = arith.truncf %124 : vector<32x512xf32> to vector<32x512xbf16>
    %cst_73 = arith.constant dense<0.000000e+00> : vector<32x512xf32>
    %126 = tpu.matmul %123, %125, %cst_73 {dimension_numbers = #tpu.dot_dimension_numbers<[1], [0], [0], [1], [0, 0, 1, 1], [], []>} : vector<32x32xbf16>, vector<32x512xbf16>, vector<32x512xf32> -> vector<32x512xf32>
    %127 = arith.addf %121, %126 : vector<32x512xf32>
    %c0_74 = arith.constant 0 : index
    %c8_75 = arith.constant 8 : index
    %c0_76 = arith.constant 0 : index
    %c0_77 = arith.constant 0 : index
    %128 = vector.load %arg4[%c0_74, %c8_75, %c0_76, %c0_77] : memref<3x9x32x32xbf16, #tpu.memory_space<vmem>>, vector<1x1x32x32xbf16>
    %129 = vector.shape_cast %128 : vector<1x1x32x32xbf16> to vector<32x32xbf16>
    %c501_i32_78 = arith.constant 501 : i32
    %130 = tpu.dynamic_rotate %79 by %c501_i32_78 dim 1 : vector<32x512xf32>, i32 -> vector<32x512xf32>
    %131 = arith.truncf %130 : vector<32x512xf32> to vector<32x512xbf16>
    %cst_79 = arith.constant dense<0.000000e+00> : vector<32x512xf32>
    %132 = tpu.matmul %129, %131, %cst_79 {dimension_numbers = #tpu.dot_dimension_numbers<[1], [0], [0], [1], [0, 0, 1, 1], [], []>} : vector<32x32xbf16>, vector<32x512xbf16>, vector<32x512xf32> -> vector<32x512xf32>
    %133 = arith.addf %127, %132 : vector<32x512xf32>
    %c1_80 = arith.constant 1 : index
    %c0_81 = arith.constant 0 : index
    %c0_82 = arith.constant 0 : index
    %134 = vector.load %arg6[%c1_80, %c0_81, %c0_82] : memref<4x32x3xf32, #tpu.memory_space<vmem>>, vector<1x32x3xf32>
    %135 = vector.shape_cast %134 : vector<1x32x3xf32> to vector<32x3xf32>
    %136 = vector.extract_strided_slice %135 {offsets = [0, 0], sizes = [32, 1], strides = [1, 1]} : vector<32x3xf32> to vector<32x1xf32>
    %137 = vector.broadcast %136 : vector<32x1xf32> to vector<32x512xf32>
    %138 = arith.addf %133, %137 : vector<32x512xf32>
    %cst_83 = arith.constant 0.000000e+00 : f32
    %139 = vector.broadcast %cst_83 : f32 to vector<32x512xf32>
    %140 = arith.maximumf %138, %139 : vector<32x512xf32>
    %141 = vector.extract_strided_slice %135 {offsets = [0, 1], sizes = [32, 1], strides = [1, 1]} : vector<32x3xf32> to vector<32x1xf32>
    %142 = vector.broadcast %141 : vector<32x1xf32> to vector<32x512xf32>
    %143 = arith.mulf %140, %142 : vector<32x512xf32>
    %144 = vector.extract_strided_slice %135 {offsets = [0, 2], sizes = [32, 1], strides = [1, 1]} : vector<32x3xf32> to vector<32x1xf32>
    %145 = vector.broadcast %144 : vector<32x1xf32> to vector<32x512xf32>
    %146 = arith.addf %143, %145 : vector<32x512xf32>
    %147 = vector.broadcast %0 : vector<1x512xf32> to vector<32x512xf32>
    %148 = arith.mulf %146, %147 : vector<32x512xf32>
    %cst_84 = arith.constant 0.000000e+00 : f32
    %149 = vector.broadcast %cst_84 : f32 to vector<32x512xf32>
    %c1_85 = arith.constant 1 : index
    %c0_86 = arith.constant 0 : index
    %c0_87 = arith.constant 0 : index
    %c0_88 = arith.constant 0 : index
    %150 = vector.load %arg4[%c1_85, %c0_86, %c0_87, %c0_88] : memref<3x9x32x32xbf16, #tpu.memory_space<vmem>>, vector<1x1x32x32xbf16>
    %151 = vector.shape_cast %150 : vector<1x1x32x32xbf16> to vector<32x32xbf16>
    %c11_i32_89 = arith.constant 11 : i32
    %152 = tpu.dynamic_rotate %148 by %c11_i32_89 dim 1 : vector<32x512xf32>, i32 -> vector<32x512xf32>
    %153 = arith.truncf %152 : vector<32x512xf32> to vector<32x512xbf16>
    %cst_90 = arith.constant dense<0.000000e+00> : vector<32x512xf32>
    %154 = tpu.matmul %151, %153, %cst_90 {dimension_numbers = #tpu.dot_dimension_numbers<[1], [0], [0], [1], [0, 0, 1, 1], [], []>} : vector<32x32xbf16>, vector<32x512xbf16>, vector<32x512xf32> -> vector<32x512xf32>
    %155 = arith.addf %149, %154 : vector<32x512xf32>
    %c1_91 = arith.constant 1 : index
    %c1_92 = arith.constant 1 : index
    %c0_93 = arith.constant 0 : index
    %c0_94 = arith.constant 0 : index
    %156 = vector.load %arg4[%c1_91, %c1_92, %c0_93, %c0_94] : memref<3x9x32x32xbf16, #tpu.memory_space<vmem>>, vector<1x1x32x32xbf16>
    %157 = vector.shape_cast %156 : vector<1x1x32x32xbf16> to vector<32x32xbf16>
    %c10_i32_95 = arith.constant 10 : i32
    %158 = tpu.dynamic_rotate %148 by %c10_i32_95 dim 1 : vector<32x512xf32>, i32 -> vector<32x512xf32>
    %159 = arith.truncf %158 : vector<32x512xf32> to vector<32x512xbf16>
    %cst_96 = arith.constant dense<0.000000e+00> : vector<32x512xf32>
    %160 = tpu.matmul %157, %159, %cst_96 {dimension_numbers = #tpu.dot_dimension_numbers<[1], [0], [0], [1], [0, 0, 1, 1], [], []>} : vector<32x32xbf16>, vector<32x512xbf16>, vector<32x512xf32> -> vector<32x512xf32>
    %161 = arith.addf %155, %160 : vector<32x512xf32>
    %c1_97 = arith.constant 1 : index
    %c2_98 = arith.constant 2 : index
    %c0_99 = arith.constant 0 : index
    %c0_100 = arith.constant 0 : index
    %162 = vector.load %arg4[%c1_97, %c2_98, %c0_99, %c0_100] : memref<3x9x32x32xbf16, #tpu.memory_space<vmem>>, vector<1x1x32x32xbf16>
    %163 = vector.shape_cast %162 : vector<1x1x32x32xbf16> to vector<32x32xbf16>
    %c9_i32_101 = arith.constant 9 : i32
    %164 = tpu.dynamic_rotate %148 by %c9_i32_101 dim 1 : vector<32x512xf32>, i32 -> vector<32x512xf32>
    %165 = arith.truncf %164 : vector<32x512xf32> to vector<32x512xbf16>
    %cst_102 = arith.constant dense<0.000000e+00> : vector<32x512xf32>
    %166 = tpu.matmul %163, %165, %cst_102 {dimension_numbers = #tpu.dot_dimension_numbers<[1], [0], [0], [1], [0, 0, 1, 1], [], []>} : vector<32x32xbf16>, vector<32x512xbf16>, vector<32x512xf32> -> vector<32x512xf32>
    %167 = arith.addf %161, %166 : vector<32x512xf32>
    %c1_103 = arith.constant 1 : index
    %c3_104 = arith.constant 3 : index
    %c0_105 = arith.constant 0 : index
    %c0_106 = arith.constant 0 : index
    %168 = vector.load %arg4[%c1_103, %c3_104, %c0_105, %c0_106] : memref<3x9x32x32xbf16, #tpu.memory_space<vmem>>, vector<1x1x32x32xbf16>
    %169 = vector.shape_cast %168 : vector<1x1x32x32xbf16> to vector<32x32xbf16>
    %c1_i32_107 = arith.constant 1 : i32
    %170 = tpu.dynamic_rotate %148 by %c1_i32_107 dim 1 : vector<32x512xf32>, i32 -> vector<32x512xf32>
    %171 = arith.truncf %170 : vector<32x512xf32> to vector<32x512xbf16>
    %cst_108 = arith.constant dense<0.000000e+00> : vector<32x512xf32>
    %172 = tpu.matmul %169, %171, %cst_108 {dimension_numbers = #tpu.dot_dimension_numbers<[1], [0], [0], [1], [0, 0, 1, 1], [], []>} : vector<32x32xbf16>, vector<32x512xbf16>, vector<32x512xf32> -> vector<32x512xf32>
    %173 = arith.addf %167, %172 : vector<32x512xf32>
    %c1_109 = arith.constant 1 : index
    %c4_110 = arith.constant 4 : index
    %c0_111 = arith.constant 0 : index
    %c0_112 = arith.constant 0 : index
    %174 = vector.load %arg4[%c1_109, %c4_110, %c0_111, %c0_112] : memref<3x9x32x32xbf16, #tpu.memory_space<vmem>>, vector<1x1x32x32xbf16>
    %175 = vector.shape_cast %174 : vector<1x1x32x32xbf16> to vector<32x32xbf16>
    %176 = arith.truncf %148 : vector<32x512xf32> to vector<32x512xbf16>
    %cst_113 = arith.constant dense<0.000000e+00> : vector<32x512xf32>
    %177 = tpu.matmul %175, %176, %cst_113 {dimension_numbers = #tpu.dot_dimension_numbers<[1], [0], [0], [1], [0, 0, 1, 1], [], []>} : vector<32x32xbf16>, vector<32x512xbf16>, vector<32x512xf32> -> vector<32x512xf32>
    %178 = arith.addf %173, %177 : vector<32x512xf32>
    %c1_114 = arith.constant 1 : index
    %c5_115 = arith.constant 5 : index
    %c0_116 = arith.constant 0 : index
    %c0_117 = arith.constant 0 : index
    %179 = vector.load %arg4[%c1_114, %c5_115, %c0_116, %c0_117] : memref<3x9x32x32xbf16, #tpu.memory_space<vmem>>, vector<1x1x32x32xbf16>
    %180 = vector.shape_cast %179 : vector<1x1x32x32xbf16> to vector<32x32xbf16>
    %c511_i32_118 = arith.constant 511 : i32
    %181 = tpu.dynamic_rotate %148 by %c511_i32_118 dim 1 : vector<32x512xf32>, i32 -> vector<32x512xf32>
    %182 = arith.truncf %181 : vector<32x512xf32> to vector<32x512xbf16>
    %cst_119 = arith.constant dense<0.000000e+00> : vector<32x512xf32>
    %183 = tpu.matmul %180, %182, %cst_119 {dimension_numbers = #tpu.dot_dimension_numbers<[1], [0], [0], [1], [0, 0, 1, 1], [], []>} : vector<32x32xbf16>, vector<32x512xbf16>, vector<32x512xf32> -> vector<32x512xf32>
    %184 = arith.addf %178, %183 : vector<32x512xf32>
    %c1_120 = arith.constant 1 : index
    %c6_121 = arith.constant 6 : index
    %c0_122 = arith.constant 0 : index
    %c0_123 = arith.constant 0 : index
    %185 = vector.load %arg4[%c1_120, %c6_121, %c0_122, %c0_123] : memref<3x9x32x32xbf16, #tpu.memory_space<vmem>>, vector<1x1x32x32xbf16>
    %186 = vector.shape_cast %185 : vector<1x1x32x32xbf16> to vector<32x32xbf16>
    %c503_i32_124 = arith.constant 503 : i32
    %187 = tpu.dynamic_rotate %148 by %c503_i32_124 dim 1 : vector<32x512xf32>, i32 -> vector<32x512xf32>
    %188 = arith.truncf %187 : vector<32x512xf32> to vector<32x512xbf16>
    %cst_125 = arith.constant dense<0.000000e+00> : vector<32x512xf32>
    %189 = tpu.matmul %186, %188, %cst_125 {dimension_numbers = #tpu.dot_dimension_numbers<[1], [0], [0], [1], [0, 0, 1, 1], [], []>} : vector<32x32xbf16>, vector<32x512xbf16>, vector<32x512xf32> -> vector<32x512xf32>
    %190 = arith.addf %184, %189 : vector<32x512xf32>
    %c1_126 = arith.constant 1 : index
    %c7_127 = arith.constant 7 : index
    %c0_128 = arith.constant 0 : index
    %c0_129 = arith.constant 0 : index
    %191 = vector.load %arg4[%c1_126, %c7_127, %c0_128, %c0_129] : memref<3x9x32x32xbf16, #tpu.memory_space<vmem>>, vector<1x1x32x32xbf16>
    %192 = vector.shape_cast %191 : vector<1x1x32x32xbf16> to vector<32x32xbf16>
    %c502_i32_130 = arith.constant 502 : i32
    %193 = tpu.dynamic_rotate %148 by %c502_i32_130 dim 1 : vector<32x512xf32>, i32 -> vector<32x512xf32>
    %194 = arith.truncf %193 : vector<32x512xf32> to vector<32x512xbf16>
    %cst_131 = arith.constant dense<0.000000e+00> : vector<32x512xf32>
    %195 = tpu.matmul %192, %194, %cst_131 {dimension_numbers = #tpu.dot_dimension_numbers<[1], [0], [0], [1], [0, 0, 1, 1], [], []>} : vector<32x32xbf16>, vector<32x512xbf16>, vector<32x512xf32> -> vector<32x512xf32>
    %196 = arith.addf %190, %195 : vector<32x512xf32>
    %c1_132 = arith.constant 1 : index
    %c8_133 = arith.constant 8 : index
    %c0_134 = arith.constant 0 : index
    %c0_135 = arith.constant 0 : index
    %197 = vector.load %arg4[%c1_132, %c8_133, %c0_134, %c0_135] : memref<3x9x32x32xbf16, #tpu.memory_space<vmem>>, vector<1x1x32x32xbf16>
    %198 = vector.shape_cast %197 : vector<1x1x32x32xbf16> to vector<32x32xbf16>
    %c501_i32_136 = arith.constant 501 : i32
    %199 = tpu.dynamic_rotate %148 by %c501_i32_136 dim 1 : vector<32x512xf32>, i32 -> vector<32x512xf32>
    %200 = arith.truncf %199 : vector<32x512xf32> to vector<32x512xbf16>
    %cst_137 = arith.constant dense<0.000000e+00> : vector<32x512xf32>
    %201 = tpu.matmul %198, %200, %cst_137 {dimension_numbers = #tpu.dot_dimension_numbers<[1], [0], [0], [1], [0, 0, 1, 1], [], []>} : vector<32x32xbf16>, vector<32x512xbf16>, vector<32x512xf32> -> vector<32x512xf32>
    %202 = arith.addf %196, %201 : vector<32x512xf32>
    %c2_138 = arith.constant 2 : index
    %c0_139 = arith.constant 0 : index
    %c0_140 = arith.constant 0 : index
    %203 = vector.load %arg6[%c2_138, %c0_139, %c0_140] : memref<4x32x3xf32, #tpu.memory_space<vmem>>, vector<1x32x3xf32>
    %204 = vector.shape_cast %203 : vector<1x32x3xf32> to vector<32x3xf32>
    %205 = vector.extract_strided_slice %204 {offsets = [0, 0], sizes = [32, 1], strides = [1, 1]} : vector<32x3xf32> to vector<32x1xf32>
    %206 = vector.broadcast %205 : vector<32x1xf32> to vector<32x512xf32>
    %207 = arith.addf %202, %206 : vector<32x512xf32>
    %cst_141 = arith.constant 0.000000e+00 : f32
    %208 = vector.broadcast %cst_141 : f32 to vector<32x512xf32>
    %209 = arith.maximumf %207, %208 : vector<32x512xf32>
    %210 = vector.extract_strided_slice %204 {offsets = [0, 1], sizes = [32, 1], strides = [1, 1]} : vector<32x3xf32> to vector<32x1xf32>
    %211 = vector.broadcast %210 : vector<32x1xf32> to vector<32x512xf32>
    %212 = arith.mulf %209, %211 : vector<32x512xf32>
    %213 = vector.extract_strided_slice %204 {offsets = [0, 2], sizes = [32, 1], strides = [1, 1]} : vector<32x3xf32> to vector<32x1xf32>
    %214 = vector.broadcast %213 : vector<32x1xf32> to vector<32x512xf32>
    %215 = arith.addf %212, %214 : vector<32x512xf32>
    %216 = vector.broadcast %0 : vector<1x512xf32> to vector<32x512xf32>
    %217 = arith.mulf %215, %216 : vector<32x512xf32>
    %cst_142 = arith.constant 0.000000e+00 : f32
    %218 = vector.broadcast %cst_142 : f32 to vector<32x512xf32>
    %c2_143 = arith.constant 2 : index
    %c0_144 = arith.constant 0 : index
    %c0_145 = arith.constant 0 : index
    %c0_146 = arith.constant 0 : index
    %219 = vector.load %arg4[%c2_143, %c0_144, %c0_145, %c0_146] : memref<3x9x32x32xbf16, #tpu.memory_space<vmem>>, vector<1x1x32x32xbf16>
    %220 = vector.shape_cast %219 : vector<1x1x32x32xbf16> to vector<32x32xbf16>
    %c11_i32_147 = arith.constant 11 : i32
    %221 = tpu.dynamic_rotate %217 by %c11_i32_147 dim 1 : vector<32x512xf32>, i32 -> vector<32x512xf32>
    %222 = arith.truncf %221 : vector<32x512xf32> to vector<32x512xbf16>
    %cst_148 = arith.constant dense<0.000000e+00> : vector<32x512xf32>
    %223 = tpu.matmul %220, %222, %cst_148 {dimension_numbers = #tpu.dot_dimension_numbers<[1], [0], [0], [1], [0, 0, 1, 1], [], []>} : vector<32x32xbf16>, vector<32x512xbf16>, vector<32x512xf32> -> vector<32x512xf32>
    %224 = arith.addf %218, %223 : vector<32x512xf32>
    %c2_149 = arith.constant 2 : index
    %c1_150 = arith.constant 1 : index
    %c0_151 = arith.constant 0 : index
    %c0_152 = arith.constant 0 : index
    %225 = vector.load %arg4[%c2_149, %c1_150, %c0_151, %c0_152] : memref<3x9x32x32xbf16, #tpu.memory_space<vmem>>, vector<1x1x32x32xbf16>
    %226 = vector.shape_cast %225 : vector<1x1x32x32xbf16> to vector<32x32xbf16>
    %c10_i32_153 = arith.constant 10 : i32
    %227 = tpu.dynamic_rotate %217 by %c10_i32_153 dim 1 : vector<32x512xf32>, i32 -> vector<32x512xf32>
    %228 = arith.truncf %227 : vector<32x512xf32> to vector<32x512xbf16>
    %cst_154 = arith.constant dense<0.000000e+00> : vector<32x512xf32>
    %229 = tpu.matmul %226, %228, %cst_154 {dimension_numbers = #tpu.dot_dimension_numbers<[1], [0], [0], [1], [0, 0, 1, 1], [], []>} : vector<32x32xbf16>, vector<32x512xbf16>, vector<32x512xf32> -> vector<32x512xf32>
    %230 = arith.addf %224, %229 : vector<32x512xf32>
    %c2_155 = arith.constant 2 : index
    %c2_156 = arith.constant 2 : index
    %c0_157 = arith.constant 0 : index
    %c0_158 = arith.constant 0 : index
    %231 = vector.load %arg4[%c2_155, %c2_156, %c0_157, %c0_158] : memref<3x9x32x32xbf16, #tpu.memory_space<vmem>>, vector<1x1x32x32xbf16>
    %232 = vector.shape_cast %231 : vector<1x1x32x32xbf16> to vector<32x32xbf16>
    %c9_i32_159 = arith.constant 9 : i32
    %233 = tpu.dynamic_rotate %217 by %c9_i32_159 dim 1 : vector<32x512xf32>, i32 -> vector<32x512xf32>
    %234 = arith.truncf %233 : vector<32x512xf32> to vector<32x512xbf16>
    %cst_160 = arith.constant dense<0.000000e+00> : vector<32x512xf32>
    %235 = tpu.matmul %232, %234, %cst_160 {dimension_numbers = #tpu.dot_dimension_numbers<[1], [0], [0], [1], [0, 0, 1, 1], [], []>} : vector<32x32xbf16>, vector<32x512xbf16>, vector<32x512xf32> -> vector<32x512xf32>
    %236 = arith.addf %230, %235 : vector<32x512xf32>
    %c2_161 = arith.constant 2 : index
    %c3_162 = arith.constant 3 : index
    %c0_163 = arith.constant 0 : index
    %c0_164 = arith.constant 0 : index
    %237 = vector.load %arg4[%c2_161, %c3_162, %c0_163, %c0_164] : memref<3x9x32x32xbf16, #tpu.memory_space<vmem>>, vector<1x1x32x32xbf16>
    %238 = vector.shape_cast %237 : vector<1x1x32x32xbf16> to vector<32x32xbf16>
    %c1_i32_165 = arith.constant 1 : i32
    %239 = tpu.dynamic_rotate %217 by %c1_i32_165 dim 1 : vector<32x512xf32>, i32 -> vector<32x512xf32>
    %240 = arith.truncf %239 : vector<32x512xf32> to vector<32x512xbf16>
    %cst_166 = arith.constant dense<0.000000e+00> : vector<32x512xf32>
    %241 = tpu.matmul %238, %240, %cst_166 {dimension_numbers = #tpu.dot_dimension_numbers<[1], [0], [0], [1], [0, 0, 1, 1], [], []>} : vector<32x32xbf16>, vector<32x512xbf16>, vector<32x512xf32> -> vector<32x512xf32>
    %242 = arith.addf %236, %241 : vector<32x512xf32>
    %c2_167 = arith.constant 2 : index
    %c4_168 = arith.constant 4 : index
    %c0_169 = arith.constant 0 : index
    %c0_170 = arith.constant 0 : index
    %243 = vector.load %arg4[%c2_167, %c4_168, %c0_169, %c0_170] : memref<3x9x32x32xbf16, #tpu.memory_space<vmem>>, vector<1x1x32x32xbf16>
    %244 = vector.shape_cast %243 : vector<1x1x32x32xbf16> to vector<32x32xbf16>
    %245 = arith.truncf %217 : vector<32x512xf32> to vector<32x512xbf16>
    %cst_171 = arith.constant dense<0.000000e+00> : vector<32x512xf32>
    %246 = tpu.matmul %244, %245, %cst_171 {dimension_numbers = #tpu.dot_dimension_numbers<[1], [0], [0], [1], [0, 0, 1, 1], [], []>} : vector<32x32xbf16>, vector<32x512xbf16>, vector<32x512xf32> -> vector<32x512xf32>
    %247 = arith.addf %242, %246 : vector<32x512xf32>
    %c2_172 = arith.constant 2 : index
    %c5_173 = arith.constant 5 : index
    %c0_174 = arith.constant 0 : index
    %c0_175 = arith.constant 0 : index
    %248 = vector.load %arg4[%c2_172, %c5_173, %c0_174, %c0_175] : memref<3x9x32x32xbf16, #tpu.memory_space<vmem>>, vector<1x1x32x32xbf16>
    %249 = vector.shape_cast %248 : vector<1x1x32x32xbf16> to vector<32x32xbf16>
    %c511_i32_176 = arith.constant 511 : i32
    %250 = tpu.dynamic_rotate %217 by %c511_i32_176 dim 1 : vector<32x512xf32>, i32 -> vector<32x512xf32>
    %251 = arith.truncf %250 : vector<32x512xf32> to vector<32x512xbf16>
    %cst_177 = arith.constant dense<0.000000e+00> : vector<32x512xf32>
    %252 = tpu.matmul %249, %251, %cst_177 {dimension_numbers = #tpu.dot_dimension_numbers<[1], [0], [0], [1], [0, 0, 1, 1], [], []>} : vector<32x32xbf16>, vector<32x512xbf16>, vector<32x512xf32> -> vector<32x512xf32>
    %253 = arith.addf %247, %252 : vector<32x512xf32>
    %c2_178 = arith.constant 2 : index
    %c6_179 = arith.constant 6 : index
    %c0_180 = arith.constant 0 : index
    %c0_181 = arith.constant 0 : index
    %254 = vector.load %arg4[%c2_178, %c6_179, %c0_180, %c0_181] : memref<3x9x32x32xbf16, #tpu.memory_space<vmem>>, vector<1x1x32x32xbf16>
    %255 = vector.shape_cast %254 : vector<1x1x32x32xbf16> to vector<32x32xbf16>
    %c503_i32_182 = arith.constant 503 : i32
    %256 = tpu.dynamic_rotate %217 by %c503_i32_182 dim 1 : vector<32x512xf32>, i32 -> vector<32x512xf32>
    %257 = arith.truncf %256 : vector<32x512xf32> to vector<32x512xbf16>
    %cst_183 = arith.constant dense<0.000000e+00> : vector<32x512xf32>
    %258 = tpu.matmul %255, %257, %cst_183 {dimension_numbers = #tpu.dot_dimension_numbers<[1], [0], [0], [1], [0, 0, 1, 1], [], []>} : vector<32x32xbf16>, vector<32x512xbf16>, vector<32x512xf32> -> vector<32x512xf32>
    %259 = arith.addf %253, %258 : vector<32x512xf32>
    %c2_184 = arith.constant 2 : index
    %c7_185 = arith.constant 7 : index
    %c0_186 = arith.constant 0 : index
    %c0_187 = arith.constant 0 : index
    %260 = vector.load %arg4[%c2_184, %c7_185, %c0_186, %c0_187] : memref<3x9x32x32xbf16, #tpu.memory_space<vmem>>, vector<1x1x32x32xbf16>
    %261 = vector.shape_cast %260 : vector<1x1x32x32xbf16> to vector<32x32xbf16>
    %c502_i32_188 = arith.constant 502 : i32
    %262 = tpu.dynamic_rotate %217 by %c502_i32_188 dim 1 : vector<32x512xf32>, i32 -> vector<32x512xf32>
    %263 = arith.truncf %262 : vector<32x512xf32> to vector<32x512xbf16>
    %cst_189 = arith.constant dense<0.000000e+00> : vector<32x512xf32>
    %264 = tpu.matmul %261, %263, %cst_189 {dimension_numbers = #tpu.dot_dimension_numbers<[1], [0], [0], [1], [0, 0, 1, 1], [], []>} : vector<32x32xbf16>, vector<32x512xbf16>, vector<32x512xf32> -> vector<32x512xf32>
    %265 = arith.addf %259, %264 : vector<32x512xf32>
    %c2_190 = arith.constant 2 : index
    %c8_191 = arith.constant 8 : index
    %c0_192 = arith.constant 0 : index
    %c0_193 = arith.constant 0 : index
    %266 = vector.load %arg4[%c2_190, %c8_191, %c0_192, %c0_193] : memref<3x9x32x32xbf16, #tpu.memory_space<vmem>>, vector<1x1x32x32xbf16>
    %267 = vector.shape_cast %266 : vector<1x1x32x32xbf16> to vector<32x32xbf16>
    %c501_i32_194 = arith.constant 501 : i32
    %268 = tpu.dynamic_rotate %217 by %c501_i32_194 dim 1 : vector<32x512xf32>, i32 -> vector<32x512xf32>
    %269 = arith.truncf %268 : vector<32x512xf32> to vector<32x512xbf16>
    %cst_195 = arith.constant dense<0.000000e+00> : vector<32x512xf32>
    %270 = tpu.matmul %267, %269, %cst_195 {dimension_numbers = #tpu.dot_dimension_numbers<[1], [0], [0], [1], [0, 0, 1, 1], [], []>} : vector<32x32xbf16>, vector<32x512xbf16>, vector<32x512xf32> -> vector<32x512xf32>
    %271 = arith.addf %265, %270 : vector<32x512xf32>
    %c3_196 = arith.constant 3 : index
    %c0_197 = arith.constant 0 : index
    %c0_198 = arith.constant 0 : index
    %272 = vector.load %arg6[%c3_196, %c0_197, %c0_198] : memref<4x32x3xf32, #tpu.memory_space<vmem>>, vector<1x32x3xf32>
    %273 = vector.shape_cast %272 : vector<1x32x3xf32> to vector<32x3xf32>
    %274 = vector.extract_strided_slice %273 {offsets = [0, 0], sizes = [32, 1], strides = [1, 1]} : vector<32x3xf32> to vector<32x1xf32>
    %275 = vector.broadcast %274 : vector<32x1xf32> to vector<32x512xf32>
    %276 = arith.addf %271, %275 : vector<32x512xf32>
    %cst_199 = arith.constant 0.000000e+00 : f32
    %277 = vector.broadcast %cst_199 : f32 to vector<32x512xf32>
    %278 = arith.maximumf %276, %277 : vector<32x512xf32>
    %279 = vector.extract_strided_slice %273 {offsets = [0, 1], sizes = [32, 1], strides = [1, 1]} : vector<32x3xf32> to vector<32x1xf32>
    %280 = vector.broadcast %279 : vector<32x1xf32> to vector<32x512xf32>
    %281 = arith.mulf %278, %280 : vector<32x512xf32>
    %282 = vector.extract_strided_slice %273 {offsets = [0, 2], sizes = [32, 1], strides = [1, 1]} : vector<32x3xf32> to vector<32x1xf32>
    %283 = vector.broadcast %282 : vector<32x1xf32> to vector<32x512xf32>
    %284 = arith.addf %281, %283 : vector<32x512xf32>
    %285 = vector.broadcast %0 : vector<1x512xf32> to vector<32x512xf32>
    %286 = arith.mulf %284, %285 : vector<32x512xf32>
    %cst_200 = arith.constant 0.000000e+00 : f32
    %287 = vector.broadcast %cst_200 : f32 to vector<8x512xf32>
    %c0_201 = arith.constant 0 : index
    %c0_202 = arith.constant 0 : index
    %c0_203 = arith.constant 0 : index
    %288 = vector.load %arg5[%c0_201, %c0_202, %c0_203] : memref<9x8x32xbf16, #tpu.memory_space<vmem>>, vector<1x8x32xbf16>
    %289 = vector.shape_cast %288 : vector<1x8x32xbf16> to vector<8x32xbf16>
    %c11_i32_204 = arith.constant 11 : i32
    %290 = tpu.dynamic_rotate %286 by %c11_i32_204 dim 1 : vector<32x512xf32>, i32 -> vector<32x512xf32>
    %291 = arith.truncf %290 : vector<32x512xf32> to vector<32x512xbf16>
    %cst_205 = arith.constant dense<0.000000e+00> : vector<8x512xf32>
    %292 = tpu.matmul %289, %291, %cst_205 {dimension_numbers = #tpu.dot_dimension_numbers<[1], [0], [0], [1], [0, 0, 1, 1], [], []>} : vector<8x32xbf16>, vector<32x512xbf16>, vector<8x512xf32> -> vector<8x512xf32>
    %293 = arith.addf %287, %292 : vector<8x512xf32>
    %c1_206 = arith.constant 1 : index
    %c0_207 = arith.constant 0 : index
    %c0_208 = arith.constant 0 : index
    %294 = vector.load %arg5[%c1_206, %c0_207, %c0_208] : memref<9x8x32xbf16, #tpu.memory_space<vmem>>, vector<1x8x32xbf16>
    %295 = vector.shape_cast %294 : vector<1x8x32xbf16> to vector<8x32xbf16>
    %c10_i32_209 = arith.constant 10 : i32
    %296 = tpu.dynamic_rotate %286 by %c10_i32_209 dim 1 : vector<32x512xf32>, i32 -> vector<32x512xf32>
    %297 = arith.truncf %296 : vector<32x512xf32> to vector<32x512xbf16>
    %cst_210 = arith.constant dense<0.000000e+00> : vector<8x512xf32>
    %298 = tpu.matmul %295, %297, %cst_210 {dimension_numbers = #tpu.dot_dimension_numbers<[1], [0], [0], [1], [0, 0, 1, 1], [], []>} : vector<8x32xbf16>, vector<32x512xbf16>, vector<8x512xf32> -> vector<8x512xf32>
    %299 = arith.addf %293, %298 : vector<8x512xf32>
    %c2_211 = arith.constant 2 : index
    %c0_212 = arith.constant 0 : index
    %c0_213 = arith.constant 0 : index
    %300 = vector.load %arg5[%c2_211, %c0_212, %c0_213] : memref<9x8x32xbf16, #tpu.memory_space<vmem>>, vector<1x8x32xbf16>
    %301 = vector.shape_cast %300 : vector<1x8x32xbf16> to vector<8x32xbf16>
    %c9_i32_214 = arith.constant 9 : i32
    %302 = tpu.dynamic_rotate %286 by %c9_i32_214 dim 1 : vector<32x512xf32>, i32 -> vector<32x512xf32>
    %303 = arith.truncf %302 : vector<32x512xf32> to vector<32x512xbf16>
    %cst_215 = arith.constant dense<0.000000e+00> : vector<8x512xf32>
    %304 = tpu.matmul %301, %303, %cst_215 {dimension_numbers = #tpu.dot_dimension_numbers<[1], [0], [0], [1], [0, 0, 1, 1], [], []>} : vector<8x32xbf16>, vector<32x512xbf16>, vector<8x512xf32> -> vector<8x512xf32>
    %305 = arith.addf %299, %304 : vector<8x512xf32>
    %c3_216 = arith.constant 3 : index
    %c0_217 = arith.constant 0 : index
    %c0_218 = arith.constant 0 : index
    %306 = vector.load %arg5[%c3_216, %c0_217, %c0_218] : memref<9x8x32xbf16, #tpu.memory_space<vmem>>, vector<1x8x32xbf16>
    %307 = vector.shape_cast %306 : vector<1x8x32xbf16> to vector<8x32xbf16>
    %c1_i32_219 = arith.constant 1 : i32
    %308 = tpu.dynamic_rotate %286 by %c1_i32_219 dim 1 : vector<32x512xf32>, i32 -> vector<32x512xf32>
    %309 = arith.truncf %308 : vector<32x512xf32> to vector<32x512xbf16>
    %cst_220 = arith.constant dense<0.000000e+00> : vector<8x512xf32>
    %310 = tpu.matmul %307, %309, %cst_220 {dimension_numbers = #tpu.dot_dimension_numbers<[1], [0], [0], [1], [0, 0, 1, 1], [], []>} : vector<8x32xbf16>, vector<32x512xbf16>, vector<8x512xf32> -> vector<8x512xf32>
    %311 = arith.addf %305, %310 : vector<8x512xf32>
    %c4_221 = arith.constant 4 : index
    %c0_222 = arith.constant 0 : index
    %c0_223 = arith.constant 0 : index
    %312 = vector.load %arg5[%c4_221, %c0_222, %c0_223] : memref<9x8x32xbf16, #tpu.memory_space<vmem>>, vector<1x8x32xbf16>
    %313 = vector.shape_cast %312 : vector<1x8x32xbf16> to vector<8x32xbf16>
    %314 = arith.truncf %286 : vector<32x512xf32> to vector<32x512xbf16>
    %cst_224 = arith.constant dense<0.000000e+00> : vector<8x512xf32>
    %315 = tpu.matmul %313, %314, %cst_224 {dimension_numbers = #tpu.dot_dimension_numbers<[1], [0], [0], [1], [0, 0, 1, 1], [], []>} : vector<8x32xbf16>, vector<32x512xbf16>, vector<8x512xf32> -> vector<8x512xf32>
    %316 = arith.addf %311, %315 : vector<8x512xf32>
    %c5_225 = arith.constant 5 : index
    %c0_226 = arith.constant 0 : index
    %c0_227 = arith.constant 0 : index
    %317 = vector.load %arg5[%c5_225, %c0_226, %c0_227] : memref<9x8x32xbf16, #tpu.memory_space<vmem>>, vector<1x8x32xbf16>
    %318 = vector.shape_cast %317 : vector<1x8x32xbf16> to vector<8x32xbf16>
    %c511_i32_228 = arith.constant 511 : i32
    %319 = tpu.dynamic_rotate %286 by %c511_i32_228 dim 1 : vector<32x512xf32>, i32 -> vector<32x512xf32>
    %320 = arith.truncf %319 : vector<32x512xf32> to vector<32x512xbf16>
    %cst_229 = arith.constant dense<0.000000e+00> : vector<8x512xf32>
    %321 = tpu.matmul %318, %320, %cst_229 {dimension_numbers = #tpu.dot_dimension_numbers<[1], [0], [0], [1], [0, 0, 1, 1], [], []>} : vector<8x32xbf16>, vector<32x512xbf16>, vector<8x512xf32> -> vector<8x512xf32>
    %322 = arith.addf %316, %321 : vector<8x512xf32>
    %c6_230 = arith.constant 6 : index
    %c0_231 = arith.constant 0 : index
    %c0_232 = arith.constant 0 : index
    %323 = vector.load %arg5[%c6_230, %c0_231, %c0_232] : memref<9x8x32xbf16, #tpu.memory_space<vmem>>, vector<1x8x32xbf16>
    %324 = vector.shape_cast %323 : vector<1x8x32xbf16> to vector<8x32xbf16>
    %c503_i32_233 = arith.constant 503 : i32
    %325 = tpu.dynamic_rotate %286 by %c503_i32_233 dim 1 : vector<32x512xf32>, i32 -> vector<32x512xf32>
    %326 = arith.truncf %325 : vector<32x512xf32> to vector<32x512xbf16>
    %cst_234 = arith.constant dense<0.000000e+00> : vector<8x512xf32>
    %327 = tpu.matmul %324, %326, %cst_234 {dimension_numbers = #tpu.dot_dimension_numbers<[1], [0], [0], [1], [0, 0, 1, 1], [], []>} : vector<8x32xbf16>, vector<32x512xbf16>, vector<8x512xf32> -> vector<8x512xf32>
    %328 = arith.addf %322, %327 : vector<8x512xf32>
    %c7_235 = arith.constant 7 : index
    %c0_236 = arith.constant 0 : index
    %c0_237 = arith.constant 0 : index
    %329 = vector.load %arg5[%c7_235, %c0_236, %c0_237] : memref<9x8x32xbf16, #tpu.memory_space<vmem>>, vector<1x8x32xbf16>
    %330 = vector.shape_cast %329 : vector<1x8x32xbf16> to vector<8x32xbf16>
    %c502_i32_238 = arith.constant 502 : i32
    %331 = tpu.dynamic_rotate %286 by %c502_i32_238 dim 1 : vector<32x512xf32>, i32 -> vector<32x512xf32>
    %332 = arith.truncf %331 : vector<32x512xf32> to vector<32x512xbf16>
    %cst_239 = arith.constant dense<0.000000e+00> : vector<8x512xf32>
    %333 = tpu.matmul %330, %332, %cst_239 {dimension_numbers = #tpu.dot_dimension_numbers<[1], [0], [0], [1], [0, 0, 1, 1], [], []>} : vector<8x32xbf16>, vector<32x512xbf16>, vector<8x512xf32> -> vector<8x512xf32>
    %334 = arith.addf %328, %333 : vector<8x512xf32>
    %c8_240 = arith.constant 8 : index
    %c0_241 = arith.constant 0 : index
    %c0_242 = arith.constant 0 : index
    %335 = vector.load %arg5[%c8_240, %c0_241, %c0_242] : memref<9x8x32xbf16, #tpu.memory_space<vmem>>, vector<1x8x32xbf16>
    %336 = vector.shape_cast %335 : vector<1x8x32xbf16> to vector<8x32xbf16>
    %c501_i32_243 = arith.constant 501 : i32
    %337 = tpu.dynamic_rotate %286 by %c501_i32_243 dim 1 : vector<32x512xf32>, i32 -> vector<32x512xf32>
    %338 = arith.truncf %337 : vector<32x512xf32> to vector<32x512xbf16>
    %cst_244 = arith.constant dense<0.000000e+00> : vector<8x512xf32>
    %339 = tpu.matmul %336, %338, %cst_244 {dimension_numbers = #tpu.dot_dimension_numbers<[1], [0], [0], [1], [0, 0, 1, 1], [], []>} : vector<8x32xbf16>, vector<32x512xbf16>, vector<8x512xf32> -> vector<8x512xf32>
    %340 = arith.addf %334, %339 : vector<8x512xf32>
    %341 = vector.extract_strided_slice %340 {offsets = [0, 0], sizes = [1, 512], strides = [1, 1]} : vector<8x512xf32> to vector<1x512xf32>
    %c0_245 = arith.constant 0 : index
    %c0_246 = arith.constant 0 : index
    %342 = vector.load %arg7[%c0_245, %c0_246] : memref<1x1xf32, #tpu.memory_space<vmem>>, vector<1x1xf32>
    %343 = vector.broadcast %342 : vector<1x1xf32> to vector<1x512xf32>
    %344 = arith.addf %341, %343 : vector<1x512xf32>
    %c0_247 = arith.constant 0 : index
    %c0_248 = arith.constant 0 : index
    %345 = vector.load %arg8[%c0_247, %c0_248] : memref<1x512xf32, #tpu.memory_space<vmem>>, vector<1x512xf32>
    tpu.vector_store %arg8[%c0_247, %c0_248], %344 {strides = array<i32>} : memref<1x512xf32, #tpu.memory_space<vmem>>, vector<1x512xf32>,
    return
  }
  func.func @transform_0(%arg0: i32) -> (i32, i32) {
    %c0_i32 = arith.constant 0 : i32
    %c0_i32_0 = arith.constant 0 : i32
    return %c0_i32, %arg0 : i32, i32
  }
  func.func @transform_1(%arg0: i32) -> (i32, i32) {
    %c0_i32 = arith.constant 0 : i32
    %c0_i32_0 = arith.constant 0 : i32
    %c0_i32_1 = arith.constant 0 : i32
    return %c0_i32, %c0_i32_0 : i32, i32
  }
  func.func @transform_2(%arg0: i32) -> (i32, i32, i32) {
    %c0_i32 = arith.constant 0 : i32
    %c0_i32_0 = arith.constant 0 : i32
    %c0_i32_1 = arith.constant 0 : i32
    %c0_i32_2 = arith.constant 0 : i32
    return %c0_i32, %c0_i32_0, %c0_i32_1 : i32, i32, i32
  }
  func.func @transform_3(%arg0: i32) -> (i32, i32, i32, i32) {
    %c0_i32 = arith.constant 0 : i32
    %c0_i32_0 = arith.constant 0 : i32
    %c0_i32_1 = arith.constant 0 : i32
    %c0_i32_2 = arith.constant 0 : i32
    %c0_i32_3 = arith.constant 0 : i32
    return %c0_i32, %c0_i32_0, %c0_i32_1, %c0_i32_2 : i32, i32, i32, i32
  }
  func.func @transform_4(%arg0: i32) -> (i32, i32, i32) {
    %c0_i32 = arith.constant 0 : i32
    %c0_i32_0 = arith.constant 0 : i32
    %c0_i32_1 = arith.constant 0 : i32
    %c0_i32_2 = arith.constant 0 : i32
    return %c0_i32, %c0_i32_0, %c0_i32_1 : i32, i32, i32
  }
  func.func @transform_5(%arg0: i32) -> (i32, i32, i32) {
    %c0_i32 = arith.constant 0 : i32
    %c0_i32_0 = arith.constant 0 : i32
    %c0_i32_1 = arith.constant 0 : i32
    %c0_i32_2 = arith.constant 0 : i32
    return %c0_i32, %c0_i32_0, %c0_i32_1 : i32, i32, i32
  }
  func.func @transform_6(%arg0: i32) -> (i32, i32) {
    %c0_i32 = arith.constant 0 : i32
    %c0_i32_0 = arith.constant 0 : i32
    %c0_i32_1 = arith.constant 0 : i32
    return %c0_i32, %c0_i32_0 : i32, i32
  }
  func.func @transform_7(%arg0: i32) -> (i32, i32) {
    %c0_i32 = arith.constant 0 : i32
    %c0_i32_0 = arith.constant 0 : i32
    return %c0_i32, %arg0 : i32, i32
  }
}

</mosaic_0001>

<bundles_post_ra>
// kernel: tile.8
= control target key start
LH: loop header
LB: loop body
LE: loop exit
PB: predicated region body
PF: predicated region fallthrough
CT: control target
= control target key end

     0   :  { %s22_s0 = inlined_call_operand.vmem [shape: f32[128], index: 0, kind: input, shape index: {}]   ;;  %s23_s1 = inlined_call_operand.vmem [shape: f32[4,128], index: 1, kind: output, shape index: {}]  }
   0x1   :  { %v4_v0 = vld [vmem:[%s22_s0] ss:$0 sm:$0xff] }
   0x2   :  { %5 = vst [vmem:[%s23_s1] sm:$0xf] %v4_v0 }

// kernel: _lambda_.1
= control target key start
LH: loop header
LB: loop body
LE: loop exit
PB: predicated region body
PF: predicated region fallthrough
CT: control target
= control target key end

     0   :  { %s13819_s0 = inlined_call_operand.vmem [shape: f32[1,1024], index: 0, kind: input, shape index: {}]   ;;  %s13820_s1 = inlined_call_operand.vmem [shape: f32[1,512], index: 1, kind: input, shape index: {}]   ;;  %s13821_s2 = inlined_call_operand.vmem [shape: f32[9,32,1], index: 2, kind: input, shape index: {}]   ;;  %s13822_s3 = inlined_call_operand.hbm [shape: bf16[3,9,32,32], index: 3, kind: input, shape index: {}]   ;;  %s13823_s4 = inlined_call_operand.vmem [shape: bf16[9,8,32], index: 4, kind: input, shape index: {}]   ;;  %s13824_s5 = inlined_call_operand.hbm [shape: f32[4,32,3], index: 5, kind: input, shape index: {}]   ;;  %s13825_s6 = inlined_call_operand.<no memory space> [shape: f32[1,1], index: 6, kind: input, shape index: {}]   ;;  %s13826_s7 = inlined_call_operand.vmem [shape: f32[1,1024], index: 7, kind: output, shape index: {}]  }
   0x1   :  { %v12_v0 = vstv %s13825_s6 }
   0x2   :  { %13 = vst [vmem:[#allocation2] sm:$0x1] %v12_v0 }
   0x3   :  { %14 = vsyncpa [#allocation4], 0 }
   0x4   :  { %15 = vsyncpa [#allocation6], 0  ;;  %s10326_s26 = smov 0  }
   0x5 LB: > { %s10265_s27 = smov [#allocation3]   ;;  %s8163_s29 = sadd.s32 4294967295, %s10263_s26   ;;  %s10263_s26 = sphi %s10326_s26, %s21_s26  }
   0x6   : > { %s222_s28 = sshll.u32 %s10265_s27, 4  ;;  %p8165_p0 = scmp.ge.s32.totalorder %s10263_s26, 1  ;;  %s223_s28 = int_to_ptr.vmem [resolvable:$true] %s222_s28 }
   0x7   : > { %p204_p1 = scmp.lt.s32.totalorder %s10263_s26, 3  ;;  %p10340_p3 = scmp.eq.s32.totalorder %s8163_s29, 0 }
   0x8   : > { %s10266_s8 = smov [#allocation5]   ;;  %s10193_s13 = scalar_lea.hbm %s13822_s3, 6912 }
   0x9   : > { %p10334_p2 = pnand %p8165_p0, %p204_p1  ;;  %s238_s9 = sshll.u32 %s10266_s8, 4  ;;  %s10352_s9 = int_to_ptr.vmem [resolvable:$true] %s238_s9 }
   0xa   : > { %s13863_s30 = scalar_select %p10340_p3, 1, 0 }
   0xb   : > { %s13862_s6 = scalar_select %p10334_p2, 1, 0 }
   0xc   : > { %p8788_p4 = pneg %p10334_p2  ;;  %p10194_p6 = scmp.ne.s32.totalorder %s13822_s3, %s10193_s13 }
   0xd   : > { %p10200_p10 = scmp.lt.u32.totalorder %s10193_s13, %s13822_s3 }
   0xe   : > { %p10348_p5 = pnand %p10340_p3, %p8788_p4 }
  0x10   : > { %p10195_p7 = pneg %p10348_p5 }
  0x12   : > { %p10196_p8 = pnand %p10195_p7, %p10194_p6 }
  0x14   : > { %p10197_p9 = pneg %p10196_p8 }
  0x16   : > { %p10202_p11 = pnand %p10200_p10, %p10197_p9 }
  0x18   : > { %10205 = shalt.err (!%p10202_p11)
}
  0x19   : > { %s10206_s18 = scalar_lea.vmem %s223_s28, 6912  ;;  %p10214_p1 = scmp.lt.s32.totalorder %s223_s28, %s223_s28 }
  0x1a   : > { %p10207_p12 = scmp.ne.s32.totalorder %s223_s28, %s10206_s18  ;;  %p10215_p4 = scmp.lt.s32.totalorder %s10206_s18, %s10206_s18 }
  0x1c   : > { %p10209_p13 = pnand %p10207_p12, %p10195_p7  ;;  %p10216_p3 = por %p10215_p4, %p10214_p1 }
  0x1e   : > { %p10210_p0 = pneg %p10209_p13 }
  0x20   : > { %p10217_p2 = pnand %p10216_p3, %p10210_p0 }
  0x22   : > { %10220 = shalt.err (!%p10217_p2)
}
  0x23   : > { %s10267_s19 = smov 64   ;;  %s10268_s20 = smov 4  }
  0x24   : > { %8791 = dma.hbm_to_vmem [thread:$0]  (!%p10348_p5), %s13822_s3, 6912, %s223_s28, [#allocation4], %s10267_s19, %s10267_s19, %s10268_s20  }
  0x25   : > { %s10221_s25 = scalar_lea.hbm %s13824_s5, 2048 }
  0x26   : > { %p10222_p6 = scmp.ne.s32.totalorder %s13824_s5, %s10221_s25  ;;  %p10228_p8 = scmp.lt.u32.totalorder %s10221_s25, %s13824_s5 }
  0x28   : > { %p10224_p2 = pnand %p10222_p6, %p10195_p7 }
  0x2a   : > { %p10225_p3 = pneg %p10224_p2 }
  0x2c   : > { %p10230_p9 = pnand %p10228_p8, %p10225_p3 }
  0x2e   : > { %10233 = shalt.err (!%p10230_p9)
}
  0x2f   : > { %s10234_s28 = scalar_lea.vmem %s10352_s9, 2048  ;;  %p10242_p13 = scmp.lt.s32.totalorder %s10352_s9, %s10352_s9 }
  0x30   : > { %p10235_p10 = scmp.ne.s32.totalorder %s10352_s9, %s10234_s28  ;;  %p10243_p0 = scmp.lt.s32.totalorder %s10234_s28, %s10234_s28 }
  0x32   : > { %p10237_p11 = pnand %p10235_p10, %p10195_p7  ;;  %p10244_p1 = por %p10243_p0, %p10242_p13 }
  0x34   : > { %p10238_p12 = pneg %p10237_p11 }
  0x36   : > { %p10245_p4 = pnand %p10244_p1, %p10238_p12 }
  0x38   : > { %10248 = shalt.err (!%p10245_p4)
}
  0x39   : > { %s10269_s13 = smov 128   ;;  %s10270_s14 = smov 8  }
  0x3a   : > { %8794 = dma.hbm_to_vmem [thread:$0]  (!%p10348_p5), %s13824_s5, 2048, %s10352_s9, [#allocation6], %s10269_s13, %s10269_s13, %s10270_s14  }
  0x3b   : > { %p13865_p6 = scmp.ne.s32.totalorder %s13862_s6, 0 }
  0x3d   : > { %265 = sbr.rel (%p13865_p6) target bundleno = 2338 (0x922), region = 48 }
  0x44   : > { %p13866_p7 = scmp.ne.s32.totalorder %s13863_s30, 0 }
  0x46   : > { %10254 = dma.done.wait (%p13866_p7), [#allocation4], 6912  }
  0x47   : > { %10256 = vsyncadd (%p13866_p7), [#allocation4], 4294960384 }
  0x48   : > { %10258 = dma.done.wait (%p13866_p7), [#allocation6], 2048  }
  0x49   : > { %10260 = vsyncadd (%p13866_p7), [#allocation6], 4294965248  ;;  %s8172_s10 = sshll.u32 %s8163_s29, 2  ;;  %v13835_v1 = vmov 0   ;;  %v13830_v2 = vlaneseq  ;;  %v8174_v3 = vld [vmem:[%s13821_s2 + $0x20] sm:$0xff]  ;;  %v8175_v6 = vld [vmem:[%s13821_s2 + $0x28] sm:$0xff] }
  0x4a   : > { %8826 = vset.pattern.permute.xlu1 %v13835_v1  ;;  %8825 = vset.pattern.permute.xlu0 %v13835_v1  ;;  %p300_p5 = scmp.lt.s32.totalorder %s8172_s10, 7  ;;  %v312_v4 = vld [vmem:[%s13821_s2] sm:$0xff]  ;;  %v313_v7 = vld [vmem:[%s13821_s2 + $0x8] sm:$0xff]  ;;  %s10272_s11 = smov 11   ;;  %v315_v19 = vld [vmem:[%s13821_s2 + $0x18] sm:$0xff]  ;;  %v13833_v63 = vmov 1  }
  0x4b   : > { %1406 = vmatprep.mubr.bf16.mxu0 %v13835_v1  ;;  %1459 = vmatprep.mubr.bf16.mxu1 %v13835_v1  ;;  %v10426_v5 = vshrl.u32 %v13830_v2, 7  ;;  %v8179_v10 = vld [vmem:[%s13821_s2 + $0x48] sm:$0xff]  ;;  %v8178_v11 = vld [vmem:[%s13821_s2 + $0x40] sm:$0xff]  ;;  %v314_v20 = vld [vmem:[%s13821_s2 + $0x10] sm:$0xff]  ;;  %s10273_s15 = smov 10   ;;  %s10274_s20 = smov 9  }
  0x4c   : > { %s13936_s10 = smov (!%p300_p5, %s8172_s10), 7  ;;  %440 = vperm.xlu1 %8826, %v8174_v3   ;;  %354 = vperm.xlu0 %8825, %v312_v4   ;;  %v8177_v21 = vld [vmem:[%s13821_s2 + $0x38] sm:$0xff]  ;;  %v8176_v22 = vld [vmem:[%s13821_s2 + $0x30] sm:$0xff]  ;;  %v8183_v23 = vld [vmem:[%s13821_s2 + $0x68] sm:$0xff]  ;;  %s10275_s28 = smov 1   ;;  %v13831_v4 = vmov 2  }
  0x4d   : > { %13867 = vst [vmem:[#allocation9_spill] sm:$0xff] %v10426_v5  ;;  %s302_s23 = scalar_lea.vmem %s13819_s0, %s13936_s10  ;;  %v10439_v8 = vsub.s32 0, %v10426_v5  ;;  %v323_v9 = vsub.s32 1, %v10426_v5  ;;  %v331_v15 = vsub.s32 3, %v10426_v5  ;;  %v327_v16 = vsub.s32 2, %v10426_v5  ;;  %v8182_v24 = vld [vmem:[%s13821_s2 + $0x60] sm:$0xff]  ;;  %s307_s21 = scalar_lea.vmem %s13826_s7, %s13936_s10 }
  0x4e   : > { %v311_v12 = vld [vmem:[%s302_s23] sm:$0xf]  ;;  %v8181_v25 = vld [vmem:[%s13821_s2 + $0x58] sm:$0xff]  ;;  %v8180_v26 = vld [vmem:[%s13821_s2 + $0x50] sm:$0xff]  ;;  %s10276_s8 = smov 127   ;;  %s10277_s17 = smov 119  }
  0x4f   : > { %13868 = vst [vmem:[#allocation10_spill] sm:$0xff] %v10439_v8  ;;  %v10450_v13 = vrot.slane %v311_v12, %v323_v9  ;;  %v10453_v14 = vrot.slane %v311_v12, %v10439_v8  ;;  %v10463_v17 = vrot.slane %v311_v12, %v331_v15  ;;  %v10467_v18 = vrot.slane %v311_v12, %v327_v16  ;;  %v8187_v27 = vld [vmem:[%s13821_s2 + $0x88] sm:$0xff]  ;;  %v8186_v28 = vld [vmem:[%s13821_s2 + $0x80] sm:$0xff]  ;;  %v8185_v29 = vld [vmem:[%s13821_s2 + $0x78] sm:$0xff]  ;;  %s10278_s12 = smov 118   ;;  %s10279_s9 = smov 117  }
  0x50   : > { %445 = vperm.xlu1 %8826, %v8175_v6   ;;  %359 = vperm.xlu0 %8825, %v313_v7   ;;  %v8184_v30 = vld [vmem:[%s13821_s2 + $0x70] sm:$0xff]  ;;  %v8191_v31 = vld [vmem:[%s13821_s2 + $0xa8] sm:$0xff]  ;;  %v8190_v32 = vld [vmem:[%s13821_s2 + $0xa0] sm:$0xff]  ;;  %vm1367_vm8 = vcmask 261120  }
  0x51   : > { %v8189_v33 = vld [vmem:[%s13821_s2 + $0x98] sm:$0xff]  ;;  %v8188_v34 = vld [vmem:[%s13821_s2 + $0x90] sm:$0xff]  ;;  %v8195_v35 = vld [vmem:[%s13821_s2 + $0xc8] sm:$0xff] }
  0x52   : > { %v8194_v36 = vld [vmem:[%s13821_s2 + $0xc0] sm:$0xff]  ;;  %v8193_v37 = vld [vmem:[%s13821_s2 + $0xb8] sm:$0xff]  ;;  %v8192_v38 = vld [vmem:[%s13821_s2 + $0xb0] sm:$0xff] }
  0x53   : > { %v8199_v39 = vld [vmem:[%s13821_s2 + $0xe8] sm:$0xff]  ;;  %v8198_v40 = vld [vmem:[%s13821_s2 + $0xe0] sm:$0xff]  ;;  %v8197_v41 = vld [vmem:[%s13821_s2 + $0xd8] sm:$0xff] }
  0x54   : > { %531 = vperm.xlu1 %8826, %v8179_v10   ;;  %526 = vperm.xlu0 %8825, %v8178_v11   ;;  %v8196_v42 = vld [vmem:[%s13821_s2 + $0xd0] sm:$0xff]  ;;  %v8203_v43 = vld [vmem:[%s13821_s2 + $0x108] sm:$0xff]  ;;  %v8202_v44 = vld [vmem:[%s13821_s2 + $0x100] sm:$0xff] }
  0x55   : > { %v8201_v45 = vld [vmem:[%s13821_s2 + $0xf8] sm:$0xff]  ;;  %v8200_v46 = vld [vmem:[%s13821_s2 + $0xf0] sm:$0xff]  ;;  %v1081_v58 = vld [vmem:[#allocation5 + $0x10] sm:$0xff] }
  0x56   : > { %v8205_v49 = vld [vmem:[%s13821_s2 + $0x118] sm:$0xff]  ;;  %v8204_v50 = vld [vmem:[%s13821_s2 + $0x110] sm:$0xff] }
  0x57   : > { %v1080_v53 = vld [vmem:[#allocation5 + $0x8] sm:$0xff]  ;;  %v1079_v54 = vld [vmem:[#allocation5] sm:$0xff]  ;;  %v1082_v57 = vld [vmem:[#allocation5 + $0x18] sm:$0xff] }
  0x58   : > { %339 = vrot.lane.b32.xlu1 %v10450_v13, %s10272_s11  ;;  %337 = vrot.lane.b32.xlu0 %v10453_v14, %s10272_s11 }
  0x5c   : > { %343 = vrot.lane.b32.xlu1 %v10463_v17, %s10272_s11  ;;  %341 = vrot.lane.b32.xlu0 %v10467_v18, %s10272_s11 }
  0x60   : > { %369 = vperm.xlu1 %8826, %v315_v19   ;;  %364 = vperm.xlu0 %8825, %v314_v20  }
  0x64   : > { %427 = vrot.lane.b32.xlu1 %v10450_v13, %s10273_s15  ;;  %425 = vrot.lane.b32.xlu0 %v10453_v14, %s10273_s15 }
  0x68   : > { %431 = vrot.lane.b32.xlu1 %v10463_v17, %s10273_s15  ;;  %429 = vrot.lane.b32.xlu0 %v10467_v18, %s10273_s15 }
  0x6c   : > { %455 = vperm.xlu1 %8826, %v8177_v21   ;;  %450 = vperm.xlu0 %8825, %v8176_v22  }
  0x70   : > { %617 = vperm.xlu1 %8826, %v8183_v23   ;;  %612 = vperm.xlu0 %8825, %v8182_v24  }
  0x74   : > { %513 = vrot.lane.b32.xlu1 %v10450_v13, %s10274_s20  ;;  %511 = vrot.lane.b32.xlu0 %v10453_v14, %s10274_s20 }
  0x78   : > { %517 = vrot.lane.b32.xlu1 %v10463_v17, %s10274_s20  ;;  %515 = vrot.lane.b32.xlu0 %v10467_v18, %s10274_s20 }
  0x7c   : > { %541 = vperm.xlu1 %8826, %v8181_v25   ;;  %536 = vperm.xlu0 %8825, %v8180_v26  }
  0x80   : > { %690 = vperm.xlu1 %8826, %v8187_v27   ;;  %685 = vperm.xlu0 %8825, %v8186_v28   ;;  %v10664_v28 = vand.u32 127, %v13830_v2 }
  0x82   : > { %vm347_vm0 = vcmp.lt.s32.totalorder %v10664_v28, 11  ;;  %vm433_vm1 = vcmp.lt.s32.totalorder %v10664_v28, 10  ;;  %vm519_vm2 = vcmp.lt.s32.totalorder %v10664_v28, 9  ;;  %vm605_vm3 = vcmp.lt.s32.totalorder %v10664_v28, 1 }
  0x83   : > { %vm748_vm4 = vcmp.lt.s32.totalorder %v10664_v28, 127  ;;  %vm834_vm5 = vcmp.lt.s32.totalorder %v10664_v28, 119  ;;  %vm920_vm6 = vcmp.lt.s32.totalorder %v10664_v28, 118  ;;  %vm1006_vm7 = vcmp.lt.s32.totalorder %v10664_v28, 117 }
  0x84   : > { %599 = vrot.lane.b32.xlu1 %v10450_v13, %s10275_s28  ;;  %597 = vrot.lane.b32.xlu0 %v10453_v14, %s10275_s28 }
  0x88   : > { %603 = vrot.lane.b32.xlu1 %v10463_v17, %s10275_s28  ;;  %601 = vrot.lane.b32.xlu0 %v10467_v18, %s10275_s28 }
  0x8c   : > { %627 = vperm.xlu1 %8826, %v8185_v29   ;;  %622 = vperm.xlu0 %8825, %v8184_v30  }
  0x90   : > { %760 = vperm.xlu1 %8826, %v8191_v31   ;;  %755 = vperm.xlu0 %8825, %v8190_v32  }
  0x94   : > { %700 = vperm.xlu1 %8826, %v8189_v33   ;;  %695 = vperm.xlu0 %8825, %v8188_v34  }
  0x98   : > { %846 = vperm.xlu1 %8826, %v8195_v35   ;;  %841 = vperm.xlu0 %8825, %v8194_v36  }
  0x9c   : > { %742 = vrot.lane.b32.xlu1 %v10450_v13, %s10276_s8  ;;  %740 = vrot.lane.b32.xlu0 %v10453_v14, %s10276_s8 }
  0xa0   : > { %746 = vrot.lane.b32.xlu1 %v10463_v17, %s10276_s8  ;;  %744 = vrot.lane.b32.xlu0 %v10467_v18, %s10276_s8 }
  0xa4   : > { %770 = vperm.xlu1 %8826, %v8193_v37   ;;  %765 = vperm.xlu0 %8825, %v8192_v38   ;;  %v310_v37 = vld [vmem:[%s13820_s1] sm:$0xf] }
  0xa8   : > { %932 = vperm.xlu1 %8826, %v8199_v39   ;;  %927 = vperm.xlu0 %8825, %v8198_v40  }
  0xac   : > { %828 = vrot.lane.b32.xlu1 %v10450_v13, %s10277_s17  ;;  %826 = vrot.lane.b32.xlu0 %v10453_v14, %s10277_s17 }
  0xb0   : > { %832 = vrot.lane.b32.xlu1 %v10463_v17, %s10277_s17  ;;  %830 = vrot.lane.b32.xlu0 %v10467_v18, %s10277_s17 }
  0xb4   : > { %856 = vperm.xlu1 %8826, %v8197_v41   ;;  %851 = vperm.xlu0 %8825, %v8196_v42  }
  0xb8   : > { %1018 = vperm.xlu1 %8826, %v8203_v43   ;;  %1013 = vperm.xlu0 %8825, %v8202_v44  }
  0xbc   : > { %914 = vrot.lane.b32.xlu1 %v10450_v13, %s10278_s12  ;;  %912 = vrot.lane.b32.xlu0 %v10453_v14, %s10278_s12 }
  0xc0   : > { %918 = vrot.lane.b32.xlu1 %v10463_v17, %s10278_s12  ;;  %916 = vrot.lane.b32.xlu0 %v10467_v18, %s10278_s12 }
  0xc4   : > { %942 = vperm.xlu1 %8826, %v8201_v45   ;;  %937 = vperm.xlu0 %8825, %v8200_v46   ;;  %v10702_v46 = vrot.slane %v310_v37, %v323_v9 }
  0xc6   : > { %13869 = vst [vmem:[#allocation11_spill] sm:$0xff] %v10702_v46  ;;  %v10759_v46 = vrot.slane %v310_v37, %v10439_v8 }
  0xc8   : > { %1000 = vrot.lane.b32.xlu1 %v10450_v13, %s10279_s9  ;;  %998 = vrot.lane.b32.xlu0 %v10453_v14, %s10279_s9  ;;  %13875 = vst [vmem:[#allocation17_spill] sm:$0xff] %v10759_v46 }
  0xcb   : > { %v10609_v47 = vpop.permute.xlu1 %440  ;;  %v10611_v48 = vpop.permute.xlu0 %354 }
  0xcc   : > { %1004 = vrot.lane.b32.xlu1 %v10463_v17, %s10279_s9  ;;  %1002 = vrot.lane.b32.xlu0 %v10467_v18, %s10279_s9 }
  0xcf   : > { %v10623_v51 = vpop.permute.xlu1 %445  ;;  %v10625_v52 = vpop.permute.xlu0 %359 }
  0xd0   : > { %1028 = vperm.xlu1 %8826, %v8205_v49   ;;  %1023 = vperm.xlu0 %8825, %v8204_v50   ;;  %v10706_v49 = vrot.slane %v310_v37, %v331_v15 }
  0xd2   : > { %13870 = vst [vmem:[#allocation12_spill] sm:$0xff] %v10706_v49 }
  0xd3   : > { %v10627_v55 = vpop.permute.xlu1 %531  ;;  %v10629_v56 = vpop.permute.xlu0 %526 }
  0xd4   : > { %1090 = vperm.xlu1 %8826, %v1080_v53   ;;  %1085 = vperm.xlu0 %8825, %v1079_v54  }
  0xd7   : > { %v340_v59 = vpop.permute.xlu1 %339  ;;  %v338_v60 = vpop.permute.xlu0 %337 }
  0xd8   : > { %1100 = vperm.xlu1 %8826, %v1082_v57   ;;  %1095 = vperm.xlu0 %8825, %v1081_v58   ;;  %v350_v31 = vsel %vm347_vm0, %v338_v60, %v340_v59 }
  0xd9   : > { %v379_v38 = vrot.slane %v350_v31, %v10439_v8 }
  0xdb   : > { %v344_v61 = vpop.permute.xlu1 %343  ;;  %v342_v62 = vpop.permute.xlu0 %341 }
  0xdc   : > { %8828 = vset.pattern.permute.xlu1 %v13833_v63  ;;  %8827 = vset.pattern.permute.xlu0 %v13833_v63  ;;  %v351_v32 = vsel %vm347_vm0, %v344_v61, %v338_v60  ;;  %v349_v35 = vsel %vm347_vm0, %v340_v59, %v342_v62  ;;  %v348_v36 = vsel %vm347_vm0, %v342_v62, %v344_v61 }
  0xdd   : > { %1140 = vperm.xlu1 %8828, %v1080_v53   ;;  %1136 = vperm.xlu0 %8827, %v1079_v54   ;;  %v375_v39 = vrot.slane %v351_v32, %v10439_v8  ;;  %v383_v41 = vrot.slane %v349_v35, %v10439_v8  ;;  %v387_v44 = vrot.slane %v348_v36, %v10439_v8 }
  0xdf   : > { %v10633_v0 = vpop.permute.xlu1 %369  ;;  %v10635_v3 = vpop.permute.xlu0 %364  ;;  %v388_v9 = vmul.f32 %v375_v39, %v10611_v48  ;;  %v392_v59 = vmul.f32 %v375_v39, %v10625_v52  ;;  %v390_v15 = vmul.f32 %v383_v41, %v10611_v48  ;;  %v395_v31 = vmul.f32 %v387_v44, %v10625_v52 }
  0xe0   : > { %v400_v35 = vmul.f32 %v375_v39, %v10633_v0  ;;  %v401_v36 = vmul.f32 %v379_v38, %v10633_v0  ;;  %v399_v49 = vmul.f32 %v387_v44, %v10635_v3 }
  0xe1   : > { %8829 = vset.pattern.permute.xlu1 %v13831_v4  ;;  %8830 = vset.pattern.permute.xlu0 %v13831_v4 }
  0xe2   : > { %1168 = vperm.xlu1 %8829, %v1079_v54   ;;  %1172 = vperm.xlu0 %8830, %v1080_v53   ;;  %v10713_v54 = vrot.slane %v310_v37, %v327_v16  ;;  %v391_v16 = vmul.f32 %v387_v44, %v10611_v48 }
  0xe3   : > { %v428_v6 = vpop.permute.xlu1 %427  ;;  %v426_v7 = vpop.permute.xlu0 %425 }
  0xe4   : > { %v436_v40 = vsel %vm433_vm1, %v426_v7, %v428_v6  ;;  %13871 = vst [vmem:[#allocation13_spill] sm:$0xff] %v10713_v54 }
  0xe5   : > { %v465_v50 = vrot.slane %v436_v40, %v10439_v8 }
  0xe6   : > { %8831 = vset.pattern.permute.xlu1 %v13833_v63  ;;  %1176 = vperm.xlu0 %8830, %v1081_v58  }
  0xe7   : > { %1144 = vperm.xlu1 %8831, %v1081_v58   ;;  %v432_v10 = vpop.permute.xlu1 %431  ;;  %v430_v11 = vpop.permute.xlu0 %429  ;;  %v393_v58 = vmul.f32 %v379_v38, %v10625_v52  ;;  %v475_v40 = vmul.f32 %v465_v50, %v10609_v47 }
  0xe8   : > { %v437_v45 = vsel %vm433_vm1, %v432_v10, %v426_v7  ;;  %v435_v53 = vsel %vm433_vm1, %v428_v6, %v430_v11  ;;  %v434_v61 = vsel %vm433_vm1, %v430_v11, %v432_v10  ;;  %v394_v7 = vmul.f32 %v383_v41, %v10625_v52 }
  0xe9   : > { %v461_v60 = vrot.slane %v437_v45, %v10439_v8  ;;  %v469_v32 = vrot.slane %v435_v53, %v10439_v8  ;;  %v479_v10 = vmul.f32 %v465_v50, %v10623_v51  ;;  %v402_v11 = vmul.f32 %v383_v41, %v10633_v0 }
  0xea   : > { %9153 = vset.pattern.permute.xlu0 %v13835_v1  ;;  %v403_v45 = vmul.f32 %v387_v44, %v10633_v0  ;;  %v473_v2 = vrot.slane %v434_v61, %v10439_v8  ;;  %v397_v52 = vmul.f32 %v379_v38, %v10635_v3  ;;  %v398_v53 = vmul.f32 %v383_v41, %v10635_v3 }
  0xeb   : > { %1148 = vperm.xlu1 %8831, %v1082_v57   ;;  %v10640_v12 = vpop.permute.xlu1 %455  ;;  %v10642_v19 = vpop.permute.xlu0 %450  ;;  %v478_v63 = vmul.f32 %v461_v60, %v10623_v51  ;;  %v476_v0 = vmul.f32 %v469_v32, %v10609_v47  ;;  %v495_v61 = vadd.f32 %v479_v10, %v393_v58 }
  0xec   : > { %v481_v44 = vmul.f32 %v473_v2, %v10623_v51 }
  0xef   : > { %8832 = vset.pattern.permute.xlu1 %v13831_v4  ;;  %v10646_v20 = vpop.permute.xlu1 %617  ;;  %v10648_v21 = vpop.permute.xlu0 %612  ;;  %v474_v4 = vmul.f32 %v461_v60, %v10609_v47 }
  0xf0   : > { %1180 = vperm.xlu1 %8832, %v1082_v57   ;;  %v389_v57 = vmul.f32 %v379_v38, %v10611_v48  ;;  %v396_v48 = vmul.f32 %v375_v39, %v10635_v3  ;;  %v480_v39 = vmul.f32 %v469_v32, %v10623_v51  ;;  %v477_v3 = vmul.f32 %v473_v2, %v10609_v47 }
  0xf1   : > { %v490_v58 = vadd.f32 %v474_v4, %v388_v9  ;;  %v492_v47 = vadd.f32 %v476_v0, %v390_v15  ;;  %v488_v4 = vmul.f32 %v469_v32, %v10640_v12  ;;  %v484_v15 = vmul.f32 %v469_v32, %v10642_v19 }
  0xf2   : > { %v491_v41 = vadd.f32 %v475_v40, %v389_v57  ;;  %v494_v40 = vadd.f32 %v478_v63, %v392_v59  ;;  %v489_v63 = vmul.f32 %v473_v2, %v10640_v12  ;;  %v493_v59 = vadd.f32 %v477_v3, %v391_v16 }
  0xf3   : > { %v10650_v22 = vpop.permute.xlu1 %513  ;;  %v10652_v23 = vpop.permute.xlu0 %511  ;;  %v504_v32 = vadd.f32 %v488_v4, %v402_v11 }
  0xf4   : > { %9154 = vset.pattern.permute.xlu1 %v13835_v1  ;;  %v522_v38 = vsel %vm519_vm2, %v10652_v23, %v10650_v22  ;;  %v505_v3 = vadd.f32 %v489_v63, %v403_v45 }
  0xf5   : > { %v551_v37 = vrot.slane %v522_v38, %v10439_v8  ;;  %v483_v38 = vmul.f32 %v465_v50, %v10642_v19 }
  0xf7   : > { %v10655_v24 = vpop.permute.xlu1 %517  ;;  %v10657_v25 = vpop.permute.xlu0 %515  ;;  %v561_v0 = vmul.f32 %v551_v37, %v10629_v56 }
  0xf8   : > { %v523_v54 = vsel %vm519_vm2, %v10655_v24, %v10652_v23  ;;  %v521_v57 = vsel %vm519_vm2, %v10650_v22, %v10657_v25  ;;  %v487_v23 = vmul.f32 %v465_v50, %v10640_v12  ;;  %v482_v22 = vmul.f32 %v461_v60, %v10642_v19 }
  0xf9   : > { %v547_v51 = vrot.slane %v523_v54, %v10439_v8  ;;  %v555_v9 = vrot.slane %v521_v57, %v10439_v8  ;;  %v485_v54 = vmul.f32 %v473_v2, %v10642_v19 }
  0xfa   : > { %v503_v57 = vadd.f32 %v487_v23, %v401_v36  ;;  %v498_v2 = vadd.f32 %v482_v22, %v396_v48 }
  0xfb   : > { %v10659_v26 = vpop.permute.xlu1 %541  ;;  %v10661_v27 = vpop.permute.xlu0 %536  ;;  %v560_v16 = vmul.f32 %v547_v51, %v10629_v56  ;;  %v564_v50 = vmul.f32 %v547_v51, %v10627_v55  ;;  %v562_v19 = vmul.f32 %v555_v9, %v10629_v56 }
  0xfc   : > { %v572_v48 = vmul.f32 %v547_v51, %v10659_v26 }
  0xfd   : > { %v576_v11 = vadd.f32 %v560_v16, %v490_v58  ;;  %v580_v45 = vadd.f32 %v564_v50, %v494_v40  ;;  %v569_v58 = vmul.f32 %v551_v37, %v10661_v27 }
  0xff   : > { %v10666_v29 = vpop.permute.xlu1 %690  ;;  %v10668_v30 = vpop.permute.xlu0 %685 }
 0x100   : > { %v10851_v16 = vmul.f32 %v10666_v29, %v10467_v18  ;;  %v710_v50 = vmul.f32 %v10666_v29, %v10463_v17 }
 0x103   : > { %v10676_v33 = vpop.permute.xlu1 %599  ;;  %v10678_v34 = vpop.permute.xlu0 %597 }
 0x107   : > { %v10692_v42 = vpop.permute.xlu1 %603  ;;  %v10694_v43 = vpop.permute.xlu0 %601 }
 0x108   : > { %v609_v40 = vsel %vm605_vm3, %v10692_v42, %v10678_v34 }
 0x10b   : > { %v10723_v62 = vpop.permute.xlu1 %627  ;;  %v10725_v6 = vpop.permute.xlu0 %622 }
 0x10c   : > { %13872 = vst [vmem:[#allocation14_spill] sm:$0xff] %v10725_v6  ;;  %v520_v6 = vsel %vm519_vm2, %v10657_v25, %v10655_v24  ;;  %v565_v24 = vmul.f32 %v551_v37, %v10627_v55 }
 0x10d   : > { %v559_v25 = vrot.slane %v520_v6, %v10439_v8  ;;  %v566_v6 = vmul.f32 %v555_v9, %v10627_v55 }
 0x10f   : > { %v10743_v1 = vpop.permute.xlu1 %760  ;;  %v10745_v5 = vpop.permute.xlu0 %755  ;;  %v571_v4 = vmul.f32 %v559_v25, %v10661_v27 }
 0x110   : > { %13873 = vst [vmem:[#allocation15_spill] sm:$0xff] %v10743_v1  ;;  %13874 = vst [vmem:[#allocation16_spill] sm:$0xff] %v10745_v5  ;;  %v486_v1 = vmul.f32 %v461_v60, %v10640_v12  ;;  %v496_v5 = vadd.f32 %v480_v39, %v394_v7  ;;  %v497_v7 = vadd.f32 %v481_v44, %v395_v31 }
 0x111   : > { %v499_v31 = vadd.f32 %v483_v38, %v397_v52  ;;  %v500_v44 = vadd.f32 %v484_v15, %v398_v53  ;;  %v573_v52 = vmul.f32 %v551_v37, %v10659_v26  ;;  %v574_v53 = vmul.f32 %v555_v9, %v10659_v26 }
 0x112   : > { %v502_v60 = vadd.f32 %v486_v1, %v400_v35  ;;  %v563_v1 = vmul.f32 %v559_v25, %v10629_v56  ;;  %v567_v35 = vmul.f32 %v559_v25, %v10627_v55  ;;  %v608_v55 = vsel %vm605_vm3, %v10678_v34, %v10676_v33 }
 0x113   : > { %v10771_v10 = vpop.permute.xlu1 %700  ;;  %v10773_v46 = vpop.permute.xlu0 %695  ;;  %v582_v56 = vadd.f32 %v566_v6, %v496_v5  ;;  %v607_v5 = vsel %vm605_vm3, %v10676_v33, %v10694_v43  ;;  %v590_v38 = vadd.f32 %v574_v53, %v504_v32 }
 0x114   : > { %13876 = vst [vmem:[#allocation18_spill] sm:$0xff] %v10771_v10  ;;  %13877 = vst [vmem:[#allocation19_spill] sm:$0xff] %v10773_v46  ;;  %v501_v46 = vadd.f32 %v485_v54, %v399_v49  ;;  %v577_v10 = vadd.f32 %v561_v0, %v491_v41  ;;  %v578_v49 = vadd.f32 %v562_v19, %v492_v47 }
 0x115   : > { %v575_v41 = vmul.f32 %v559_v25, %v10659_v26  ;;  %v570_v47 = vmul.f32 %v555_v9, %v10661_v27  ;;  %v606_v26 = vsel %vm605_vm3, %v10694_v43, %v10692_v42  ;;  %v579_v63 = vadd.f32 %v563_v1, %v493_v59 }
 0x116   : > { %v583_v34 = vadd.f32 %v567_v35, %v497_v7  ;;  %v588_v22 = vadd.f32 %v572_v48, %v502_v60  ;;  %v637_v9 = vrot.slane %v608_v55, %v10439_v8  ;;  %v633_v42 = vrot.slane %v609_v40, %v10439_v8  ;;  %v13884_v40 = vld [vmem:[#allocation14_spill] sm:$0xff] }
 0x117   : > { %v10790_v39 = vpop.permute.xlu1 %846  ;;  %v10792_v12 = vpop.permute.xlu0 %841  ;;  %v591_v15 = vadd.f32 %v575_v41, %v505_v3  ;;  %v585_v0 = vadd.f32 %v569_v58, %v499_v31  ;;  %v641_v33 = vrot.slane %v607_v5, %v10439_v8  ;;  %v645_v43 = vrot.slane %v606_v26, %v10439_v8 }
 0x118   : > { %13878 = vst [vmem:[#allocation20_spill] sm:$0xff] %v10790_v39  ;;  %13879 = vst [vmem:[#allocation21_spill] sm:$0xff] %v10792_v12  ;;  %v10798_v39 = vadd.f32 %v565_v24, %v495_v61  ;;  %v568_v61 = vmul.f32 %v547_v51, %v10661_v27  ;;  %v589_v27 = vadd.f32 %v573_v52, %v503_v57 }
 0x119   : > { %v586_v24 = vadd.f32 %v570_v47, %v500_v44  ;;  %v587_v25 = vadd.f32 %v571_v4, %v501_v46  ;;  %v707_v59 = vmul.f32 %v10666_v29, %v10453_v14  ;;  %v10843_v7 = vmul.f32 %v10666_v29, %v10450_v13 }
 0x11a   : > { %v584_v54 = vadd.f32 %v568_v61, %v498_v2  ;;  %v703_v46 = vmul.f32 %v10668_v30, %v10453_v14  ;;  %v647_v32 = vmul.f32 %v637_v9, %v10648_v21  ;;  %v704_v3 = vmul.f32 %v10668_v30, %v10450_v13 }
 0x11b   : > { %v10802_v36 = vpop.permute.xlu1 %742  ;;  %v10804_v23 = vpop.permute.xlu0 %740  ;;  %v705_v2 = vmul.f32 %v10668_v30, %v10467_v18  ;;  %v646_v19 = vmul.f32 %v633_v42, %v10648_v21  ;;  %v650_v31 = vmul.f32 %v633_v42, %v10646_v20  ;;  %v706_v44 = vmul.f32 %v10668_v30, %v10463_v17 }
 0x11c   : > { %v651_v29 = vmul.f32 %v637_v9, %v10646_v20  ;;  %v648_v6 = vmul.f32 %v641_v33, %v10648_v21  ;;  %v649_v1 = vmul.f32 %v645_v43, %v10648_v21  ;;  %v652_v35 = vmul.f32 %v641_v33, %v10646_v20 }
 0x11d   : > { %v653_v48 = vmul.f32 %v645_v43, %v10646_v20  ;;  %v658_v52 = vmul.f32 %v633_v42, %v10723_v62  ;;  %v659_v53 = vmul.f32 %v637_v9, %v10723_v62  ;;  %v663_v61 = vadd.f32 %v647_v32, %v577_v10 }
 0x11e   : > { %v660_v30 = vmul.f32 %v641_v33, %v10723_v62  ;;  %v661_v58 = vmul.f32 %v645_v43, %v10723_v62  ;;  %v654_v47 = vmul.f32 %v633_v42, %v13884_v40  ;;  %v662_v21 = vadd.f32 %v646_v19, %v576_v11 }
 0x11f   : > { %v10830_v37 = vpop.permute.xlu1 %746  ;;  %v10832_v51 = vpop.permute.xlu0 %744  ;;  %v666_v4 = vadd.f32 %v650_v31, %v580_v45  ;;  %v655_v26 = vmul.f32 %v637_v9, %v13884_v40  ;;  %v656_v20 = vmul.f32 %v641_v33, %v13884_v40  ;;  %v667_v5 = vadd.f32 %v651_v29, %v10798_v39 }
 0x120   : > { %v665_v12 = vadd.f32 %v649_v1, %v579_v63  ;;  %v657_v10 = vmul.f32 %v645_v43, %v13884_v40  ;;  %v668_v32 = vadd.f32 %v652_v35, %v582_v56  ;;  %v675_v62 = vadd.f32 %v659_v53, %v589_v27 }
 0x121   : > { %v676_v45 = vadd.f32 %v660_v30, %v590_v38  ;;  %v677_v9 = vadd.f32 %v661_v58, %v591_v15  ;;  %v670_v42 = vadd.f32 %v654_v47, %v584_v54  ;;  %v751_v39 = vsel %vm748_vm4, %v10804_v23, %v10802_v36  ;;  %v13885_v38 = vld [vmem:[#allocation18_spill] sm:$0xff] }
 0x122   : > { %v672_v63 = vadd.f32 %v656_v20, %v586_v24  ;;  %v719_v33 = vadd.f32 %v703_v46, %v662_v21  ;;  %v723_v43 = vadd.f32 %v707_v59, %v666_v4  ;;  %v673_v56 = vadd.f32 %v657_v10, %v587_v25 }
 0x123   : > { %v10845_v60 = vpop.permute.xlu1 %770  ;;  %v10847_v57 = vpop.permute.xlu0 %765  ;;  %v750_v27 = vsel %vm748_vm4, %v10802_v36, %v10832_v51  ;;  %v715_v15 = vmul.f32 %v13885_v38, %v10453_v14  ;;  %v776_v54 = vrot.slane %v751_v39, %v10439_v8  ;;  %v720_v24 = vadd.f32 %v704_v3, %v663_v61 }
 0x124   : > { %13880 = vst [vmem:[#allocation22_spill] sm:$0xff] %v10845_v60  ;;  %13881 = vst [vmem:[#allocation23_spill] sm:$0xff] %v10847_v57  ;;  %v674_v57 = vadd.f32 %v658_v52, %v588_v22  ;;  %v752_v22 = vsel %vm748_vm4, %v10830_v37, %v10804_v23  ;;  %v717_v23 = vmul.f32 %v13885_v38, %v10467_v18 }
 0x125   : > { %v718_v46 = vmul.f32 %v13885_v38, %v10463_v17  ;;  %v749_v36 = vsel %vm748_vm4, %v10832_v51, %v10830_v37  ;;  %v788_v19 = vrot.slane %v752_v22, %v10439_v8  ;;  %v724_v3 = vadd.f32 %v10843_v7, %v667_v5  ;;  %v13887_v37 = vld [vmem:[#allocation16_spill] sm:$0xff] }
 0x126   : > { %v780_v31 = vrot.slane %v750_v27, %v10439_v8  ;;  %v789_v51 = vmul.f32 %v776_v54, %v13887_v37  ;;  %v725_v7 = vadd.f32 %v10851_v16, %v668_v32  ;;  %v784_v52 = vrot.slane %v749_v36, %v10439_v8 }
 0x127   : > { %v10873_v41 = vpop.permute.xlu1 %932  ;;  %v10875_v55 = vpop.permute.xlu0 %927 }
 0x128   : > { %13882 = vst [vmem:[#allocation24_spill] sm:$0xff] %v10873_v41  ;;  %13883 = vst [vmem:[#allocation25_spill] sm:$0xff] %v10875_v55  ;;  %v664_v41 = vadd.f32 %v648_v6, %v578_v49  ;;  %v669_v55 = vadd.f32 %v653_v48, %v583_v34  ;;  %v671_v49 = vadd.f32 %v655_v26, %v585_v0  ;;  %v13888_v48 = vld [vmem:[#allocation15_spill] sm:$0xff] }
 0x129   : > { %v722_v34 = vadd.f32 %v706_v44, %v665_v12  ;;  %v716_v12 = vmul.f32 %v13885_v38, %v10450_v13  ;;  %v13886_v44 = vld [vmem:[#allocation19_spill] sm:$0xff]  ;;  %v796_v61 = vmul.f32 %v788_v19, %v13888_v48  ;;  %v790_v30 = vmul.f32 %v780_v31, %v13887_v37 }
 0x12a   : > { %v726_v0 = vadd.f32 %v710_v50, %v669_v55  ;;  %v721_v50 = vadd.f32 %v705_v2, %v664_v41  ;;  %v711_v29 = vmul.f32 %v13886_v44, %v10453_v14  ;;  %v712_v6 = vmul.f32 %v13886_v44, %v10450_v13 }
 0x12b   : > { %v10885_v60 = vpop.permute.xlu1 %828  ;;  %v10887_v11 = vpop.permute.xlu0 %826  ;;  %v713_v1 = vmul.f32 %v13886_v44, %v10467_v18  ;;  %v714_v35 = vmul.f32 %v13886_v44, %v10463_v17  ;;  %v793_v2 = vmul.f32 %v776_v54, %v13888_v48  ;;  %v731_v13 = vadd.f32 %v715_v15, %v674_v57  ;;  %v13890_v38 = vld [vmem:[#allocation23_spill] sm:$0xff]  ;;  %v13892_v44 = vld [vmem:[#allocation20_spill] sm:$0xff] }
 0x12c   : > { %v732_v41 = vadd.f32 %v716_v12, %v675_v62  ;;  %v733_v18 = vadd.f32 %v717_v23, %v676_v45  ;;  %v734_v55 = vadd.f32 %v718_v46, %v677_v9  ;;  %v792_v17 = vmul.f32 %v788_v19, %v13887_v37  ;;  %v13889_v62 = vld [vmem:[#allocation22_spill] sm:$0xff]  ;;  %v13891_v46 = vld [vmem:[#allocation21_spill] sm:$0xff] }
 0x12d   : > { %v837_v16 = vsel %vm834_vm5, %v10887_v11, %v10885_v60  ;;  %v727_v58 = vadd.f32 %v711_v29, %v670_v42  ;;  %v728_v40 = vadd.f32 %v712_v6, %v671_v49  ;;  %v729_v47 = vadd.f32 %v713_v1, %v672_v63 }
 0x12e   : > { %v730_v21 = vadd.f32 %v714_v35, %v673_v56  ;;  %v805_v4 = vadd.f32 %v789_v51, %v719_v33  ;;  %v809_v57 = vadd.f32 %v793_v2, %v723_v43  ;;  %v791_v26 = vmul.f32 %v784_v52, %v13887_v37 }
 0x12f   : > { %v833_v59 = vpop.permute.xlu1 %832  ;;  %v831_v25 = vpop.permute.xlu0 %830  ;;  %v794_v20 = vmul.f32 %v780_v31, %v13888_v48  ;;  %v795_v32 = vmul.f32 %v784_v52, %v13888_v48  ;;  %v801_v45 = vmul.f32 %v776_v54, %v13889_v62  ;;  %v802_v9 = vmul.f32 %v780_v31, %v13889_v62 }
 0x130   : > { %v862_v42 = vrot.slane %v837_v16, %v10439_v8  ;;  %v10951_v39 = vadd.f32 %v792_v17, %v722_v34  ;;  %v10953_v49 = vadd.f32 %v796_v61, %v726_v0  ;;  %v10955_v63 = vadd.f32 %v790_v30, %v720_v24 }
 0x131   : > { %v838_v33 = vsel %vm834_vm5, %v833_v59, %v10887_v11  ;;  %v803_v43 = vmul.f32 %v784_v52, %v13889_v62  ;;  %v804_v56 = vmul.f32 %v788_v19, %v13889_v62  ;;  %v835_v22 = vsel %vm834_vm5, %v831_v25, %v833_v59 }
 0x132   : > { %v836_v34 = vsel %vm834_vm5, %v10885_v60, %v831_v25  ;;  %v810_v27 = vadd.f32 %v794_v20, %v724_v3  ;;  %v797_v15 = vmul.f32 %v776_v54, %v13890_v38  ;;  %v798_v0 = vmul.f32 %v780_v31, %v13890_v38 }
 0x133   : > { %v10929_v53 = vpop.permute.xlu1 %856  ;;  %v10931_v14 = vpop.permute.xlu0 %851  ;;  %v799_v24 = vmul.f32 %v784_v52, %v13890_v38  ;;  %v800_v23 = vmul.f32 %v788_v19, %v13890_v38  ;;  %v875_v36 = vmul.f32 %v862_v42, %v13891_v46  ;;  %v879_v29 = vmul.f32 %v862_v42, %v13892_v44 }
 0x134   : > { %v874_v59 = vrot.slane %v838_v33, %v10439_v8  ;;  %v807_v6 = vadd.f32 %v791_v26, %v721_v50  ;;  %v811_v1 = vadd.f32 %v795_v32, %v725_v7  ;;  %v866_v60 = vrot.slane %v836_v34, %v10439_v8  ;;  %v13894_v34 = vld [vmem:[#allocation24_spill] sm:$0xff] }
 0x135   : > { %v870_v54 = vrot.slane %v835_v22, %v10439_v8  ;;  %v817_v25 = vadd.f32 %v801_v45, %v731_v13  ;;  %v818_v3 = vadd.f32 %v802_v9, %v732_v41  ;;  %v819_v31 = vadd.f32 %v803_v43, %v733_v18 }
 0x136   : > { %v820_v35 = vadd.f32 %v804_v56, %v734_v55  ;;  %v813_v37 = vadd.f32 %v797_v15, %v727_v58  ;;  %v814_v51 = vadd.f32 %v798_v0, %v728_v40  ;;  %v815_v48 = vadd.f32 %v799_v24, %v729_v47  ;;  %v13893_v56 = vld [vmem:[#allocation25_spill] sm:$0xff] }
 0x137   : > { %v10943_v5 = vpop.permute.xlu1 %1018  ;;  %v10945_v10 = vpop.permute.xlu0 %1013  ;;  %v816_v50 = vadd.f32 %v800_v23, %v730_v21  ;;  %v878_v7 = vmul.f32 %v874_v59, %v13891_v46  ;;  %v895_v17 = vadd.f32 %v879_v29, %v809_v57  ;;  %v891_v61 = vadd.f32 %v875_v36, %v805_v4 }
 0x138   : > { %v887_v13 = vmul.f32 %v862_v42, %v10929_v53  ;;  %v888_v41 = vmul.f32 %v866_v60, %v10929_v53  ;;  %v889_v18 = vmul.f32 %v870_v54, %v10929_v53  ;;  %v890_v55 = vmul.f32 %v874_v59, %v10929_v53 }
 0x139   : > { %v882_v30 = vmul.f32 %v874_v59, %v13892_v44  ;;  %v876_v16 = vmul.f32 %v866_v60, %v13891_v46  ;;  %v877_v58 = vmul.f32 %v870_v54, %v13891_v46  ;;  %v883_v47 = vmul.f32 %v862_v42, %v10931_v14 }
 0x13a   : > { %v884_v21 = vmul.f32 %v866_v60, %v10931_v14  ;;  %v885_v4 = vmul.f32 %v870_v54, %v10931_v14  ;;  %v880_v53 = vmul.f32 %v866_v60, %v13892_v44  ;;  %v881_v32 = vmul.f32 %v870_v54, %v13892_v44 }
 0x13b   : > { %v915_v12 = vpop.permute.xlu1 %914  ;;  %v913_v11 = vpop.permute.xlu0 %912  ;;  %v886_v62 = vmul.f32 %v874_v59, %v10931_v14  ;;  %v903_v9 = vadd.f32 %v887_v13, %v817_v25  ;;  %v904_v42 = vadd.f32 %v888_v41, %v818_v3  ;;  %v905_v33 = vadd.f32 %v889_v18, %v819_v31 }
 0x13c   : > { %v923_v19 = vsel %vm920_vm6, %v913_v11, %v915_v12  ;;  %v906_v43 = vadd.f32 %v890_v55, %v820_v35  ;;  %v899_v24 = vadd.f32 %v883_v47, %v813_v37  ;;  %v11005_v14 = vadd.f32 %v885_v4, %v815_v48 }
 0x13d   : > { %v948_v40 = vrot.slane %v923_v19, %v10439_v8  ;;  %v11008_v36 = vadd.f32 %v886_v62, %v816_v50  ;;  %v896_v44 = vadd.f32 %v880_v53, %v810_v27  ;;  %v897_v29 = vadd.f32 %v881_v32, %v811_v1 }
 0x13e   : > { %v898_v59 = vadd.f32 %v882_v30, %v10953_v49  ;;  %v892_v54 = vadd.f32 %v876_v16, %v10955_v63  ;;  %v893_v25 = vadd.f32 %v877_v58, %v807_v6  ;;  %v894_v3 = vadd.f32 %v878_v7, %v10951_v39 }
 0x13f   : > { %v919_v2 = vpop.permute.xlu1 %918  ;;  %v917_v52 = vpop.permute.xlu0 %916  ;;  %v961_v22 = vmul.f32 %v948_v40, %v13893_v56  ;;  %v965_v38 = vmul.f32 %v948_v40, %v13894_v34 }
 0x140   : > { %v924_v57 = vsel %vm920_vm6, %v919_v2, %v913_v11  ;;  %v922_v45 = vsel %vm920_vm6, %v915_v12, %v917_v52  ;;  %v921_v0 = vsel %vm920_vm6, %v917_v52, %v919_v2  ;;  %v11003_v11 = vadd.f32 %v884_v21, %v814_v51 }
 0x141   : > { %v960_v15 = vrot.slane %v924_v57, %v10439_v8  ;;  %v952_v12 = vrot.slane %v922_v45, %v10439_v8  ;;  %v956_v60 = vrot.slane %v921_v0, %v10439_v8  ;;  %v981_v37 = vadd.f32 %v965_v38, %v895_v17 }
 0x142   : > { %v977_v51 = vadd.f32 %v961_v22, %v891_v61 }
 0x143   : > { %v943_v26 = vpop.permute.xlu1 %942  ;;  %v938_v20 = vpop.permute.xlu0 %937  ;;  %v964_v31 = vmul.f32 %v960_v15, %v13893_v56  ;;  %v968_v35 = vmul.f32 %v960_v15, %v13894_v34  ;;  %v962_v48 = vmul.f32 %v952_v12, %v13893_v56  ;;  %v966_v63 = vmul.f32 %v952_v12, %v13894_v34 }
 0x144   : > { %v973_v19 = vmul.f32 %v948_v40, %v943_v26  ;;  %v974_v27 = vmul.f32 %v952_v12, %v943_v26  ;;  %v975_v50 = vmul.f32 %v956_v60, %v943_v26  ;;  %v963_v13 = vmul.f32 %v956_v60, %v13893_v56 }
 0x145   : > { %v967_v41 = vmul.f32 %v956_v60, %v13894_v34  ;;  %v976_v18 = vmul.f32 %v960_v15, %v943_v26  ;;  %v969_v58 = vmul.f32 %v948_v40, %v938_v20  ;;  %v970_v47 = vmul.f32 %v952_v12, %v938_v20 }
 0x146   : > { %v989_v30 = vadd.f32 %v973_v19, %v903_v9  ;;  %v990_v16 = vadd.f32 %v974_v27, %v904_v42  ;;  %v971_v57 = vmul.f32 %v956_v60, %v938_v20  ;;  %v991_v45 = vadd.f32 %v975_v50, %v905_v33 }
 0x147   : > { %v1001_v23 = vpop.permute.xlu1 %1000  ;;  %v999_v46 = vpop.permute.xlu0 %998  ;;  %v972_v56 = vmul.f32 %v960_v15, %v938_v20  ;;  %v982_v22 = vadd.f32 %v966_v63, %v896_v44  ;;  %v983_v34 = vadd.f32 %v967_v41, %v897_v29  ;;  %v984_v38 = vadd.f32 %v968_v35, %v898_v59 }
 0x148   : > { %v1009_v49 = vsel %vm1006_vm7, %v999_v46, %v1001_v23  ;;  %v992_v42 = vadd.f32 %v976_v18, %v906_v43  ;;  %v978_v12 = vadd.f32 %v962_v48, %v892_v54  ;;  %v985_v19 = vadd.f32 %v969_v58, %v899_v24 }
 0x149   : > { %v1034_v55 = vrot.slane %v1009_v49, %v10439_v8  ;;  %v986_v44 = vadd.f32 %v970_v47, %v11003_v11  ;;  %v979_v29 = vadd.f32 %v963_v13, %v893_v25  ;;  %v980_v59 = vadd.f32 %v964_v31, %v894_v3 }
 0x14a   : > { %v988_v43 = vadd.f32 %v972_v56, %v11008_v36 }
 0x14b   : > { %v1005_v1 = vpop.permute.xlu1 %1004  ;;  %v1003_v2 = vpop.permute.xlu0 %1002  ;;  %v1051_v9 = vmul.f32 %v1034_v55, %v10943_v5  ;;  %v1047_v40 = vmul.f32 %v1034_v55, %v10945_v10 }
 0x14c   : > { %v1010_v39 = vsel %vm1006_vm7, %v1005_v1, %v999_v46  ;;  %v1007_v6 = vsel %vm1006_vm7, %v1003_v2, %v1005_v1  ;;  %v1008_v52 = vsel %vm1006_vm7, %v1001_v23, %v1003_v2 }
 0x14d   : > { %v1046_v7 = vrot.slane %v1010_v39, %v10439_v8  ;;  %v1038_v17 = vrot.slane %v1008_v52, %v10439_v8  ;;  %v1042_v61 = vrot.slane %v1007_v6, %v10439_v8  ;;  %v1067_v27 = vadd.f32 %v1051_v9, %v981_v37 }
 0x14e   : > { %v1063_v54 = vadd.f32 %v1047_v40, %v977_v51 }
 0x14f   : > { %v1029_v21 = vpop.permute.xlu1 %1028  ;;  %v1024_v4 = vpop.permute.xlu0 %1023  ;;  %v1052_v53 = vmul.f32 %v1038_v17, %v10943_v5  ;;  %v1053_v32 = vmul.f32 %v1042_v61, %v10943_v5  ;;  %v1054_v62 = vmul.f32 %v1046_v7, %v10943_v5  ;;  %v1048_v26 = vmul.f32 %v1038_v17, %v10945_v10 }
 0x150   : > { %v1049_v23 = vmul.f32 %v1042_v61, %v10945_v10  ;;  %v1050_v46 = vmul.f32 %v1046_v7, %v10945_v10  ;;  %v987_v5 = vadd.f32 %v971_v57, %v11005_v14  ;;  %v1059_v48 = vmul.f32 %v1034_v55, %v1029_v21 }
 0x151   : > { %v1068_v33 = vadd.f32 %v1052_v53, %v982_v22  ;;  %v1069_v20 = vadd.f32 %v1053_v32, %v983_v34  ;;  %v1070_v15 = vadd.f32 %v1054_v62, %v984_v38  ;;  %v1064_v35 = vadd.f32 %v1048_v26, %v978_v12 }
 0x152   : > { %v1060_v49 = vmul.f32 %v1038_v17, %v1029_v21  ;;  %v1065_v1 = vadd.f32 %v1049_v23, %v979_v29  ;;  %v1066_v10 = vadd.f32 %v1050_v46, %v980_v59  ;;  %v1061_v25 = vmul.f32 %v1042_v61, %v1029_v21 }
 0x153   : > { %v1091_v0 = vpop.permute.xlu1 %1090  ;;  %v1086_v60 = vpop.permute.xlu0 %1085  ;;  %v1055_v3 = vmul.f32 %v1034_v55, %v1024_v4  ;;  %v1062_v14 = vmul.f32 %v1046_v7, %v1029_v21  ;;  %v1056_v50 = vmul.f32 %v1038_v17, %v1024_v4  ;;  %v1057_v36 = vmul.f32 %v1042_v61, %v1024_v4 }
 0x154   : > { %v1107_v63 = vadd.f32 %v1091_v0, %v1067_v27  ;;  %v1108_v39 = vadd.f32 %v1091_v0, %v1068_v33  ;;  %v1109_v6 = vadd.f32 %v1091_v0, %v1069_v20  ;;  %v1110_v11 = vadd.f32 %v1091_v0, %v1070_v15  ;;  %v13896_v27 = vld [vmem:[#allocation11_spill] sm:$0xff] }
 0x155   : > { %v1103_v31 = vadd.f32 %v1086_v60, %v1063_v54  ;;  %v1104_v52 = vadd.f32 %v1086_v60, %v1064_v35  ;;  %v1058_v37 = vmul.f32 %v1046_v7, %v1024_v4  ;;  %v1105_v51 = vadd.f32 %v1086_v60, %v1065_v1 }
 0x156   : > { %v1106_v13 = vadd.f32 %v1086_v60, %v1066_v10  ;;  %v1075_v41 = vadd.f32 %v1059_v48, %v989_v30  ;;  %v1076_v18 = vadd.f32 %v1060_v49, %v990_v16  ;;  %v1123_v58 = vmax.f32 %v1107_v63, 0.0 }
 0x157   : > { %v11043_v2 = vpop.permute.xlu1 %1100  ;;  %v1096_v24 = vpop.permute.xlu0 %1095  ;;  %v1124_v47 = vmax.f32 %v1108_v39, 0.0  ;;  %v1125_v57 = vmax.f32 %v1109_v6, 0.0  ;;  %v1126_v53 = vmax.f32 %v1110_v11, 0.0  ;;  %v1119_v56 = vmax.f32 %v1103_v31, 0.0 }
 0x158   : > { %v1120_v22 = vmax.f32 %v1104_v52, 0.0  ;;  %v1077_v26 = vadd.f32 %v1061_v25, %v991_v45  ;;  %v1071_v55 = vadd.f32 %v1055_v3, %v985_v19  ;;  %v1078_v34 = vadd.f32 %v1062_v14, %v992_v42  ;;  %v13897_v14 = vld [vmem:[#allocation13_spill] sm:$0xff] }
 0x159   : > { %v11046_v21 = vadd.f32 %v11043_v2, %v1075_v41  ;;  %v1072_v17 = vadd.f32 %v1056_v50, %v986_v44  ;;  %v1073_v7 = vadd.f32 %v1057_v36, %v987_v5  ;;  %v1121_v61 = vmax.f32 %v1105_v51, 0.0  ;;  %v13895_v5 = vld [vmem:[#allocation17_spill] sm:$0xff] }
 0x15a   : > { %v1122_v4 = vmax.f32 %v1106_v13, 0.0  ;;  %v1074_v30 = vadd.f32 %v1058_v37, %v988_v43  ;;  %v1111_v16 = vadd.f32 %v1096_v24, %v1071_v55  ;;  %v1116_v6 = vadd.f32 %v11043_v2, %v1076_v18 }
 0x15b   : > { %v1112_v38 = vadd.f32 %v1096_v24, %v1072_v17  ;;  %v1113_v9 = vadd.f32 %v1096_v24, %v1073_v7  ;;  %v1117_v11 = vadd.f32 %v11043_v2, %v1077_v26  ;;  %v1118_v25 = vadd.f32 %v11043_v2, %v1078_v34 }
 0x15c   : > { %v1141_v32 = vpop.permute.xlu1 %1140  ;;  %v1137_v62 = vpop.permute.xlu0 %1136  ;;  %v1114_v1 = vadd.f32 %v1096_v24, %v1074_v30  ;;  %v1127_v10 = vmax.f32 %v1111_v16, 0.0  ;;  %v13898_v24 = vld [vmem:[#allocation12_spill] sm:$0xff] }
 0x15d   : > { %v1151_v40 = vmul.f32 %v1137_v62, %v1119_v56  ;;  %v1152_v0 = vmul.f32 %v1137_v62, %v1120_v22  ;;  %v1155_v12 = vmul.f32 %v1141_v32, %v1123_v58  ;;  %v1156_v23 = vmul.f32 %v1141_v32, %v1124_v47 }
 0x15e   : > { %v1153_v46 = vmul.f32 %v1137_v62, %v1121_v61  ;;  %v1154_v60 = vmul.f32 %v1137_v62, %v1122_v4  ;;  %v1157_v19 = vmul.f32 %v1141_v32, %v1125_v57  ;;  %v1158_v42 = vmul.f32 %v1141_v32, %v1126_v53 }
 0x15f   : > { %v1128_v3 = vmax.f32 %v1112_v38, 0.0  ;;  %v1129_v52 = vmax.f32 %v1113_v9, 0.0  ;;  %v1130_v58 = vmax.f32 %v1114_v1, 0.0  ;;  %v1131_v32 = vmax.f32 %v11046_v21, 0.0 }
 0x160   : > { %v1132_v62 = vmax.f32 %v1116_v6, 0.0  ;;  %v1133_v26 = vmax.f32 %v1117_v11, 0.0  ;;  %v1134_v55 = vmax.f32 %v1118_v25, 0.0 }
 0x161   : > { %v1169_v45 = vpop.permute.xlu1 %1168  ;;  %v1173_v15 = vpop.permute.xlu0 %1172 }
 0x162   : > { %v1183_v33 = vadd.f32 %v1169_v45, %v1151_v40  ;;  %v1184_v20 = vadd.f32 %v1169_v45, %v1152_v0  ;;  %v1185_v44 = vadd.f32 %v1169_v45, %v1153_v46  ;;  %v1186_v29 = vadd.f32 %v1169_v45, %v1154_v60 }
 0x163   : > { %v1187_v59 = vadd.f32 %v1173_v15, %v1155_v12  ;;  %v1188_v35 = vadd.f32 %v1173_v15, %v1156_v23  ;;  %v1189_v48 = vadd.f32 %v1173_v15, %v1157_v19  ;;  %v1190_v49 = vadd.f32 %v1173_v15, %v1158_v42 }
 0x164   : > { %v11049_v43 = vmul.f32 %v13895_v5, %v1183_v33  ;;  %v11052_v54 = vmul.f32 %v13896_v27, %v1184_v20  ;;  %v11064_v50 = vmul.f32 %v13897_v14, %v1185_v44  ;;  %v11067_v36 = vmul.f32 %v13898_v24, %v1186_v29 }
 0x165   : > { %v11055_v63 = vmul.f32 %v13895_v5, %v1187_v59  ;;  %v11058_v39 = vmul.f32 %v13896_v27, %v1188_v35  ;;  %v11070_v51 = vmul.f32 %v13897_v14, %v1189_v48  ;;  %v11073_v13 = vmul.f32 %v13898_v24, %v1190_v49  ;;  %v1177_v41 = vpop.permute.xlu0 %1176 }
 0x166   : > { %v1145_v31 = vpop.permute.xlu1 %1144 }
 0x167   : > { %v1159_v37 = vmul.f32 %v1145_v31, %v1127_v10  ;;  %v11077_v2 = vpack.i.bf16 %v11058_v39, %v11052_v54  ;;  %v11081_v18 = vpack.i.bf16 %v11055_v63, %v11049_v43  ;;  %v1160_v47 = vmul.f32 %v1145_v31, %v1128_v3 }
 0x168   : > { %v1161_v57 = vmul.f32 %v1145_v31, %v1129_v52  ;;  %v1162_v56 = vmul.f32 %v1145_v31, %v1130_v58  ;;  %v11090_v34 = vpack.i.bf16 %v11073_v13, %v11067_v36  ;;  %v11094_v17 = vpack.i.bf16 %v11070_v51, %v11064_v50 }
 0x169   : > { %8839 = vrot.lane.b32.xlu1 %v11077_v2, %s10273_s15  ;;  %8834 = vrot.lane.b32.xlu0 %v11081_v18, %s10273_s15  ;;  %v1191_v22 = vadd.f32 %v1177_v41, %v1159_v37  ;;  %v1192_v7 = vadd.f32 %v1177_v41, %v1160_v47  ;;  %v2006_v48 = vpack.c.bf16 %v11058_v39, %v11052_v54 }
 0x16a   : > { %v1149_v53 = vpop.permute.xlu1 %1148  ;;  %v1193_v61 = vadd.f32 %v1177_v41, %v1161_v57  ;;  %v1194_v21 = vadd.f32 %v1177_v41, %v1162_v56  ;;  %v2008_v49 = vpack.c.bf16 %v11073_v13, %v11067_v36  ;;  %v2005_v1 = vpack.c.bf16 %v11055_v63, %v11049_v43 }
 0x16b   : > { %v1163_v4 = vmul.f32 %v1149_v53, %v1131_v32  ;;  %v1164_v30 = vmul.f32 %v1149_v53, %v1132_v62  ;;  %v1165_v16 = vmul.f32 %v1149_v53, %v1133_v26  ;;  %v1166_v38 = vmul.f32 %v1149_v53, %v1134_v55 }
 0x16c   : > { %v11101_v9 = vmul.f32 %v13895_v5, %v1191_v22  ;;  %v11104_v60 = vmul.f32 %v13896_v27, %v1192_v7  ;;  %v11127_v44 = vmul.f32 %v13898_v24, %v1194_v21  ;;  %v11130_v29 = vmul.f32 %v13897_v14, %v1193_v61 }
 0x16d   : > { %8849 = vrot.lane.b32.xlu1 %v11090_v34, %s10273_s15  ;;  %8844 = vrot.lane.b32.xlu0 %v11094_v17, %s10273_s15  ;;  %v2007_v6 = vpack.c.bf16 %v11070_v51, %v11064_v50 }
 0x16f   : > { %v1181_v40 = vpop.permute.xlu1 %1180 }
 0x170   : > { %v1195_v0 = vadd.f32 %v1181_v40, %v1163_v4  ;;  %v1196_v12 = vadd.f32 %v1181_v40, %v1164_v30  ;;  %v1197_v23 = vadd.f32 %v1181_v40, %v1165_v16  ;;  %v1198_v46 = vadd.f32 %v1181_v40, %v1166_v38 }
 0x172   : > { %v11107_v45 = vmul.f32 %v13895_v5, %v1195_v0  ;;  %v11110_v19 = vmul.f32 %v13896_v27, %v1196_v12  ;;  %v11113_v42 = vmul.f32 %v13898_v24, %v1198_v46  ;;  %v11116_v33 = vmul.f32 %v13897_v14, %v1197_v23 }
 0x174   : > { %v11120_v20 = vpack.i.bf16 %v11110_v19, %v11104_v60  ;;  %v11124_v15 = vpack.i.bf16 %v11107_v45, %v11101_v9  ;;  %v11138_v59 = vpack.i.bf16 %v11113_v42, %v11127_v44  ;;  %v11142_v35 = vpack.i.bf16 %v11116_v33, %v11130_v29 }
 0x175   : > { %v2010_v10 = vpack.c.bf16 %v11110_v19, %v11104_v60  ;;  %v2012_v11 = vpack.c.bf16 %v11113_v42, %v11127_v44  ;;  %v2009_v25 = vpack.c.bf16 %v11107_v45, %v11101_v9  ;;  %v2011_v3 = vpack.c.bf16 %v11116_v33, %v11130_v29  ;;  %v10146_v60 = vld [vmem:[#allocation3 + $0x38] sm:$0xff]  }
 0x176   : > { %8859 = vrot.lane.b32.xlu1 %v11120_v20, %s10273_s15  ;;  %8854 = vrot.lane.b32.xlu0 %v11124_v15, %s10273_s15 }
 0x17a   : > { %8869 = vrot.lane.b32.xlu1 %v11138_v59, %s10273_s15  ;;  %8864 = vrot.lane.b32.xlu0 %v11142_v35, %s10273_s15 }
 0x17e   : > { %8879 = vrot.lane.b32.xlu1 %v11077_v2, %s10272_s11  ;;  %8874 = vrot.lane.b32.xlu0 %v11081_v18, %s10272_s11 }
 0x182   : > { %8889 = vrot.lane.b32.xlu1 %v11090_v34, %s10272_s11  ;;  %8884 = vrot.lane.b32.xlu0 %v11094_v17, %s10272_s11 }
 0x186   : > { %8899 = vrot.lane.b32.xlu1 %v11120_v20, %s10272_s11  ;;  %8894 = vrot.lane.b32.xlu0 %v11124_v15, %s10272_s11 }
 0x18a   : > { %8909 = vrot.lane.b32.xlu1 %v11138_v59, %s10272_s11  ;;  %8904 = vrot.lane.b32.xlu0 %v11142_v35, %s10272_s11 }
 0x18e   : > { %8919 = vrot.lane.b32.xlu1 %v11077_v2, %s10274_s20  ;;  %8914 = vrot.lane.b32.xlu0 %v11081_v18, %s10274_s20 }
 0x192   : > { %8929 = vrot.lane.b32.xlu1 %v11090_v34, %s10274_s20  ;;  %8924 = vrot.lane.b32.xlu0 %v11094_v17, %s10274_s20 }
 0x196   : > { %8939 = vrot.lane.b32.xlu1 %v11120_v20, %s10274_s20  ;;  %8934 = vrot.lane.b32.xlu0 %v11124_v15, %s10274_s20 }
 0x19a   : > { %8949 = vrot.lane.b32.xlu1 %v11138_v59, %s10274_s20  ;;  %8944 = vrot.lane.b32.xlu0 %v11142_v35, %s10274_s20 }
 0x19e   : > { %8959 = vrot.lane.b32.xlu1 %v11077_v2, %s10275_s28  ;;  %8954 = vrot.lane.b32.xlu0 %v11081_v18, %s10275_s28 }
 0x1a2   : > { %8969 = vrot.lane.b32.xlu1 %v11090_v34, %s10275_s28  ;;  %8964 = vrot.lane.b32.xlu0 %v11094_v17, %s10275_s28 }
 0x1a6   : > { %8979 = vrot.lane.b32.xlu1 %v11120_v20, %s10275_s28  ;;  %8974 = vrot.lane.b32.xlu0 %v11124_v15, %s10275_s28 }
 0x1aa   : > { %8989 = vrot.lane.b32.xlu1 %v11138_v59, %s10275_s28  ;;  %8984 = vrot.lane.b32.xlu0 %v11142_v35, %s10275_s28 }
 0x1ae   : > { %8999 = vrot.lane.b32.xlu1 %v11077_v2, %s10276_s8  ;;  %8994 = vrot.lane.b32.xlu0 %v11081_v18, %s10276_s8 }
 0x1b2   : > { %9009 = vrot.lane.b32.xlu1 %v11090_v34, %s10276_s8  ;;  %9004 = vrot.lane.b32.xlu0 %v11094_v17, %s10276_s8 }
 0x1b6   : > { %9019 = vrot.lane.b32.xlu1 %v11120_v20, %s10276_s8  ;;  %9014 = vrot.lane.b32.xlu0 %v11124_v15, %s10276_s8 }
 0x1ba   : > { %9029 = vrot.lane.b32.xlu1 %v11138_v59, %s10276_s8  ;;  %9024 = vrot.lane.b32.xlu0 %v11142_v35, %s10276_s8 }
 0x1be   : > { %9039 = vrot.lane.b32.xlu1 %v11077_v2, %s10277_s17  ;;  %9034 = vrot.lane.b32.xlu0 %v11081_v18, %s10277_s17 }
 0x1c2   : > { %9049 = vrot.lane.b32.xlu1 %v11090_v34, %s10277_s17  ;;  %9044 = vrot.lane.b32.xlu0 %v11094_v17, %s10277_s17 }
 0x1c6   : > { %9059 = vrot.lane.b32.xlu1 %v11120_v20, %s10277_s17  ;;  %9054 = vrot.lane.b32.xlu0 %v11124_v15, %s10277_s17 }
 0x1ca   : > { %9069 = vrot.lane.b32.xlu1 %v11138_v59, %s10277_s17  ;;  %9064 = vrot.lane.b32.xlu0 %v11142_v35, %s10277_s17 }
 0x1ce   : > { %9079 = vrot.lane.b32.xlu1 %v11077_v2, %s10278_s12  ;;  %9074 = vrot.lane.b32.xlu0 %v11081_v18, %s10278_s12 }
 0x1d2   : > { %9089 = vrot.lane.b32.xlu1 %v11090_v34, %s10278_s12  ;;  %9084 = vrot.lane.b32.xlu0 %v11094_v17, %s10278_s12 }
 0x1d6   : > { %9099 = vrot.lane.b32.xlu1 %v11120_v20, %s10278_s12  ;;  %9094 = vrot.lane.b32.xlu0 %v11124_v15, %s10278_s12 }
 0x1da   : > { %9109 = vrot.lane.b32.xlu1 %v11138_v59, %s10278_s12  ;;  %9104 = vrot.lane.b32.xlu0 %v11142_v35, %s10278_s12 }
 0x1db   : > { %v8840_v31 = vpop.permute.xlu1 %8839  ;;  %v8835_v52 = vpop.permute.xlu0 %8834 }
 0x1dc   : > { %v8842_v37 = vunpack.i.h.bf16 %v8840_v31  ;;  %v8841_v41 = vunpack.i.l.bf16 %v8840_v31  ;;  %v8837_v58 = vunpack.i.h.bf16 %v8835_v52  ;;  %v8836_v47 = vunpack.i.l.bf16 %v8835_v52 }
 0x1de   : > { %9119 = vrot.lane.b32.xlu1 %v11077_v2, %s10279_s9  ;;  %9114 = vrot.lane.b32.xlu0 %v11081_v18, %s10279_s9  ;;  %v1341_v57 = vsel %vm433_vm1, %v8836_v47, %v8841_v41  ;;  %v1342_v53 = vsel %vm433_vm1, %v8837_v58, %v8842_v37 }
 0x1df   : > { %v8850_v32 = vpop.permute.xlu1 %8849  ;;  %v8845_v62 = vpop.permute.xlu0 %8844  ;;  %v1350_v56 = vpack.c.bf16 %v1342_v53, %v1341_v57 }
 0x1e0   : > { %v8852_v22 = vunpack.i.h.bf16 %v8850_v32  ;;  %v8851_v26 = vunpack.i.l.bf16 %v8850_v32  ;;  %v8847_v55 = vunpack.i.h.bf16 %v8845_v62  ;;  %v8846_v7 = vunpack.i.l.bf16 %v8845_v62 }
 0x1e1   : > { %1374 = vmatprep.subr.bf16.mxu0 %v1350_v56 }
 0x1e2   : > { %9129 = vrot.lane.b32.xlu1 %v11090_v34, %s10279_s9  ;;  %9124 = vrot.lane.b32.xlu0 %v11094_v17, %s10279_s9  ;;  %v1345_v2 = vsel %vm433_vm1, %v8851_v26, %v8836_v47  ;;  %v1346_v18 = vsel %vm433_vm1, %v8852_v22, %v8837_v58  ;;  %v1333_v61 = vsel %vm433_vm1, %v8846_v7, %v8851_v26 }
 0x1e3   : > { %v1334_v4 = vsel %vm433_vm1, %v8847_v55, %v8852_v22  ;;  %v1349_v30 = vpack.c.bf16 %v1346_v18, %v1345_v2  ;;  %v1337_v34 = vsel %vm433_vm1, %v8841_v41, %v8846_v7  ;;  %v1338_v17 = vsel %vm433_vm1, %v8842_v37, %v8847_v55 }
 0x1e4   : > { %v1352_v16 = vpack.c.bf16 %v1334_v4, %v1333_v61  ;;  %v1351_v38 = vpack.c.bf16 %v1338_v17, %v1337_v34 }
 0x1e5   : > { %1375 = vmatpush1.bf16.msra.mxu0 %v1349_v30  ;;  %v10139_v30 = vld [vmem:[#allocation3 + $0x10] sm:$0xff]  }
 0x1e6   : > { %1427 = vmatprep.subr.bf16.mxu1 %v1352_v16  ;;  %9139 = vrot.lane.b32.xlu1 %v11120_v20, %s10279_s9 }
 0x1e7   : > { %1428 = vmatpush1.bf16.msra.mxu1 %v1351_v38  ;;  %9134 = vrot.lane.b32.xlu0 %v11124_v15, %s10279_s9 }
 0x1e8   : > { %v8860_v21 = vpop.permute.xlu1 %8859  ;;  %v8855_v40 = vpop.permute.xlu0 %8854 }
 0x1e9   : > { %v8862_v0 = vunpack.i.h.bf16 %v8860_v21  ;;  %v8861_v12 = vunpack.i.l.bf16 %v8860_v21  ;;  %v8857_v23 = vunpack.i.h.bf16 %v8855_v40  ;;  %v8856_v46 = vunpack.i.l.bf16 %v8855_v40 }
 0x1ea   : > { %9149 = vrot.lane.b32.xlu1 %v11138_v59, %s10279_s9 }
 0x1eb   : > { %v1343_v31 = vsel %vm433_vm1, %v8856_v46, %v8861_v12  ;;  %v1344_v52 = vsel %vm433_vm1, %v8857_v23, %v8862_v0  ;;  %9144 = vrot.lane.b32.xlu0 %v11142_v35, %s10279_s9 }
 0x1ec   : > { %v8870_v20 = vpop.permute.xlu1 %8869  ;;  %v8865_v15 = vpop.permute.xlu0 %8864  ;;  %v1354_v37 = vpack.c.bf16 %v1344_v52, %v1343_v31  ;;  %v13899_v31 = vmov 0  }
 0x1ed   : > { %v8872_v41 = vunpack.i.h.bf16 %v8870_v20  ;;  %v8871_v58 = vunpack.i.l.bf16 %v8870_v20  ;;  %v8867_v47 = vunpack.i.h.bf16 %v8865_v15  ;;  %v8866_v57 = vunpack.i.l.bf16 %v8865_v15 }
 0x1ee   : > { %1376 = vmatprep.subr.bf16.mxu0 %v1354_v37 }
 0x1ef   : > { %v1347_v59 = vsel %vm433_vm1, %v8871_v58, %v8856_v46  ;;  %v1348_v53 = vsel %vm433_vm1, %v8872_v41, %v8857_v23  ;;  %v1335_v32 = vsel %vm433_vm1, %v8866_v57, %v8871_v58  ;;  %v1336_v35 = vsel %vm433_vm1, %v8867_v47, %v8872_v41 }
 0x1f0   : > { %v8880_v62 = vpop.permute.xlu1 %8879  ;;  %v8875_v56 = vpop.permute.xlu0 %8874  ;;  %v1353_v22 = vpack.c.bf16 %v1348_v53, %v1347_v59  ;;  %v1356_v26 = vpack.c.bf16 %v1336_v35, %v1335_v32  ;;  %v1339_v55 = vsel %vm433_vm1, %v8861_v12, %v8866_v57  ;;  %v1340_v7 = vsel %vm433_vm1, %v8862_v0, %v8867_v47 }
 0x1f1   : > { %v8882_v2 = vunpack.i.h.bf16 %v8880_v62  ;;  %v8881_v18 = vunpack.i.l.bf16 %v8880_v62  ;;  %v8877_v61 = vunpack.i.h.bf16 %v8875_v56  ;;  %v8876_v4 = vunpack.i.l.bf16 %v8875_v56 }
 0x1f2   : > { %1377 = vmatpush1.bf16.msra.mxu0 %v1353_v22  ;;  %1429 = vmatprep.subr.bf16.mxu1 %v1356_v26  ;;  %v1355_v16 = vpack.c.bf16 %v1340_v7, %v1339_v55  ;;  %v10140_v22 = vld [vmem:[#allocation3 + $0x18] sm:$0xff]  }
 0x1f3   : > { %v1280_v34 = vsel %vm347_vm0, %v8876_v4, %v8881_v18  ;;  %v1281_v17 = vsel %vm347_vm0, %v8877_v61, %v8882_v2 }
 0x1f4   : > { %1430 = vmatpush1.bf16.msra.mxu1 %v1355_v16  ;;  %v8890_v38 = vpop.permute.xlu1 %8889  ;;  %v8885_v21 = vpop.permute.xlu0 %8884  ;;  %v1289_v40 = vpack.c.bf16 %v1281_v17, %v1280_v34 }
 0x1f5   : > { %v8892_v0 = vunpack.i.h.bf16 %v8890_v38  ;;  %v8891_v12 = vunpack.i.l.bf16 %v8890_v38  ;;  %v8887_v23 = vunpack.i.h.bf16 %v8885_v21  ;;  %v8886_v46 = vunpack.i.l.bf16 %v8885_v21  ;;  %8208 = vmatmul.mubr.msk.bf16.vlgmr.msra.gmra.mrb[0].mxu0 %vm1367_vm8, %v10139_v30 }
 0x1f6   : > { %1496 = vmatprep.subr.bf16.mxu0 %v1289_v40  ;;  %1416 = vmatprep.mubr.bf16.mxu0 %v13899_v31 }
 0x1f7   : > { %v1284_v52 = vsel %vm347_vm0, %v8891_v12, %v8876_v4  ;;  %v1285_v20 = vsel %vm347_vm0, %v8892_v0, %v8877_v61  ;;  %v1277_v15 = vsel %vm347_vm0, %v8882_v2, %v8887_v23  ;;  %v1276_v37 = vsel %vm347_vm0, %v8881_v18, %v8886_v46  ;;  %8210 = vmatmul.mubr.msk.bf16.vlgmr.msra.gmra.mrb[0].mxu1 %vm1367_vm8, %v10139_v30 }
 0x1f8   : > { %v8900_v41 = vpop.permute.xlu1 %8899  ;;  %v8895_v58 = vpop.permute.xlu0 %8894  ;;  %v1288_v47 = vpack.c.bf16 %v1285_v20, %v1284_v52  ;;  %v1272_v57 = vsel %vm347_vm0, %v8886_v46, %v8891_v12  ;;  %v1273_v59 = vsel %vm347_vm0, %v8887_v23, %v8892_v0  ;;  %v1290_v53 = vpack.c.bf16 %v1277_v15, %v1276_v37  ;;  %1469 = vmatprep.mubr.bf16.mxu1 %v13899_v31  ;;  %v11348_v15 = vld [vmem:[#allocation5 + $0x28] sm:$0xff]  ;;  %v11350_v37 = vld [vmem:[#allocation5 + $0x20] sm:$0xff] }
 0x1f9   : > { %v8902_v32 = vunpack.i.h.bf16 %v8900_v41  ;;  %v8901_v35 = vunpack.i.l.bf16 %v8900_v41  ;;  %v8897_v62 = vunpack.i.h.bf16 %v8895_v58  ;;  %v8896_v56 = vunpack.i.l.bf16 %v8895_v58  ;;  %2959 = vperm.xlu1 %9154, %v11348_v15   ;;  %2954 = vperm.xlu0 %9153, %v11350_v37  }
 0x1fa   : > { %1497 = vmatpush1.bf16.msra.mxu0 %v1288_v47  ;;  %v1291_v26 = vpack.c.bf16 %v1273_v59, %v1272_v57  ;;  %v10141_v59 = vld [vmem:[#allocation3] sm:$0xff]  }
 0x1fb   : > { %v1282_v55 = vsel %vm347_vm0, %v8896_v56, %v8901_v35  ;;  %v1283_v7 = vsel %vm347_vm0, %v8897_v62, %v8902_v32 }
 0x1fc   : > { %1549 = vmatprep.subr.bf16.mxu1 %v1291_v26  ;;  %v8910_v2 = vpop.permute.xlu1 %8909  ;;  %v8905_v18 = vpop.permute.xlu0 %8904  ;;  %v1293_v61 = vpack.c.bf16 %v1283_v7, %v1282_v55  ;;  %v11358_v26 = vld [vmem:[#allocation5 + $0x30] sm:$0xff] }
 0x1fd   : > { %1550 = vmatpush1.bf16.msra.mxu1 %v1290_v53  ;;  %v8912_v4 = vunpack.i.h.bf16 %v8910_v2  ;;  %v8911_v30 = vunpack.i.l.bf16 %v8910_v2  ;;  %v8907_v16 = vunpack.i.h.bf16 %v8905_v18  ;;  %v8906_v34 = vunpack.i.l.bf16 %v8905_v18  ;;  %8209 = vmatmul.mubr.msk.bf16.gmra.mrb[4].mxu0 %vm1367_vm8, %v10140_v22 }
 0x1fe   : > { %1498 = vmatprep.subr.bf16.mxu0 %v1293_v61  ;;  %1528 = vmatprep.mubr.bf16.mxu0 %v13899_v31  ;;  %v11362_v61 = vld [vmem:[#allocation5 + $0x38] sm:$0xff] }
 0x1ff   : > { %v1286_v17 = vsel %vm347_vm0, %v8911_v30, %v8896_v56  ;;  %v1287_v38 = vsel %vm347_vm0, %v8912_v4, %v8897_v62  ;;  %v1279_v21 = vsel %vm347_vm0, %v8902_v32, %v8907_v16  ;;  %v1278_v40 = vsel %vm347_vm0, %v8901_v35, %v8906_v34  ;;  %8211 = vmatmul.mubr.msk.bf16.gmra.mrb[4].mxu1 %vm1367_vm8, %v10140_v22 }
 0x200   : > { %v8920_v0 = vpop.permute.xlu1 %8919  ;;  %v8915_v12 = vpop.permute.xlu0 %8914  ;;  %v1292_v23 = vpack.c.bf16 %v1287_v38, %v1286_v17  ;;  %v1274_v46 = vsel %vm347_vm0, %v8906_v34, %v8911_v30  ;;  %v1275_v52 = vsel %vm347_vm0, %v8907_v16, %v8912_v4  ;;  %v1294_v20 = vpack.c.bf16 %v1279_v21, %v1278_v40  ;;  %1581 = vmatprep.mubr.bf16.mxu1 %v13899_v31 }
 0x201   : > { %v8922_v41 = vunpack.i.h.bf16 %v8920_v0  ;;  %v8921_v58 = vunpack.i.l.bf16 %v8920_v0  ;;  %v8917_v47 = vunpack.i.h.bf16 %v8915_v12  ;;  %v8916_v57 = vunpack.i.l.bf16 %v8915_v12  ;;  %2964 = vperm.xlu1 %9154, %v11358_v26   ;;  %2969 = vperm.xlu0 %9153, %v11362_v61  }
 0x202   : > { %1499 = vmatpush1.bf16.msra.mxu0 %v1292_v23  ;;  %v1295_v53 = vpack.c.bf16 %v1275_v52, %v1274_v46 }
 0x203   : > { %v1647_v32 = vsel %vm519_vm2, %v8916_v57, %v8921_v58  ;;  %v1648_v35 = vsel %vm519_vm2, %v8917_v47, %v8922_v41 }
 0x204   : > { %1551 = vmatprep.subr.bf16.mxu1 %v1295_v53  ;;  %v8930_v62 = vpop.permute.xlu1 %8929  ;;  %v8925_v56 = vpop.permute.xlu0 %8924  ;;  %v1656_v22 = vpack.c.bf16 %v1648_v35, %v1647_v32 }
 0x205   : > { %1552 = vmatpush1.bf16.msra.mxu1 %v1294_v20  ;;  %v8932_v55 = vunpack.i.h.bf16 %v8930_v62  ;;  %v8931_v7 = vunpack.i.l.bf16 %v8930_v62  ;;  %v8927_v2 = vunpack.i.h.bf16 %v8925_v56  ;;  %v8926_v18 = vunpack.i.l.bf16 %v8925_v56  ;;  %8214 = vmatmul.mubr.msk.bf16.vlgmr.msra.gmra.mrb[0].mxu0 %vm1367_vm8, %v10141_v59 }
 0x206   : > { %1679 = vmatprep.subr.bf16.mxu0 %v1656_v22  ;;  %1538 = vmatprep.mubr.bf16.mxu0 %v13899_v31 }
 0x207   : > { %v1651_v4 = vsel %vm519_vm2, %v8931_v7, %v8916_v57  ;;  %v1652_v30 = vsel %vm519_vm2, %v8932_v55, %v8917_v47  ;;  %v1644_v16 = vsel %vm519_vm2, %v8922_v41, %v8927_v2  ;;  %v1643_v34 = vsel %vm519_vm2, %v8921_v58, %v8926_v18  ;;  %v10142_v41 = vld [vmem:[#allocation3 + $0x8] sm:$0xff]  }
 0x208   : > { %8216 = vmatmul.mubr.msk.bf16.vlgmr.msra.gmra.mrb[0].mxu1 %vm1367_vm8, %v10141_v59  ;;  %v8940_v17 = vpop.permute.xlu1 %8939  ;;  %v8935_v38 = vpop.permute.xlu0 %8934  ;;  %v1655_v21 = vpack.c.bf16 %v1652_v30, %v1651_v4  ;;  %v1639_v40 = vsel %vm519_vm2, %v8926_v18, %v8931_v7  ;;  %v1640_v0 = vsel %vm519_vm2, %v8927_v2, %v8932_v55  ;;  %v1657_v12 = vpack.c.bf16 %v1644_v16, %v1643_v34 }
 0x209   : > { %v8942_v23 = vunpack.i.h.bf16 %v8940_v17  ;;  %v8941_v46 = vunpack.i.l.bf16 %v8940_v17  ;;  %v8937_v52 = vunpack.i.h.bf16 %v8935_v38  ;;  %v8936_v20 = vunpack.i.l.bf16 %v8935_v38  ;;  %1591 = vmatprep.mubr.bf16.mxu1 %v13899_v31 }
 0x20a   : > { %1680 = vmatpush1.bf16.msra.mxu0 %v1655_v21  ;;  %v1658_v58 = vpack.c.bf16 %v1640_v0, %v1639_v40  ;;  %v13900_v59 = vmov 1  }
 0x20b   : > { %v1649_v47 = vsel %vm519_vm2, %v8936_v20, %v8941_v46  ;;  %v1650_v57 = vsel %vm519_vm2, %v8937_v52, %v8942_v23  ;;  %9155 = vset.pattern.permute.xlu1 %v13900_v59  ;;  %9156 = vset.pattern.permute.xlu0 %v13900_v59 }
 0x20c   : > { %1732 = vmatprep.subr.bf16.mxu1 %v1658_v58  ;;  %v8950_v53 = vpop.permute.xlu1 %8949  ;;  %v8945_v32 = vpop.permute.xlu0 %8944  ;;  %v1660_v35 = vpack.c.bf16 %v1650_v57, %v1649_v47  ;;  %3005 = vperm.xlu1 %9155, %v11350_v37  }
 0x20d   : > { %1733 = vmatpush1.bf16.msra.mxu1 %v1657_v12  ;;  %v8952_v62 = vunpack.i.h.bf16 %v8950_v53  ;;  %v8951_v56 = vunpack.i.l.bf16 %v8950_v53  ;;  %v8947_v22 = vunpack.i.h.bf16 %v8945_v32  ;;  %v8946_v55 = vunpack.i.l.bf16 %v8945_v32  ;;  %8215 = vmatmul.mubr.msk.bf16.gmra.mrb[4].mxu0 %vm1367_vm8, %v10142_v41 }
 0x20e   : > { %1681 = vmatprep.subr.bf16.mxu0 %v1660_v35  ;;  %1711 = vmatprep.mubr.bf16.mxu0 %v13899_v31 }
 0x20f   : > { %v1653_v7 = vsel %vm519_vm2, %v8951_v56, %v8936_v20  ;;  %v1654_v2 = vsel %vm519_vm2, %v8952_v62, %v8937_v52  ;;  %v1646_v18 = vsel %vm519_vm2, %v8942_v23, %v8947_v22  ;;  %v1645_v4 = vsel %vm519_vm2, %v8941_v46, %v8946_v55  ;;  %v10143_v52 = vld [vmem:[#allocation3 + $0x20] sm:$0xff]   ;;  %3009 = vperm.xlu0 %9156, %v11348_v15  }
 0x210   : > { %8217 = vmatmul.mubr.msk.bf16.gmra.mrb[4].mxu1 %vm1367_vm8, %v10142_v41  ;;  %v8960_v30 = vpop.permute.xlu1 %8959  ;;  %v8955_v16 = vpop.permute.xlu0 %8954  ;;  %v1659_v34 = vpack.c.bf16 %v1654_v2, %v1653_v7  ;;  %v1641_v17 = vsel %vm519_vm2, %v8946_v55, %v8951_v56  ;;  %v1642_v38 = vsel %vm519_vm2, %v8947_v22, %v8952_v62  ;;  %v1661_v21 = vpack.c.bf16 %v1646_v18, %v1645_v4 }
 0x211   : > { %v8962_v40 = vunpack.i.h.bf16 %v8960_v30  ;;  %v8961_v0 = vunpack.i.l.bf16 %v8960_v30  ;;  %v8957_v12 = vunpack.i.h.bf16 %v8955_v16  ;;  %v8956_v23 = vunpack.i.l.bf16 %v8955_v16  ;;  %1764 = vmatprep.mubr.bf16.mxu1 %v13899_v31 }
 0x212   : > { %v13901_v46 = vmov 2   ;;  %1682 = vmatpush1.bf16.msra.mxu0 %v1659_v34  ;;  %v1662_v20 = vpack.c.bf16 %v1642_v38, %v1641_v17 }
 0x213   : > { %9157 = vset.pattern.permute.xlu1 %v13901_v46  ;;  %v1846_v41 = vsel %vm605_vm3, %v8956_v23, %v8961_v0  ;;  %v1847_v58 = vsel %vm605_vm3, %v8957_v12, %v8962_v40  ;;  %3013 = vperm.xlu0 %9156, %v11358_v26  }
 0x214   : > { %3037 = vperm.xlu1 %9157, %v11350_v37   ;;  %1734 = vmatprep.subr.bf16.mxu1 %v1662_v20  ;;  %v8970_v47 = vpop.permute.xlu1 %8969  ;;  %v8965_v57 = vpop.permute.xlu0 %8964  ;;  %v1855_v53 = vpack.c.bf16 %v1847_v58, %v1846_v41 }
 0x215   : > { %1735 = vmatpush1.bf16.msra.mxu1 %v1661_v21  ;;  %v8972_v32 = vunpack.i.h.bf16 %v8970_v47  ;;  %v8971_v35 = vunpack.i.l.bf16 %v8970_v47  ;;  %v8967_v62 = vunpack.i.h.bf16 %v8965_v57  ;;  %v8966_v56 = vunpack.i.l.bf16 %v8965_v57  ;;  %8220 = vmatmul.mubr.msk.bf16.vlgmr.msra.gmra.mrb[0].mxu0 %vm1367_vm8, %v10143_v52 }
 0x216   : > { %1878 = vmatprep.subr.bf16.mxu0 %v1855_v53  ;;  %1721 = vmatprep.mubr.bf16.mxu0 %v13899_v31 }
 0x217   : > { %v1850_v37 = vsel %vm605_vm3, %v8971_v35, %v8956_v23  ;;  %v1851_v22 = vsel %vm605_vm3, %v8972_v32, %v8957_v12  ;;  %v1843_v55 = vsel %vm605_vm3, %v8962_v40, %v8967_v62  ;;  %v1842_v7 = vsel %vm605_vm3, %v8961_v0, %v8966_v56  ;;  %v10144_v12 = vld [vmem:[#allocation3 + $0x28] sm:$0xff]   ;;  %9159 = vset.pattern.permute.xlu0 %v13901_v46 }
 0x218   : > { %3041 = vperm.xlu1 %9157, %v11348_v15   ;;  %8222 = vmatmul.mubr.msk.bf16.vlgmr.msra.gmra.mrb[0].mxu1 %vm1367_vm8, %v10143_v52  ;;  %v8980_v2 = vpop.permute.xlu1 %8979  ;;  %v8975_v18 = vpop.permute.xlu0 %8974  ;;  %v1854_v4 = vpack.c.bf16 %v1851_v22, %v1850_v37  ;;  %v1838_v30 = vsel %vm605_vm3, %v8966_v56, %v8971_v35  ;;  %v1839_v16 = vsel %vm605_vm3, %v8967_v62, %v8972_v32 }
 0x219   : > { %v1856_v34 = vpack.c.bf16 %v1843_v55, %v1842_v7  ;;  %v8982_v17 = vunpack.i.h.bf16 %v8980_v2  ;;  %v8981_v38 = vunpack.i.l.bf16 %v8980_v2  ;;  %v8977_v21 = vunpack.i.h.bf16 %v8975_v18  ;;  %1774 = vmatprep.mubr.bf16.mxu1 %v13899_v31  ;;  %3045 = vperm.xlu0 %9159, %v11358_v26  }
 0x21a   : > { %v8976_v40 = vunpack.i.l.bf16 %v8975_v18  ;;  %1879 = vmatpush1.bf16.msra.mxu0 %v1854_v4  ;;  %v1857_v15 = vpack.c.bf16 %v1839_v16, %v1838_v30  ;;  %v10145_v4 = vld [vmem:[#allocation3 + $0x30] sm:$0xff]  }
 0x21b   : > { %v1849_v23 = vsel %vm605_vm3, %v8977_v21, %v8982_v17 }
 0x21c   : > { %v1848_v0 = vsel %vm605_vm3, %v8976_v40, %v8981_v38  ;;  %9158 = vset.pattern.permute.xlu1 %v13900_v59  ;;  %1931 = vmatprep.subr.bf16.mxu1 %v1857_v15  ;;  %v8990_v52 = vpop.permute.xlu1 %8989  ;;  %v8985_v20 = vpop.permute.xlu0 %8984 }
 0x21d   : > { %v1859_v41 = vpack.c.bf16 %v1849_v23, %v1848_v0  ;;  %3017 = vperm.xlu1 %9158, %v11362_v61   ;;  %1932 = vmatpush1.bf16.msra.mxu1 %v1856_v34  ;;  %v8992_v58 = vunpack.i.h.bf16 %v8990_v52  ;;  %v8991_v47 = vunpack.i.l.bf16 %v8990_v52  ;;  %v8987_v57 = vunpack.i.h.bf16 %v8985_v20  ;;  %v10147_v23 = vld [vmem:[#allocation3 + $0x40] sm:$0xff]  }
 0x21e   : > { %v8986_v53 = vunpack.i.l.bf16 %v8985_v20  ;;  %8221 = vmatmul.mubr.msk.bf16.gmra.mrb[4].mxu0 %vm1367_vm8, %v10144_v12  ;;  %9482 = vset.pattern.permute.xlu0 %v13899_v31 }
 0x21f   : > { %1880 = vmatprep.subr.bf16.mxu0 %v1859_v41  ;;  %1910 = vmatprep.mubr.bf16.mxu0 %v13899_v31  ;;  %v1852_v32 = vsel %vm605_vm3, %v8991_v47, %v8976_v40  ;;  %v1853_v35 = vsel %vm605_vm3, %v8992_v58, %v8977_v21  ;;  %v1845_v62 = vsel %vm605_vm3, %v8982_v17, %v8987_v57 }
 0x220   : > { %v1844_v56 = vsel %vm605_vm3, %v8981_v38, %v8986_v53  ;;  %8223 = vmatmul.mubr.msk.bf16.gmra.mrb[4].mxu1 %vm1367_vm8, %v10144_v12  ;;  %v9000_v37 = vpop.permute.xlu1 %8999  ;;  %v8995_v22 = vpop.permute.xlu0 %8994  ;;  %v1858_v55 = vpack.c.bf16 %v1853_v35, %v1852_v32  ;;  %v1840_v7 = vsel %vm605_vm3, %v8986_v53, %v8991_v47  ;;  %v1841_v2 = vsel %vm605_vm3, %v8987_v57, %v8992_v58 }
 0x221   : > { %v1860_v18 = vpack.c.bf16 %v1845_v62, %v1844_v56  ;;  %1963 = vmatprep.mubr.bf16.mxu1 %v13899_v31  ;;  %v1861_v30 = vpack.c.bf16 %v1841_v2, %v1840_v7  ;;  %9160 = vset.pattern.permute.xlu1 %v13901_v46  ;;  %v9002_v16 = vunpack.i.h.bf16 %v9000_v37  ;;  %v9001_v34 = vunpack.i.l.bf16 %v9000_v37 }
 0x222   : > { %1881 = vmatpush1.bf16.msra.mxu0 %v1858_v55  ;;  %3049 = vperm.xlu1 %9160, %v11362_v61   ;;  %v8997_v54 = vunpack.i.h.bf16 %v8995_v22  ;;  %v8996_v39 = vunpack.i.l.bf16 %v8995_v22 }
 0x223   : > { %2029 = vmatprep.subr.bf16.mxu0 %v2006_v48  ;;  %1933 = vmatprep.subr.bf16.mxu1 %v1861_v30 }
 0x224   : > { %v9010_v17 = vpop.permute.xlu1 %9009  ;;  %v9005_v38 = vpop.permute.xlu0 %9004  ;;  %1934 = vmatpush1.bf16.msra.mxu1 %v1860_v18  ;;  %v2197_v9 = vsel %vm748_vm4, %v8997_v54, %v9002_v16  ;;  %v2196_v45 = vsel %vm748_vm4, %v8996_v39, %v9001_v34 }
 0x225   : > { %v9012_v21 = vunpack.i.h.bf16 %v9010_v17  ;;  %v9011_v40 = vunpack.i.l.bf16 %v9010_v17  ;;  %v9007_v12 = vunpack.i.h.bf16 %v9005_v38  ;;  %v9006_v26 = vunpack.i.l.bf16 %v9005_v38  ;;  %2082 = vmatprep.subr.bf16.mxu1 %v2008_v49 }
 0x226   : > { %8226 = vmatmul.mubr.msk.bf16.vlgmr.msra.gmra.mrb[0].mxu0 %vm1367_vm8, %v10145_v4  ;;  %9481 = vset.pattern.permute.xlu1 %v13899_v31  ;;  %v2204_v20 = vpack.c.bf16 %v2197_v9, %v2196_v45 }
 0x227   : > { %2030 = vmatpush1.bf16.msra.mxu0 %v2005_v1  ;;  %v2192_v48 = vsel %vm748_vm4, %v9001_v34, %v9006_v26  ;;  %v2193_v61 = vsel %vm748_vm4, %v9002_v16, %v9007_v12  ;;  %1920 = vmatprep.mubr.bf16.mxu0 %v13899_v31  ;;  %v2200_v43 = vsel %vm748_vm4, %v9011_v40, %v8996_v39 }
 0x228   : > { %2031 = vmatprep.subr.bf16.mxu0 %v2010_v10  ;;  %8228 = vmatmul.mubr.msk.bf16.vlgmr.msra.gmra.mrb[0].mxu1 %vm1367_vm8, %v10145_v4  ;;  %v9020_v36 = vpop.permute.xlu1 %9019  ;;  %v9015_v13 = vpop.permute.xlu0 %9014  ;;  %v2205_v49 = vpack.c.bf16 %v2193_v61, %v2192_v48  ;;  %v2201_v63 = vsel %vm748_vm4, %v9012_v21, %v8997_v54  ;;  %v2189_v52 = vsel %vm748_vm4, %v9007_v12, %v9012_v21  ;;  %v10148_v61 = vld [vmem:[#allocation3 + $0x48] sm:$0xff]  }
 0x229   : > { %2083 = vmatpush1.bf16.msra.mxu1 %v2007_v6  ;;  %1973 = vmatprep.mubr.bf16.mxu1 %v13899_v31  ;;  %v2207_v19 = vpack.c.bf16 %v2201_v63, %v2200_v43  ;;  %v9022_v42 = vunpack.i.h.bf16 %v9020_v36  ;;  %v9021_v44 = vunpack.i.l.bf16 %v9020_v36  ;;  %v9017_v6 = vunpack.i.h.bf16 %v9015_v13 }
 0x22a   : > { %2084 = vmatprep.subr.bf16.mxu1 %v2012_v11  ;;  %v9016_v11 = vunpack.i.l.bf16 %v9015_v13  ;;  %v2188_v41 = vsel %vm748_vm4, %v9006_v26, %v9011_v40 }
 0x22b   : > { %2032 = vmatpush1.bf16.msra.mxu0 %v2009_v25  ;;  %v2199_v58 = vsel %vm748_vm4, %v9017_v6, %v9022_v42  ;;  %v2206_v30 = vpack.c.bf16 %v2189_v52, %v2188_v41 }
 0x22c   : > { %2228 = vmatprep.subr.bf16.mxu0 %v2205_v49  ;;  %v9030_v50 = vpop.permute.xlu1 %9029  ;;  %v9025_v51 = vpop.permute.xlu0 %9024  ;;  %v2198_v47 = vsel %vm748_vm4, %v9016_v11, %v9021_v44 }
 0x22d   : > { %2085 = vmatpush1.bf16.msra.mxu1 %v2011_v3  ;;  %v9027_v1 = vunpack.i.h.bf16 %v9025_v51  ;;  %v9026_v10 = vunpack.i.l.bf16 %v9025_v51  ;;  %v9032_v25 = vunpack.i.h.bf16 %v9030_v50  ;;  %v9031_v33 = vunpack.i.l.bf16 %v9030_v50 }
 0x22e   : > { %8227 = vmatmul.mubr.msk.bf16.gmra.mrb[4].mxu0 %vm1367_vm8, %v10146_v60  ;;  %2281 = vmatprep.subr.bf16.mxu1 %v2207_v19  ;;  %v2208_v16 = vpack.c.bf16 %v2199_v58, %v2198_v47 }
 0x22f   : > { %2061 = vmatprep.mubr.bf16.mxu0 %v13899_v31  ;;  %v2194_v15 = vsel %vm748_vm4, %v9021_v44, %v9026_v10  ;;  %v2195_v0 = vsel %vm748_vm4, %v9022_v42, %v9027_v1  ;;  %v2202_v56 = vsel %vm748_vm4, %v9031_v33, %v9016_v11  ;;  %v2203_v37 = vsel %vm748_vm4, %v9032_v25, %v9017_v6 }
 0x230   : > { %8229 = vmatmul.mubr.msk.bf16.gmra.mrb[4].mxu1 %vm1367_vm8, %v10146_v60  ;;  %v9040_v29 = vpop.permute.xlu1 %9039  ;;  %v9035_v3 = vpop.permute.xlu0 %9034  ;;  %v2209_v57 = vpack.c.bf16 %v2195_v0, %v2194_v15  ;;  %v2191_v34 = vsel %vm748_vm4, %v9027_v1, %v9032_v25  ;;  %v2190_v17 = vsel %vm748_vm4, %v9026_v10, %v9031_v33  ;;  %v2211_v40 = vpack.c.bf16 %v2203_v37, %v2202_v56  ;;  %v10149_v33 = vld [vmem:[#allocation3 + $0x50] sm:$0xff]  }
 0x231   : > { %2114 = vmatprep.mubr.bf16.mxu1 %v13899_v31  ;;  %v9042_v53 = vunpack.i.h.bf16 %v9040_v29  ;;  %v9041_v32 = vunpack.i.l.bf16 %v9040_v29  ;;  %v9037_v18 = vunpack.i.h.bf16 %v9035_v3  ;;  %v9036_v4 = vunpack.i.l.bf16 %v9035_v3 }
 0x232   : > { %v2210_v13 = vpack.c.bf16 %v2191_v34, %v2190_v17 }
 0x233   : > { %v2396_v19 = vsel %vm834_vm5, %v9037_v18, %v9042_v53  ;;  %v2395_v1 = vsel %vm834_vm5, %v9036_v4, %v9041_v32 }
 0x234   : > { %v9050_v35 = vpop.permute.xlu1 %9049  ;;  %v9045_v62 = vpop.permute.xlu0 %9044  ;;  %v2403_v3 = vpack.c.bf16 %v2396_v19, %v2395_v1 }
 0x235   : > { %v9052_v22 = vunpack.i.h.bf16 %v9050_v35  ;;  %v9051_v55 = vunpack.i.l.bf16 %v9050_v35  ;;  %v9047_v7 = vunpack.i.h.bf16 %v9045_v62  ;;  %v9046_v2 = vunpack.i.l.bf16 %v9045_v62 }
 0x236   : > { %8232 = vmatmul.mubr.msk.bf16.vlgmr.msra.gmra.mrb[0].mxu0 %vm1367_vm8, %v10147_v23 }
 0x237   : > { %2229 = vmatpush1.bf16.msra.mxu0 %v2204_v20  ;;  %2071 = vmatprep.mubr.bf16.mxu0 %v13899_v31  ;;  %v2391_v38 = vsel %vm834_vm5, %v9041_v32, %v9046_v2  ;;  %v2392_v21 = vsel %vm834_vm5, %v9042_v53, %v9047_v7  ;;  %v2399_v39 = vsel %vm834_vm5, %v9051_v55, %v9036_v4 }
 0x238   : > { %2230 = vmatprep.subr.bf16.mxu0 %v2209_v57  ;;  %8234 = vmatmul.mubr.msk.bf16.vlgmr.msra.gmra.mrb[0].mxu1 %vm1367_vm8, %v10147_v23  ;;  %v9060_v12 = vpop.permute.xlu1 %9059  ;;  %v9055_v26 = vpop.permute.xlu0 %9054  ;;  %v2404_v54 = vpack.c.bf16 %v2392_v21, %v2391_v38  ;;  %v2400_v48 = vsel %vm834_vm5, %v9052_v22, %v9037_v18  ;;  %v2388_v29 = vsel %vm834_vm5, %v9047_v7, %v9052_v22 }
 0x239   : > { %2282 = vmatpush1.bf16.msra.mxu1 %v2206_v30  ;;  %2124 = vmatprep.mubr.bf16.mxu1 %v13899_v31  ;;  %v2406_v36 = vpack.c.bf16 %v2400_v48, %v2399_v39  ;;  %v9062_v50 = vunpack.i.h.bf16 %v9060_v12  ;;  %v9061_v51 = vunpack.i.l.bf16 %v9060_v12  ;;  %v9057_v10 = vunpack.i.h.bf16 %v9055_v26  ;;  %v10150_v12 = vld [vmem:[#allocation3 + $0x58] sm:$0xff]  }
 0x23a   : > { %2283 = vmatprep.subr.bf16.mxu1 %v2211_v40  ;;  %v9056_v42 = vunpack.i.l.bf16 %v9055_v26  ;;  %v2387_v15 = vsel %vm834_vm5, %v9046_v2, %v9051_v55 }
 0x23b   : > { %2231 = vmatpush1.bf16.msra.mxu0 %v2208_v16  ;;  %v2398_v0 = vsel %vm834_vm5, %v9057_v10, %v9062_v50  ;;  %v2405_v55 = vpack.c.bf16 %v2388_v29, %v2387_v15 }
 0x23c   : > { %2427 = vmatprep.subr.bf16.mxu0 %v2404_v54  ;;  %v9070_v49 = vpop.permute.xlu1 %9069  ;;  %v9065_v43 = vpop.permute.xlu0 %9064  ;;  %v2397_v23 = vsel %vm834_vm5, %v9056_v42, %v9061_v51 }
 0x23d   : > { %2284 = vmatpush1.bf16.msra.mxu1 %v2210_v13  ;;  %v9067_v63 = vunpack.i.h.bf16 %v9065_v43  ;;  %v9066_v60 = vunpack.i.l.bf16 %v9065_v43  ;;  %v9072_v44 = vunpack.i.h.bf16 %v9070_v49  ;;  %v9071_v9 = vunpack.i.l.bf16 %v9070_v49 }
 0x23e   : > { %8233 = vmatmul.mubr.msk.bf16.gmra.mrb[4].mxu0 %vm1367_vm8, %v10148_v61  ;;  %2480 = vmatprep.subr.bf16.mxu1 %v2406_v36  ;;  %v2407_v7 = vpack.c.bf16 %v2398_v0, %v2397_v23 }
 0x23f   : > { %2260 = vmatprep.mubr.bf16.mxu0 %v13899_v31  ;;  %v2393_v11 = vsel %vm834_vm5, %v9061_v51, %v9066_v60  ;;  %v2394_v25 = vsel %vm834_vm5, %v9062_v50, %v9067_v63  ;;  %v2401_v57 = vsel %vm834_vm5, %v9071_v9, %v9056_v42  ;;  %v2402_v53 = vsel %vm834_vm5, %v9072_v44, %v9057_v10 }
 0x240   : > { %8235 = vmatmul.mubr.msk.bf16.gmra.mrb[4].mxu1 %vm1367_vm8, %v10148_v61  ;;  %v9080_v45 = vpop.permute.xlu1 %9079  ;;  %v9075_v6 = vpop.permute.xlu0 %9074  ;;  %v2408_v52 = vpack.c.bf16 %v2394_v25, %v2393_v11  ;;  %v2390_v2 = vsel %vm834_vm5, %v9067_v63, %v9072_v44  ;;  %v2389_v18 = vsel %vm834_vm5, %v9066_v60, %v9071_v9  ;;  %v2410_v16 = vpack.c.bf16 %v2402_v53, %v2401_v57  ;;  %v10151_v9 = vld [vmem:[#allocation3 + $0x60] sm:$0xff]  }
 0x241   : > { %2313 = vmatprep.mubr.bf16.mxu1 %v13899_v31  ;;  %v9082_v20 = vunpack.i.h.bf16 %v9080_v45  ;;  %v9081_v41 = vunpack.i.l.bf16 %v9080_v45  ;;  %v9077_v37 = vunpack.i.h.bf16 %v9075_v6  ;;  %v9076_v22 = vunpack.i.l.bf16 %v9075_v6 }
 0x242   : > { %v2409_v54 = vpack.c.bf16 %v2390_v2, %v2389_v18 }
 0x243   : > { %v2595_v13 = vsel %vm920_vm6, %v9077_v37, %v9082_v20  ;;  %v2594_v49 = vsel %vm920_vm6, %v9076_v22, %v9081_v41 }
 0x244   : > { %v9090_v58 = vpop.permute.xlu1 %9089  ;;  %v9085_v47 = vpop.permute.xlu0 %9084  ;;  %v2602_v25 = vpack.c.bf16 %v2595_v13, %v2594_v49 }
 0x245   : > { %v9092_v32 = vunpack.i.h.bf16 %v9090_v58  ;;  %v9091_v35 = vunpack.i.l.bf16 %v9090_v58  ;;  %v9087_v62 = vunpack.i.h.bf16 %v9085_v47  ;;  %v9086_v56 = vunpack.i.l.bf16 %v9085_v47 }
 0x246   : > { %8238 = vmatmul.mubr.msk.bf16.vlgmr.msra.gmra.mrb[0].mxu0 %vm1367_vm8, %v10149_v33 }
 0x247   : > { %2428 = vmatpush1.bf16.msra.mxu0 %v2403_v3  ;;  %2270 = vmatprep.mubr.bf16.mxu0 %v13899_v31  ;;  %v2590_v4 = vsel %vm920_vm6, %v9081_v41, %v9086_v56  ;;  %v2591_v30 = vsel %vm920_vm6, %v9082_v20, %v9087_v62  ;;  %v2598_v21 = vsel %vm920_vm6, %v9091_v35, %v9076_v22 }
 0x248   : > { %2429 = vmatprep.subr.bf16.mxu0 %v2408_v52  ;;  %8240 = vmatmul.mubr.msk.bf16.vlgmr.msra.gmra.mrb[0].mxu1 %vm1367_vm8, %v10149_v33  ;;  %v9100_v34 = vpop.permute.xlu1 %9099  ;;  %v9095_v17 = vpop.permute.xlu0 %9094  ;;  %v2603_v38 = vpack.c.bf16 %v2591_v30, %v2590_v4  ;;  %v2599_v40 = vsel %vm920_vm6, %v9092_v32, %v9077_v37  ;;  %v2587_v43 = vsel %vm920_vm6, %v9087_v62, %v9092_v32 }
 0x249   : > { %2481 = vmatpush1.bf16.msra.mxu1 %v2405_v55  ;;  %2323 = vmatprep.mubr.bf16.mxu1 %v13899_v31  ;;  %v2605_v26 = vpack.c.bf16 %v2599_v40, %v2598_v21  ;;  %v9102_v63 = vunpack.i.h.bf16 %v9100_v34  ;;  %v9101_v60 = vunpack.i.l.bf16 %v9100_v34  ;;  %v9097_v50 = vunpack.i.h.bf16 %v9095_v17 }
 0x24a   : > { %2482 = vmatprep.subr.bf16.mxu1 %v2410_v16  ;;  %v2586_v51 = vsel %vm920_vm6, %v9086_v56, %v9091_v35  ;;  %v9096_v19 = vunpack.i.l.bf16 %v9095_v17  ;;  %v10152_v16 = vld [vmem:[#allocation3 + $0x68] sm:$0xff]  }
 0x24b   : > { %2430 = vmatpush1.bf16.msra.mxu0 %v2407_v7  ;;  %v2597_v11 = vsel %vm920_vm6, %v9097_v50, %v9102_v63  ;;  %v2604_v33 = vpack.c.bf16 %v2587_v43, %v2586_v51 }
 0x24c   : > { %2626 = vmatprep.subr.bf16.mxu0 %v2603_v38  ;;  %v9110_v39 = vpop.permute.xlu1 %9109  ;;  %v9105_v48 = vpop.permute.xlu0 %9104  ;;  %v2596_v29 = vsel %vm920_vm6, %v9096_v19, %v9101_v60 }
 0x24d   : > { %2483 = vmatpush1.bf16.msra.mxu1 %v2409_v54  ;;  %v9107_v61 = vunpack.i.h.bf16 %v9105_v48  ;;  %v9106_v36 = vunpack.i.l.bf16 %v9105_v48  ;;  %v9112_v1 = vunpack.i.h.bf16 %v9110_v39  ;;  %v9111_v10 = vunpack.i.l.bf16 %v9110_v39 }
 0x24e   : > { %8239 = vmatmul.mubr.msk.bf16.gmra.mrb[4].mxu0 %vm1367_vm8, %v10150_v12  ;;  %2679 = vmatprep.subr.bf16.mxu1 %v2605_v26  ;;  %v2606_v56 = vpack.c.bf16 %v2597_v11, %v2596_v29 }
 0x24f   : > { %2459 = vmatprep.mubr.bf16.mxu0 %v13899_v31  ;;  %v2592_v45 = vsel %vm920_vm6, %v9101_v60, %v9106_v36  ;;  %v2593_v6 = vsel %vm920_vm6, %v9102_v63, %v9107_v61  ;;  %v2600_v0 = vsel %vm920_vm6, %v9111_v10, %v9096_v19  ;;  %v2601_v23 = vsel %vm920_vm6, %v9112_v1, %v9097_v50  ;;  %v10153_v63 = vld [vmem:[#allocation3 + $0x70] sm:$0xff]  }
 0x250   : > { %8241 = vmatmul.mubr.msk.bf16.gmra.mrb[4].mxu1 %vm1367_vm8, %v10150_v12  ;;  %v9120_v42 = vpop.permute.xlu1 %9119  ;;  %v9115_v44 = vpop.permute.xlu0 %9114  ;;  %v2607_v15 = vpack.c.bf16 %v2593_v6, %v2592_v45  ;;  %v2589_v62 = vsel %vm920_vm6, %v9107_v61, %v9112_v1  ;;  %v2588_v55 = vsel %vm920_vm6, %v9106_v36, %v9111_v10  ;;  %v2609_v7 = vpack.c.bf16 %v2601_v23, %v2600_v0  ;;  %v10155_v0 = vld [vmem:[#allocation3 + $0x80] sm:$0xff]   ;;  %v10156_v23 = vld [vmem:[#allocation3 + $0x88] sm:$0xff]  }
 0x251   : > { %2512 = vmatprep.mubr.bf16.mxu1 %v13899_v31  ;;  %v9117_v52 = vunpack.i.h.bf16 %v9115_v44  ;;  %v9116_v20 = vunpack.i.l.bf16 %v9115_v44  ;;  %v9122_v57 = vunpack.i.h.bf16 %v9120_v42  ;;  %v9121_v53 = vunpack.i.l.bf16 %v9120_v42 }
 0x252   : > { %v2608_v38 = vpack.c.bf16 %v2589_v62, %v2588_v55 }
 0x253   : > { %v2794_v54 = vsel %vm1006_vm7, %v9117_v52, %v9122_v57  ;;  %v2793_v36 = vsel %vm1006_vm7, %v9116_v20, %v9121_v53 }
 0x254   : > { %v9130_v3 = vpop.permute.xlu1 %9129  ;;  %v9125_v47 = vpop.permute.xlu0 %9124  ;;  %v2801_v10 = vpack.c.bf16 %v2794_v54, %v2793_v36 }
 0x255   : > { %v9132_v41 = vunpack.i.h.bf16 %v9130_v3  ;;  %v9131_v58 = vunpack.i.l.bf16 %v9130_v3  ;;  %v9127_v32 = vunpack.i.h.bf16 %v9125_v47  ;;  %v9126_v35 = vunpack.i.l.bf16 %v9125_v47  ;;  %v10154_v3 = vld [vmem:[#allocation3 + $0x78] sm:$0xff]  }
 0x256   : > { %8244 = vmatmul.mubr.msk.bf16.vlgmr.msra.gmra.mrb[0].mxu0 %vm1367_vm8, %v10151_v9 }
 0x257   : > { %2627 = vmatpush1.bf16.msra.mxu0 %v2602_v25  ;;  %2469 = vmatprep.mubr.bf16.mxu0 %v13899_v31  ;;  %v2797_v37 = vsel %vm1006_vm7, %v9131_v58, %v9116_v20  ;;  %v2798_v22 = vsel %vm1006_vm7, %v9132_v41, %v9117_v52  ;;  %v2789_v2 = vsel %vm1006_vm7, %v9121_v53, %v9126_v35 }
 0x258   : > { %2628 = vmatprep.subr.bf16.mxu0 %v2607_v15  ;;  %8246 = vmatmul.mubr.msk.bf16.vlgmr.msra.gmra.mrb[0].mxu1 %vm1367_vm8, %v10151_v9  ;;  %v2790_v18 = vsel %vm1006_vm7, %v9122_v57, %v9127_v32  ;;  %v9140_v4 = vpop.permute.xlu1 %9139  ;;  %v2804_v17 = vpack.c.bf16 %v2798_v22, %v2797_v37  ;;  %v2786_v51 = vsel %vm1006_vm7, %v9127_v32, %v9132_v41 }
 0x259   : > { %2680 = vmatpush1.bf16.msra.mxu1 %v2604_v33  ;;  %v2802_v30 = vpack.c.bf16 %v2790_v18, %v2789_v2  ;;  %2522 = vmatprep.mubr.bf16.mxu1 %v13899_v31  ;;  %v9135_v34 = vpop.permute.xlu0 %9134  ;;  %v9142_v39 = vunpack.i.h.bf16 %v9140_v4  ;;  %v9141_v48 = vunpack.i.l.bf16 %v9140_v4  ;;  %v2785_v19 = vsel %vm1006_vm7, %v9126_v35, %v9131_v58 }
 0x25a   : > { %2681 = vmatprep.subr.bf16.mxu1 %v2609_v7  ;;  %v9137_v61 = vunpack.i.h.bf16 %v9135_v34  ;;  %v9136_v13 = vunpack.i.l.bf16 %v9135_v34  ;;  %v2803_v6 = vpack.c.bf16 %v2786_v51, %v2785_v19 }
 0x25b   : > { %2629 = vmatpush1.bf16.msra.mxu0 %v2606_v56 }
 0x25c   : > { %2825 = vmatprep.subr.bf16.mxu0 %v2802_v30  ;;  %v9150_v21 = vpop.permute.xlu1 %9149  ;;  %v2796_v1 = vsel %vm1006_vm7, %v9137_v61, %v9142_v39  ;;  %v2795_v42 = vsel %vm1006_vm7, %v9136_v13, %v9141_v48 }
 0x25d   : > { %2682 = vmatpush1.bf16.msra.mxu1 %v2608_v38  ;;  %v9145_v40 = vpop.permute.xlu0 %9144  ;;  %v9152_v49 = vunpack.i.h.bf16 %v9150_v21  ;;  %v9151_v43 = vunpack.i.l.bf16 %v9150_v21  ;;  %v2805_v29 = vpack.c.bf16 %v2796_v1, %v2795_v42 }
 0x25e   : > { %8245 = vmatmul.mubr.msk.bf16.gmra.mrb[4].mxu0 %vm1367_vm8, %v10152_v16  ;;  %2878 = vmatprep.subr.bf16.mxu1 %v2804_v17  ;;  %v9147_v12 = vunpack.i.h.bf16 %v9145_v40  ;;  %v9146_v26 = vunpack.i.l.bf16 %v9145_v40 }
 0x25f   : > { %2658 = vmatprep.mubr.bf16.mxu0 %v13899_v31  ;;  %v2799_v9 = vsel %vm1006_vm7, %v9151_v43, %v9136_v13  ;;  %v2800_v45 = vsel %vm1006_vm7, %v9152_v49, %v9137_v61 }
 0x260   : > { %8247 = vmatmul.mubr.msk.bf16.gmra.mrb[4].mxu1 %vm1367_vm8, %v10152_v16  ;;  %v2791_v60 = vsel %vm1006_vm7, %v9141_v48, %v9146_v26  ;;  %v2792_v50 = vsel %vm1006_vm7, %v9142_v39, %v9147_v12  ;;  %v2788_v11 = vsel %vm1006_vm7, %v9147_v12, %v9152_v49  ;;  %v2787_v25 = vsel %vm1006_vm7, %v9146_v26, %v9151_v43 }
 0x261   : > { %2711 = vmatprep.mubr.bf16.mxu1 %v13899_v31  ;;  %v2806_v44 = vpack.c.bf16 %v2792_v50, %v2791_v60  ;;  %v2808_v33 = vpack.c.bf16 %v2800_v45, %v2799_v9  ;;  %v2807_v15 = vpack.c.bf16 %v2788_v11, %v2787_v25 }
 0x266   : > { %8250 = vmatmul.mubr.msk.bf16.vlgmr.msra.gmra.mrb[0].mxu0 %vm1367_vm8, %v10153_v63 }
 0x267   : > { %2826 = vmatpush1.bf16.msra.mxu0 %v2801_v10  ;;  %2668 = vmatprep.mubr.bf16.mxu0 %v13899_v31 }
 0x268   : > { %2827 = vmatprep.subr.bf16.mxu0 %v2806_v44  ;;  %8252 = vmatmul.mubr.msk.bf16.vlgmr.msra.gmra.mrb[0].mxu1 %vm1367_vm8, %v10153_v63 }
 0x269   : > { %2879 = vmatpush1.bf16.msra.mxu1 %v2803_v6  ;;  %2721 = vmatprep.mubr.bf16.mxu1 %v13899_v31 }
 0x26a   : > { %2880 = vmatprep.subr.bf16.mxu1 %v2808_v33 }
 0x26b   : > { %2828 = vmatpush1.bf16.msra.mxu0 %v2805_v29 }
 0x26d   : > { %2881 = vmatpush1.bf16.msra.mxu1 %v2807_v15 }
 0x26e   : > { %8251 = vmatmul.mubr.msk.bf16.gmra.mrb[4].mxu0 %vm1367_vm8, %v10154_v3 }
 0x26f   : > { %2857 = vmatprep.mubr.bf16.mxu0 %v13899_v31 }
 0x270   : > { %8253 = vmatmul.mubr.msk.bf16.gmra.mrb[4].mxu1 %vm1367_vm8, %v10154_v3 }
 0x271   : > { %2910 = vmatprep.mubr.bf16.mxu1 %v13899_v31 }
 0x276   : > { %8256 = vmatmul.mubr.msk.bf16.vlgmr.msra.gmra.mrb[0].mxu0 %vm1367_vm8, %v10155_v0 }
 0x277   : > { %2867 = vmatprep.mubr.bf16.mxu0 %v13899_v31 }
 0x278   : > { %8258 = vmatmul.mubr.msk.bf16.vlgmr.msra.gmra.mrb[0].mxu1 %vm1367_vm8, %v10155_v0  ;;  %v2960_v52 = vpop.permute.xlu1 %2959  ;;  %v2955_v41 = vpop.permute.xlu0 %2954 }
 0x279   : > { %2920 = vmatprep.mubr.bf16.mxu1 %v13899_v31 }
 0x27e   : > { %8257 = vmatmul.mubr.msk.bf16.gmra.mrb[4].mxu0 %vm1367_vm8, %v10156_v23 }
 0x27f   : > { %3254 = vmatprep.mubr.bf16.mxu0 %v13899_v31 }
 0x280   : > { %8259 = vmatmul.mubr.msk.bf16.gmra.mrb[4].mxu1 %vm1367_vm8, %v10156_v23  ;;  %v11656_v20 = vpop.permute.xlu1 %2964  ;;  %v11658_v47 = vpop.permute.xlu0 %2969 }
 0x281   : > { %3307 = vmatprep.mubr.bf16.mxu1 %v13899_v31 }
 0x28b   : > { %v3006_v58 = vpop.permute.xlu1 %3005 }
 0x28e   : > { %v3010_v30 = vpop.permute.xlu0 %3009 }
 0x292   : > { %v3014_v25 = vpop.permute.xlu0 %3013 }
 0x293   : > { %v3038_v35 = vpop.permute.xlu1 %3037 }
 0x297   : > { %v3042_v63 = vpop.permute.xlu1 %3041 }
 0x349   : > { %v2859_v57 = vpop.f32.mrb[0].mxu0 }
 0x34a   : > { %v2972_v53 = vadd.f32 %v2955_v41, %v2859_v57  ;;  %v2861_v32 = vpop.f32.mrb[1].mxu0 }
 0x34b   : > { %v2973_v62 = vadd.f32 %v2955_v41, %v2861_v32  ;;  %v2863_v56 = vpop.f32.mrb[2].mxu0  ;;  %v2912_v22 = vpop.f32.mrb[0].mxu1 }
 0x34c   : > { %v2988_v37 = vmax.f32 %v2972_v53, 0.0  ;;  %v2976_v55 = vadd.f32 %v2960_v52, %v2863_v56  ;;  %v2865_v7 = vpop.f32.mrb[3].mxu0  ;;  %v2974_v18 = vadd.f32 %v2955_v41, %v2912_v22  ;;  %v2914_v4 = vpop.f32.mrb[1].mxu1 }
 0x34d   : > { %v2989_v2 = vmax.f32 %v2973_v62, 0.0  ;;  %v2977_v16 = vadd.f32 %v2960_v52, %v2865_v7  ;;  %v2975_v38 = vadd.f32 %v2955_v41, %v2914_v4  ;;  %v2916_v21 = vpop.f32.mrb[2].mxu1  ;;  %v3018_v62 = vpop.permute.xlu1 %3017 }
 0x34e   : > { %v3020_v34 = vmul.f32 %v3006_v58, %v2988_v37  ;;  %v2992_v17 = vmax.f32 %v2976_v55, 0.0  ;;  %v2990_v12 = vmax.f32 %v2974_v18, 0.0  ;;  %v2978_v54 = vadd.f32 %v2960_v52, %v2916_v21  ;;  %v2918_v39 = vpop.f32.mrb[3].mxu1 }
 0x34f   : > { %v3021_v40 = vmul.f32 %v3006_v58, %v2989_v2  ;;  %v2993_v26 = vmax.f32 %v2977_v16, 0.0  ;;  %v2991_v61 = vmax.f32 %v2975_v38, 0.0  ;;  %v2979_v13 = vadd.f32 %v2960_v52, %v2918_v39  ;;  %v3046_v16 = vpop.permute.xlu0 %3045 }
 0x350   : > { %v3052_v48 = vadd.f32 %v3038_v35, %v3020_v34  ;;  %v3024_v36 = vmul.f32 %v3010_v30, %v2992_v17  ;;  %v3022_v43 = vmul.f32 %v3006_v58, %v2990_v12  ;;  %v2994_v50 = vmax.f32 %v2978_v54, 0.0 }
 0x351   : > { %v3053_v49 = vadd.f32 %v3038_v35, %v3021_v40  ;;  %v3025_v60 = vmul.f32 %v3010_v30, %v2993_v26  ;;  %v2869_v51 = vpop.f32.mrb[4].mxu0  ;;  %v3023_v1 = vmul.f32 %v3006_v58, %v2991_v61  ;;  %v2995_v42 = vmax.f32 %v2979_v13, 0.0 }
 0x352   : > { %v11661_v19 = vmul.f32 %v3052_v48, %v13895_v5  ;;  %v3056_v10 = vadd.f32 %v3042_v63, %v3024_v36  ;;  %v2871_v44 = vpop.f32.mrb[5].mxu0  ;;  %v3054_v45 = vadd.f32 %v3038_v35, %v3022_v43  ;;  %v3026_v11 = vmul.f32 %v3010_v30, %v2994_v50 }
 0x353   : > { %v11664_v9 = vmul.f32 %v3053_v49, %v13896_v27  ;;  %v3057_v6 = vadd.f32 %v3042_v63, %v3025_v60  ;;  %v2873_v33 = vpop.f32.mrb[6].mxu0  ;;  %v3055_v29 = vadd.f32 %v3038_v35, %v3023_v1  ;;  %v3027_v15 = vmul.f32 %v3010_v30, %v2995_v42  ;;  %v2922_v23 = vpop.f32.mrb[4].mxu1 }
 0x354   : > { %v11667_v3 = vmul.f32 %v3056_v10, %v13895_v5  ;;  %v2980_v0 = vadd.f32 %v11656_v20, %v2869_v51  ;;  %v2875_v52 = vpop.f32.mrb[7].mxu0  ;;  %v11671_v41 = vmul.f32 %v3054_v45, %v13897_v14  ;;  %v3058_v57 = vadd.f32 %v3042_v63, %v3026_v11  ;;  %v2924_v32 = vpop.f32.mrb[5].mxu1 }
 0x355   : > { %v11674_v58 = vmul.f32 %v3057_v6, %v13896_v27  ;;  %v2981_v53 = vadd.f32 %v11656_v20, %v2871_v44  ;;  %v11678_v35 = vmul.f32 %v3055_v29, %v13898_v24  ;;  %v3059_v56 = vadd.f32 %v3042_v63, %v3027_v15  ;;  %v2926_v55 = vpop.f32.mrb[6].mxu1  ;;  %v3050_v63 = vpop.permute.xlu1 %3049 }
 0x356   : > { %v2996_v37 = vmax.f32 %v2980_v0, 0.0  ;;  %v2982_v22 = vadd.f32 %v11656_v20, %v2922_v23  ;;  %v11682_v7 = vmul.f32 %v3058_v57, %v13897_v14  ;;  %v2984_v18 = vadd.f32 %v11658_v47, %v2873_v33  ;;  %v2928_v30 = vpop.f32.mrb[7].mxu1 }
 0x357   : > { %v2997_v2 = vmax.f32 %v2981_v53, 0.0  ;;  %v2983_v4 = vadd.f32 %v11656_v20, %v2924_v32  ;;  %v11687_v34 = vmul.f32 %v3059_v56, %v13898_v24  ;;  %v2985_v21 = vadd.f32 %v11658_v47, %v2875_v52 }
 0x358   : > { %v3028_v17 = vmul.f32 %v3014_v25, %v2996_v37  ;;  %v2998_v38 = vmax.f32 %v2982_v22, 0.0  ;;  %v3000_v12 = vmax.f32 %v2984_v18, 0.0  ;;  %v2986_v54 = vadd.f32 %v11658_v47, %v2926_v55 }
 0x359   : > { %v3029_v40 = vmul.f32 %v3014_v25, %v2997_v2  ;;  %v2999_v26 = vmax.f32 %v2983_v4, 0.0  ;;  %v3001_v48 = vmax.f32 %v2985_v21, 0.0  ;;  %v2987_v61 = vadd.f32 %v11658_v47, %v2928_v30 }
 0x35a   : > { %v3030_v39 = vmul.f32 %v3014_v25, %v2998_v38  ;;  %v3060_v36 = vadd.f32 %v3046_v16, %v3028_v17  ;;  %v3002_v13 = vmax.f32 %v2986_v54, 0.0  ;;  %v3032_v49 = vmul.f32 %v3018_v62, %v3000_v12 }
 0x35b   : > { %v3031_v20 = vmul.f32 %v3014_v25, %v2999_v26  ;;  %v3061_v43 = vadd.f32 %v3046_v16, %v3029_v40  ;;  %v3033_v60 = vmul.f32 %v3018_v62, %v3001_v48  ;;  %v3003_v50 = vmax.f32 %v2987_v61, 0.0 }
 0x35c   : > { %v3062_v51 = vadd.f32 %v3046_v16, %v3030_v39  ;;  %v11693_v1 = vmul.f32 %v3060_v36, %v13895_v5  ;;  %v3034_v10 = vmul.f32 %v3018_v62, %v3002_v13  ;;  %v11700_v47 = vpack.i.bf16 %v11667_v3, %v11661_v19 }
 0x35d   : > { %v3063_v42 = vadd.f32 %v3046_v16, %v3031_v20  ;;  %v11696_v44 = vmul.f32 %v3061_v43, %v13896_v27  ;;  %v3035_v45 = vmul.f32 %v3018_v62, %v3003_v50  ;;  %v3064_v11 = vadd.f32 %v3050_v63, %v3032_v49 }
 0x35e   : > { %v11703_v6 = vmul.f32 %v3062_v51, %v13897_v14  ;;  %v3065_v25 = vadd.f32 %v3050_v63, %v3033_v60  ;;  %9162 = vrot.lane.b32.xlu1 %v11700_v47, %s10273_s15  ;;  %v3066_v29 = vadd.f32 %v3050_v63, %v3034_v10  ;;  %v11712_v15 = vpack.i.bf16 %v11674_v58, %v11664_v9 }
 0x35f   : > { %v11706_v33 = vmul.f32 %v3063_v42, %v13898_v24  ;;  %v11716_v0 = vpack.i.bf16 %v11682_v7, %v11671_v41  ;;  %v3067_v23 = vadd.f32 %v3050_v63, %v3035_v45  ;;  %v11719_v52 = vmul.f32 %v3064_v11, %v13895_v5 }
 0x360   : > { %v11722_v57 = vmul.f32 %v3065_v25, %v13896_v27  ;;  %v11726_v53 = vpack.i.bf16 %v11687_v34, %v11678_v35  ;;  %v11729_v32 = vmul.f32 %v3066_v29, %v13897_v14  ;;  %9172 = vrot.lane.b32.xlu0 %v11712_v15, %s10273_s15  ;;  %v3854_v2 = vpack.c.bf16 %v11674_v58, %v11664_v9 }
 0x361   : > { %v11734_v62 = vmul.f32 %v3067_v23, %v13898_v24  ;;  %v11738_v56 = vpack.i.bf16 %v11719_v52, %v11693_v1  ;;  %v3856_v18 = vpack.c.bf16 %v11687_v34, %v11678_v35  ;;  %v3853_v4 = vpack.c.bf16 %v11667_v3, %v11661_v19 }
 0x362   : > { %v11742_v37 = vpack.i.bf16 %v11722_v57, %v11696_v44  ;;  %9167 = vrot.lane.b32.xlu1 %v11716_v0, %s10273_s15  ;;  %v11748_v22 = vpack.i.bf16 %v11729_v32, %v11703_v6  ;;  %v3858_v30 = vpack.c.bf16 %v11722_v57, %v11696_v44  ;;  %v3855_v16 = vpack.c.bf16 %v11682_v7, %v11671_v41  ;;  %v10164_v44 = vld [vmem:[#allocation3 + $0xc8] sm:$0xff]  }
 0x363   : > { %v11752_v55 = vpack.i.bf16 %v11734_v62, %v11706_v33  ;;  %v3860_v17 = vpack.c.bf16 %v11734_v62, %v11706_v33  ;;  %v3857_v38 = vpack.c.bf16 %v11719_v52, %v11693_v1  ;;  %v3859_v21 = vpack.c.bf16 %v11729_v32, %v11703_v6 }
 0x364   : > { %9177 = vrot.lane.b32.xlu0 %v11726_v53, %s10273_s15 }
 0x366   : > { %9182 = vrot.lane.b32.xlu1 %v11738_v56, %s10273_s15 }
 0x368   : > { %9197 = vrot.lane.b32.xlu0 %v11742_v37, %s10273_s15 }
 0x36a   : > { %9187 = vrot.lane.b32.xlu1 %v11748_v22, %s10273_s15 }
 0x36c   : > { %9202 = vrot.lane.b32.xlu0 %v11752_v55, %s10273_s15 }
 0x36e   : > { %9192 = vrot.lane.b32.xlu1 %v11700_v47, %s10272_s11 }
 0x370   : > { %9207 = vrot.lane.b32.xlu0 %v11712_v15, %s10272_s11 }
 0x372   : > { %9212 = vrot.lane.b32.xlu1 %v11716_v0, %s10272_s11 }
 0x374   : > { %9217 = vrot.lane.b32.xlu0 %v11726_v53, %s10272_s11 }
 0x376   : > { %9222 = vrot.lane.b32.xlu1 %v11738_v56, %s10272_s11 }
 0x378   : > { %9237 = vrot.lane.b32.xlu0 %v11742_v37, %s10272_s11 }
 0x37a   : > { %9227 = vrot.lane.b32.xlu1 %v11748_v22, %s10272_s11 }
 0x37c   : > { %9242 = vrot.lane.b32.xlu0 %v11752_v55, %s10272_s11 }
 0x37e   : > { %9232 = vrot.lane.b32.xlu1 %v11700_v47, %s10274_s20 }
 0x380   : > { %9247 = vrot.lane.b32.xlu0 %v11712_v15, %s10274_s20 }
 0x382   : > { %9252 = vrot.lane.b32.xlu1 %v11716_v0, %s10274_s20 }
 0x384   : > { %9257 = vrot.lane.b32.xlu0 %v11726_v53, %s10274_s20 }
 0x386   : > { %9262 = vrot.lane.b32.xlu1 %v11738_v56, %s10274_s20 }
 0x388   : > { %9277 = vrot.lane.b32.xlu0 %v11742_v37, %s10274_s20 }
 0x38a   : > { %9267 = vrot.lane.b32.xlu1 %v11748_v22, %s10274_s20 }
 0x38c   : > { %9282 = vrot.lane.b32.xlu0 %v11752_v55, %s10274_s20 }
 0x38e   : > { %9272 = vrot.lane.b32.xlu1 %v11700_v47, %s10275_s28 }
 0x390   : > { %9287 = vrot.lane.b32.xlu0 %v11712_v15, %s10275_s28 }
 0x392   : > { %9292 = vrot.lane.b32.xlu1 %v11716_v0, %s10275_s28 }
 0x394   : > { %9297 = vrot.lane.b32.xlu0 %v11726_v53, %s10275_s28 }
 0x396   : > { %9302 = vrot.lane.b32.xlu1 %v11738_v56, %s10275_s28 }
 0x398   : > { %9312 = vrot.lane.b32.xlu0 %v11742_v37, %s10275_s28 }
 0x39a   : > { %9307 = vrot.lane.b32.xlu1 %v11748_v22, %s10275_s28 }
 0x39c   : > { %9317 = vrot.lane.b32.xlu0 %v11752_v55, %s10275_s28 }
 0x39e   : > { %9322 = vrot.lane.b32.xlu1 %v11700_v47, %s10276_s8 }
 0x3a0   : > { %9327 = vrot.lane.b32.xlu0 %v11712_v15, %s10276_s8 }
 0x3a2   : > { %9332 = vrot.lane.b32.xlu1 %v11716_v0, %s10276_s8 }
 0x3a4   : > { %9337 = vrot.lane.b32.xlu0 %v11726_v53, %s10276_s8 }
 0x3a6   : > { %9342 = vrot.lane.b32.xlu1 %v11738_v56, %s10276_s8 }
 0x3a8   : > { %9357 = vrot.lane.b32.xlu0 %v11742_v37, %s10276_s8 }
 0x3aa   : > { %9347 = vrot.lane.b32.xlu1 %v11748_v22, %s10276_s8 }
 0x3ac   : > { %9362 = vrot.lane.b32.xlu0 %v11752_v55, %s10276_s8 }
 0x3ae   : > { %9352 = vrot.lane.b32.xlu1 %v11700_v47, %s10277_s17 }
 0x3b0   : > { %9367 = vrot.lane.b32.xlu0 %v11712_v15, %s10277_s17 }
 0x3b2   : > { %9372 = vrot.lane.b32.xlu1 %v11716_v0, %s10277_s17 }
 0x3b4   : > { %9377 = vrot.lane.b32.xlu0 %v11726_v53, %s10277_s17 }
 0x3b6   : > { %9382 = vrot.lane.b32.xlu1 %v11738_v56, %s10277_s17 }
 0x3b8   : > { %9397 = vrot.lane.b32.xlu0 %v11742_v37, %s10277_s17 }
 0x3ba   : > { %9387 = vrot.lane.b32.xlu1 %v11748_v22, %s10277_s17 }
 0x3bc   : > { %9402 = vrot.lane.b32.xlu0 %v11752_v55, %s10277_s17 }
 0x3be   : > { %9392 = vrot.lane.b32.xlu1 %v11700_v47, %s10278_s12 }
 0x3c0   : > { %9407 = vrot.lane.b32.xlu0 %v11712_v15, %s10278_s12 }
 0x3c2   : > { %9412 = vrot.lane.b32.xlu1 %v11716_v0, %s10278_s12 }
 0x3c4   : > { %9417 = vrot.lane.b32.xlu0 %v11726_v53, %s10278_s12 }
 0x3c6   : > { %9422 = vrot.lane.b32.xlu1 %v11738_v56, %s10278_s12 }
 0x3c8   : > { %9437 = vrot.lane.b32.xlu0 %v11742_v37, %s10278_s12 }
 0x3ca   : > { %9427 = vrot.lane.b32.xlu1 %v11748_v22, %s10278_s12 }
 0x3cc   : > { %9442 = vrot.lane.b32.xlu0 %v11752_v55, %s10278_s12 }
 0x3ce   : > { %9432 = vrot.lane.b32.xlu1 %v11700_v47, %s10279_s9 }
 0x3d0   : > { %9447 = vrot.lane.b32.xlu0 %v11712_v15, %s10279_s9  ;;  %v9163_v40 = vpop.permute.xlu1 %9162 }
 0x3d1   : > { %v9165_v12 = vunpack.i.h.bf16 %v9163_v40  ;;  %v9164_v26 = vunpack.i.l.bf16 %v9163_v40 }
 0x3d2   : > { %v9173_v54 = vpop.permute.xlu0 %9172  ;;  %9452 = vrot.lane.b32.xlu1 %v11716_v0, %s10279_s9 }
 0x3d3   : > { %v9175_v39 = vunpack.i.h.bf16 %v9173_v54  ;;  %v9174_v48 = vunpack.i.l.bf16 %v9173_v54 }
 0x3d4   : > { %9457 = vrot.lane.b32.xlu0 %v11726_v53, %s10279_s9  ;;  %v9168_v61 = vpop.permute.xlu1 %9167 }
 0x3d5   : > { %v9170_v36 = vunpack.i.h.bf16 %v9168_v61  ;;  %v9169_v20 = vunpack.i.l.bf16 %v9168_v61  ;;  %v3190_v13 = vsel %vm433_vm1, %v9164_v26, %v9174_v48  ;;  %v3191_v49 = vsel %vm433_vm1, %v9165_v12, %v9175_v39 }
 0x3d6   : > { %v9178_v43 = vpop.permute.xlu0 %9177  ;;  %9462 = vrot.lane.b32.xlu1 %v11738_v56, %s10279_s9  ;;  %v3199_v63 = vpack.c.bf16 %v3191_v49, %v3190_v13 }
 0x3d7   : > { %v9180_v60 = vunpack.i.h.bf16 %v9178_v43  ;;  %v9179_v50 = vunpack.i.l.bf16 %v9178_v43  ;;  %v3186_v51 = vsel %vm433_vm1, %v9174_v48, %v9169_v20  ;;  %v3187_v10 = vsel %vm433_vm1, %v9175_v39, %v9170_v36 }
 0x3d8   : > { %3222 = vmatprep.subr.bf16.mxu0 %v3199_v63  ;;  %9472 = vrot.lane.b32.xlu0 %v11742_v37, %s10279_s9  ;;  %v9183_v42 = vpop.permute.xlu1 %9182  ;;  %v3200_v40 = vpack.c.bf16 %v3187_v10, %v3186_v51 }
 0x3d9   : > { %v3195_v47 = vsel %vm433_vm1, %v9180_v60, %v9165_v12  ;;  %v3194_v45 = vsel %vm433_vm1, %v9179_v50, %v9164_v26  ;;  %v9185_v11 = vunpack.i.h.bf16 %v9183_v42  ;;  %v9184_v25 = vunpack.i.l.bf16 %v9183_v42 }
 0x3da   : > { %v9198_v29 = vpop.permute.xlu0 %9197  ;;  %9467 = vrot.lane.b32.xlu1 %v11748_v22, %s10279_s9  ;;  %v3198_v15 = vpack.c.bf16 %v3195_v47, %v3194_v45  ;;  %v3182_v0 = vsel %vm433_vm1, %v9169_v20, %v9179_v50  ;;  %v3183_v23 = vsel %vm433_vm1, %v9170_v36, %v9180_v60 }
 0x3db   : > { %v9200_v53 = vunpack.i.h.bf16 %v9198_v29  ;;  %v9199_v56 = vunpack.i.l.bf16 %v9198_v29  ;;  %v3201_v37 = vpack.c.bf16 %v3183_v23, %v3182_v0  ;;  %v10157_v0 = vld [vmem:[#allocation3 + $0xa0] sm:$0xff]  }
 0x3dc   : > { %3223 = vmatpush1.bf16.msra.mxu0 %v3198_v15  ;;  %9477 = vrot.lane.b32.xlu0 %v11752_v55, %s10279_s9  ;;  %v9188_v12 = vpop.permute.xlu1 %9187 }
 0x3dd   : > { %3275 = vmatprep.subr.bf16.mxu1 %v3201_v37  ;;  %v9190_v26 = vunpack.i.h.bf16 %v9188_v12  ;;  %v9189_v54 = vunpack.i.l.bf16 %v9188_v12  ;;  %v3192_v22 = vsel %vm433_vm1, %v9184_v25, %v9199_v56  ;;  %v3193_v39 = vsel %vm433_vm1, %v9185_v11, %v9200_v53 }
 0x3de   : > { %3276 = vmatpush1.bf16.msra.mxu1 %v3200_v40  ;;  %v9203_v48 = vpop.permute.xlu0 %9202  ;;  %v3203_v61 = vpack.c.bf16 %v3193_v39, %v3192_v22 }
 0x3df   : > { %v9205_v36 = vunpack.i.h.bf16 %v9203_v48  ;;  %v9204_v20 = vunpack.i.l.bf16 %v9203_v48  ;;  %v3188_v13 = vsel %vm433_vm1, %v9199_v56, %v9189_v54  ;;  %v3189_v55 = vsel %vm433_vm1, %v9200_v53, %v9190_v26 }
 0x3e0   : > { %3224 = vmatprep.subr.bf16.mxu0 %v3203_v61  ;;  %v9193_v49 = vpop.permute.xlu1 %9192 }
 0x3e1   : > { %v3197_v43 = vsel %vm433_vm1, %v9205_v36, %v9185_v11  ;;  %v3196_v63 = vsel %vm433_vm1, %v9204_v20, %v9184_v25  ;;  %v9195_v60 = vunpack.i.h.bf16 %v9193_v49  ;;  %v9194_v50 = vunpack.i.l.bf16 %v9193_v49 }
 0x3e2   : > { %v9208_v51 = vpop.permute.xlu0 %9207  ;;  %v3202_v10 = vpack.c.bf16 %v3197_v43, %v3196_v63  ;;  %v3184_v42 = vsel %vm433_vm1, %v9189_v54, %v9204_v20  ;;  %v3185_v47 = vsel %vm433_vm1, %v9190_v26, %v9205_v36  ;;  %v3204_v11 = vpack.c.bf16 %v3189_v55, %v3188_v13 }
 0x3e3   : > { %v9210_v45 = vunpack.i.h.bf16 %v9208_v51  ;;  %v9209_v29 = vunpack.i.l.bf16 %v9208_v51  ;;  %v3205_v15 = vpack.c.bf16 %v3185_v47, %v3184_v42  ;;  %v10158_v42 = vld [vmem:[#allocation3 + $0xa8] sm:$0xff]  }
 0x3e4   : > { %3225 = vmatpush1.bf16.msra.mxu0 %v3202_v10  ;;  %v9213_v23 = vpop.permute.xlu1 %9212 }
 0x3e5   : > { %3277 = vmatprep.subr.bf16.mxu1 %v3205_v15  ;;  %v9215_v53 = vunpack.i.h.bf16 %v9213_v23  ;;  %v9214_v25 = vunpack.i.l.bf16 %v9213_v23  ;;  %v3129_v56 = vsel %vm347_vm0, %v9194_v50, %v9209_v29  ;;  %v3130_v37 = vsel %vm347_vm0, %v9195_v60, %v9210_v45 }
 0x3e6   : > { %3278 = vmatpush1.bf16.msra.mxu1 %v3204_v11  ;;  %v9218_v40 = vpop.permute.xlu0 %9217  ;;  %v3138_v12 = vpack.c.bf16 %v3130_v37, %v3129_v56 }
 0x3e7   : > { %v9220_v26 = vunpack.i.h.bf16 %v9218_v40  ;;  %v9219_v54 = vunpack.i.l.bf16 %v9218_v40  ;;  %8262 = vmatmul.mubr.msk.bf16.vlgmr.msra.gmra.mrb[8].mxu0 %vm1367_vm8, %v10157_v0  ;;  %v3125_v22 = vsel %vm347_vm0, %v9209_v29, %v9214_v25  ;;  %v3126_v39 = vsel %vm347_vm0, %v9210_v45, %v9215_v53 }
 0x3e8   : > { %3344 = vmatprep.subr.bf16.mxu0 %v3138_v12  ;;  %v9223_v48 = vpop.permute.xlu1 %9222  ;;  %3264 = vmatprep.mubr.bf16.mxu0 %v13899_v31  ;;  %v3139_v47 = vpack.c.bf16 %v3126_v39, %v3125_v22  ;;  %v11959_v39 = vld [vmem:[#allocation5 + $0x40] sm:$0xff] }
 0x3e9   : > { %v3134_v61 = vsel %vm347_vm0, %v9220_v26, %v9195_v60  ;;  %v3133_v36 = vsel %vm347_vm0, %v9219_v54, %v9194_v50  ;;  %8264 = vmatmul.mubr.msk.bf16.vlgmr.msra.gmra.mrb[8].mxu1 %vm1367_vm8, %v10157_v0  ;;  %v9225_v20 = vunpack.i.h.bf16 %v9223_v48  ;;  %v9224_v13 = vunpack.i.l.bf16 %v9223_v48  ;;  %4802 = vperm.xlu1 %9481, %v11959_v39  }
 0x3ea   : > { %v9238_v55 = vpop.permute.xlu0 %9237  ;;  %v3137_v49 = vpack.c.bf16 %v3134_v61, %v3133_v36  ;;  %v3121_v43 = vsel %vm347_vm0, %v9214_v25, %v9219_v54  ;;  %v3122_v63 = vsel %vm347_vm0, %v9215_v53, %v9220_v26  ;;  %3317 = vmatprep.mubr.bf16.mxu1 %v13899_v31 }
 0x3eb   : > { %v9240_v51 = vunpack.i.h.bf16 %v9238_v55  ;;  %v9239_v10 = vunpack.i.l.bf16 %v9238_v55  ;;  %v3140_v60 = vpack.c.bf16 %v3122_v63, %v3121_v43  ;;  %v10159_v63 = vld [vmem:[#allocation3 + $0x90] sm:$0xff]  }
 0x3ec   : > { %3345 = vmatpush1.bf16.msra.mxu0 %v3137_v49  ;;  %v9228_v50 = vpop.permute.xlu1 %9227 }
 0x3ed   : > { %3397 = vmatprep.subr.bf16.mxu1 %v3140_v60  ;;  %v9230_v45 = vunpack.i.h.bf16 %v9228_v50  ;;  %v9229_v29 = vunpack.i.l.bf16 %v9228_v50  ;;  %v3131_v15 = vsel %vm347_vm0, %v9224_v13, %v9239_v10  ;;  %v3132_v0 = vsel %vm347_vm0, %v9225_v20, %v9240_v51 }
 0x3ee   : > { %3398 = vmatpush1.bf16.msra.mxu1 %v3139_v47  ;;  %v9243_v23 = vpop.permute.xlu0 %9242  ;;  %v3142_v11 = vpack.c.bf16 %v3132_v0, %v3131_v15 }
 0x3ef   : > { %v9245_v53 = vunpack.i.h.bf16 %v9243_v23  ;;  %v9244_v25 = vunpack.i.l.bf16 %v9243_v23  ;;  %8263 = vmatmul.mubr.msk.bf16.gmra.mrb[12].mxu0 %vm1367_vm8, %v10158_v42  ;;  %v3127_v56 = vsel %vm347_vm0, %v9239_v10, %v9229_v29  ;;  %v3128_v37 = vsel %vm347_vm0, %v9240_v51, %v9230_v45  ;;  %v11969_v51 = vld [vmem:[#allocation5 + $0x50] sm:$0xff] }
 0x3f0   : > { %3346 = vmatprep.subr.bf16.mxu0 %v3142_v11  ;;  %v9233_v40 = vpop.permute.xlu1 %9232  ;;  %3376 = vmatprep.mubr.bf16.mxu0 %v13899_v31  ;;  %v3143_v60 = vpack.c.bf16 %v3128_v37, %v3127_v56  ;;  %v11978_v11 = vld [vmem:[#allocation5 + $0x58] sm:$0xff] }
 0x3f1   : > { %v3136_v12 = vsel %vm347_vm0, %v9245_v53, %v9225_v20  ;;  %v3135_v26 = vsel %vm347_vm0, %v9244_v25, %v9224_v13  ;;  %8265 = vmatmul.mubr.msk.bf16.gmra.mrb[12].mxu1 %vm1367_vm8, %v10158_v42  ;;  %v9235_v54 = vunpack.i.h.bf16 %v9233_v40  ;;  %v9234_v22 = vunpack.i.l.bf16 %v9233_v40  ;;  %v11967_v20 = vld [vmem:[#allocation5 + $0x48] sm:$0xff]  ;;  %4812 = vperm.xlu1 %9481, %v11969_v51  }
 0x3f2   : > { %v9248_v48 = vpop.permute.xlu0 %9247  ;;  %v3141_v61 = vpack.c.bf16 %v3136_v12, %v3135_v26  ;;  %v3123_v36 = vsel %vm347_vm0, %v9229_v29, %v9244_v25  ;;  %v3124_v55 = vsel %vm347_vm0, %v9230_v45, %v9245_v53  ;;  %3429 = vmatprep.mubr.bf16.mxu1 %v13899_v31  ;;  %4807 = vperm.xlu0 %9482, %v11967_v20  }
 0x3f3   : > { %v9250_v13 = vunpack.i.h.bf16 %v9248_v48  ;;  %v9249_v49 = vunpack.i.l.bf16 %v9248_v48  ;;  %v3144_v43 = vpack.c.bf16 %v3124_v55, %v3123_v36 }
 0x3f4   : > { %3347 = vmatpush1.bf16.msra.mxu0 %v3141_v61  ;;  %v9253_v10 = vpop.permute.xlu1 %9252 }
 0x3f5   : > { %3399 = vmatprep.subr.bf16.mxu1 %v3144_v43  ;;  %v9255_v42 = vunpack.i.h.bf16 %v9253_v10  ;;  %v9254_v50 = vunpack.i.l.bf16 %v9253_v10  ;;  %v3495_v47 = vsel %vm519_vm2, %v9234_v22, %v9249_v49  ;;  %v3496_v45 = vsel %vm519_vm2, %v9235_v54, %v9250_v13  ;;  %4817 = vperm.xlu1 %9481, %v11978_v11  }
 0x3f6   : > { %3400 = vmatpush1.bf16.msra.mxu1 %v3143_v60  ;;  %v9258_v29 = vpop.permute.xlu0 %9257  ;;  %v3504_v15 = vpack.c.bf16 %v3496_v45, %v3495_v47  ;;  %9483 = vset.pattern.permute.xlu0 %v13900_v59 }
 0x3f7   : > { %v9260_v0 = vunpack.i.h.bf16 %v9258_v29  ;;  %v9259_v23 = vunpack.i.l.bf16 %v9258_v29  ;;  %8268 = vmatmul.mubr.msk.bf16.vlgmr.msra.gmra.mrb[8].mxu0 %vm1367_vm8, %v10159_v63  ;;  %v3491_v53 = vsel %vm519_vm2, %v9249_v49, %v9254_v50  ;;  %v3492_v25 = vsel %vm519_vm2, %v9250_v13, %v9255_v42  ;;  %4853 = vperm.xlu0 %9483, %v11959_v39   ;;  %v10160_v49 = vld [vmem:[#allocation3 + $0x98] sm:$0xff]  }
 0x3f8   : > { %3527 = vmatprep.subr.bf16.mxu0 %v3504_v15  ;;  %v9263_v56 = vpop.permute.xlu1 %9262  ;;  %3386 = vmatprep.mubr.bf16.mxu0 %v13899_v31 }
 0x3f9   : > { %v3500_v37 = vsel %vm519_vm2, %v9260_v0, %v9235_v54  ;;  %v3499_v40 = vsel %vm519_vm2, %v9259_v23, %v9234_v22  ;;  %8270 = vmatmul.mubr.msk.bf16.vlgmr.msra.gmra.mrb[8].mxu1 %vm1367_vm8, %v10159_v63  ;;  %v9265_v12 = vunpack.i.h.bf16 %v9263_v56  ;;  %v9264_v26 = vunpack.i.l.bf16 %v9263_v56  ;;  %9484 = vset.pattern.permute.xlu1 %v13900_v59 }
 0x3fa   : > { %v9278_v48 = vpop.permute.xlu0 %9277  ;;  %v3503_v61 = vpack.c.bf16 %v3500_v37, %v3499_v40  ;;  %v3487_v36 = vsel %vm519_vm2, %v9254_v50, %v9259_v23  ;;  %v3488_v55 = vsel %vm519_vm2, %v9255_v42, %v9260_v0  ;;  %3439 = vmatprep.mubr.bf16.mxu1 %v13899_v31  ;;  %v3505_v63 = vpack.c.bf16 %v3492_v25, %v3491_v53 }
 0x3fb   : > { %v9280_v54 = vunpack.i.h.bf16 %v9278_v48  ;;  %v9279_v22 = vunpack.i.l.bf16 %v9278_v48  ;;  %v3506_v13 = vpack.c.bf16 %v3488_v55, %v3487_v36  ;;  %9486 = vset.pattern.permute.xlu0 %v13901_v46  ;;  %4857 = vperm.xlu1 %9484, %v11967_v20  }
 0x3fc   : > { %3528 = vmatpush1.bf16.msra.mxu0 %v3503_v61  ;;  %v9268_v43 = vpop.permute.xlu1 %9267  ;;  %4889 = vperm.xlu0 %9486, %v11967_v20  }
 0x3fd   : > { %3580 = vmatprep.subr.bf16.mxu1 %v3506_v13  ;;  %v9270_v10 = vunpack.i.h.bf16 %v9268_v43  ;;  %v9269_v60 = vunpack.i.l.bf16 %v9268_v43  ;;  %v3497_v50 = vsel %vm519_vm2, %v9264_v26, %v9279_v22  ;;  %v3498_v42 = vsel %vm519_vm2, %v9265_v12, %v9280_v54 }
 0x3fe   : > { %3581 = vmatpush1.bf16.msra.mxu1 %v3505_v63  ;;  %v9283_v47 = vpop.permute.xlu0 %9282  ;;  %v3508_v45 = vpack.c.bf16 %v3498_v42, %v3497_v50 }
 0x3ff   : > { %v9285_v29 = vunpack.i.h.bf16 %v9283_v47  ;;  %v9284_v15 = vunpack.i.l.bf16 %v9283_v47  ;;  %8269 = vmatmul.mubr.msk.bf16.gmra.mrb[12].mxu0 %vm1367_vm8, %v10160_v49  ;;  %v3493_v0 = vsel %vm519_vm2, %v9279_v22, %v9269_v60  ;;  %v3494_v23 = vsel %vm519_vm2, %v9280_v54, %v9270_v10  ;;  %9485 = vset.pattern.permute.xlu1 %v13901_v46 }
 0x400   : > { %3529 = vmatprep.subr.bf16.mxu0 %v3508_v45  ;;  %v9273_v53 = vpop.permute.xlu1 %9272  ;;  %3559 = vmatprep.mubr.bf16.mxu0 %v13899_v31 }
 0x401   : > { %v3502_v25 = vsel %vm519_vm2, %v9285_v29, %v9265_v12  ;;  %v3501_v56 = vsel %vm519_vm2, %v9284_v15, %v9264_v26  ;;  %8271 = vmatmul.mubr.msk.bf16.gmra.mrb[12].mxu1 %vm1367_vm8, %v10160_v49  ;;  %v9275_v37 = vunpack.i.h.bf16 %v9273_v53  ;;  %v9274_v40 = vunpack.i.l.bf16 %v9273_v53  ;;  %v10161_v26 = vld [vmem:[#allocation3 + $0xb0] sm:$0xff]   ;;  %4885 = vperm.xlu1 %9485, %v11959_v39  }
 0x402   : > { %v9288_v48 = vpop.permute.xlu0 %9287  ;;  %v3507_v61 = vpack.c.bf16 %v3502_v25, %v3501_v56  ;;  %v3489_v36 = vsel %vm519_vm2, %v9269_v60, %v9284_v15  ;;  %v3490_v55 = vsel %vm519_vm2, %v9270_v10, %v9285_v29  ;;  %3612 = vmatprep.mubr.bf16.mxu1 %v13899_v31  ;;  %v3509_v49 = vpack.c.bf16 %v3494_v23, %v3493_v0 }
 0x403   : > { %v9290_v12 = vunpack.i.h.bf16 %v9288_v48  ;;  %v9289_v54 = vunpack.i.l.bf16 %v9288_v48  ;;  %v3510_v22 = vpack.c.bf16 %v3490_v55, %v3489_v36  ;;  %4893 = vperm.xlu0 %9486, %v11969_v51   ;;  %v10162_v55 = vld [vmem:[#allocation3 + $0xb8] sm:$0xff]  }
 0x404   : > { %3530 = vmatpush1.bf16.msra.mxu0 %v3507_v61  ;;  %v9293_v13 = vpop.permute.xlu1 %9292 }
 0x405   : > { %3582 = vmatprep.subr.bf16.mxu1 %v3510_v22  ;;  %v9295_v20 = vunpack.i.h.bf16 %v9293_v13  ;;  %v9294_v43 = vunpack.i.l.bf16 %v9293_v13  ;;  %v3694_v63 = vsel %vm605_vm3, %v9274_v40, %v9289_v54  ;;  %v3695_v10 = vsel %vm605_vm3, %v9275_v37, %v9290_v12  ;;  %9487 = vset.pattern.permute.xlu1 %v13900_v59 }
 0x406   : > { %3583 = vmatpush1.bf16.msra.mxu1 %v3509_v49  ;;  %v9298_v60 = vpop.permute.xlu0 %9297  ;;  %v3703_v50 = vpack.c.bf16 %v3695_v10, %v3694_v63  ;;  %4861 = vperm.xlu1 %9487, %v11969_v51  }
 0x407   : > { %v9300_v42 = vunpack.i.h.bf16 %v9298_v60  ;;  %v9299_v47 = vunpack.i.l.bf16 %v9298_v60  ;;  %8274 = vmatmul.mubr.msk.bf16.vlgmr.msra.gmra.mrb[8].mxu0 %vm1367_vm8, %v10161_v26  ;;  %v3690_v39 = vsel %vm605_vm3, %v9289_v54, %v9294_v43  ;;  %v3691_v45 = vsel %vm605_vm3, %v9290_v12, %v9295_v20  ;;  %9809 = vset.pattern.permute.xlu0 %v13899_v31 }
 0x408   : > { %3726 = vmatprep.subr.bf16.mxu0 %v3703_v50  ;;  %v9303_v29 = vpop.permute.xlu1 %9302  ;;  %3569 = vmatprep.mubr.bf16.mxu0 %v13899_v31  ;;  %v3704_v54 = vpack.c.bf16 %v3691_v45, %v3690_v39 }
 0x409   : > { %v3699_v15 = vsel %vm605_vm3, %v9300_v42, %v9275_v37  ;;  %v3698_v0 = vsel %vm605_vm3, %v9299_v47, %v9274_v40  ;;  %8276 = vmatmul.mubr.msk.bf16.vlgmr.msra.gmra.mrb[8].mxu1 %vm1367_vm8, %v10161_v26  ;;  %v9305_v23 = vunpack.i.h.bf16 %v9303_v29  ;;  %v9304_v53 = vunpack.i.l.bf16 %v9303_v29 }
 0x40a   : > { %v9313_v25 = vpop.permute.xlu0 %9312  ;;  %v3702_v56 = vpack.c.bf16 %v3699_v15, %v3698_v0  ;;  %v3686_v48 = vsel %vm605_vm3, %v9294_v43, %v9299_v47  ;;  %v3687_v61 = vsel %vm605_vm3, %v9295_v20, %v9300_v42  ;;  %3622 = vmatprep.mubr.bf16.mxu1 %v13899_v31  ;;  %4865 = vperm.xlu1 %9487, %v11978_v11  }
 0x40b   : > { %v9315_v37 = vunpack.i.h.bf16 %v9313_v25  ;;  %v9314_v40 = vunpack.i.l.bf16 %v9313_v25  ;;  %v3705_v36 = vpack.c.bf16 %v3687_v61, %v3686_v48  ;;  %v10163_v25 = vld [vmem:[#allocation3 + $0xc0] sm:$0xff]  }
 0x40c   : > { %3727 = vmatpush1.bf16.msra.mxu0 %v3702_v56  ;;  %v9308_v12 = vpop.permute.xlu1 %9307 }
 0x40d   : > { %3779 = vmatprep.subr.bf16.mxu1 %v3705_v36  ;;  %v9310_v22 = vunpack.i.h.bf16 %v9308_v12  ;;  %v9309_v26 = vunpack.i.l.bf16 %v9308_v12  ;;  %v3696_v13 = vsel %vm605_vm3, %v9304_v53, %v9314_v40  ;;  %v3697_v49 = vsel %vm605_vm3, %v9305_v23, %v9315_v37 }
 0x40e   : > { %3780 = vmatpush1.bf16.msra.mxu1 %v3704_v54  ;;  %v9318_v51 = vpop.permute.xlu0 %9317  ;;  %v3707_v20 = vpack.c.bf16 %v3697_v49, %v3696_v13  ;;  %9488 = vset.pattern.permute.xlu1 %v13901_v46 }
 0x40f   : > { %v9320_v43 = vunpack.i.h.bf16 %v9318_v51  ;;  %v9319_v63 = vunpack.i.l.bf16 %v9318_v51  ;;  %8275 = vmatmul.mubr.msk.bf16.gmra.mrb[12].mxu0 %vm1367_vm8, %v10162_v55  ;;  %v3692_v60 = vsel %vm605_vm3, %v9314_v40, %v9309_v26  ;;  %v3693_v50 = vsel %vm605_vm3, %v9315_v37, %v9310_v22  ;;  %4897 = vperm.xlu1 %9488, %v11978_v11  }
 0x410   : > { %3728 = vmatprep.subr.bf16.mxu0 %v3707_v20  ;;  %v12054_v10 = vpop.permute.xlu1 %9322  ;;  %3758 = vmatprep.mubr.bf16.mxu0 %v13899_v31 }
 0x411   : > { %v3701_v42 = vsel %vm605_vm3, %v9320_v43, %v9305_v23  ;;  %v3700_v47 = vsel %vm605_vm3, %v9319_v63, %v9304_v53  ;;  %8277 = vmatmul.mubr.msk.bf16.gmra.mrb[12].mxu1 %vm1367_vm8, %v10162_v55  ;;  %v3688_v29 = vsel %vm605_vm3, %v9309_v26, %v9319_v63  ;;  %v3689_v15 = vsel %vm605_vm3, %v9310_v22, %v9320_v43 }
 0x412   : > { %v9328_v39 = vpop.permute.xlu0 %9327  ;;  %v3706_v45 = vpack.c.bf16 %v3701_v42, %v3700_v47  ;;  %3811 = vmatprep.mubr.bf16.mxu1 %v13899_v31  ;;  %v3709_v0 = vpack.c.bf16 %v3689_v15, %v3688_v29  ;;  %v3708_v53 = vpack.c.bf16 %v3693_v50, %v3692_v60  ;;  %v9325_v11 = vunpack.i.h.bf16 %v12054_v10 }
 0x413   : > { %v9330_v61 = vunpack.i.h.bf16 %v9328_v39  ;;  %v9329_v37 = vunpack.i.l.bf16 %v9328_v39  ;;  %v9324_v12 = vunpack.i.l.bf16 %v12054_v10  ;;  %9810 = vset.pattern.permute.xlu1 %v13899_v31 }
 0x414   : > { %3729 = vmatpush1.bf16.msra.mxu0 %v3706_v45  ;;  %v9333_v23 = vpop.permute.xlu1 %9332  ;;  %3781 = vmatprep.subr.bf16.mxu1 %v3709_v0 }
 0x415   : > { %v9335_v56 = vunpack.i.h.bf16 %v9333_v23  ;;  %v9334_v48 = vunpack.i.l.bf16 %v9333_v23  ;;  %3877 = vmatprep.subr.bf16.mxu0 %v3854_v2  ;;  %3782 = vmatpush1.bf16.msra.mxu1 %v3708_v53  ;;  %v4045_v1 = vsel %vm748_vm4, %v9325_v11, %v9330_v61  ;;  %v4044_v52 = vsel %vm748_vm4, %v9324_v12, %v9329_v37 }
 0x416   : > { %v9338_v40 = vpop.permute.xlu0 %9337  ;;  %3930 = vmatprep.subr.bf16.mxu1 %v3856_v18  ;;  %v4052_v20 = vpack.c.bf16 %v4045_v1, %v4044_v52 }
 0x417   : > { %v9340_v36 = vunpack.i.h.bf16 %v9338_v40  ;;  %v9339_v55 = vunpack.i.l.bf16 %v9338_v40  ;;  %8280 = vmatmul.mubr.msk.bf16.vlgmr.msra.gmra.mrb[8].mxu0 %vm1367_vm8, %v10163_v25  ;;  %v4040_v58 = vsel %vm748_vm4, %v9329_v37, %v9334_v48  ;;  %v4041_v2 = vsel %vm748_vm4, %v9330_v61, %v9335_v56 }
 0x418   : > { %3878 = vmatpush1.bf16.msra.mxu0 %v3853_v4  ;;  %v9343_v9 = vpop.permute.xlu1 %9342  ;;  %3768 = vmatprep.mubr.bf16.mxu0 %v13899_v31  ;;  %v4053_v34 = vpack.c.bf16 %v4041_v2, %v4040_v58  ;;  %v10166_v2 = vld [vmem:[#allocation3 + $0xd8] sm:$0xff]  }
 0x419   : > { %8282 = vmatmul.mubr.msk.bf16.vlgmr.msra.gmra.mrb[8].mxu1 %vm1367_vm8, %v10163_v25  ;;  %3879 = vmatprep.subr.bf16.mxu0 %v3858_v30  ;;  %v4048_v3 = vsel %vm748_vm4, %v9339_v55, %v9324_v12  ;;  %v4049_v35 = vsel %vm748_vm4, %v9340_v36, %v9325_v11  ;;  %v9345_v33 = vunpack.i.h.bf16 %v9343_v9  ;;  %v9344_v32 = vunpack.i.l.bf16 %v9343_v9 }
 0x41a   : > { %3931 = vmatpush1.bf16.msra.mxu1 %v3855_v16  ;;  %v9358_v19 = vpop.permute.xlu0 %9357  ;;  %3821 = vmatprep.mubr.bf16.mxu1 %v13899_v31  ;;  %v4055_v7 = vpack.c.bf16 %v4049_v35, %v4048_v3  ;;  %v4037_v26 = vsel %vm748_vm4, %v9335_v56, %v9340_v36  ;;  %v4036_v13 = vsel %vm748_vm4, %v9334_v48, %v9339_v55 }
 0x41b   : > { %3932 = vmatprep.subr.bf16.mxu1 %v3860_v17  ;;  %v9360_v62 = vunpack.i.h.bf16 %v9358_v19  ;;  %v9359_v6 = vunpack.i.l.bf16 %v9358_v19  ;;  %v4054_v48 = vpack.c.bf16 %v4037_v26, %v4036_v13 }
 0x41c   : > { %3880 = vmatpush1.bf16.msra.mxu0 %v3857_v38  ;;  %v9348_v41 = vpop.permute.xlu1 %9347 }
 0x41d   : > { %4076 = vmatprep.subr.bf16.mxu0 %v4053_v34  ;;  %v9350_v18 = vunpack.i.h.bf16 %v9348_v41  ;;  %v9349_v4 = vunpack.i.l.bf16 %v9348_v41  ;;  %v4047_v49 = vsel %vm748_vm4, %v9345_v33, %v9360_v62  ;;  %v4046_v50 = vsel %vm748_vm4, %v9344_v32, %v9359_v6 }
 0x41e   : > { %3933 = vmatpush1.bf16.msra.mxu1 %v3859_v21  ;;  %v9363_v57 = vpop.permute.xlu0 %9362  ;;  %v10165_v21 = vld [vmem:[#allocation3 + $0xd0] sm:$0xff]   ;;  %v4056_v11 = vpack.c.bf16 %v4047_v49, %v4046_v50 }
 0x41f   : > { %4129 = vmatprep.subr.bf16.mxu1 %v4055_v7  ;;  %8281 = vmatmul.mubr.msk.bf16.gmra.mrb[12].mxu0 %vm1367_vm8, %v10164_v44  ;;  %v9365_v16 = vunpack.i.h.bf16 %v9363_v57  ;;  %v9364_v17 = vunpack.i.l.bf16 %v9363_v57  ;;  %v4042_v54 = vsel %vm748_vm4, %v9359_v6, %v9349_v4  ;;  %v4043_v22 = vsel %vm748_vm4, %v9360_v62, %v9350_v18  ;;  %v10167_v6 = vld [vmem:[#allocation3 + $0xe0] sm:$0xff]  }
 0x420   : > { %v12113_v30 = vpop.permute.xlu1 %9352  ;;  %3909 = vmatprep.mubr.bf16.mxu0 %v13899_v31  ;;  %v4057_v47 = vpack.c.bf16 %v4043_v22, %v4042_v54 }
 0x421   : > { %8283 = vmatmul.mubr.msk.bf16.gmra.mrb[12].mxu1 %vm1367_vm8, %v10164_v44  ;;  %v4050_v39 = vsel %vm748_vm4, %v9364_v17, %v9344_v32  ;;  %v4051_v45 = vsel %vm748_vm4, %v9365_v16, %v9345_v33  ;;  %v4039_v23 = vsel %vm748_vm4, %v9350_v18, %v9365_v16  ;;  %v9355_v53 = vunpack.i.h.bf16 %v12113_v30 }
 0x422   : > { %v9368_v38 = vpop.permute.xlu0 %9367  ;;  %3962 = vmatprep.mubr.bf16.mxu1 %v13899_v31  ;;  %v9354_v56 = vunpack.i.l.bf16 %v12113_v30  ;;  %v4038_v37 = vsel %vm748_vm4, %v9349_v4, %v9364_v17  ;;  %v4059_v40 = vpack.c.bf16 %v4051_v45, %v4050_v39 }
 0x423   : > { %v9370_v43 = vunpack.i.h.bf16 %v9368_v38  ;;  %v9369_v63 = vunpack.i.l.bf16 %v9368_v38  ;;  %v4058_v19 = vpack.c.bf16 %v4039_v23, %v4038_v37 }
 0x424   : > { %v12132_v51 = vpop.permute.xlu1 %9372 }
 0x425   : > { %v9375_v10 = vunpack.i.h.bf16 %v12132_v51  ;;  %v9374_v60 = vunpack.i.l.bf16 %v12132_v51  ;;  %v4244_v18 = vsel %vm834_vm5, %v9355_v53, %v9370_v43  ;;  %v4243_v4 = vsel %vm834_vm5, %v9354_v56, %v9369_v63 }
 0x426   : > { %v9378_v42 = vpop.permute.xlu0 %9377  ;;  %v4251_v22 = vpack.c.bf16 %v4244_v18, %v4243_v4 }
 0x427   : > { %v9380_v29 = vunpack.i.h.bf16 %v9378_v42  ;;  %v9379_v15 = vunpack.i.l.bf16 %v9378_v42  ;;  %8286 = vmatmul.mubr.msk.bf16.vlgmr.msra.gmra.mrb[8].mxu0 %vm1367_vm8, %v10165_v21  ;;  %v4239_v0 = vsel %vm834_vm5, %v9369_v63, %v9374_v60  ;;  %v4240_v25 = vsel %vm834_vm5, %v9370_v43, %v9375_v10 }
 0x428   : > { %4077 = vmatpush1.bf16.msra.mxu0 %v4052_v20  ;;  %v9383_v61 = vpop.permute.xlu1 %9382  ;;  %3919 = vmatprep.mubr.bf16.mxu0 %v13899_v31  ;;  %v4252_v36 = vpack.c.bf16 %v4240_v25, %v4239_v0 }
 0x429   : > { %8288 = vmatmul.mubr.msk.bf16.vlgmr.msra.gmra.mrb[8].mxu1 %vm1367_vm8, %v10165_v21  ;;  %4078 = vmatprep.subr.bf16.mxu0 %v4057_v47  ;;  %v4247_v12 = vsel %vm834_vm5, %v9379_v15, %v9354_v56  ;;  %v4248_v9 = vsel %vm834_vm5, %v9380_v29, %v9355_v53  ;;  %v9385_v41 = vunpack.i.h.bf16 %v9383_v61  ;;  %v9384_v62 = vunpack.i.l.bf16 %v9383_v61 }
 0x42a   : > { %4130 = vmatpush1.bf16.msra.mxu1 %v4054_v48  ;;  %v9398_v55 = vpop.permute.xlu0 %9397  ;;  %3972 = vmatprep.mubr.bf16.mxu1 %v13899_v31  ;;  %v4254_v58 = vpack.c.bf16 %v4248_v9, %v4247_v12  ;;  %v4236_v17 = vsel %vm834_vm5, %v9375_v10, %v9380_v29  ;;  %v4235_v38 = vsel %vm834_vm5, %v9374_v60, %v9379_v15 }
 0x42b   : > { %4131 = vmatprep.subr.bf16.mxu1 %v4059_v40  ;;  %v9400_v7 = vunpack.i.h.bf16 %v9398_v55  ;;  %v9399_v33 = vunpack.i.l.bf16 %v9398_v55  ;;  %v4253_v0 = vpack.c.bf16 %v4236_v17, %v4235_v38  ;;  %v10168_v55 = vld [vmem:[#allocation3 + $0xe8] sm:$0xff]  }
 0x42c   : > { %4079 = vmatpush1.bf16.msra.mxu0 %v4056_v11  ;;  %v9388_v3 = vpop.permute.xlu1 %9387 }
 0x42d   : > { %4275 = vmatprep.subr.bf16.mxu0 %v4252_v36  ;;  %v9390_v34 = vunpack.i.h.bf16 %v9388_v3  ;;  %v9389_v44 = vunpack.i.l.bf16 %v9388_v3  ;;  %v4246_v21 = vsel %vm834_vm5, %v9385_v41, %v9400_v7  ;;  %v4245_v20 = vsel %vm834_vm5, %v9384_v62, %v9399_v33 }
 0x42e   : > { %4132 = vmatpush1.bf16.msra.mxu1 %v4058_v19  ;;  %v9403_v35 = vpop.permute.xlu0 %9402  ;;  %v4255_v61 = vpack.c.bf16 %v4246_v21, %v4245_v20 }
 0x42f   : > { %4328 = vmatprep.subr.bf16.mxu1 %v4254_v58  ;;  %8287 = vmatmul.mubr.msk.bf16.gmra.mrb[12].mxu0 %vm1367_vm8, %v10166_v2  ;;  %v9405_v30 = vunpack.i.h.bf16 %v9403_v35  ;;  %v9404_v1 = vunpack.i.l.bf16 %v9403_v35  ;;  %v4241_v32 = vsel %vm834_vm5, %v9399_v33, %v9389_v44  ;;  %v4242_v16 = vsel %vm834_vm5, %v9400_v7, %v9390_v34  ;;  %v10169_v33 = vld [vmem:[#allocation3 + $0xf0] sm:$0xff]  }
 0x430   : > { %v12161_v57 = vpop.permute.xlu1 %9392  ;;  %4108 = vmatprep.mubr.bf16.mxu0 %v13899_v31  ;;  %v4256_v63 = vpack.c.bf16 %v4242_v16, %v4241_v32 }
 0x431   : > { %8289 = vmatmul.mubr.msk.bf16.gmra.mrb[12].mxu1 %vm1367_vm8, %v10166_v2  ;;  %v4249_v10 = vsel %vm834_vm5, %v9404_v1, %v9384_v62  ;;  %v4250_v60 = vsel %vm834_vm5, %v9405_v30, %v9385_v41  ;;  %v4238_v45 = vsel %vm834_vm5, %v9390_v34, %v9405_v30  ;;  %v9395_v29 = vunpack.i.h.bf16 %v12161_v57 }
 0x432   : > { %v9408_v52 = vpop.permute.xlu0 %9407  ;;  %4161 = vmatprep.mubr.bf16.mxu1 %v13899_v31  ;;  %v9394_v15 = vunpack.i.l.bf16 %v12161_v57  ;;  %v4237_v23 = vsel %vm834_vm5, %v9389_v44, %v9404_v1  ;;  %v4258_v53 = vpack.c.bf16 %v4250_v60, %v4249_v10 }
 0x433   : > { %v9410_v26 = vunpack.i.h.bf16 %v9408_v52  ;;  %v9409_v13 = vunpack.i.l.bf16 %v9408_v52  ;;  %v4257_v11 = vpack.c.bf16 %v4238_v45, %v4237_v23 }
 0x434   : > { %v12180_v54 = vpop.permute.xlu1 %9412 }
 0x435   : > { %v9415_v49 = vunpack.i.h.bf16 %v12180_v54  ;;  %v9414_v51 = vunpack.i.l.bf16 %v12180_v54  ;;  %v4443_v34 = vsel %vm920_vm6, %v9395_v29, %v9410_v26  ;;  %v4442_v44 = vsel %vm920_vm6, %v9394_v15, %v9409_v13 }
 0x436   : > { %v9418_v43 = vpop.permute.xlu0 %9417  ;;  %v4450_v16 = vpack.c.bf16 %v4443_v34, %v4442_v44  ;;  %v10171_v34 = vld [vmem:[#allocation3 + $0x100] sm:$0xff]  }
 0x437   : > { %v9420_v50 = vunpack.i.h.bf16 %v9418_v43  ;;  %v9419_v42 = vunpack.i.l.bf16 %v9418_v43  ;;  %8292 = vmatmul.mubr.msk.bf16.vlgmr.msra.gmra.mrb[8].mxu0 %vm1367_vm8, %v10167_v6  ;;  %v4438_v47 = vsel %vm920_vm6, %v9409_v13, %v9414_v51  ;;  %v4439_v39 = vsel %vm920_vm6, %v9410_v26, %v9415_v49 }
 0x438   : > { %4276 = vmatpush1.bf16.msra.mxu0 %v4251_v22  ;;  %v9423_v25 = vpop.permute.xlu1 %9422  ;;  %4118 = vmatprep.mubr.bf16.mxu0 %v13899_v31  ;;  %v4451_v56 = vpack.c.bf16 %v4439_v39, %v4438_v47 }
 0x439   : > { %8294 = vmatmul.mubr.msk.bf16.vlgmr.msra.gmra.mrb[8].mxu1 %vm1367_vm8, %v10167_v6  ;;  %4277 = vmatprep.subr.bf16.mxu0 %v4256_v63  ;;  %v4446_v37 = vsel %vm920_vm6, %v9419_v42, %v9394_v15  ;;  %v4447_v40 = vsel %vm920_vm6, %v9420_v50, %v9395_v29  ;;  %v9425_v19 = vunpack.i.h.bf16 %v9423_v25  ;;  %v9424_v7 = vunpack.i.l.bf16 %v9423_v25 }
 0x43a   : > { %4329 = vmatpush1.bf16.msra.mxu1 %v4253_v0  ;;  %v9438_v48 = vpop.permute.xlu0 %9437  ;;  %4171 = vmatprep.mubr.bf16.mxu1 %v13899_v31  ;;  %v4453_v36 = vpack.c.bf16 %v4447_v40, %v4446_v37  ;;  %v4435_v1 = vsel %vm920_vm6, %v9415_v49, %v9420_v50  ;;  %v4434_v52 = vsel %vm920_vm6, %v9414_v51, %v9419_v42 }
 0x43b   : > { %4330 = vmatprep.subr.bf16.mxu1 %v4258_v53  ;;  %v9440_v3 = vunpack.i.h.bf16 %v9438_v48  ;;  %v9439_v41 = vunpack.i.l.bf16 %v9438_v48  ;;  %v4452_v47 = vpack.c.bf16 %v4435_v1, %v4434_v52  ;;  %v10170_v48 = vld [vmem:[#allocation3 + $0xf8] sm:$0xff]  }
 0x43c   : > { %4278 = vmatpush1.bf16.msra.mxu0 %v4255_v61  ;;  %v9428_v12 = vpop.permute.xlu1 %9427 }
 0x43d   : > { %4474 = vmatprep.subr.bf16.mxu0 %v4451_v56  ;;  %v9430_v58 = vunpack.i.h.bf16 %v9428_v12  ;;  %v9429_v2 = vunpack.i.l.bf16 %v9428_v12  ;;  %v4445_v6 = vsel %vm920_vm6, %v9425_v19, %v9440_v3  ;;  %v4444_v22 = vsel %vm920_vm6, %v9424_v7, %v9439_v41 }
 0x43e   : > { %4331 = vmatpush1.bf16.msra.mxu1 %v4257_v11  ;;  %v9443_v9 = vpop.permute.xlu0 %9442  ;;  %v4454_v25 = vpack.c.bf16 %v4445_v6, %v4444_v22  ;;  %v10174_v22 = vld [vmem:[#allocation3 + $0x118] sm:$0xff]  }
 0x43f   : > { %4527 = vmatprep.subr.bf16.mxu1 %v4453_v36  ;;  %8293 = vmatmul.mubr.msk.bf16.gmra.mrb[12].mxu0 %vm1367_vm8, %v10168_v55  ;;  %v9445_v57 = vunpack.i.h.bf16 %v9443_v9  ;;  %v9444_v18 = vunpack.i.l.bf16 %v9443_v9  ;;  %v4440_v62 = vsel %vm920_vm6, %v9439_v41, %v9429_v2  ;;  %v4441_v30 = vsel %vm920_vm6, %v9440_v3, %v9430_v58 }
 0x440   : > { %v12209_v35 = vpop.permute.xlu1 %9432  ;;  %4307 = vmatprep.mubr.bf16.mxu0 %v13899_v31  ;;  %v4455_v13 = vpack.c.bf16 %v4441_v30, %v4440_v62 }
 0x441   : > { %8295 = vmatmul.mubr.msk.bf16.gmra.mrb[12].mxu1 %vm1367_vm8, %v10168_v55  ;;  %v4448_v49 = vsel %vm920_vm6, %v9444_v18, %v9424_v7  ;;  %v4449_v51 = vsel %vm920_vm6, %v9445_v57, %v9425_v19  ;;  %v4437_v60 = vsel %vm920_vm6, %v9430_v58, %v9445_v57  ;;  %v9435_v50 = vunpack.i.h.bf16 %v12209_v35 }
 0x442   : > { %v12217_v4 = vpop.permute.xlu0 %9447  ;;  %4360 = vmatprep.mubr.bf16.mxu1 %v13899_v31  ;;  %v9434_v42 = vunpack.i.l.bf16 %v12209_v35  ;;  %v4436_v45 = vsel %vm920_vm6, %v9429_v2, %v9444_v18  ;;  %v4457_v29 = vpack.c.bf16 %v4449_v51, %v4448_v49 }
 0x443   : > { %v9450_v17 = vunpack.i.h.bf16 %v12217_v4  ;;  %v9449_v38 = vunpack.i.l.bf16 %v12217_v4  ;;  %v4456_v61 = vpack.c.bf16 %v4437_v60, %v4436_v45 }
 0x444   : > { %v12230_v32 = vpop.permute.xlu1 %9452 }
 0x445   : > { %v9455_v21 = vunpack.i.h.bf16 %v12230_v32  ;;  %v9454_v54 = vunpack.i.l.bf16 %v12230_v32  ;;  %v4642_v2 = vsel %vm1006_vm7, %v9435_v50, %v9450_v17  ;;  %v4641_v19 = vsel %vm1006_vm7, %v9434_v42, %v9449_v38 }
 0x446   : > { %v9458_v26 = vpop.permute.xlu0 %9457  ;;  %v4649_v18 = vpack.c.bf16 %v4642_v2, %v4641_v19 }
 0x447   : > { %v9460_v20 = vunpack.i.h.bf16 %v9458_v26  ;;  %v9459_v43 = vunpack.i.l.bf16 %v9458_v26  ;;  %8298 = vmatmul.mubr.msk.bf16.vlgmr.msra.gmra.mrb[8].mxu0 %vm1367_vm8, %v10169_v33  ;;  %v4637_v63 = vsel %vm1006_vm7, %v9449_v38, %v9454_v54  ;;  %v4638_v10 = vsel %vm1006_vm7, %v9450_v17, %v9455_v21  ;;  %v10172_v38 = vld [vmem:[#allocation3 + $0x108] sm:$0xff]  }
 0x448   : > { %4475 = vmatpush1.bf16.msra.mxu0 %v4450_v16  ;;  %v9463_v39 = vpop.permute.xlu1 %9462  ;;  %4317 = vmatprep.mubr.bf16.mxu0 %v13899_v31  ;;  %v4650_v15 = vpack.c.bf16 %v4638_v10, %v4637_v63 }
 0x449   : > { %8300 = vmatmul.mubr.msk.bf16.vlgmr.msra.gmra.mrb[8].mxu1 %vm1367_vm8, %v10169_v33  ;;  %4476 = vmatprep.subr.bf16.mxu0 %v4455_v13  ;;  %v4645_v23 = vsel %vm1006_vm7, %v9459_v43, %v9434_v42  ;;  %v4646_v53 = vsel %vm1006_vm7, %v9460_v20, %v9435_v50  ;;  %v9465_v3 = vunpack.i.h.bf16 %v9463_v39  ;;  %v9464_v35 = vunpack.i.l.bf16 %v9463_v39 }
 0x44a   : > { %4528 = vmatpush1.bf16.msra.mxu1 %v4452_v47  ;;  %v9473_v0 = vpop.permute.xlu0 %9472  ;;  %4370 = vmatprep.mubr.bf16.mxu1 %v13899_v31  ;;  %v4652_v56 = vpack.c.bf16 %v4646_v53, %v4645_v23  ;;  %v4634_v7 = vsel %vm1006_vm7, %v9455_v21, %v9460_v20  ;;  %v4633_v57 = vsel %vm1006_vm7, %v9454_v54, %v9459_v43  ;;  %v10173_v54 = vld [vmem:[#allocation3 + $0x110] sm:$0xff]  }
 0x44b   : > { %4529 = vmatprep.subr.bf16.mxu1 %v4457_v29  ;;  %v9475_v11 = vunpack.i.h.bf16 %v9473_v0  ;;  %v9474_v12 = vunpack.i.l.bf16 %v9473_v0  ;;  %v4651_v52 = vpack.c.bf16 %v4634_v7, %v4633_v57 }
 0x44c   : > { %4477 = vmatpush1.bf16.msra.mxu0 %v4454_v25  ;;  %v9468_v37 = vpop.permute.xlu1 %9467 }
 0x44d   : > { %4673 = vmatprep.subr.bf16.mxu0 %v4650_v15  ;;  %v9470_v36 = vunpack.i.h.bf16 %v9468_v37  ;;  %v9469_v55 = vunpack.i.l.bf16 %v9468_v37  ;;  %v4644_v62 = vsel %vm1006_vm7, %v9465_v3, %v9475_v11  ;;  %v4643_v30 = vsel %vm1006_vm7, %v9464_v35, %v9474_v12 }
 0x44e   : > { %4530 = vmatpush1.bf16.msra.mxu1 %v4456_v61  ;;  %v9478_v40 = vpop.permute.xlu0 %9477  ;;  %v4653_v17 = vpack.c.bf16 %v4644_v62, %v4643_v30 }
 0x44f   : > { %4726 = vmatprep.subr.bf16.mxu1 %v4652_v56  ;;  %8299 = vmatmul.mubr.msk.bf16.gmra.mrb[12].mxu0 %vm1367_vm8, %v10170_v48  ;;  %v9480_v9 = vunpack.i.h.bf16 %v9478_v40  ;;  %v9479_v58 = vunpack.i.l.bf16 %v9478_v40  ;;  %v4639_v44 = vsel %vm1006_vm7, %v9474_v12, %v9469_v55  ;;  %v4640_v41 = vsel %vm1006_vm7, %v9475_v11, %v9470_v36 }
 0x450   : > { %4506 = vmatprep.mubr.bf16.mxu0 %v13899_v31  ;;  %v4654_v1 = vpack.c.bf16 %v4640_v41, %v4639_v44 }
 0x451   : > { %8301 = vmatmul.mubr.msk.bf16.gmra.mrb[12].mxu1 %vm1367_vm8, %v10170_v48  ;;  %v4647_v4 = vsel %vm1006_vm7, %v9479_v58, %v9464_v35  ;;  %v4648_v33 = vsel %vm1006_vm7, %v9480_v9, %v9465_v3  ;;  %v4636_v6 = vsel %vm1006_vm7, %v9470_v36, %v9480_v9  ;;  %v4635_v32 = vsel %vm1006_vm7, %v9469_v55, %v9479_v58 }
 0x452   : > { %4559 = vmatprep.mubr.bf16.mxu1 %v13899_v31  ;;  %v4656_v16 = vpack.c.bf16 %v4648_v33, %v4647_v4  ;;  %v4655_v21 = vpack.c.bf16 %v4636_v6, %v4635_v32 }
 0x457   : > { %8304 = vmatmul.mubr.msk.bf16.vlgmr.msra.gmra.mrb[8].mxu0 %vm1367_vm8, %v10171_v34 }
 0x458   : > { %4674 = vmatpush1.bf16.msra.mxu0 %v4649_v18  ;;  %4516 = vmatprep.mubr.bf16.mxu0 %v13899_v31 }
 0x459   : > { %8306 = vmatmul.mubr.msk.bf16.vlgmr.msra.gmra.mrb[8].mxu1 %vm1367_vm8, %v10171_v34  ;;  %4675 = vmatprep.subr.bf16.mxu0 %v4654_v1 }
 0x45a   : > { %4727 = vmatpush1.bf16.msra.mxu1 %v4651_v52  ;;  %4569 = vmatprep.mubr.bf16.mxu1 %v13899_v31 }
 0x45b   : > { %4728 = vmatprep.subr.bf16.mxu1 %v4656_v16 }
 0x45c   : > { %4676 = vmatpush1.bf16.msra.mxu0 %v4653_v17 }
 0x45e   : > { %4729 = vmatpush1.bf16.msra.mxu1 %v4655_v21 }
 0x45f   : > { %8305 = vmatmul.mubr.msk.bf16.gmra.mrb[12].mxu0 %vm1367_vm8, %v10172_v38 }
 0x460   : > { %4705 = vmatprep.mubr.bf16.mxu0 %v13899_v31 }
 0x461   : > { %8307 = vmatmul.mubr.msk.bf16.gmra.mrb[12].mxu1 %vm1367_vm8, %v10172_v38 }
 0x462   : > { %4758 = vmatprep.mubr.bf16.mxu1 %v13899_v31 }
 0x467   : > { %8310 = vmatmul.mubr.msk.bf16.vlgmr.msra.gmra.mrb[8].mxu0 %vm1367_vm8, %v10173_v54 }
 0x468   : > { %4715 = vmatprep.mubr.bf16.mxu0 %v13899_v31  ;;  %v4803_v26 = vpop.permute.xlu1 %4802 }
 0x469   : > { %8312 = vmatmul.mubr.msk.bf16.vlgmr.msra.gmra.mrb[8].mxu1 %vm1367_vm8, %v10173_v54 }
 0x46a   : > { %4768 = vmatprep.mubr.bf16.mxu1 %v13899_v31 }
 0x46f   : > { %8311 = vmatmul.mubr.msk.bf16.gmra.mrb[12].mxu0 %vm1367_vm8, %v10174_v22 }
 0x470   : > { %5102 = vmatprep.mubr.bf16.mxu0 %v13899_v31  ;;  %v12304_v13 = vpop.permute.xlu1 %4812 }
 0x471   : > { %8313 = vmatmul.mubr.msk.bf16.gmra.mrb[12].mxu1 %vm1367_vm8, %v10174_v22  ;;  %v4808_v20 = vpop.permute.xlu0 %4807 }
 0x472   : > { %5155 = vmatprep.mubr.bf16.mxu1 %v13899_v31 }
 0x474   : > { %v12306_v49 = vpop.permute.xlu1 %4817 }
 0x476   : > { %v4854_v60 = vpop.permute.xlu0 %4853 }
 0x47a   : > { %v4858_v51 = vpop.permute.xlu1 %4857 }
 0x47b   : > { %v4890_v18 = vpop.permute.xlu0 %4889 }
 0x480   : > { %v4886_v43 = vpop.permute.xlu1 %4885 }
 0x485   : > { %v4862_v34 = vpop.permute.xlu1 %4861 }
 0x53a   : > { %v4707_v63 = vpop.f32.mrb[8].mxu0 }
 0x53b   : > { %v4820_v10 = vadd.f32 %v4803_v26, %v4707_v63  ;;  %v4709_v50 = vpop.f32.mrb[9].mxu0 }
 0x53c   : > { %v4821_v42 = vadd.f32 %v4803_v26, %v4709_v50  ;;  %v4760_v47 = vpop.f32.mrb[8].mxu1  ;;  %v4711_v39 = vpop.f32.mrb[10].mxu0 }
 0x53d   : > { %v4836_v45 = vmax.f32 %v4820_v10, 0.0  ;;  %v4822_v29 = vadd.f32 %v4803_v26, %v4760_v47  ;;  %v4824_v15 = vadd.f32 %v4808_v20, %v4711_v39  ;;  %v4762_v0 = vpop.f32.mrb[9].mxu1  ;;  %v4713_v25 = vpop.f32.mrb[11].mxu0 }
 0x53e   : > { %v4837_v23 = vmax.f32 %v4821_v42, 0.0  ;;  %v4823_v53 = vadd.f32 %v4803_v26, %v4762_v0  ;;  %v4825_v56 = vadd.f32 %v4808_v20, %v4713_v25  ;;  %v4764_v48 = vpop.f32.mrb[10].mxu1  ;;  %v4866_v39 = vpop.permute.xlu1 %4865 }
 0x53f   : > { %v4868_v61 = vmul.f32 %v4854_v60, %v4836_v45  ;;  %v4838_v37 = vmax.f32 %v4822_v29, 0.0  ;;  %v4840_v40 = vmax.f32 %v4824_v15, 0.0  ;;  %v4826_v36 = vadd.f32 %v4808_v20, %v4764_v48  ;;  %v4766_v55 = vpop.f32.mrb[11].mxu1 }
 0x540   : > { %v4869_v11 = vmul.f32 %v4854_v60, %v4837_v23  ;;  %v4839_v12 = vmax.f32 %v4823_v53, 0.0  ;;  %v4841_v9 = vmax.f32 %v4825_v56, 0.0  ;;  %v4827_v58 = vadd.f32 %v4808_v20, %v4766_v55 }
 0x541   : > { %v4900_v2 = vadd.f32 %v4886_v43, %v4868_v61  ;;  %v4870_v19 = vmul.f32 %v4854_v60, %v4838_v37  ;;  %v4872_v3 = vmul.f32 %v4858_v51, %v4840_v40  ;;  %v4842_v35 = vmax.f32 %v4826_v36, 0.0  ;;  %v4894_v36 = vpop.permute.xlu0 %4893 }
 0x542   : > { %v4901_v44 = vadd.f32 %v4886_v43, %v4869_v11  ;;  %v4871_v41 = vmul.f32 %v4854_v60, %v4839_v12  ;;  %v4873_v7 = vmul.f32 %v4858_v51, %v4841_v9  ;;  %v4843_v57 = vmax.f32 %v4827_v58, 0.0  ;;  %v4717_v4 = vpop.f32.mrb[12].mxu0 }
 0x543   : > { %v12309_v33 = vmul.f32 %v4900_v2, %v13895_v5  ;;  %v4902_v62 = vadd.f32 %v4886_v43, %v4870_v19  ;;  %v4874_v30 = vmul.f32 %v4858_v51, %v4842_v35  ;;  %v4904_v1 = vadd.f32 %v4890_v18, %v4872_v3  ;;  %v4719_v52 = vpop.f32.mrb[13].mxu0  ;;  %v4898_v35 = vpop.permute.xlu1 %4897 }
 0x544   : > { %v12312_v6 = vmul.f32 %v4901_v44, %v13896_v27  ;;  %v4903_v32 = vadd.f32 %v4886_v43, %v4871_v41  ;;  %v4875_v16 = vmul.f32 %v4858_v51, %v4843_v57  ;;  %v4905_v17 = vadd.f32 %v4890_v18, %v4873_v7  ;;  %v4770_v38 = vpop.f32.mrb[12].mxu1  ;;  %v4721_v21 = vpop.f32.mrb[14].mxu0 }
 0x545   : > { %v12315_v54 = vmul.f32 %v4902_v62, %v13897_v14  ;;  %v4906_v22 = vadd.f32 %v4890_v18, %v4874_v30  ;;  %v12318_v26 = vmul.f32 %v4904_v1, %v13895_v5  ;;  %v4828_v20 = vadd.f32 %v12304_v13, %v4717_v4  ;;  %v4772_v63 = vpop.f32.mrb[13].mxu1  ;;  %v4723_v10 = vpop.f32.mrb[15].mxu0 }
 0x546   : > { %v12322_v60 = vmul.f32 %v4903_v32, %v13898_v24  ;;  %v4907_v50 = vadd.f32 %v4890_v18, %v4875_v16  ;;  %v12325_v51 = vmul.f32 %v4905_v17, %v13896_v27  ;;  %v4829_v43 = vadd.f32 %v12304_v13, %v4719_v52  ;;  %v4774_v42 = vpop.f32.mrb[14].mxu1 }
 0x547   : > { %v12329_v47 = vmul.f32 %v4906_v22, %v13897_v14  ;;  %v4844_v45 = vmax.f32 %v4828_v20, 0.0  ;;  %v4830_v29 = vadd.f32 %v12304_v13, %v4770_v38  ;;  %v4832_v15 = vadd.f32 %v12306_v49, %v4721_v21  ;;  %v4776_v0 = vpop.f32.mrb[15].mxu1 }
 0x548   : > { %v12334_v25 = vmul.f32 %v4907_v50, %v13898_v24  ;;  %v4845_v23 = vmax.f32 %v4829_v43, 0.0  ;;  %v4831_v53 = vadd.f32 %v12304_v13, %v4772_v63  ;;  %v4833_v56 = vadd.f32 %v12306_v49, %v4723_v10 }
 0x549   : > { %v4876_v48 = vmul.f32 %v4862_v34, %v4844_v45  ;;  %v4846_v61 = vmax.f32 %v4830_v29, 0.0  ;;  %v4848_v37 = vmax.f32 %v4832_v15, 0.0  ;;  %v4834_v40 = vadd.f32 %v12306_v49, %v4774_v42 }
 0x54a   : > { %v4877_v55 = vmul.f32 %v4862_v34, %v4845_v23  ;;  %v4847_v11 = vmax.f32 %v4831_v53, 0.0  ;;  %v4849_v12 = vmax.f32 %v4833_v56, 0.0  ;;  %v4835_v9 = vadd.f32 %v12306_v49, %v4776_v0 }
 0x54b   : > { %v4908_v58 = vadd.f32 %v4894_v36, %v4876_v48  ;;  %v4878_v2 = vmul.f32 %v4862_v34, %v4846_v61  ;;  %v4880_v19 = vmul.f32 %v4866_v39, %v4848_v37  ;;  %v4850_v3 = vmax.f32 %v4834_v40, 0.0 }
 0x54c   : > { %v4909_v44 = vadd.f32 %v4894_v36, %v4877_v55  ;;  %v4879_v13 = vmul.f32 %v4862_v34, %v4847_v11  ;;  %v4881_v41 = vmul.f32 %v4866_v39, %v4849_v12  ;;  %v4851_v7 = vmax.f32 %v4835_v9, 0.0 }
 0x54d   : > { %v12341_v57 = vmul.f32 %v4908_v58, %v13895_v5  ;;  %v4910_v18 = vadd.f32 %v4894_v36, %v4878_v2  ;;  %v4882_v4 = vmul.f32 %v4866_v39, %v4850_v3  ;;  %v12345_v62 = vpack.i.bf16 %v12318_v26, %v12309_v33 }
 0x54e   : > { %v12348_v49 = vmul.f32 %v4909_v44, %v13896_v27  ;;  %v4911_v30 = vadd.f32 %v4894_v36, %v4879_v13  ;;  %v4883_v1 = vmul.f32 %v4866_v39, %v4851_v7  ;;  %v4912_v52 = vadd.f32 %v4898_v35, %v4880_v19 }
 0x54f   : > { %v12351_v32 = vmul.f32 %v4910_v18, %v13897_v14  ;;  %9490 = vrot.lane.b32.xlu0 %v12345_v62, %s10273_s15  ;;  %v4913_v34 = vadd.f32 %v4898_v35, %v4881_v41  ;;  %v4914_v16 = vadd.f32 %v4898_v35, %v4882_v4  ;;  %v12357_v17 = vpack.i.bf16 %v12325_v51, %v12312_v6 }
 0x550   : > { %v12360_v38 = vmul.f32 %v4911_v30, %v13898_v24  ;;  %v4915_v21 = vadd.f32 %v4898_v35, %v4883_v1  ;;  %v12363_v22 = vmul.f32 %v4912_v52, %v13895_v5  ;;  %v12367_v20 = vpack.i.bf16 %v12329_v47, %v12315_v54 }
 0x551   : > { %v12370_v63 = vmul.f32 %v4913_v34, %v13896_v27  ;;  %v12373_v10 = vmul.f32 %v4914_v16, %v13897_v14  ;;  %9500 = vrot.lane.b32.xlu1 %v12357_v17, %s10273_s15  ;;  %v12379_v50 = vpack.i.bf16 %v12334_v25, %v12322_v60  ;;  %v5702_v15 = vpack.c.bf16 %v12325_v51, %v12312_v6 }
 0x552   : > { %v12382_v43 = vmul.f32 %v4915_v21, %v13898_v24  ;;  %v12386_v42 = vpack.i.bf16 %v12363_v22, %v12341_v57  ;;  %v5704_v0 = vpack.c.bf16 %v12334_v25, %v12322_v60  ;;  %v5701_v23 = vpack.c.bf16 %v12318_v26, %v12309_v33 }
 0x553   : > { %9495 = vrot.lane.b32.xlu0 %v12367_v20, %s10273_s15  ;;  %v12392_v39 = vpack.i.bf16 %v12370_v63, %v12348_v49  ;;  %v12396_v45 = vpack.i.bf16 %v12373_v10, %v12351_v32  ;;  %v5706_v53 = vpack.c.bf16 %v12370_v63, %v12348_v49  ;;  %v5703_v56 = vpack.c.bf16 %v12329_v47, %v12315_v54  ;;  %v10182_v49 = vld [vmem:[#allocation3 + $0x158] sm:$0xff]  }
 0x554   : > { %v12400_v29 = vpack.i.bf16 %v12382_v43, %v12360_v38  ;;  %v5708_v48 = vpack.c.bf16 %v12382_v43, %v12360_v38  ;;  %v5705_v61 = vpack.c.bf16 %v12363_v22, %v12341_v57  ;;  %v5707_v37 = vpack.c.bf16 %v12373_v10, %v12351_v32 }
 0x555   : > { %9505 = vrot.lane.b32.xlu1 %v12379_v50, %s10273_s15 }
 0x557   : > { %9510 = vrot.lane.b32.xlu0 %v12386_v42, %s10273_s15 }
 0x559   : > { %9525 = vrot.lane.b32.xlu1 %v12392_v39, %s10273_s15 }
 0x55b   : > { %9515 = vrot.lane.b32.xlu0 %v12396_v45, %s10273_s15 }
 0x55d   : > { %9530 = vrot.lane.b32.xlu1 %v12400_v29, %s10273_s15 }
 0x55f   : > { %9520 = vrot.lane.b32.xlu0 %v12345_v62, %s10272_s11 }
 0x561   : > { %9535 = vrot.lane.b32.xlu1 %v12357_v17, %s10272_s11 }
 0x563   : > { %9540 = vrot.lane.b32.xlu0 %v12367_v20, %s10272_s11 }
 0x565   : > { %9545 = vrot.lane.b32.xlu1 %v12379_v50, %s10272_s11 }
 0x567   : > { %9550 = vrot.lane.b32.xlu0 %v12386_v42, %s10272_s11 }
 0x569   : > { %9565 = vrot.lane.b32.xlu1 %v12392_v39, %s10272_s11 }
 0x56b   : > { %9555 = vrot.lane.b32.xlu0 %v12396_v45, %s10272_s11 }
 0x56d   : > { %9570 = vrot.lane.b32.xlu1 %v12400_v29, %s10272_s11 }
 0x56f   : > { %9560 = vrot.lane.b32.xlu0 %v12345_v62, %s10274_s20 }
 0x571   : > { %9575 = vrot.lane.b32.xlu1 %v12357_v17, %s10274_s20 }
 0x573   : > { %9580 = vrot.lane.b32.xlu0 %v12367_v20, %s10274_s20 }
 0x575   : > { %9585 = vrot.lane.b32.xlu1 %v12379_v50, %s10274_s20 }
 0x577   : > { %9590 = vrot.lane.b32.xlu0 %v12386_v42, %s10274_s20 }
 0x579   : > { %9605 = vrot.lane.b32.xlu1 %v12392_v39, %s10274_s20 }
 0x57b   : > { %9595 = vrot.lane.b32.xlu0 %v12396_v45, %s10274_s20 }
 0x57d   : > { %9610 = vrot.lane.b32.xlu1 %v12400_v29, %s10274_s20 }
 0x57f   : > { %9600 = vrot.lane.b32.xlu0 %v12345_v62, %s10275_s28 }
 0x581   : > { %9615 = vrot.lane.b32.xlu1 %v12357_v17, %s10275_s28 }
 0x583   : > { %9620 = vrot.lane.b32.xlu0 %v12367_v20, %s10275_s28 }
 0x585   : > { %9625 = vrot.lane.b32.xlu1 %v12379_v50, %s10275_s28 }
 0x587   : > { %9630 = vrot.lane.b32.xlu0 %v12386_v42, %s10275_s28 }
 0x589   : > { %9640 = vrot.lane.b32.xlu1 %v12392_v39, %s10275_s28 }
 0x58b   : > { %9635 = vrot.lane.b32.xlu0 %v12396_v45, %s10275_s28 }
 0x58d   : > { %9645 = vrot.lane.b32.xlu1 %v12400_v29, %s10275_s28 }
 0x58f   : > { %9650 = vrot.lane.b32.xlu0 %v12345_v62, %s10276_s8 }
 0x591   : > { %9655 = vrot.lane.b32.xlu1 %v12357_v17, %s10276_s8 }
 0x593   : > { %9660 = vrot.lane.b32.xlu0 %v12367_v20, %s10276_s8 }
 0x595   : > { %9665 = vrot.lane.b32.xlu1 %v12379_v50, %s10276_s8 }
 0x597   : > { %9670 = vrot.lane.b32.xlu0 %v12386_v42, %s10276_s8 }
 0x599   : > { %9685 = vrot.lane.b32.xlu1 %v12392_v39, %s10276_s8 }
 0x59b   : > { %9675 = vrot.lane.b32.xlu0 %v12396_v45, %s10276_s8 }
 0x59d   : > { %9690 = vrot.lane.b32.xlu1 %v12400_v29, %s10276_s8 }
 0x59f   : > { %9680 = vrot.lane.b32.xlu0 %v12345_v62, %s10277_s17 }
 0x5a1   : > { %9695 = vrot.lane.b32.xlu1 %v12357_v17, %s10277_s17 }
 0x5a3   : > { %9700 = vrot.lane.b32.xlu0 %v12367_v20, %s10277_s17 }
 0x5a5   : > { %9705 = vrot.lane.b32.xlu1 %v12379_v50, %s10277_s17 }
 0x5a7   : > { %9710 = vrot.lane.b32.xlu0 %v12386_v42, %s10277_s17 }
 0x5a9   : > { %9725 = vrot.lane.b32.xlu1 %v12392_v39, %s10277_s17 }
 0x5ab   : > { %9715 = vrot.lane.b32.xlu0 %v12396_v45, %s10277_s17 }
 0x5ad   : > { %9730 = vrot.lane.b32.xlu1 %v12400_v29, %s10277_s17 }
 0x5af   : > { %9720 = vrot.lane.b32.xlu0 %v12345_v62, %s10278_s12 }
 0x5b1   : > { %9735 = vrot.lane.b32.xlu1 %v12357_v17, %s10278_s12 }
 0x5b3   : > { %9740 = vrot.lane.b32.xlu0 %v12367_v20, %s10278_s12 }
 0x5b5   : > { %9745 = vrot.lane.b32.xlu1 %v12379_v50, %s10278_s12 }
 0x5b7   : > { %9750 = vrot.lane.b32.xlu0 %v12386_v42, %s10278_s12 }
 0x5b9   : > { %9765 = vrot.lane.b32.xlu1 %v12392_v39, %s10278_s12 }
 0x5bb   : > { %9755 = vrot.lane.b32.xlu0 %v12396_v45, %s10278_s12 }
 0x5bd   : > { %9770 = vrot.lane.b32.xlu1 %v12400_v29, %s10278_s12 }
 0x5bf   : > { %9760 = vrot.lane.b32.xlu0 %v12345_v62, %s10279_s9 }
 0x5c1   : > { %9775 = vrot.lane.b32.xlu1 %v12357_v17, %s10279_s9  ;;  %v9491_v40 = vpop.permute.xlu0 %9490 }
 0x5c2   : > { %v9493_v36 = vunpack.i.h.bf16 %v9491_v40  ;;  %v9492_v55 = vunpack.i.l.bf16 %v9491_v40 }
 0x5c3   : > { %v9501_v11 = vpop.permute.xlu1 %9500  ;;  %9780 = vrot.lane.b32.xlu0 %v12367_v20, %s10279_s9 }
 0x5c4   : > { %v9503_v12 = vunpack.i.h.bf16 %v9501_v11  ;;  %v9502_v9 = vunpack.i.l.bf16 %v9501_v11 }
 0x5c5   : > { %9785 = vrot.lane.b32.xlu1 %v12379_v50, %s10279_s9  ;;  %v9496_v58 = vpop.permute.xlu0 %9495 }
 0x5c6   : > { %v9498_v2 = vunpack.i.h.bf16 %v9496_v58  ;;  %v9497_v19 = vunpack.i.l.bf16 %v9496_v58  ;;  %v5038_v3 = vsel %vm433_vm1, %v9492_v55, %v9502_v9  ;;  %v5039_v35 = vsel %vm433_vm1, %v9493_v36, %v9503_v12 }
 0x5c7   : > { %v9506_v44 = vpop.permute.xlu1 %9505  ;;  %9790 = vrot.lane.b32.xlu0 %v12386_v42, %s10279_s9  ;;  %v5047_v13 = vpack.c.bf16 %v5039_v35, %v5038_v3 }
 0x5c8   : > { %v9508_v41 = vunpack.i.h.bf16 %v9506_v44  ;;  %v9507_v7 = vunpack.i.l.bf16 %v9506_v44  ;;  %v5034_v18 = vsel %vm433_vm1, %v9502_v9, %v9497_v19  ;;  %v5035_v4 = vsel %vm433_vm1, %v9503_v12, %v9498_v2 }
 0x5c9   : > { %5070 = vmatprep.subr.bf16.mxu0 %v5047_v13  ;;  %9800 = vrot.lane.b32.xlu1 %v12392_v39, %s10279_s9  ;;  %v9511_v62 = vpop.permute.xlu0 %9510  ;;  %v5048_v40 = vpack.c.bf16 %v5035_v4, %v5034_v18 }
 0x5ca   : > { %v5043_v30 = vsel %vm433_vm1, %v9508_v41, %v9493_v36  ;;  %v5042_v1 = vsel %vm433_vm1, %v9507_v7, %v9492_v55  ;;  %v9513_v52 = vunpack.i.h.bf16 %v9511_v62  ;;  %v9512_v34 = vunpack.i.l.bf16 %v9511_v62 }
 0x5cb   : > { %v9526_v16 = vpop.permute.xlu1 %9525  ;;  %9795 = vrot.lane.b32.xlu0 %v12396_v45, %s10279_s9  ;;  %v5046_v17 = vpack.c.bf16 %v5043_v30, %v5042_v1  ;;  %v5030_v21 = vsel %vm433_vm1, %v9497_v19, %v9507_v7  ;;  %v5031_v20 = vsel %vm433_vm1, %v9498_v2, %v9508_v41 }
 0x5cc   : > { %v9528_v50 = vunpack.i.h.bf16 %v9526_v16  ;;  %v9527_v42 = vunpack.i.l.bf16 %v9526_v16  ;;  %v5049_v39 = vpack.c.bf16 %v5031_v20, %v5030_v21  ;;  %v10175_v21 = vld [vmem:[#allocation3 + $0x130] sm:$0xff]  }
 0x5cd   : > { %5071 = vmatpush1.bf16.msra.mxu0 %v5046_v17  ;;  %9805 = vrot.lane.b32.xlu1 %v12400_v29, %s10279_s9  ;;  %v9516_v36 = vpop.permute.xlu0 %9515 }
 0x5ce   : > { %5123 = vmatprep.subr.bf16.mxu1 %v5049_v39  ;;  %v9518_v55 = vunpack.i.h.bf16 %v9516_v36  ;;  %v9517_v11 = vunpack.i.l.bf16 %v9516_v36  ;;  %v5040_v45 = vsel %vm433_vm1, %v9512_v34, %v9527_v42  ;;  %v5041_v12 = vsel %vm433_vm1, %v9513_v52, %v9528_v50 }
 0x5cf   : > { %5124 = vmatpush1.bf16.msra.mxu1 %v5048_v40  ;;  %v9531_v9 = vpop.permute.xlu1 %9530  ;;  %v5051_v58 = vpack.c.bf16 %v5041_v12, %v5040_v45 }
 0x5d0   : > { %v9533_v2 = vunpack.i.h.bf16 %v9531_v9  ;;  %v9532_v19 = vunpack.i.l.bf16 %v9531_v9  ;;  %v5036_v3 = vsel %vm433_vm1, %v9527_v42, %v9517_v11  ;;  %v5037_v29 = vsel %vm433_vm1, %v9528_v50, %v9518_v55 }
 0x5d1   : > { %5072 = vmatprep.subr.bf16.mxu0 %v5051_v58  ;;  %v9521_v35 = vpop.permute.xlu0 %9520 }
 0x5d2   : > { %v5045_v44 = vsel %vm433_vm1, %v9533_v2, %v9513_v52  ;;  %v5044_v13 = vsel %vm433_vm1, %v9532_v19, %v9512_v34  ;;  %v9523_v41 = vunpack.i.h.bf16 %v9521_v35  ;;  %v9522_v7 = vunpack.i.l.bf16 %v9521_v35 }
 0x5d3   : > { %v9536_v18 = vpop.permute.xlu1 %9535  ;;  %v5050_v4 = vpack.c.bf16 %v5045_v44, %v5044_v13  ;;  %v5032_v62 = vsel %vm433_vm1, %v9517_v11, %v9532_v19  ;;  %v5033_v30 = vsel %vm433_vm1, %v9518_v55, %v9533_v2  ;;  %v5052_v52 = vpack.c.bf16 %v5037_v29, %v5036_v3 }
 0x5d4   : > { %v9538_v1 = vunpack.i.h.bf16 %v9536_v18  ;;  %v9537_v16 = vunpack.i.l.bf16 %v9536_v18  ;;  %v5053_v17 = vpack.c.bf16 %v5033_v30, %v5032_v62  ;;  %v10176_v62 = vld [vmem:[#allocation3 + $0x138] sm:$0xff]  }
 0x5d5   : > { %5073 = vmatpush1.bf16.msra.mxu0 %v5050_v4  ;;  %v9541_v20 = vpop.permute.xlu0 %9540 }
 0x5d6   : > { %5125 = vmatprep.subr.bf16.mxu1 %v5053_v17  ;;  %v9543_v50 = vunpack.i.h.bf16 %v9541_v20  ;;  %v9542_v34 = vunpack.i.l.bf16 %v9541_v20  ;;  %v4977_v42 = vsel %vm347_vm0, %v9522_v7, %v9537_v16  ;;  %v4978_v39 = vsel %vm347_vm0, %v9523_v41, %v9538_v1 }
 0x5d7   : > { %5126 = vmatpush1.bf16.msra.mxu1 %v5052_v52  ;;  %v9546_v40 = vpop.permute.xlu1 %9545  ;;  %v4986_v36 = vpack.c.bf16 %v4978_v39, %v4977_v42 }
 0x5d8   : > { %v9548_v55 = vunpack.i.h.bf16 %v9546_v40  ;;  %v9547_v11 = vunpack.i.l.bf16 %v9546_v40  ;;  %8316 = vmatmul.mubr.msk.bf16.vlgmr.msra.gmra.mrb[16].mxu0 %vm1367_vm8, %v10175_v21  ;;  %v4973_v45 = vsel %vm347_vm0, %v9537_v16, %v9542_v34  ;;  %v4974_v12 = vsel %vm347_vm0, %v9538_v1, %v9543_v50 }
 0x5d9   : > { %5192 = vmatprep.subr.bf16.mxu0 %v4986_v36  ;;  %v9551_v9 = vpop.permute.xlu0 %9550  ;;  %5112 = vmatprep.mubr.bf16.mxu0 %v13899_v31  ;;  %v4987_v30 = vpack.c.bf16 %v4974_v12, %v4973_v45  ;;  %v12607_v12 = vld [vmem:[#allocation5 + $0x68] sm:$0xff] }
 0x5da   : > { %v4982_v58 = vsel %vm347_vm0, %v9548_v55, %v9523_v41  ;;  %v4981_v2 = vsel %vm347_vm0, %v9547_v11, %v9522_v7  ;;  %8318 = vmatmul.mubr.msk.bf16.vlgmr.msra.gmra.mrb[16].mxu1 %vm1367_vm8, %v10175_v21  ;;  %v9553_v19 = vunpack.i.h.bf16 %v9551_v9  ;;  %v9552_v3 = vunpack.i.l.bf16 %v9551_v9  ;;  %v12609_v9 = vld [vmem:[#allocation5 + $0x60] sm:$0xff]  ;;  %6655 = vperm.xlu1 %9810, %v12607_v12  }
 0x5db   : > { %v9566_v29 = vpop.permute.xlu1 %9565  ;;  %v4985_v35 = vpack.c.bf16 %v4982_v58, %v4981_v2  ;;  %v4969_v44 = vsel %vm347_vm0, %v9542_v34, %v9547_v11  ;;  %v4970_v13 = vsel %vm347_vm0, %v9543_v50, %v9548_v55  ;;  %5165 = vmatprep.mubr.bf16.mxu1 %v13899_v31  ;;  %6650 = vperm.xlu0 %9809, %v12609_v9  }
 0x5dc   : > { %v9568_v18 = vunpack.i.h.bf16 %v9566_v29  ;;  %v9567_v4 = vunpack.i.l.bf16 %v9566_v29  ;;  %v4988_v41 = vpack.c.bf16 %v4970_v13, %v4969_v44  ;;  %v10177_v13 = vld [vmem:[#allocation3 + $0x120] sm:$0xff]  }
 0x5dd   : > { %5193 = vmatpush1.bf16.msra.mxu0 %v4985_v35  ;;  %v9556_v7 = vpop.permute.xlu0 %9555 }
 0x5de   : > { %5245 = vmatprep.subr.bf16.mxu1 %v4988_v41  ;;  %v9558_v1 = vunpack.i.h.bf16 %v9556_v7  ;;  %v9557_v16 = vunpack.i.l.bf16 %v9556_v7  ;;  %v4979_v17 = vsel %vm347_vm0, %v9552_v3, %v9567_v4  ;;  %v4980_v21 = vsel %vm347_vm0, %v9553_v19, %v9568_v18 }
 0x5df   : > { %5246 = vmatpush1.bf16.msra.mxu1 %v4987_v30  ;;  %v9571_v20 = vpop.permute.xlu1 %9570  ;;  %v4990_v52 = vpack.c.bf16 %v4980_v21, %v4979_v17 }
 0x5e0   : > { %v9573_v50 = vunpack.i.h.bf16 %v9571_v20  ;;  %v9572_v34 = vunpack.i.l.bf16 %v9571_v20  ;;  %8317 = vmatmul.mubr.msk.bf16.gmra.mrb[20].mxu0 %vm1367_vm8, %v10176_v62  ;;  %v4975_v42 = vsel %vm347_vm0, %v9567_v4, %v9557_v16  ;;  %v4976_v39 = vsel %vm347_vm0, %v9568_v18, %v9558_v1  ;;  %v12617_v18 = vld [vmem:[#allocation5 + $0x70] sm:$0xff] }
 0x5e1   : > { %5194 = vmatprep.subr.bf16.mxu0 %v4990_v52  ;;  %v9561_v40 = vpop.permute.xlu0 %9560  ;;  %5224 = vmatprep.mubr.bf16.mxu0 %v13899_v31  ;;  %v4991_v41 = vpack.c.bf16 %v4976_v39, %v4975_v42 }
 0x5e2   : > { %v4984_v36 = vsel %vm347_vm0, %v9573_v50, %v9553_v19  ;;  %v4983_v55 = vsel %vm347_vm0, %v9572_v34, %v9552_v3  ;;  %8319 = vmatmul.mubr.msk.bf16.gmra.mrb[20].mxu1 %vm1367_vm8, %v10176_v62  ;;  %v9563_v11 = vunpack.i.h.bf16 %v9561_v40  ;;  %v9562_v45 = vunpack.i.l.bf16 %v9561_v40  ;;  %v12620_v62 = vld [vmem:[#allocation5 + $0x78] sm:$0xff]  ;;  %6660 = vperm.xlu1 %9810, %v12617_v18  }
 0x5e3   : > { %v9576_v58 = vpop.permute.xlu1 %9575  ;;  %v4989_v2 = vpack.c.bf16 %v4984_v36, %v4983_v55  ;;  %v4971_v29 = vsel %vm347_vm0, %v9557_v16, %v9572_v34  ;;  %v4972_v35 = vsel %vm347_vm0, %v9558_v1, %v9573_v50  ;;  %5277 = vmatprep.mubr.bf16.mxu1 %v13899_v31  ;;  %6665 = vperm.xlu0 %9809, %v12620_v62  }
 0x5e4   : > { %v9578_v19 = vunpack.i.h.bf16 %v9576_v58  ;;  %v9577_v3 = vunpack.i.l.bf16 %v9576_v58  ;;  %v4992_v44 = vpack.c.bf16 %v4972_v35, %v4971_v29 }
 0x5e5   : > { %5195 = vmatpush1.bf16.msra.mxu0 %v4989_v2  ;;  %v9581_v4 = vpop.permute.xlu0 %9580 }
 0x5e6   : > { %5247 = vmatprep.subr.bf16.mxu1 %v4992_v44  ;;  %v9583_v7 = vunpack.i.h.bf16 %v9581_v4  ;;  %v9582_v30 = vunpack.i.l.bf16 %v9581_v4  ;;  %v5343_v1 = vsel %vm519_vm2, %v9562_v45, %v9577_v3  ;;  %v5344_v16 = vsel %vm519_vm2, %v9563_v11, %v9578_v19  ;;  %9811 = vset.pattern.permute.xlu1 %v13900_v59 }
 0x5e7   : > { %5248 = vmatpush1.bf16.msra.mxu1 %v4991_v41  ;;  %v9586_v17 = vpop.permute.xlu1 %9585  ;;  %v5352_v21 = vpack.c.bf16 %v5344_v16, %v5343_v1  ;;  %6701 = vperm.xlu1 %9811, %v12609_v9  }
 0x5e8   : > { %v9588_v20 = vunpack.i.h.bf16 %v9586_v17  ;;  %v9587_v52 = vunpack.i.l.bf16 %v9586_v17  ;;  %8322 = vmatmul.mubr.msk.bf16.vlgmr.msra.gmra.mrb[16].mxu0 %vm1367_vm8, %v10177_v13  ;;  %v5339_v50 = vsel %vm519_vm2, %v9577_v3, %v9582_v30  ;;  %v5340_v34 = vsel %vm519_vm2, %v9578_v19, %v9583_v7  ;;  %9812 = vset.pattern.permute.xlu0 %v13900_v59 }
 0x5e9   : > { %5375 = vmatprep.subr.bf16.mxu0 %v5352_v21  ;;  %v9591_v42 = vpop.permute.xlu0 %9590  ;;  %5234 = vmatprep.mubr.bf16.mxu0 %v13899_v31 }
 0x5ea   : > { %v5348_v39 = vsel %vm519_vm2, %v9588_v20, %v9563_v11  ;;  %v5347_v40 = vsel %vm519_vm2, %v9587_v52, %v9562_v45  ;;  %8324 = vmatmul.mubr.msk.bf16.vlgmr.msra.gmra.mrb[16].mxu1 %vm1367_vm8, %v10177_v13  ;;  %v9593_v36 = vunpack.i.h.bf16 %v9591_v42  ;;  %v9592_v55 = vunpack.i.l.bf16 %v9591_v42  ;;  %v10178_v45 = vld [vmem:[#allocation3 + $0x128] sm:$0xff]   ;;  %6705 = vperm.xlu0 %9812, %v12607_v12  }
 0x5eb   : > { %v9606_v58 = vpop.permute.xlu1 %9605  ;;  %v5351_v2 = vpack.c.bf16 %v5348_v39, %v5347_v40  ;;  %v5335_v29 = vsel %vm519_vm2, %v9582_v30, %v9587_v52  ;;  %v5336_v35 = vsel %vm519_vm2, %v9583_v7, %v9588_v20  ;;  %5287 = vmatprep.mubr.bf16.mxu1 %v13899_v31  ;;  %v5353_v13 = vpack.c.bf16 %v5340_v34, %v5339_v50 }
 0x5ec   : > { %v9608_v11 = vunpack.i.h.bf16 %v9606_v58  ;;  %v9607_v19 = vunpack.i.l.bf16 %v9606_v58  ;;  %v5354_v3 = vpack.c.bf16 %v5336_v35, %v5335_v29  ;;  %9813 = vset.pattern.permute.xlu1 %v13901_v46 }
 0x5ed   : > { %5376 = vmatpush1.bf16.msra.mxu0 %v5351_v2  ;;  %v9596_v44 = vpop.permute.xlu0 %9595  ;;  %6733 = vperm.xlu1 %9813, %v12609_v9  }
 0x5ee   : > { %5428 = vmatprep.subr.bf16.mxu1 %v5354_v3  ;;  %v9598_v4 = vunpack.i.h.bf16 %v9596_v44  ;;  %v9597_v41 = vunpack.i.l.bf16 %v9596_v44  ;;  %v5345_v7 = vsel %vm519_vm2, %v9592_v55, %v9607_v19  ;;  %v5346_v30 = vsel %vm519_vm2, %v9593_v36, %v9608_v11  ;;  %6709 = vperm.xlu0 %9812, %v12617_v18  }
 0x5ef   : > { %5429 = vmatpush1.bf16.msra.mxu1 %v5353_v13  ;;  %v9611_v1 = vpop.permute.xlu1 %9610  ;;  %v5356_v16 = vpack.c.bf16 %v5346_v30, %v5345_v7 }
 0x5f0   : > { %v9613_v17 = vunpack.i.h.bf16 %v9611_v1  ;;  %v9612_v21 = vunpack.i.l.bf16 %v9611_v1  ;;  %8323 = vmatmul.mubr.msk.bf16.gmra.mrb[20].mxu0 %vm1367_vm8, %v10178_v45  ;;  %v5341_v20 = vsel %vm519_vm2, %v9607_v19, %v9597_v41  ;;  %v5342_v52 = vsel %vm519_vm2, %v9608_v11, %v9598_v4  ;;  %v10179_v19 = vld [vmem:[#allocation3 + $0x140] sm:$0xff]  }
 0x5f1   : > { %5377 = vmatprep.subr.bf16.mxu0 %v5356_v16  ;;  %v9601_v50 = vpop.permute.xlu0 %9600  ;;  %5407 = vmatprep.mubr.bf16.mxu0 %v13899_v31 }
 0x5f2   : > { %v5350_v34 = vsel %vm519_vm2, %v9613_v17, %v9593_v36  ;;  %v5349_v42 = vsel %vm519_vm2, %v9612_v21, %v9592_v55  ;;  %8325 = vmatmul.mubr.msk.bf16.gmra.mrb[20].mxu1 %vm1367_vm8, %v10178_v45  ;;  %v9603_v39 = vunpack.i.h.bf16 %v9601_v50  ;;  %v9602_v40 = vunpack.i.l.bf16 %v9601_v50  ;;  %6737 = vperm.xlu1 %9813, %v12607_v12  }
 0x5f3   : > { %v9616_v58 = vpop.permute.xlu1 %9615  ;;  %v5355_v2 = vpack.c.bf16 %v5350_v34, %v5349_v42  ;;  %v5337_v29 = vsel %vm519_vm2, %v9597_v41, %v9612_v21  ;;  %v5338_v35 = vsel %vm519_vm2, %v9598_v4, %v9613_v17  ;;  %5460 = vmatprep.mubr.bf16.mxu1 %v13899_v31  ;;  %v5357_v45 = vpack.c.bf16 %v5342_v52, %v5341_v20 }
 0x5f4   : > { %v9618_v36 = vunpack.i.h.bf16 %v9616_v58  ;;  %v9617_v55 = vunpack.i.l.bf16 %v9616_v58  ;;  %v5358_v11 = vpack.c.bf16 %v5338_v35, %v5337_v29  ;;  %9815 = vset.pattern.permute.xlu0 %v13901_v46  ;;  %v10180_v29 = vld [vmem:[#allocation3 + $0x148] sm:$0xff]  }
 0x5f5   : > { %5378 = vmatpush1.bf16.msra.mxu0 %v5355_v2  ;;  %v9621_v3 = vpop.permute.xlu0 %9620  ;;  %6741 = vperm.xlu0 %9815, %v12617_v18  }
 0x5f6   : > { %5430 = vmatprep.subr.bf16.mxu1 %v5358_v11  ;;  %v9623_v9 = vunpack.i.h.bf16 %v9621_v3  ;;  %v9622_v44 = vunpack.i.l.bf16 %v9621_v3  ;;  %v5542_v13 = vsel %vm605_vm3, %v9602_v40, %v9617_v55  ;;  %v5543_v4 = vsel %vm605_vm3, %v9603_v39, %v9618_v36  ;;  %9814 = vset.pattern.permute.xlu1 %v13900_v59 }
 0x5f7   : > { %5431 = vmatpush1.bf16.msra.mxu1 %v5357_v45  ;;  %v9626_v41 = vpop.permute.xlu1 %9625  ;;  %v5551_v7 = vpack.c.bf16 %v5543_v4, %v5542_v13  ;;  %6713 = vperm.xlu1 %9814, %v12620_v62  }
 0x5f8   : > { %v9628_v30 = vunpack.i.h.bf16 %v9626_v41  ;;  %v9627_v1 = vunpack.i.l.bf16 %v9626_v41  ;;  %8328 = vmatmul.mubr.msk.bf16.vlgmr.msra.gmra.mrb[16].mxu0 %vm1367_vm8, %v10179_v19  ;;  %v5538_v16 = vsel %vm605_vm3, %v9617_v55, %v9622_v44  ;;  %v5539_v17 = vsel %vm605_vm3, %v9618_v36, %v9623_v9 }
 0x5f9   : > { %5574 = vmatprep.subr.bf16.mxu0 %v5551_v7  ;;  %v9631_v21 = vpop.permute.xlu0 %9630  ;;  %5417 = vmatprep.mubr.bf16.mxu0 %v13899_v31  ;;  %v5552_v35 = vpack.c.bf16 %v5539_v17, %v5538_v16 }
 0x5fa   : > { %v5547_v12 = vsel %vm605_vm3, %v9628_v30, %v9603_v39  ;;  %v5546_v20 = vsel %vm605_vm3, %v9627_v1, %v9602_v40  ;;  %8330 = vmatmul.mubr.msk.bf16.vlgmr.msra.gmra.mrb[16].mxu1 %vm1367_vm8, %v10179_v19  ;;  %v9633_v52 = vunpack.i.h.bf16 %v9631_v21  ;;  %v9632_v18 = vunpack.i.l.bf16 %v9631_v21  ;;  %10138 = vset.pattern.permute.xlu0 %v13899_v31  ;;  %v10181_v21 = vld [vmem:[#allocation3 + $0x150] sm:$0xff]  }
 0x5fb   : > { %v9641_v50 = vpop.permute.xlu1 %9640  ;;  %v5550_v34 = vpack.c.bf16 %v5547_v12, %v5546_v20  ;;  %v5534_v42 = vsel %vm605_vm3, %v9622_v44, %v9627_v1  ;;  %v5535_v58 = vsel %vm605_vm3, %v9623_v9, %v9628_v30  ;;  %5470 = vmatprep.mubr.bf16.mxu1 %v13899_v31  ;;  %9816 = vset.pattern.permute.xlu1 %v13901_v46 }
 0x5fc   : > { %v9643_v39 = vunpack.i.h.bf16 %v9641_v50  ;;  %v9642_v40 = vunpack.i.l.bf16 %v9641_v50  ;;  %v5553_v2 = vpack.c.bf16 %v5535_v58, %v5534_v42  ;;  %6745 = vperm.xlu1 %9816, %v12620_v62  }
 0x5fd   : > { %5575 = vmatpush1.bf16.msra.mxu0 %v5550_v34  ;;  %v9636_v59 = vpop.permute.xlu0 %9635 }
 0x5fe   : > { %5627 = vmatprep.subr.bf16.mxu1 %v5553_v2  ;;  %v9638_v36 = vunpack.i.h.bf16 %v9636_v59  ;;  %v9637_v55 = vunpack.i.l.bf16 %v9636_v59  ;;  %v5544_v11 = vsel %vm605_vm3, %v9632_v18, %v9642_v40  ;;  %v5545_v19 = vsel %vm605_vm3, %v9633_v52, %v9643_v39 }
 0x5ff   : > { %5628 = vmatpush1.bf16.msra.mxu1 %v5552_v35  ;;  %v9646_v3 = vpop.permute.xlu1 %9645  ;;  %v5555_v45 = vpack.c.bf16 %v5545_v19, %v5544_v11 }
 0x600   : > { %v9648_v9 = vunpack.i.h.bf16 %v9646_v3  ;;  %v9647_v44 = vunpack.i.l.bf16 %v9646_v3  ;;  %8329 = vmatmul.mubr.msk.bf16.gmra.mrb[20].mxu0 %vm1367_vm8, %v10180_v29  ;;  %v5540_v4 = vsel %vm605_vm3, %v9642_v40, %v9637_v55  ;;  %v5541_v41 = vsel %vm605_vm3, %v9643_v39, %v9638_v36  ;;  %10137 = vset.pattern.permute.xlu1 %v13899_v31 }
 0x601   : > { %5576 = vmatprep.subr.bf16.mxu0 %v5555_v45  ;;  %v12704_v13 = vpop.permute.xlu0 %9650  ;;  %5606 = vmatprep.mubr.bf16.mxu0 %v13899_v31  ;;  %v5556_v20 = vpack.c.bf16 %v5541_v41, %v5540_v4 }
 0x602   : > { %v5549_v46 = vsel %vm605_vm3, %v9648_v9, %v9633_v52  ;;  %v5548_v7 = vsel %vm605_vm3, %v9647_v44, %v9632_v18  ;;  %8331 = vmatmul.mubr.msk.bf16.gmra.mrb[20].mxu1 %vm1367_vm8, %v10180_v29  ;;  %v5536_v1 = vsel %vm605_vm3, %v9637_v55, %v9647_v44  ;;  %v5537_v16 = vsel %vm605_vm3, %v9638_v36, %v9648_v9 }
 0x603   : > { %v9656_v62 = vpop.permute.xlu1 %9655  ;;  %v5554_v30 = vpack.c.bf16 %v5549_v46, %v5548_v7  ;;  %5659 = vmatprep.mubr.bf16.mxu1 %v13899_v31  ;;  %v5557_v17 = vpack.c.bf16 %v5537_v16, %v5536_v1  ;;  %v9653_v40 = vunpack.i.h.bf16 %v12704_v13  ;;  %v9652_v2 = vunpack.i.l.bf16 %v12704_v13 }
 0x604   : > { %v9658_v50 = vunpack.i.h.bf16 %v9656_v62  ;;  %v9657_v34 = vunpack.i.l.bf16 %v9656_v62 }
 0x605   : > { %5577 = vmatpush1.bf16.msra.mxu0 %v5554_v30  ;;  %v9661_v12 = vpop.permute.xlu0 %9660  ;;  %5629 = vmatprep.subr.bf16.mxu1 %v5557_v17 }
 0x606   : > { %v9663_v52 = vunpack.i.h.bf16 %v9661_v12  ;;  %v9662_v18 = vunpack.i.l.bf16 %v9661_v12  ;;  %5725 = vmatprep.subr.bf16.mxu0 %v5702_v15  ;;  %5630 = vmatpush1.bf16.msra.mxu1 %v5556_v20  ;;  %v5893_v57 = vsel %vm748_vm4, %v9653_v40, %v9658_v50  ;;  %v5892_v22 = vsel %vm748_vm4, %v9652_v2, %v9657_v34 }
 0x607   : > { %v9666_v42 = vpop.permute.xlu1 %9665  ;;  %5778 = vmatprep.subr.bf16.mxu1 %v5704_v0  ;;  %v5900_v19 = vpack.c.bf16 %v5893_v57, %v5892_v22  ;;  %v10185_v57 = vld [vmem:[#allocation3 + $0x170] sm:$0xff]  }
 0x608   : > { %v9668_v58 = vunpack.i.h.bf16 %v9666_v42  ;;  %v9667_v39 = vunpack.i.l.bf16 %v9666_v42  ;;  %8334 = vmatmul.mubr.msk.bf16.vlgmr.msra.gmra.mrb[16].mxu0 %vm1367_vm8, %v10181_v21  ;;  %v5888_v51 = vsel %vm748_vm4, %v9657_v34, %v9662_v18  ;;  %v5889_v15 = vsel %vm748_vm4, %v9658_v50, %v9663_v52 }
 0x609   : > { %5726 = vmatpush1.bf16.msra.mxu0 %v5701_v23  ;;  %v9671_v6 = vpop.permute.xlu0 %9670  ;;  %5616 = vmatprep.mubr.bf16.mxu0 %v13899_v31  ;;  %v5901_v25 = vpack.c.bf16 %v5889_v15, %v5888_v51 }
 0x60a   : > { %8336 = vmatmul.mubr.msk.bf16.vlgmr.msra.gmra.mrb[16].mxu1 %vm1367_vm8, %v10181_v21  ;;  %5727 = vmatprep.subr.bf16.mxu0 %v5706_v53  ;;  %v5896_v26 = vsel %vm748_vm4, %v9667_v39, %v9652_v2  ;;  %v5897_v60 = vsel %vm748_vm4, %v9668_v58, %v9653_v40  ;;  %v9673_v38 = vunpack.i.h.bf16 %v9671_v6  ;;  %v9672_v10 = vunpack.i.l.bf16 %v9671_v6  ;;  %v10184_v6 = vld [vmem:[#allocation3 + $0x168] sm:$0xff]  }
 0x60b   : > { %5779 = vmatpush1.bf16.msra.mxu1 %v5703_v56  ;;  %v9686_v33 = vpop.permute.xlu1 %9685  ;;  %5669 = vmatprep.mubr.bf16.mxu1 %v13899_v31  ;;  %v5903_v47 = vpack.c.bf16 %v5897_v60, %v5896_v26  ;;  %v5885_v35 = vsel %vm748_vm4, %v9663_v52, %v9668_v58  ;;  %v5884_v36 = vsel %vm748_vm4, %v9662_v18, %v9667_v39 }
 0x60c   : > { %5780 = vmatprep.subr.bf16.mxu1 %v5708_v48  ;;  %v9688_v43 = vunpack.i.h.bf16 %v9686_v33  ;;  %v9687_v32 = vunpack.i.l.bf16 %v9686_v33  ;;  %v5902_v20 = vpack.c.bf16 %v5885_v35, %v5884_v36 }
 0x60d   : > { %5728 = vmatpush1.bf16.msra.mxu0 %v5705_v61  ;;  %v9676_v54 = vpop.permute.xlu0 %9675 }
 0x60e   : > { %5924 = vmatprep.subr.bf16.mxu0 %v5901_v25  ;;  %v9678_v0 = vunpack.i.h.bf16 %v9676_v54  ;;  %v9677_v23 = vunpack.i.l.bf16 %v9676_v54  ;;  %v5895_v55 = vsel %vm748_vm4, %v9673_v38, %v9688_v43  ;;  %v5894_v13 = vsel %vm748_vm4, %v9672_v10, %v9687_v32 }
 0x60f   : > { %5781 = vmatpush1.bf16.msra.mxu1 %v5707_v37  ;;  %v9691_v63 = vpop.permute.xlu1 %9690  ;;  %v10183_v37 = vld [vmem:[#allocation3 + $0x160] sm:$0xff]   ;;  %v5904_v58 = vpack.c.bf16 %v5895_v55, %v5894_v13 }
 0x610   : > { %5977 = vmatprep.subr.bf16.mxu1 %v5903_v47  ;;  %8335 = vmatmul.mubr.msk.bf16.gmra.mrb[20].mxu0 %vm1367_vm8, %v10182_v49  ;;  %v9693_v56 = vunpack.i.h.bf16 %v9691_v63  ;;  %v9692_v48 = vunpack.i.l.bf16 %v9691_v63  ;;  %v5890_v29 = vsel %vm748_vm4, %v9687_v32, %v9677_v23  ;;  %v5891_v59 = vsel %vm748_vm4, %v9688_v43, %v9678_v0 }
 0x611   : > { %v12761_v53 = vpop.permute.xlu0 %9680  ;;  %5757 = vmatprep.mubr.bf16.mxu0 %v13899_v31  ;;  %v5905_v41 = vpack.c.bf16 %v5891_v59, %v5890_v29 }
 0x612   : > { %8337 = vmatmul.mubr.msk.bf16.gmra.mrb[20].mxu1 %vm1367_vm8, %v10182_v49  ;;  %v5898_v46 = vsel %vm748_vm4, %v9692_v48, %v9672_v10  ;;  %v5899_v7 = vsel %vm748_vm4, %v9693_v56, %v9673_v38  ;;  %v5887_v17 = vsel %vm748_vm4, %v9678_v0, %v9693_v56  ;;  %v9683_v21 = vunpack.i.h.bf16 %v12761_v53 }
 0x613   : > { %v9696_v61 = vpop.permute.xlu1 %9695  ;;  %5810 = vmatprep.mubr.bf16.mxu1 %v13899_v31  ;;  %v9682_v12 = vunpack.i.l.bf16 %v12761_v53  ;;  %v5886_v18 = vsel %vm748_vm4, %v9677_v23, %v9692_v48  ;;  %v5907_v50 = vpack.c.bf16 %v5899_v7, %v5898_v46 }
 0x614   : > { %v9698_v3 = vunpack.i.h.bf16 %v9696_v61  ;;  %v9697_v45 = vunpack.i.l.bf16 %v9696_v61  ;;  %v5906_v51 = vpack.c.bf16 %v5887_v17, %v5886_v18 }
 0x615   : > { %v12780_v11 = vpop.permute.xlu0 %9700 }
 0x616   : > { %v9703_v9 = vunpack.i.h.bf16 %v12780_v11  ;;  %v9702_v44 = vunpack.i.l.bf16 %v12780_v11  ;;  %v6092_v47 = vsel %vm834_vm5, %v9683_v21, %v9698_v3  ;;  %v6091_v63 = vsel %vm834_vm5, %v9682_v12, %v9697_v45 }
 0x617   : > { %v9706_v4 = vpop.permute.xlu1 %9705 }
 0x618   : > { %v9708_v62 = vunpack.i.h.bf16 %v9706_v4  ;;  %v9707_v30 = vunpack.i.l.bf16 %v9706_v4  ;;  %8340 = vmatmul.mubr.msk.bf16.vlgmr.msra.gmra.mrb[16].mxu0 %vm1367_vm8, %v10183_v37  ;;  %v6087_v1 = vsel %vm834_vm5, %v9697_v45, %v9702_v44  ;;  %v6088_v16 = vsel %vm834_vm5, %v9698_v3, %v9703_v9 }
 0x619   : > { %5925 = vmatpush1.bf16.msra.mxu0 %v5900_v19  ;;  %v9711_v52 = vpop.permute.xlu0 %9710  ;;  %5767 = vmatprep.mubr.bf16.mxu0 %v13899_v31  ;;  %v6100_v34 = vpack.c.bf16 %v6088_v16, %v6087_v1 }
 0x61a   : > { %8342 = vmatmul.mubr.msk.bf16.vlgmr.msra.gmra.mrb[16].mxu1 %vm1367_vm8, %v10183_v37  ;;  %5926 = vmatprep.subr.bf16.mxu0 %v5905_v41  ;;  %v6095_v39 = vsel %vm834_vm5, %v9707_v30, %v9682_v12  ;;  %v6096_v40 = vsel %vm834_vm5, %v9708_v62, %v9683_v21  ;;  %v9713_v25 = vunpack.i.h.bf16 %v9711_v52  ;;  %v9712_v23 = vunpack.i.l.bf16 %v9711_v52 }
 0x61b   : > { %5978 = vmatpush1.bf16.msra.mxu1 %v5902_v20  ;;  %v9726_v42 = vpop.permute.xlu1 %9725  ;;  %5820 = vmatprep.mubr.bf16.mxu1 %v13899_v31  ;;  %v6102_v2 = vpack.c.bf16 %v6096_v40, %v6095_v39  ;;  %v6084_v10 = vsel %vm834_vm5, %v9703_v9, %v9708_v62  ;;  %v6083_v56 = vsel %vm834_vm5, %v9702_v44, %v9707_v30 }
 0x61c   : > { %5979 = vmatprep.subr.bf16.mxu1 %v5907_v50  ;;  %v9728_v49 = vunpack.i.h.bf16 %v9726_v42  ;;  %v9727_v0 = vunpack.i.l.bf16 %v9726_v42  ;;  %v6099_v37 = vpack.c.bf16 %v6092_v47, %v6091_v63  ;;  %v6101_v62 = vpack.c.bf16 %v6084_v10, %v6083_v56  ;;  %v10186_v50 = vld [vmem:[#allocation3 + $0x178] sm:$0xff]   ;;  %v10187_v47 = vld [vmem:[#allocation3 + $0x180] sm:$0xff]  }
 0x61d   : > { %5927 = vmatpush1.bf16.msra.mxu0 %v5904_v58  ;;  %v9716_v15 = vpop.permute.xlu0 %9715 }
 0x61e   : > { %6123 = vmatprep.subr.bf16.mxu0 %v6100_v34  ;;  %v9718_v26 = vunpack.i.h.bf16 %v9716_v15  ;;  %v9717_v60 = vunpack.i.l.bf16 %v9716_v15  ;;  %v6094_v48 = vsel %vm834_vm5, %v9713_v25, %v9728_v49  ;;  %v6093_v55 = vsel %vm834_vm5, %v9712_v23, %v9727_v0 }
 0x61f   : > { %5980 = vmatpush1.bf16.msra.mxu1 %v5906_v51  ;;  %v9731_v33 = vpop.permute.xlu1 %9730  ;;  %v6103_v12 = vpack.c.bf16 %v6094_v48, %v6093_v55 }
 0x620   : > { %6176 = vmatprep.subr.bf16.mxu1 %v6102_v2  ;;  %8341 = vmatmul.mubr.msk.bf16.gmra.mrb[20].mxu0 %vm1367_vm8, %v10184_v6  ;;  %v9733_v38 = vunpack.i.h.bf16 %v9731_v33  ;;  %v9732_v43 = vunpack.i.l.bf16 %v9731_v33  ;;  %v6089_v22 = vsel %vm834_vm5, %v9727_v0, %v9717_v60  ;;  %v6090_v32 = vsel %vm834_vm5, %v9728_v49, %v9718_v26 }
 0x621   : > { %v12809_v54 = vpop.permute.xlu0 %9720  ;;  %5956 = vmatprep.mubr.bf16.mxu0 %v13899_v31  ;;  %v6104_v19 = vpack.c.bf16 %v6090_v32, %v6089_v22 }
 0x622   : > { %8343 = vmatmul.mubr.msk.bf16.gmra.mrb[20].mxu1 %vm1367_vm8, %v10184_v6  ;;  %v6097_v3 = vsel %vm834_vm5, %v9732_v43, %v9712_v23  ;;  %v6098_v45 = vsel %vm834_vm5, %v9733_v38, %v9713_v25  ;;  %v6086_v41 = vsel %vm834_vm5, %v9718_v26, %v9733_v38  ;;  %v9723_v46 = vunpack.i.h.bf16 %v12809_v54 }
 0x623   : > { %v9736_v53 = vpop.permute.xlu1 %9735  ;;  %6009 = vmatprep.mubr.bf16.mxu1 %v13899_v31  ;;  %v9722_v7 = vunpack.i.l.bf16 %v12809_v54  ;;  %v6085_v1 = vsel %vm834_vm5, %v9717_v60, %v9732_v43  ;;  %v6106_v16 = vpack.c.bf16 %v6098_v45, %v6097_v3 }
 0x624   : > { %v9738_v29 = vunpack.i.h.bf16 %v9736_v53  ;;  %v9737_v59 = vunpack.i.l.bf16 %v9736_v53  ;;  %v6105_v34 = vpack.c.bf16 %v6086_v41, %v6085_v1 }
 0x625   : > { %v12828_v61 = vpop.permute.xlu0 %9740 }
 0x626   : > { %v9743_v35 = vunpack.i.h.bf16 %v12828_v61  ;;  %v9742_v36 = vunpack.i.l.bf16 %v12828_v61  ;;  %v6291_v15 = vsel %vm920_vm6, %v9723_v46, %v9738_v29  ;;  %v6290_v33 = vsel %vm920_vm6, %v9722_v7, %v9737_v59 }
 0x627   : > { %v9746_v11 = vpop.permute.xlu1 %9745  ;;  %v6298_v23 = vpack.c.bf16 %v6291_v15, %v6290_v33 }
 0x628   : > { %v9748_v9 = vunpack.i.h.bf16 %v9746_v11  ;;  %v9747_v44 = vunpack.i.l.bf16 %v9746_v11  ;;  %8346 = vmatmul.mubr.msk.bf16.vlgmr.msra.gmra.mrb[16].mxu0 %vm1367_vm8, %v10185_v57  ;;  %v6286_v13 = vsel %vm920_vm6, %v9737_v59, %v9742_v36  ;;  %v6287_v4 = vsel %vm920_vm6, %v9738_v29, %v9743_v35 }
 0x629   : > { %6124 = vmatpush1.bf16.msra.mxu0 %v6099_v37  ;;  %v9751_v30 = vpop.permute.xlu0 %9750  ;;  %5966 = vmatprep.mubr.bf16.mxu0 %v13899_v31  ;;  %v6299_v17 = vpack.c.bf16 %v6287_v4, %v6286_v13 }
 0x62a   : > { %8348 = vmatmul.mubr.msk.bf16.vlgmr.msra.gmra.mrb[16].mxu1 %vm1367_vm8, %v10185_v57  ;;  %6125 = vmatprep.subr.bf16.mxu0 %v6104_v19  ;;  %v6294_v20 = vsel %vm920_vm6, %v9747_v44, %v9722_v7  ;;  %v6295_v52 = vsel %vm920_vm6, %v9748_v9, %v9723_v46  ;;  %v9753_v2 = vunpack.i.h.bf16 %v9751_v30  ;;  %v9752_v60 = vunpack.i.l.bf16 %v9751_v30 }
 0x62b   : > { %6177 = vmatpush1.bf16.msra.mxu1 %v6101_v62  ;;  %v9766_v21 = vpop.permute.xlu1 %9765  ;;  %6019 = vmatprep.mubr.bf16.mxu1 %v13899_v31  ;;  %v6301_v18 = vpack.c.bf16 %v6295_v52, %v6294_v20  ;;  %v6283_v38 = vsel %vm920_vm6, %v9743_v35, %v9748_v9  ;;  %v6282_v43 = vsel %vm920_vm6, %v9742_v36, %v9747_v44 }
 0x62c   : > { %6178 = vmatprep.subr.bf16.mxu1 %v6106_v16  ;;  %v9768_v6 = vunpack.i.h.bf16 %v9766_v21  ;;  %v9767_v26 = vunpack.i.l.bf16 %v9766_v21  ;;  %v6300_v19 = vpack.c.bf16 %v6283_v38, %v6282_v43  ;;  %v10188_v16 = vld [vmem:[#allocation3 + $0x188] sm:$0xff]  }
 0x62d   : > { %6126 = vmatpush1.bf16.msra.mxu0 %v6103_v12  ;;  %v9756_v42 = vpop.permute.xlu0 %9755 }
 0x62e   : > { %6322 = vmatprep.subr.bf16.mxu0 %v6299_v17  ;;  %v9758_v39 = vunpack.i.h.bf16 %v9756_v42  ;;  %v9757_v40 = vunpack.i.l.bf16 %v9756_v42  ;;  %v6293_v53 = vsel %vm920_vm6, %v9753_v2, %v9768_v6  ;;  %v6292_v48 = vsel %vm920_vm6, %v9752_v60, %v9767_v26 }
 0x62f   : > { %6179 = vmatpush1.bf16.msra.mxu1 %v6105_v34  ;;  %v9771_v58 = vpop.permute.xlu1 %9770  ;;  %v6302_v46 = vpack.c.bf16 %v6293_v53, %v6292_v48 }
 0x630   : > { %6375 = vmatprep.subr.bf16.mxu1 %v6301_v18  ;;  %8347 = vmatmul.mubr.msk.bf16.gmra.mrb[20].mxu0 %vm1367_vm8, %v10186_v50  ;;  %v9773_v25 = vunpack.i.h.bf16 %v9771_v58  ;;  %v9772_v49 = vunpack.i.l.bf16 %v9771_v58  ;;  %v6288_v63 = vsel %vm920_vm6, %v9767_v26, %v9757_v40  ;;  %v6289_v0 = vsel %vm920_vm6, %v9768_v6, %v9758_v39  ;;  %v10189_v6 = vld [vmem:[#allocation3 + $0x190] sm:$0xff]  }
 0x631   : > { %v12857_v51 = vpop.permute.xlu0 %9760  ;;  %6155 = vmatprep.mubr.bf16.mxu0 %v13899_v31  ;;  %v6303_v37 = vpack.c.bf16 %v6289_v0, %v6288_v63 }
 0x632   : > { %8349 = vmatmul.mubr.msk.bf16.gmra.mrb[20].mxu1 %vm1367_vm8, %v10186_v50  ;;  %v6296_v29 = vsel %vm920_vm6, %v9772_v49, %v9752_v60  ;;  %v6297_v59 = vsel %vm920_vm6, %v9773_v25, %v9753_v2  ;;  %v6285_v3 = vsel %vm920_vm6, %v9758_v39, %v9773_v25  ;;  %v9763_v45 = vunpack.i.h.bf16 %v12857_v51 }
 0x633   : > { %v12865_v54 = vpop.permute.xlu1 %9775  ;;  %6208 = vmatprep.mubr.bf16.mxu1 %v13899_v31  ;;  %v9762_v9 = vunpack.i.l.bf16 %v12857_v51  ;;  %v6284_v13 = vsel %vm920_vm6, %v9757_v40, %v9772_v49  ;;  %v6305_v4 = vpack.c.bf16 %v6297_v59, %v6296_v29 }
 0x634   : > { %v9778_v22 = vunpack.i.h.bf16 %v12865_v54  ;;  %v9777_v32 = vunpack.i.l.bf16 %v12865_v54  ;;  %v6304_v17 = vpack.c.bf16 %v6285_v3, %v6284_v13 }
 0x635   : > { %v12878_v57 = vpop.permute.xlu0 %9780 }
 0x636   : > { %v9783_v10 = vunpack.i.h.bf16 %v12878_v57  ;;  %v9782_v56 = vunpack.i.l.bf16 %v12878_v57  ;;  %v6490_v58 = vsel %vm1006_vm7, %v9763_v45, %v9778_v22  ;;  %v6489_v39 = vsel %vm1006_vm7, %v9762_v9, %v9777_v32  ;;  %v10190_v57 = vld [vmem:[#allocation3 + $0x198] sm:$0xff]  }
 0x637   : > { %v9786_v61 = vpop.permute.xlu1 %9785  ;;  %v6497_v60 = vpack.c.bf16 %v6490_v58, %v6489_v39 }
 0x638   : > { %v9788_v35 = vunpack.i.h.bf16 %v9786_v61  ;;  %v9787_v36 = vunpack.i.l.bf16 %v9786_v61  ;;  %8352 = vmatmul.mubr.msk.bf16.vlgmr.msra.gmra.mrb[16].mxu0 %vm1367_vm8, %v10187_v47  ;;  %v6485_v55 = vsel %vm1006_vm7, %v9777_v32, %v9782_v56  ;;  %v6486_v11 = vsel %vm1006_vm7, %v9778_v22, %v9783_v10  ;;  %v10191_v32 = vld [vmem:[#allocation3 + $0x1a0] sm:$0xff]  }
 0x639   : > { %6323 = vmatpush1.bf16.msra.mxu0 %v6298_v23  ;;  %v9791_v44 = vpop.permute.xlu0 %9790  ;;  %6165 = vmatprep.mubr.bf16.mxu0 %v13899_v31  ;;  %v6498_v41 = vpack.c.bf16 %v6486_v11, %v6485_v55 }
 0x63a   : > { %8354 = vmatmul.mubr.msk.bf16.vlgmr.msra.gmra.mrb[16].mxu1 %vm1367_vm8, %v10187_v47  ;;  %6324 = vmatprep.subr.bf16.mxu0 %v6303_v37  ;;  %v6493_v62 = vsel %vm1006_vm7, %v9787_v36, %v9762_v9  ;;  %v6494_v30 = vsel %vm1006_vm7, %v9788_v35, %v9763_v45  ;;  %v9793_v40 = vunpack.i.h.bf16 %v9791_v44  ;;  %v9792_v2 = vunpack.i.l.bf16 %v9791_v44 }
 0x63b   : > { %6376 = vmatpush1.bf16.msra.mxu1 %v6300_v19  ;;  %v9801_v7 = vpop.permute.xlu1 %9800  ;;  %6218 = vmatprep.mubr.bf16.mxu1 %v13899_v31  ;;  %v6500_v1 = vpack.c.bf16 %v6494_v30, %v6493_v62  ;;  %v6482_v33 = vsel %vm1006_vm7, %v9783_v10, %v9788_v35  ;;  %v6481_v26 = vsel %vm1006_vm7, %v9782_v56, %v9787_v36  ;;  %v10192_v10 = vld [vmem:[#allocation3 + $0x1a8] sm:$0xff]  }
 0x63c   : > { %6377 = vmatprep.subr.bf16.mxu1 %v6305_v4  ;;  %v9803_v18 = vunpack.i.h.bf16 %v9801_v7  ;;  %v9802_v50 = vunpack.i.l.bf16 %v9801_v7  ;;  %v6499_v0 = vpack.c.bf16 %v6482_v33, %v6481_v26 }
 0x63d   : > { %6325 = vmatpush1.bf16.msra.mxu0 %v6302_v46  ;;  %v9796_v21 = vpop.permute.xlu0 %9795 }
 0x63e   : > { %6521 = vmatprep.subr.bf16.mxu0 %v6498_v41  ;;  %v9798_v20 = vunpack.i.h.bf16 %v9796_v21  ;;  %v9797_v52 = vunpack.i.l.bf16 %v9796_v21  ;;  %v6492_v54 = vsel %vm1006_vm7, %v9793_v40, %v9803_v18  ;;  %v6491_v47 = vsel %vm1006_vm7, %v9792_v2, %v9802_v50 }
 0x63f   : > { %6378 = vmatpush1.bf16.msra.mxu1 %v6304_v17  ;;  %v9806_v12 = vpop.permute.xlu1 %9805  ;;  %v6501_v53 = vpack.c.bf16 %v6492_v54, %v6491_v47 }
 0x640   : > { %6574 = vmatprep.subr.bf16.mxu1 %v6500_v1  ;;  %8353 = vmatmul.mubr.msk.bf16.gmra.mrb[20].mxu0 %vm1367_vm8, %v10188_v16  ;;  %v9808_v34 = vunpack.i.h.bf16 %v9806_v12  ;;  %v9807_v42 = vunpack.i.l.bf16 %v9806_v12  ;;  %v6487_v51 = vsel %vm1006_vm7, %v9802_v50, %v9797_v52  ;;  %v6488_v15 = vsel %vm1006_vm7, %v9803_v18, %v9798_v20 }
 0x641   : > { %6354 = vmatprep.mubr.bf16.mxu0 %v13899_v31  ;;  %v6502_v63 = vpack.c.bf16 %v6488_v15, %v6487_v51 }
 0x642   : > { %8355 = vmatmul.mubr.msk.bf16.gmra.mrb[20].mxu1 %vm1367_vm8, %v10188_v16  ;;  %v6495_v25 = vsel %vm1006_vm7, %v9807_v42, %v9792_v2  ;;  %v6496_v49 = vsel %vm1006_vm7, %v9808_v34, %v9793_v40  ;;  %v6484_v23 = vsel %vm1006_vm7, %v9798_v20, %v9808_v34  ;;  %v6483_v38 = vsel %vm1006_vm7, %v9797_v52, %v9807_v42 }
 0x643   : > { %6407 = vmatprep.mubr.bf16.mxu1 %v13899_v31  ;;  %v6504_v43 = vpack.c.bf16 %v6496_v49, %v6495_v25  ;;  %v6503_v22 = vpack.c.bf16 %v6484_v23, %v6483_v38 }
 0x648   : > { %8358 = vmatmul.mubr.msk.bf16.vlgmr.msra.gmra.mrb[16].mxu0 %vm1367_vm8, %v10189_v6 }
 0x649   : > { %6522 = vmatpush1.bf16.msra.mxu0 %v6497_v60  ;;  %6364 = vmatprep.mubr.bf16.mxu0 %v13899_v31 }
 0x64a   : > { %8360 = vmatmul.mubr.msk.bf16.vlgmr.msra.gmra.mrb[16].mxu1 %vm1367_vm8, %v10189_v6  ;;  %6523 = vmatprep.subr.bf16.mxu0 %v6502_v63 }
 0x64b   : > { %6575 = vmatpush1.bf16.msra.mxu1 %v6499_v0  ;;  %6417 = vmatprep.mubr.bf16.mxu1 %v13899_v31 }
 0x64c   : > { %6576 = vmatprep.subr.bf16.mxu1 %v6504_v43 }
 0x64d   : > { %6524 = vmatpush1.bf16.msra.mxu0 %v6501_v53 }
 0x64f   : > { %6577 = vmatpush1.bf16.msra.mxu1 %v6503_v22 }
 0x650   : > { %8359 = vmatmul.mubr.msk.bf16.gmra.mrb[20].mxu0 %vm1367_vm8, %v10190_v57 }
 0x651   : > { %6553 = vmatprep.mubr.bf16.mxu0 %v13899_v31 }
 0x652   : > { %8361 = vmatmul.mubr.msk.bf16.gmra.mrb[20].mxu1 %vm1367_vm8, %v10190_v57 }
 0x653   : > { %6606 = vmatprep.mubr.bf16.mxu1 %v13899_v31 }
 0x658   : > { %8364 = vmatmul.mubr.msk.bf16.vlgmr.msra.gmra.mrb[16].mxu0 %vm1367_vm8, %v10191_v32 }
 0x659   : > { %6563 = vmatprep.mubr.bf16.mxu0 %v13899_v31  ;;  %v6656_v56 = vpop.permute.xlu1 %6655 }
 0x65a   : > { %8366 = vmatmul.mubr.msk.bf16.vlgmr.msra.gmra.mrb[16].mxu1 %vm1367_vm8, %v10191_v32  ;;  %v6651_v61 = vpop.permute.xlu0 %6650 }
 0x65b   : > { %6616 = vmatprep.mubr.bf16.mxu1 %v13899_v31 }
 0x660   : > { %8365 = vmatmul.mubr.msk.bf16.gmra.mrb[20].mxu0 %vm1367_vm8, %v10192_v10 }
 0x661   : > { %6930 = vmatprep.mubr.bf16.mxu0 %v13899_v31  ;;  %v12952_v48 = vpop.permute.xlu1 %6660 }
 0x662   : > { %8367 = vmatmul.mubr.msk.bf16.gmra.mrb[20].mxu1 %vm1367_vm8, %v10192_v10  ;;  %v12954_v29 = vpop.permute.xlu0 %6665 }
 0x663   : > { %6971 = vmatprep.mubr.bf16.mxu1 %v13899_v31 }
 0x666   : > { %v6702_v37 = vpop.permute.xlu1 %6701 }
 0x669   : > { %v6706_v11 = vpop.permute.xlu0 %6705 }
 0x66c   : > { %v6734_v59 = vpop.permute.xlu1 %6733 }
 0x66d   : > { %v6710_v33 = vpop.permute.xlu0 %6709 }
 0x671   : > { %v6738_v20 = vpop.permute.xlu1 %6737 }
 0x676   : > { %v6714_v63 = vpop.permute.xlu1 %6713 }
 0x72b   : > { %v6555_v35 = vpop.f32.mrb[16].mxu0 }
 0x72c   : > { %v6668_v36 = vadd.f32 %v6651_v61, %v6555_v35  ;;  %v6557_v55 = vpop.f32.mrb[17].mxu0 }
 0x72d   : > { %v6669_v19 = vadd.f32 %v6651_v61, %v6557_v55  ;;  %v6608_v3 = vpop.f32.mrb[16].mxu1  ;;  %v6559_v45 = vpop.f32.mrb[18].mxu0 }
 0x72e   : > { %v6684_v9 = vmax.f32 %v6668_v36, 0.0  ;;  %v6670_v44 = vadd.f32 %v6651_v61, %v6608_v3  ;;  %v6672_v13 = vadd.f32 %v6656_v56, %v6559_v45  ;;  %v6610_v4 = vpop.f32.mrb[17].mxu1  ;;  %v6561_v41 = vpop.f32.mrb[19].mxu0 }
 0x72f   : > { %v6685_v46 = vmax.f32 %v6669_v19, 0.0  ;;  %v6671_v7 = vadd.f32 %v6651_v61, %v6610_v4  ;;  %v6673_v62 = vadd.f32 %v6656_v56, %v6561_v41  ;;  %v6612_v30 = vpop.f32.mrb[18].mxu1 }
 0x730   : > { %v6716_v1 = vmul.f32 %v6702_v37, %v6684_v9  ;;  %v6686_v16 = vmax.f32 %v6670_v44, 0.0  ;;  %v6688_v17 = vmax.f32 %v6672_v13, 0.0  ;;  %v6674_v21 = vadd.f32 %v6656_v56, %v6612_v30  ;;  %v6614_v12 = vpop.f32.mrb[19].mxu1 }
 0x731   : > { %v6717_v52 = vmul.f32 %v6702_v37, %v6685_v46  ;;  %v6687_v18 = vmax.f32 %v6671_v7, 0.0  ;;  %v6689_v50 = vmax.f32 %v6673_v62, 0.0  ;;  %v6675_v34 = vadd.f32 %v6656_v56, %v6614_v12  ;;  %v6742_v7 = vpop.permute.xlu0 %6741 }
 0x732   : > { %v6748_v42 = vadd.f32 %v6734_v59, %v6716_v1  ;;  %v6718_v58 = vmul.f32 %v6702_v37, %v6686_v16  ;;  %v6720_v39 = vmul.f32 %v6706_v11, %v6688_v17  ;;  %v6690_v40 = vmax.f32 %v6674_v21, 0.0 }
 0x733   : > { %v6749_v2 = vadd.f32 %v6734_v59, %v6717_v52  ;;  %v6719_v6 = vmul.f32 %v6702_v37, %v6687_v18  ;;  %v6721_v51 = vmul.f32 %v6706_v11, %v6689_v50  ;;  %v6691_v15 = vmax.f32 %v6675_v34, 0.0  ;;  %v6565_v26 = vpop.f32.mrb[20].mxu0 }
 0x734   : > { %v12957_v60 = vmul.f32 %v6748_v42, %v13895_v5  ;;  %v6750_v25 = vadd.f32 %v6734_v59, %v6718_v58  ;;  %v6722_v49 = vmul.f32 %v6706_v11, %v6690_v40  ;;  %v6752_v54 = vadd.f32 %v6738_v20, %v6720_v39  ;;  %v6567_v47 = vpop.f32.mrb[21].mxu0  ;;  %v6746_v42 = vpop.permute.xlu1 %6745 }
 0x735   : > { %v12960_v0 = vmul.f32 %v6749_v2, %v13896_v27  ;;  %v6751_v23 = vadd.f32 %v6734_v59, %v6719_v6  ;;  %v6723_v38 = vmul.f32 %v6706_v11, %v6691_v15  ;;  %v6753_v43 = vadd.f32 %v6738_v20, %v6721_v51  ;;  %v6618_v53 = vpop.f32.mrb[20].mxu1  ;;  %v6569_v57 = vpop.f32.mrb[22].mxu0 }
 0x736   : > { %v12963_v22 = vmul.f32 %v6750_v25, %v13897_v14  ;;  %v6754_v32 = vadd.f32 %v6738_v20, %v6722_v49  ;;  %v12966_v10 = vmul.f32 %v6752_v54, %v13895_v5  ;;  %v6676_v56 = vadd.f32 %v12952_v48, %v6565_v26  ;;  %v6620_v61 = vpop.f32.mrb[21].mxu1  ;;  %v6571_v37 = vpop.f32.mrb[23].mxu0 }
 0x737   : > { %v12970_v35 = vmul.f32 %v6751_v23, %v13898_v24  ;;  %v6755_v36 = vadd.f32 %v6738_v20, %v6723_v38  ;;  %v12973_v59 = vmul.f32 %v6753_v43, %v13896_v27  ;;  %v6677_v55 = vadd.f32 %v12952_v48, %v6567_v47  ;;  %v6622_v11 = vpop.f32.mrb[22].mxu1 }
 0x738   : > { %v12977_v19 = vmul.f32 %v6754_v32, %v13897_v14  ;;  %v6692_v3 = vmax.f32 %v6676_v56, 0.0  ;;  %v6678_v45 = vadd.f32 %v12952_v48, %v6618_v53  ;;  %v6680_v9 = vadd.f32 %v12954_v29, %v6569_v57  ;;  %v6624_v44 = vpop.f32.mrb[23].mxu1 }
 0x739   : > { %v12982_v13 = vmul.f32 %v6755_v36, %v13898_v24  ;;  %v6693_v4 = vmax.f32 %v6677_v55, 0.0  ;;  %v6679_v41 = vadd.f32 %v12952_v48, %v6620_v61  ;;  %v6681_v46 = vadd.f32 %v12954_v29, %v6571_v37 }
 0x73a   : > { %v6724_v62 = vmul.f32 %v6710_v33, %v6692_v3  ;;  %v6694_v30 = vmax.f32 %v6678_v45, 0.0  ;;  %v6696_v1 = vmax.f32 %v6680_v9, 0.0  ;;  %v6682_v16 = vadd.f32 %v12954_v29, %v6622_v11 }
 0x73b   : > { %v6725_v17 = vmul.f32 %v6710_v33, %v6693_v4  ;;  %v6695_v21 = vmax.f32 %v6679_v41, 0.0  ;;  %v6697_v12 = vmax.f32 %v6681_v46, 0.0  ;;  %v6683_v20 = vadd.f32 %v12954_v29, %v6624_v44 }
 0x73c   : > { %v6726_v52 = vmul.f32 %v6710_v33, %v6694_v30  ;;  %v6698_v18 = vmax.f32 %v6682_v16, 0.0  ;;  %v6728_v50 = vmul.f32 %v6714_v63, %v6696_v1  ;;  %v6756_v34 = vadd.f32 %v6742_v7, %v6724_v62 }
 0x73d   : > { %v6727_v58 = vmul.f32 %v6710_v33, %v6695_v21  ;;  %v6729_v48 = vmul.f32 %v6714_v63, %v6697_v12  ;;  %v6699_v39 = vmax.f32 %v6683_v20, 0.0  ;;  %v6757_v40 = vadd.f32 %v6742_v7, %v6725_v17 }
 0x73e   : > { %v6730_v2 = vmul.f32 %v6714_v63, %v6698_v18  ;;  %v6758_v6 = vadd.f32 %v6742_v7, %v6726_v52  ;;  %v12989_v51 = vmul.f32 %v6756_v34, %v13895_v5  ;;  %v12993_v15 = vpack.i.bf16 %v12966_v10, %v12957_v60 }
 0x73f   : > { %v6731_v26 = vmul.f32 %v6714_v63, %v6699_v39  ;;  %v6759_v29 = vadd.f32 %v6742_v7, %v6727_v58  ;;  %v12996_v25 = vmul.f32 %v6757_v40, %v13896_v27  ;;  %v6760_v49 = vadd.f32 %v6746_v42, %v6728_v50 }
 0x740   : > { %13902 = vst [vmem:[#allocation14_spill] sm:$0xff] %v12989_v51  ;;  %v12999_v33 = vmul.f32 %v6758_v6, %v13897_v14  ;;  %9818 = vrot.lane.b32.xlu1 %v12993_v15, %s10273_s15  ;;  %v6761_v54 = vadd.f32 %v6746_v42, %v6729_v48  ;;  %v6762_v47 = vadd.f32 %v6746_v42, %v6730_v2 }
 0x741   : > { %v13005_v23 = vpack.i.bf16 %v12973_v59, %v12960_v0  ;;  %v13008_v38 = vmul.f32 %v6759_v29, %v13898_v24  ;;  %v6763_v63 = vadd.f32 %v6746_v42, %v6731_v26  ;;  %v13011_v43 = vmul.f32 %v6760_v49, %v13895_v5  ;;  %v8046_v29 = vld [vmem:[#allocation2] sm:$0x1] }
 0x742   : > { %13903 = vst [vmem:[#allocation18_spill] sm:$0xff] %v12999_v33  ;;  %v13015_v53 = vpack.i.bf16 %v12977_v19, %v12963_v22  ;;  %v13018_v57 = vmul.f32 %v6761_v54, %v13896_v27  ;;  %v13021_v32 = vmul.f32 %v6762_v47, %v13897_v14  ;;  %v9892_v56 = vpack.i.bf16 %v12982_v13, %v12970_v35 }
 0x743   : > { %13904 = vst [vmem:[#allocation19_spill] sm:$0xff] %v13011_v43  ;;  %9888 = vrot.lane.b32.xlu0 %v13005_v23, %s10273_s15  ;;  %v13028_v61 = vmul.f32 %v6763_v63, %v13898_v24  ;;  %v13037_v5 = vpack.i.bf16 %v13011_v43, %v12989_v51 }
 0x744   : > { %13905 = vst [vmem:[#allocation16_spill] sm:$0xff] %v13021_v32  ;;  %9823 = vrot.lane.b32.xlu1 %v13015_v53, %s10273_s15  ;;  %v13041_v27 = vpack.i.bf16 %v13018_v57, %v12996_v25  ;;  %v13045_v14 = vpack.i.bf16 %v13021_v32, %v12999_v33 }
 0x745   : > { %v13049_v24 = vpack.i.bf16 %v13028_v61, %v13008_v38 }
 0x747   : > { %9893 = vrot.lane.b32.xlu0 %v9892_v56, %s10273_s15 }
 0x748   : > { %9828 = vrot.lane.b32.xlu1 %v12993_v15, %s10272_s11 }
 0x74b   : > { %9898 = vrot.lane.b32.xlu0 %v13005_v23, %s10272_s11 }
 0x74c   : > { %9833 = vrot.lane.b32.xlu1 %v13015_v53, %s10272_s11 }
 0x74f   : > { %9903 = vrot.lane.b32.xlu0 %v9892_v56, %s10272_s11 }
 0x750   : > { %9838 = vrot.lane.b32.xlu1 %v12993_v15, %s10274_s20 }
 0x753   : > { %9908 = vrot.lane.b32.xlu0 %v13005_v23, %s10274_s20 }
 0x754   : > { %9843 = vrot.lane.b32.xlu1 %v13015_v53, %s10274_s20 }
 0x757   : > { %9913 = vrot.lane.b32.xlu0 %v9892_v56, %s10274_s20 }
 0x758   : > { %9848 = vrot.lane.b32.xlu1 %v12993_v15, %s10275_s28 }
 0x75b   : > { %9918 = vrot.lane.b32.xlu0 %v13005_v23, %s10275_s28 }
 0x75c   : > { %9853 = vrot.lane.b32.xlu1 %v13015_v53, %s10275_s28 }
 0x75f   : > { %9923 = vrot.lane.b32.xlu0 %v9892_v56, %s10275_s28 }
 0x760   : > { %9858 = vrot.lane.b32.xlu1 %v12993_v15, %s10276_s8 }
 0x763   : > { %9928 = vrot.lane.b32.xlu0 %v13005_v23, %s10276_s8 }
 0x764   : > { %9863 = vrot.lane.b32.xlu1 %v13015_v53, %s10276_s8 }
 0x767   : > { %9933 = vrot.lane.b32.xlu0 %v9892_v56, %s10276_s8 }
 0x768   : > { %9868 = vrot.lane.b32.xlu1 %v12993_v15, %s10277_s17 }
 0x76b   : > { %9938 = vrot.lane.b32.xlu0 %v13005_v23, %s10277_s17 }
 0x76c   : > { %9873 = vrot.lane.b32.xlu1 %v13015_v53, %s10277_s17 }
 0x76f   : > { %9943 = vrot.lane.b32.xlu0 %v9892_v56, %s10277_s17 }
 0x770   : > { %9878 = vrot.lane.b32.xlu1 %v12993_v15, %s10278_s12 }
 0x773   : > { %9948 = vrot.lane.b32.xlu0 %v13005_v23, %s10278_s12 }
 0x774   : > { %9883 = vrot.lane.b32.xlu1 %v13015_v53, %s10278_s12 }
 0x777   : > { %9953 = vrot.lane.b32.xlu0 %v9892_v56, %s10278_s12 }
 0x778   : > { %9958 = vrot.lane.b32.xlu1 %v13037_v5, %s10273_s15 }
 0x77b   : > { %10033 = vrot.lane.b32.xlu0 %v13041_v27, %s10273_s15 }
 0x77c   : > { %9963 = vrot.lane.b32.xlu1 %v13045_v14, %s10273_s15 }
 0x77f   : > { %10038 = vrot.lane.b32.xlu0 %v13049_v24, %s10273_s15 }
 0x780   : > { %9968 = vrot.lane.b32.xlu1 %v13037_v5, %s10272_s11 }
 0x783   : > { %10043 = vrot.lane.b32.xlu0 %v13041_v27, %s10272_s11 }
 0x784   : > { %9973 = vrot.lane.b32.xlu1 %v13045_v14, %s10272_s11 }
 0x787   : > { %10048 = vrot.lane.b32.xlu0 %v13049_v24, %s10272_s11 }
 0x788   : > { %9978 = vrot.lane.b32.xlu1 %v13037_v5, %s10274_s20 }
 0x78b   : > { %10053 = vrot.lane.b32.xlu0 %v13041_v27, %s10274_s20 }
 0x78c   : > { %9983 = vrot.lane.b32.xlu1 %v13045_v14, %s10274_s20 }
 0x78f   : > { %10058 = vrot.lane.b32.xlu0 %v13049_v24, %s10274_s20 }
 0x790   : > { %9988 = vrot.lane.b32.xlu1 %v13037_v5, %s10275_s28 }
 0x793   : > { %10063 = vrot.lane.b32.xlu0 %v13041_v27, %s10275_s28 }
 0x794   : > { %9993 = vrot.lane.b32.xlu1 %v13045_v14, %s10275_s28 }
 0x797   : > { %10068 = vrot.lane.b32.xlu0 %v13049_v24, %s10275_s28 }
 0x798   : > { %9998 = vrot.lane.b32.xlu1 %v12993_v15, %s10279_s9 }
 0x79b   : > { %10073 = vrot.lane.b32.xlu0 %v13005_v23, %s10279_s9 }
 0x79c   : > { %10003 = vrot.lane.b32.xlu1 %v13037_v5, %s10276_s8 }
 0x79f   : > { %10083 = vrot.lane.b32.xlu0 %v9892_v56, %s10279_s9 }
 0x7a0   : > { %10008 = vrot.lane.b32.xlu1 %v13045_v14, %s10276_s8 }
 0x7a3   : > { %10098 = vrot.lane.b32.xlu0 %v13041_v27, %s10276_s8 }
 0x7a4   : > { %10013 = vrot.lane.b32.xlu1 %v13037_v5, %s10277_s17 }
 0x7a7   : > { %10103 = vrot.lane.b32.xlu0 %v13049_v24, %s10276_s8 }
 0x7a8   : > { %10018 = vrot.lane.b32.xlu1 %v13045_v14, %s10277_s17 }
 0x7ab   : > { %10108 = vrot.lane.b32.xlu0 %v13041_v27, %s10277_s17 }
 0x7ac   : > { %10023 = vrot.lane.b32.xlu1 %v13037_v5, %s10278_s12 }
 0x7af   : > { %10113 = vrot.lane.b32.xlu0 %v13049_v24, %s10277_s17 }
 0x7b0   : > { %10028 = vrot.lane.b32.xlu1 %v13045_v14, %s10278_s12 }
 0x7b2   : > { %v9819_v4 = vpop.permute.xlu1 %9818 }
 0x7b3   : > { %10118 = vrot.lane.b32.xlu0 %v13041_v27, %s10278_s12  ;;  %v9821_v41 = vunpack.i.h.bf16 %v9819_v4  ;;  %v9820_v46 = vunpack.i.l.bf16 %v9819_v4 }
 0x7b4   : > { %10078 = vrot.lane.b32.xlu1 %v13015_v53, %s10279_s9 }
 0x7b5   : > { %v9889_v7 = vpop.permute.xlu0 %9888 }
 0x7b6   : > { %v9891_v62 = vunpack.i.h.bf16 %v9889_v7  ;;  %v9890_v30 = vunpack.i.l.bf16 %v9889_v7  ;;  %v9824_v1 = vpop.permute.xlu1 %9823 }
 0x7b7   : > { %10123 = vrot.lane.b32.xlu0 %v13049_v24, %s10278_s12  ;;  %v9826_v16 = vunpack.i.h.bf16 %v9824_v1  ;;  %v9825_v17 = vunpack.i.l.bf16 %v9824_v1 }
 0x7b8   : > { %v6879_v21 = vsel %vm433_vm1, %v9820_v46, %v9890_v30  ;;  %v6880_v12 = vsel %vm433_vm1, %v9821_v41, %v9891_v62  ;;  %10088 = vrot.lane.b32.xlu1 %v13037_v5, %s10279_s9 }
 0x7b9   : > { %v9894_v20 = vpop.permute.xlu0 %9893  ;;  %v6888_v52 = vpack.c.bf16 %v6880_v12, %v6879_v21  ;;  %v6875_v42 = vsel %vm433_vm1, %v9890_v30, %v9825_v17  ;;  %v6876_v58 = vsel %vm433_vm1, %v9891_v62, %v9826_v16 }
 0x7ba   : > { %v9896_v18 = vunpack.i.h.bf16 %v9894_v20  ;;  %v9895_v50 = vunpack.i.l.bf16 %v9894_v20  ;;  %v9829_v34 = vpop.permute.xlu1 %9828  ;;  %v6889_v49 = vpack.c.bf16 %v6876_v58, %v6875_v42 }
 0x7bb   : > { %6898 = vmatprep.subr.bf16.mxu0 %v6888_v52  ;;  %10128 = vrot.lane.b32.xlu0 %v13041_v27, %s10279_s9  ;;  %v9831_v21 = vunpack.i.h.bf16 %v9829_v34  ;;  %v9830_v12 = vunpack.i.l.bf16 %v9829_v34 }
 0x7bc   : > { %v6884_v48 = vsel %vm433_vm1, %v9896_v18, %v9821_v41  ;;  %v6883_v39 = vsel %vm433_vm1, %v9895_v50, %v9820_v46  ;;  %10093 = vrot.lane.b32.xlu1 %v13045_v14, %s10279_s9  ;;  %v6871_v6 = vsel %vm433_vm1, %v9825_v17, %v9895_v50  ;;  %v6872_v15 = vsel %vm433_vm1, %v9826_v16, %v9896_v18 }
 0x7bd   : > { %v6887_v40 = vpack.c.bf16 %v6884_v48, %v6883_v39  ;;  %v9899_v2 = vpop.permute.xlu0 %9898  ;;  %v6890_v26 = vpack.c.bf16 %v6872_v15, %v6871_v6 }
 0x7be   : > { %v9834_v54 = vpop.permute.xlu1 %9833  ;;  %v9901_v20 = vunpack.i.h.bf16 %v9899_v2  ;;  %v9900_v52 = vunpack.i.l.bf16 %v9899_v2 }
 0x7bf   : > { %6899 = vmatpush1.bf16.msra.mxu0 %v6887_v40  ;;  %10133 = vrot.lane.b32.xlu0 %v13049_v24, %s10279_s9  ;;  %v9836_v50 = vunpack.i.h.bf16 %v9834_v54  ;;  %v9835_v42 = vunpack.i.l.bf16 %v9834_v54 }
 0x7c0   : > { %6939 = vmatprep.subr.bf16.mxu1 %v6890_v26  ;;  %8049 = vperm.xlu1 %10137, %v8046_v29   ;;  %v13234_v6 = vsel %vm347_vm0, %v9830_v12, %v9900_v52  ;;  %v13238_v15 = vsel %vm347_vm0, %v9831_v21, %v9901_v20 }
 0x7c1   : > { %6940 = vmatpush1.bf16.msra.mxu1 %v6889_v49  ;;  %v9904_v47 = vpop.permute.xlu0 %9903  ;;  %v13244_v49 = vsel %vm347_vm0, %v9900_v52, %v9835_v42  ;;  %v13248_v54 = vsel %vm347_vm0, %v9901_v20, %v9836_v50  ;;  %v6830_v20 = vpack.c.bf16 %v13238_v15, %v13234_v6 }
 0x7c2   : > { %v13194_v23 = vpop.permute.xlu1 %9838  ;;  %v9906_v48 = vunpack.i.h.bf16 %v9904_v47  ;;  %v9905_v39 = vunpack.i.l.bf16 %v9904_v47 }
 0x7c3   : > { %v9841_v34 = vunpack.i.h.bf16 %v13194_v23  ;;  %v9840_v2 = vunpack.i.l.bf16 %v13194_v23 }
 0x7c4   : > { %v13254_v45 = vsel %vm347_vm0, %v9906_v48, %v9831_v21  ;;  %v13258_v23 = vsel %vm347_vm0, %v9905_v39, %v9830_v12  ;;  %v13264_v11 = vsel %vm347_vm0, %v9835_v42, %v9905_v39  ;;  %v13268_v55 = vsel %vm347_vm0, %v9836_v50, %v9906_v48 }
 0x7c5   : > { %v9909_v63 = vpop.permute.xlu0 %9908 }
 0x7c6   : > { %v13196_v53 = vpop.permute.xlu1 %9843  ;;  %v9911_v26 = vunpack.i.h.bf16 %v9909_v63  ;;  %v9910_v29 = vunpack.i.l.bf16 %v9909_v63 }
 0x7c7   : > { %v13855_v47 = vunpack.i.h.bf16 %v13196_v53  ;;  %v13854_v44 = vunpack.i.l.bf16 %v13196_v53 }
 0x7c8   : > { %v13272_v12 = vsel %vm519_vm2, %v9840_v2, %v9910_v29 }
 0x7c9   : > { %v13198_v56 = vpop.permute.xlu0 %9913  ;;  %v13286_v50 = vsel %vm519_vm2, %v9910_v29, %v13854_v44  ;;  %v6832_v44 = vpack.c.bf16 %v13268_v55, %v13264_v11 }
 0x7ca   : > { %v13200_v5 = vpop.permute.xlu1 %9848  ;;  %v9916_v42 = vunpack.i.h.bf16 %v13198_v56 }
 0x7cd   : > { %v13202_v27 = vpop.permute.xlu0 %9918 }
 0x7ce   : > { %v13204_v14 = vpop.permute.xlu1 %9853 }
 0x7d1   : > { %v13206_v4 = vpop.permute.xlu0 %9923 }
 0x7d2   : > { %v13208_v24 = vpop.permute.xlu1 %9858 }
 0x7d5   : > { %v13210_v41 = vpop.permute.xlu0 %9928 }
 0x7d6   : > { %v13212_v46 = vpop.permute.xlu1 %9863 }
 0x7d9   : > { %v13214_v7 = vpop.permute.xlu0 %9933 }
 0x7da   : > { %v13216_v62 = vpop.permute.xlu1 %9868 }
 0x7dd   : > { %v13218_v30 = vpop.permute.xlu0 %9938 }
 0x7de   : > { %v13220_v1 = vpop.permute.xlu1 %9873 }
 0x7e1   : > { %v13222_v16 = vpop.permute.xlu0 %9943 }
 0x7e2   : > { %v13224_v17 = vpop.permute.xlu1 %9878 }
 0x7e5   : > { %v13226_v18 = vpop.permute.xlu0 %9948 }
 0x7e6   : > { %v13228_v58 = vpop.permute.xlu1 %9883 }
 0x7e7   : > { %13906 = vst [vmem:[#allocation15_spill] sm:$0xff] %v13228_v58 }
 0x7e9   : > { %v13230_v40 = vpop.permute.xlu0 %9953 }
 0x7ea   : > { %13907 = vst [vmem:[#allocation22_spill] sm:$0xff] %v13230_v40  ;;  %v9959_v9 = vpop.permute.xlu1 %9958 }
 0x7eb   : > { %v9961_v63 = vunpack.i.h.bf16 %v9959_v9  ;;  %v9960_v52 = vunpack.i.l.bf16 %v9959_v9  ;;  %v13276_v9 = vsel %vm519_vm2, %v9841_v34, %v9911_v26 }
 0x7ed   : > { %v10034_v3 = vpop.permute.xlu0 %10033 }
 0x7ee   : > { %v10036_v21 = vunpack.i.h.bf16 %v10034_v3  ;;  %v10035_v36 = vunpack.i.l.bf16 %v10034_v3  ;;  %v13292_v3 = vsel %vm519_vm2, %v9911_v26, %v13855_v47  ;;  %v9964_v48 = vpop.permute.xlu1 %9963  ;;  %v9921_v26 = vunpack.i.h.bf16 %v13202_v27 }
 0x7ef   : > { %v9966_v39 = vunpack.i.h.bf16 %v9964_v48  ;;  %v9965_v15 = vunpack.i.l.bf16 %v9964_v48  ;;  %v9915_v48 = vunpack.i.l.bf16 %v13198_v56 }
 0x7f0   : > { %v6881_v37 = vsel %vm433_vm1, %v9960_v52, %v10035_v36  ;;  %v6882_v6 = vsel %vm433_vm1, %v9961_v63, %v10036_v21 }
 0x7f1   : > { %v10039_v8 = vpop.permute.xlu0 %10038  ;;  %v6892_v29 = vpack.c.bf16 %v6882_v6, %v6881_v37  ;;  %v6877_v37 = vsel %vm433_vm1, %v10035_v36, %v9965_v15  ;;  %v6878_v55 = vsel %vm433_vm1, %v10036_v21, %v9966_v39 }
 0x7f2   : > { %v10041_v40 = vunpack.i.h.bf16 %v10039_v8  ;;  %v10040_v33 = vunpack.i.l.bf16 %v10039_v8  ;;  %v9969_v11 = vpop.permute.xlu1 %9968 }
 0x7f3   : > { %6900 = vmatprep.subr.bf16.mxu0 %v6892_v29  ;;  %v9971_v47 = vunpack.i.h.bf16 %v9969_v11  ;;  %v9970_v8 = vunpack.i.l.bf16 %v9969_v11  ;;  %v9920_v29 = vunpack.i.l.bf16 %v13202_v27  ;;  %v13328_v11 = vsel %vm519_vm2, %v9915_v48, %v9840_v2  ;;  %v8368_v27 = vld [vmem:[%s13823_s4 + $0x4] sm:$0xf] }
 0x7f4   : > { %v6886_v6 = vsel %vm433_vm1, %v10041_v40, %v9961_v63  ;;  %v6885_v56 = vsel %vm433_vm1, %v10040_v33, %v9960_v52  ;;  %v6873_v36 = vsel %vm433_vm1, %v9965_v15, %v10040_v33  ;;  %v6874_v21 = vsel %vm433_vm1, %v9966_v39, %v10041_v40 }
 0x7f5   : > { %v6891_v32 = vpack.c.bf16 %v6886_v6, %v6885_v56  ;;  %v10044_v51 = vpop.permute.xlu0 %10043  ;;  %v6894_v63 = vpack.c.bf16 %v6874_v21, %v6873_v36  ;;  %v13324_v52 = vsel %vm519_vm2, %v9916_v42, %v9841_v34  ;;  %v9855_v6 = vunpack.i.l.bf16 %v13204_v14 }
 0x7f6   : > { %v10046_v43 = vunpack.i.h.bf16 %v10044_v51  ;;  %v10045_v58 = vunpack.i.l.bf16 %v10044_v51  ;;  %v6893_v56 = vpack.c.bf16 %v6878_v55, %v6877_v37  ;;  %v9974_v33 = vpop.permute.xlu1 %9973  ;;  %v9856_v39 = vunpack.i.h.bf16 %v13204_v14 }
 0x7f7   : > { %6901 = vmatpush1.bf16.msra.mxu0 %v6891_v32  ;;  %6941 = vmatprep.subr.bf16.mxu1 %v6894_v63  ;;  %v9976_v51 = vunpack.i.h.bf16 %v9974_v33  ;;  %v9975_v40 = vunpack.i.l.bf16 %v9974_v33  ;;  %v13908_v37 = vunpack.i.l.bf16 %v13196_v53  ;;  %v13909_v36 = vunpack.i.h.bf16 %v13196_v53 }
 0x7f8   : > { %6983 = vmatprep.subr.bf16.mxu0 %v6830_v20  ;;  %v6823_v34 = vsel %vm347_vm0, %v9970_v8, %v10045_v58  ;;  %v6824_v2 = vsel %vm347_vm0, %v9971_v47, %v10046_v43  ;;  %6942 = vmatpush1.bf16.msra.mxu1 %v6893_v56  ;;  %v13910_v33 = vunpack.i.l.bf16 %v13200_v5  ;;  %v13364_v53 = vsel %vm605_vm3, %v9920_v29, %v9855_v6 }
 0x7f9   : > { %v10049_v15 = vpop.permute.xlu0 %10048  ;;  %v6834_v32 = vpack.c.bf16 %v6824_v2, %v6823_v34  ;;  %v7099_v55 = vsel %vm519_vm2, %v13908_v37, %v9915_v48  ;;  %v7100_v20 = vsel %vm519_vm2, %v13909_v36, %v9916_v42  ;;  %7024 = vmatprep.subr.bf16.mxu1 %v6832_v44  ;;  %v13911_v34 = vunpack.i.h.bf16 %v13200_v5 }
 0x7fa   : > { %v10051_v21 = vunpack.i.h.bf16 %v10049_v15  ;;  %v10050_v63 = vunpack.i.l.bf16 %v10049_v15  ;;  %8369 = vmatmul.mubr.msk.bf16.vlgmr.msra.gmra.mrb[24].mxu0 %vm1367_vm8, %v8368_v27  ;;  %v13352_v56 = vsel %vm605_vm3, %v13910_v33, %v9920_v29  ;;  %v9926_v44 = vunpack.i.h.bf16 %v13206_v4  ;;  %v9979_v37 = vpop.permute.xlu1 %9978 }
 0x7fb   : > { %v13358_v48 = vsel %vm605_vm3, %v13911_v34, %v9921_v26  ;;  %v6819_v42 = vsel %vm347_vm0, %v10045_v58, %v9975_v40  ;;  %v6820_v2 = vsel %vm347_vm0, %v10046_v43, %v9976_v51  ;;  %v13912_v15 = vpack.c.bf16 %v13254_v45, %v13258_v23  ;;  %7015 = vmatprep.mubr.bf16.mxu0 %v13899_v31 }
 0x7fc   : > { %v6828_v36 = vsel %vm347_vm0, %v10051_v21, %v9971_v47  ;;  %v6827_v29 = vsel %vm347_vm0, %v10050_v63, %v9970_v8  ;;  %8370 = vmatmul.mubr.msk.bf16.vlgmr.msra.gmra.mrb[24].mxu1 %vm1367_vm8, %v8368_v27  ;;  %v9981_v33 = vunpack.i.h.bf16 %v9979_v37  ;;  %v9980_v58 = vunpack.i.l.bf16 %v9979_v37 }
 0x7fd   : > { %6984 = vmatpush1.bf16.msra.mxu0 %v13912_v15  ;;  %v9925_v43 = vunpack.i.l.bf16 %v13206_v4  ;;  %v6833_v34 = vpack.c.bf16 %v6828_v36, %v6827_v29  ;;  %v13913_v45 = vpack.c.bf16 %v13248_v54, %v13244_v49  ;;  %v10054_v23 = vpop.permute.xlu0 %10053  ;;  %v6815_v15 = vsel %vm347_vm0, %v9975_v40, %v10050_v63  ;;  %7056 = vmatprep.mubr.bf16.mxu1 %v13899_v31 }
 0x7fe   : > { %6985 = vmatprep.subr.bf16.mxu0 %v6834_v32  ;;  %v6816_v47 = vsel %vm347_vm0, %v9976_v51, %v10051_v21  ;;  %v13393_v8 = vsel %vm605_vm3, %v9921_v26, %v9856_v39  ;;  %v10056_v4 = vunpack.i.h.bf16 %v10054_v23  ;;  %v10055_v27 = vunpack.i.l.bf16 %v10054_v23  ;;  %v9984_v40 = vpop.permute.xlu1 %9983  ;;  %v6780_v51 = vld [vmem:[%s13823_s4] sm:$0xf] }
 0x7ff   : > { %7025 = vmatpush1.bf16.msra.mxu1 %v13913_v45  ;;  %v6836_v32 = vpack.c.bf16 %v6816_v47, %v6815_v15  ;;  %v7115_v49 = vpack.c.bf16 %v13324_v52, %v13328_v11  ;;  %v6835_v54 = vpack.c.bf16 %v6820_v2, %v6819_v42  ;;  %v7118_v63 = vpack.c.bf16 %v7100_v20, %v7099_v55 }
 0x800   : > { %v7263_v21 = vpack.c.bf16 %v13358_v48, %v13352_v56  ;;  %v9986_v26 = vunpack.i.h.bf16 %v9984_v40  ;;  %v9985_v37 = vunpack.i.l.bf16 %v9984_v40  ;;  %v13914_v36 = vpack.c.bf16 %v13276_v9, %v13272_v12 }
 0x801   : > { %6986 = vmatpush1.bf16.msra.mxu0 %v6833_v34  ;;  %7026 = vmatprep.subr.bf16.mxu1 %v6836_v32  ;;  %v7109_v52 = vsel %vm519_vm2, %v9980_v58, %v10055_v27  ;;  %v7110_v11 = vsel %vm519_vm2, %v9981_v33, %v10056_v4  ;;  %v7264_v55 = vpack.c.bf16 %v13393_v8, %v13364_v53  ;;  %v13915_v20 = vunpack.i.h.bf16 %v13200_v5  ;;  %v10059_v9 = vpop.permute.xlu0 %10058 }
 0x802   : > { %7126 = vmatprep.subr.bf16.mxu0 %v13914_v36  ;;  %v13916_v48 = vunpack.i.l.bf16 %v13200_v5  ;;  %v7120_v42 = vpack.c.bf16 %v7110_v11, %v7109_v52  ;;  %v9861_v2 = vunpack.i.h.bf16 %v13208_v24  ;;  %v10061_v29 = vunpack.i.h.bf16 %v10059_v9  ;;  %v9989_v47 = vpop.permute.xlu1 %9988  ;;  %v8373_v52 = vld [vmem:[%s13823_s4 + $0x8] sm:$0xf] }
 0x803   : > { %v13415_v56 = vsel %vm605_vm3, %v9926_v44, %v13915_v20  ;;  %7027 = vmatpush1.bf16.msra.mxu1 %v6835_v54  ;;  %v10060_v34 = vunpack.i.l.bf16 %v10059_v9  ;;  %v7246_v45 = vsel %vm605_vm3, %v9855_v6, %v9925_v43  ;;  %v9931_v5 = vunpack.i.h.bf16 %v13210_v41 }
 0x804   : > { %v13421_v12 = vsel %vm605_vm3, %v9925_v43, %v13916_v48  ;;  %7167 = vmatprep.subr.bf16.mxu1 %v7118_v63  ;;  %8371 = vmatmul.mubr.msk.bf16.vlgmr.msra.gmra.mrb[28].mxu0 %vm1367_vm8, %v6780_v51  ;;  %v7105_v23 = vsel %vm519_vm2, %v10055_v27, %v9985_v37  ;;  %v7106_v15 = vsel %vm519_vm2, %v10056_v4, %v9986_v26  ;;  %v9991_v27 = vunpack.i.h.bf16 %v9989_v47 }
 0x805   : > { %7127 = vmatpush1.bf16.msra.mxu0 %v7115_v49  ;;  %7158 = vmatprep.mubr.bf16.mxu0 %v13899_v31  ;;  %v7247_v32 = vsel %vm605_vm3, %v9856_v39, %v9926_v44  ;;  %v7114_v6 = vsel %vm519_vm2, %v10061_v29, %v9981_v33  ;;  %v7113_v43 = vsel %vm519_vm2, %v10060_v34, %v9980_v58  ;;  %v9990_v54 = vunpack.i.l.bf16 %v9989_v47  ;;  %v10064_v40 = vpop.permute.xlu0 %10063 }
 0x806   : > { %8372 = vmatmul.mubr.msk.bf16.vlgmr.msra.gmra.mrb[28].mxu1 %vm1367_vm8, %v6780_v51  ;;  %7128 = vmatprep.subr.bf16.mxu0 %v7120_v42  ;;  %v9860_v4 = vunpack.i.l.bf16 %v13208_v24  ;;  %v7119_v49 = vpack.c.bf16 %v7114_v6, %v7113_v43  ;;  %v13917_v14 = vpack.c.bf16 %v13292_v3, %v13286_v50  ;;  %v7101_v39 = vsel %vm519_vm2, %v9985_v37, %v10060_v34 }
 0x807   : > { %v7102_v44 = vsel %vm519_vm2, %v9986_v26, %v10061_v29  ;;  %7199 = vmatprep.mubr.bf16.mxu1 %v13899_v31  ;;  %v7262_v33 = vpack.c.bf16 %v13415_v56, %v13421_v12  ;;  %v10066_v58 = vunpack.i.h.bf16 %v10064_v40  ;;  %v10065_v63 = vunpack.i.l.bf16 %v10064_v40  ;;  %v9994_v26 = vpop.permute.xlu1 %9993 }
 0x808   : > { %7168 = vmatpush1.bf16.msra.mxu1 %v13917_v14  ;;  %v7122_v51 = vpack.c.bf16 %v7102_v44, %v7101_v39  ;;  %v13461_v50 = vsel %vm748_vm4, %v9861_v2, %v9931_v5  ;;  %v9930_v3 = vunpack.i.l.bf16 %v13210_v41  ;;  %v7121_v37 = vpack.c.bf16 %v7106_v15, %v7105_v23 }
 0x809   : > { %7129 = vmatpush1.bf16.msra.mxu0 %v7119_v49  ;;  %v7265_v36 = vpack.c.bf16 %v7247_v32, %v7246_v45  ;;  %v9996_v11 = vunpack.i.h.bf16 %v9994_v26  ;;  %v9995_v20 = vunpack.i.l.bf16 %v9994_v26  ;;  %v7256_v56 = vsel %vm605_vm3, %v9990_v54, %v10065_v63  ;;  %v10069_v29 = vpop.permute.xlu0 %10068 }
 0x80a   : > { %7169 = vmatprep.subr.bf16.mxu1 %v7122_v51  ;;  %7273 = vmatprep.subr.bf16.mxu0 %v7263_v21  ;;  %v7257_v48 = vsel %vm605_vm3, %v9991_v27, %v10066_v58  ;;  %v9866_v12 = vunpack.i.h.bf16 %v13212_v46  ;;  %v9865_v9 = vunpack.i.l.bf16 %v13212_v46  ;;  %v9936_v42 = vunpack.i.h.bf16 %v13214_v7 }
 0x80b   : > { %v7267_v34 = vpack.c.bf16 %v7257_v48, %v7256_v56  ;;  %v9935_v45 = vunpack.i.l.bf16 %v13214_v7  ;;  %v9871_v23 = vunpack.i.h.bf16 %v13216_v62  ;;  %v10071_v21 = vunpack.i.h.bf16 %v10069_v29  ;;  %v13482_v43 = vpop.permute.xlu1 %9998 }
 0x80c   : > { %7170 = vmatpush1.bf16.msra.mxu1 %v7121_v37  ;;  %v10070_v15 = vunpack.i.l.bf16 %v10069_v29  ;;  %8374 = vmatmul.mubr.msk.bf16.vlgmr.msra.gmra.mrb[32].mxu0 %vm1367_vm8, %v8373_v52  ;;  %v9870_v47 = vunpack.i.l.bf16 %v13216_v62  ;;  %v9941_v32 = vunpack.i.h.bf16 %v13218_v30  ;;  %v9940_v46 = vunpack.i.l.bf16 %v13218_v30 }
 0x80d   : > { %7314 = vmatprep.subr.bf16.mxu1 %v7265_v36  ;;  %v7252_v6 = vsel %vm605_vm3, %v10065_v63, %v9995_v20  ;;  %7274 = vmatpush1.bf16.msra.mxu0 %v7262_v33  ;;  %v9876_v7 = vunpack.i.h.bf16 %v13220_v1  ;;  %v7253_v49 = vsel %vm605_vm3, %v10066_v58, %v9996_v11  ;;  %v7261_v14 = vsel %vm605_vm3, %v10071_v21, %v9991_v27  ;;  %v13497_v44 = vpop.permute.xlu0 %10073 }
 0x80e   : > { %7305 = vmatprep.mubr.bf16.mxu0 %v13899_v31  ;;  %v7260_v40 = vsel %vm605_vm3, %v10070_v15, %v9990_v54  ;;  %7275 = vmatprep.subr.bf16.mxu0 %v7267_v34  ;;  %v9875_v30 = vunpack.i.l.bf16 %v13220_v1  ;;  %v7248_v33 = vsel %vm605_vm3, %v9995_v20, %v10070_v15  ;;  %v7249_v27 = vsel %vm605_vm3, %v9996_v11, %v10071_v21 }
 0x80f   : > { %8375 = vmatmul.mubr.msk.bf16.vlgmr.msra.gmra.mrb[32].mxu1 %vm1367_vm8, %v8373_v52  ;;  %v7266_v39 = vpack.c.bf16 %v7261_v14, %v7260_v40  ;;  %v13508_v1 = vsel %vm748_vm4, %v9860_v4, %v9930_v3  ;;  %v7269_v54 = vpack.c.bf16 %v7249_v27, %v7248_v33  ;;  %v7496_v53 = vsel %vm748_vm4, %v9930_v3, %v9865_v9  ;;  %v13524_v51 = vpop.permute.xlu1 %10003  ;;  %v8376_v3 = vld [vmem:[%s13823_s4 + $0xc] sm:$0xf]  ;;  %v13925_v14 = vld [vmem:[#allocation19_spill] sm:$0xff]  ;;  %v13926_v40 = vld [vmem:[#allocation14_spill] sm:$0xff] }
 0x810   : > { %7315 = vmatpush1.bf16.msra.mxu1 %v7264_v55  ;;  %7346 = vmatprep.mubr.bf16.mxu1 %v13899_v31  ;;  %v7497_v8 = vsel %vm748_vm4, %v9931_v5, %v9866_v12  ;;  %v13518_v55 = vsel %vm748_vm4, %v9866_v12, %v9936_v42  ;;  %v13522_v58 = vsel %vm748_vm4, %v9865_v9, %v9935_v45  ;;  %v9946_v36 = vunpack.i.h.bf16 %v13222_v16 }
 0x811   : > { %v7268_v63 = vpack.c.bf16 %v7253_v49, %v7252_v6  ;;  %7276 = vmatpush1.bf16.msra.mxu0 %v7266_v39  ;;  %v7504_v41 = vsel %vm748_vm4, %v9935_v45, %v9860_v4  ;;  %v13537_v5 = vsel %vm834_vm5, %v9871_v23, %v9941_v32  ;;  %v13543_v37 = vsel %vm834_vm5, %v9870_v47, %v9940_v46  ;;  %v13554_v11 = vpop.permute.xlu0 %10083  ;;  %v13924_v6 = vld [vmem:[#allocation15_spill] sm:$0xff] }
 0x812   : > { %7316 = vmatprep.subr.bf16.mxu1 %v7269_v54  ;;  %v13918_v26 = vpack.c.bf16 %v12973_v59, %v12960_v0  ;;  %v7505_v4 = vsel %vm748_vm4, %v9936_v42, %v9861_v2  ;;  %v9945_v52 = vunpack.i.l.bf16 %v13222_v16  ;;  %v13558_v20 = vsel %vm834_vm5, %v9940_v46, %v9875_v30 }
 0x813   : > { %v13562_v0 = vsel %vm834_vm5, %v9941_v32, %v9876_v7  ;;  %v7508_v59 = vpack.c.bf16 %v13461_v50, %v13508_v1  ;;  %v13919_v24 = vpack.c.bf16 %v12982_v13, %v12970_v35  ;;  %v7510_v16 = vpack.c.bf16 %v13518_v55, %v13522_v58  ;;  %v10009_v56 = vpop.permute.xlu1 %10008 }
 0x814   : > { %7372 = vmatprep.subr.bf16.mxu0 %v13918_v26  ;;  %7317 = vmatpush1.bf16.msra.mxu1 %v7268_v63  ;;  %v13920_v2 = vpack.c.bf16 %v12966_v10, %v12957_v60  ;;  %v7509_v48 = vpack.c.bf16 %v7497_v8, %v7496_v53  ;;  %v7511_v12 = vpack.c.bf16 %v7505_v4, %v7504_v41  ;;  %v9881_v35 = vunpack.i.h.bf16 %v13224_v17  ;;  %v13928_v53 = vld [vmem:[#allocation16_spill] sm:$0xff]  ;;  %v13929_v8 = vld [vmem:[#allocation18_spill] sm:$0xff] }
 0x815   : > { %7413 = vmatprep.subr.bf16.mxu1 %v13919_v24  ;;  %8377 = vmatmul.mubr.msk.bf16.vlgmr.msra.gmra.mrb[36].mxu0 %vm1367_vm8, %v8376_v3  ;;  %v7655_v50 = vpack.c.bf16 %v13537_v5, %v13543_v37  ;;  %v9951_v13 = vunpack.i.h.bf16 %v13226_v18  ;;  %v13921_v9 = vpack.c.bf16 %v13018_v57, %v12996_v25  ;;  %v7656_v60 = vpack.c.bf16 %v13562_v0, %v13558_v20  ;;  %v10099_v21 = vpop.permute.xlu0 %10098  ;;  %v13931_v41 = vld [vmem:[#allocation22_spill] sm:$0xff] }
 0x816   : > { %7373 = vmatpush1.bf16.msra.mxu0 %v13920_v2  ;;  %7404 = vmatprep.mubr.bf16.mxu0 %v13899_v31  ;;  %v13588_v10 = vsel %vm834_vm5, %v9876_v7, %v9946_v36  ;;  %v13592_v42 = vsel %vm834_vm5, %v9875_v30, %v9945_v52  ;;  %v10011_v29 = vunpack.i.h.bf16 %v10009_v56  ;;  %v10010_v34 = vunpack.i.l.bf16 %v10009_v56 }
 0x817   : > { %8378 = vmatmul.mubr.msk.bf16.vlgmr.msra.gmra.mrb[36].mxu1 %vm1367_vm8, %v8376_v3  ;;  %7374 = vmatprep.subr.bf16.mxu0 %v13921_v9  ;;  %v13922_v45 = vpack.c.bf16 %v12977_v19, %v12963_v22  ;;  %v9880_v25 = vunpack.i.l.bf16 %v13224_v17  ;;  %v9950_v57 = vunpack.i.l.bf16 %v13226_v18  ;;  %v10101_v15 = vunpack.i.h.bf16 %v10099_v21  ;;  %v13610_v39 = vpop.permute.xlu1 %10013  ;;  %v8379_v18 = vld [vmem:[%s13823_s4 + $0x10] sm:$0xf] }
 0x818   : > { %7445 = vmatprep.mubr.bf16.mxu1 %v13899_v31  ;;  %v10100_v32 = vunpack.i.l.bf16 %v10099_v21  ;;  %v13923_v46 = vpack.c.bf16 %v13028_v61, %v13008_v38  ;;  %v9886_v7 = vunpack.i.h.bf16 %v13924_v6  ;;  %v9885_v49 = vunpack.i.l.bf16 %v13924_v6 }
 0x819   : > { %7414 = vmatpush1.bf16.msra.mxu1 %v13922_v45  ;;  %v10006_v22 = vunpack.i.h.bf16 %v13524_v51  ;;  %v10005_v19 = vunpack.i.l.bf16 %v13524_v51  ;;  %v13927_v30 = vpack.c.bf16 %v13925_v14, %v13926_v40  ;;  %v7657_v38 = vpack.c.bf16 %v13588_v10, %v13592_v42  ;;  %v10104_v58 = vpop.permute.xlu0 %10103 }
 0x81a   : > { %7415 = vmatprep.subr.bf16.mxu1 %v13923_v46  ;;  %v13621_v61 = vsel %vm920_vm6, %v9881_v35, %v9951_v13  ;;  %v7651_v33 = vsel %vm834_vm5, %v9945_v52, %v9870_v47  ;;  %v7652_v27 = vsel %vm834_vm5, %v9946_v36, %v9871_v23  ;;  %v13930_v55 = vpack.c.bf16 %v13928_v53, %v13929_v8 }
 0x81b   : > { %7375 = vmatpush1.bf16.msra.mxu0 %v13927_v30  ;;  %v7503_v1 = vsel %vm748_vm4, %v10006_v22, %v10101_v15  ;;  %v7502_v54 = vsel %vm748_vm4, %v10005_v19, %v10100_v32  ;;  %v7498_v63 = vsel %vm748_vm4, %v10100_v32, %v10010_v34  ;;  %v7499_v62 = vsel %vm748_vm4, %v10101_v15, %v10011_v29  ;;  %v10019_v36 = vpop.permute.xlu1 %10018 }
 0x81c   : > { %7519 = vmatprep.subr.bf16.mxu0 %v7509_v48  ;;  %v13646_v23 = vsel %vm920_vm6, %v9880_v25, %v9950_v57  ;;  %v10106_v47 = vunpack.i.h.bf16 %v10104_v58  ;;  %v10105_v51 = vunpack.i.l.bf16 %v10104_v58  ;;  %v7513_v3 = vpack.c.bf16 %v7499_v62, %v7498_v63 }
 0x81d   : > { %7416 = vmatpush1.bf16.msra.mxu1 %v13930_v55  ;;  %v9956_v26 = vunpack.i.h.bf16 %v13931_v41  ;;  %v9955_v4 = vunpack.i.l.bf16 %v13931_v41  ;;  %v13654_v52 = vsel %vm920_vm6, %v9950_v57, %v9885_v49  ;;  %v13658_v24 = vsel %vm920_vm6, %v9951_v13, %v9886_v7  ;;  %v10109_v45 = vpop.permute.xlu0 %10108 }
 0x81e   : > { %7560 = vmatprep.subr.bf16.mxu1 %v7511_v12  ;;  %8380 = vmatmul.mubr.msk.bf16.vlgmr.msra.gmra.mrb[40].mxu0 %vm1367_vm8, %v8379_v18  ;;  %v7512_v2 = vpack.c.bf16 %v7503_v1, %v7502_v54  ;;  %v7495_v56 = vsel %vm748_vm4, %v10011_v29, %v10106_v47  ;;  %v7494_v48 = vsel %vm748_vm4, %v10010_v34, %v10105_v51  ;;  %v10020_v9 = vunpack.i.l.bf16 %v10019_v36 }
 0x81f   : > { %7520 = vmatpush1.bf16.msra.mxu0 %v7508_v59  ;;  %7551 = vmatprep.mubr.bf16.mxu0 %v13899_v31  ;;  %v10021_v59 = vunpack.i.h.bf16 %v10019_v36  ;;  %v7514_v12 = vpack.c.bf16 %v7495_v56, %v7494_v48  ;;  %v7506_v21 = vsel %vm748_vm4, %v10105_v51, %v10005_v19  ;;  %v7507_v13 = vsel %vm748_vm4, %v10106_v47, %v10006_v22  ;;  %v13674_v6 = vpop.permute.xlu1 %10023  ;;  %v8382_v22 = vld [vmem:[%s13823_s4 + $0x14] sm:$0xf] }
 0x820   : > { %8381 = vmatmul.mubr.msk.bf16.vlgmr.msra.gmra.mrb[40].mxu1 %vm1367_vm8, %v8379_v18  ;;  %7521 = vmatprep.subr.bf16.mxu0 %v7513_v3  ;;  %v10111_v29 = vunpack.i.h.bf16 %v10109_v45  ;;  %v10110_v57 = vunpack.i.l.bf16 %v10109_v45  ;;  %v7515_v15 = vpack.c.bf16 %v7507_v13, %v7506_v21  ;;  %v7658_v34 = vpack.c.bf16 %v7652_v27, %v7651_v33 }
 0x821   : > { %7561 = vmatpush1.bf16.msra.mxu1 %v7510_v16  ;;  %7592 = vmatprep.mubr.bf16.mxu1 %v13899_v31  ;;  %v7802_v32 = vpack.c.bf16 %v13621_v61, %v13646_v23  ;;  %v10016_v46 = vunpack.i.h.bf16 %v13610_v39  ;;  %v10015_v16 = vunpack.i.l.bf16 %v13610_v39  ;;  %v7803_v19 = vpack.c.bf16 %v13658_v24, %v13654_v52  ;;  %v10114_v18 = vpop.permute.xlu0 %10113 }
 0x822   : > { %v13683_v14 = vsel %vm920_vm6, %v9886_v7, %v9956_v26  ;;  %v13687_v40 = vsel %vm920_vm6, %v9885_v49, %v9955_v4  ;;  %7562 = vmatprep.subr.bf16.mxu1 %v7515_v15  ;;  %v7798_v30 = vsel %vm920_vm6, %v9955_v4, %v9880_v25  ;;  %v7645_v49 = vsel %vm834_vm5, %v10110_v57, %v10020_v9 }
 0x823   : > { %7522 = vmatpush1.bf16.msra.mxu0 %v7512_v2  ;;  %v7650_v39 = vsel %vm834_vm5, %v10016_v46, %v10111_v29  ;;  %v7649_v7 = vsel %vm834_vm5, %v10015_v16, %v10110_v57  ;;  %v7646_v20 = vsel %vm834_vm5, %v10111_v29, %v10021_v59  ;;  %v10116_v0 = vunpack.i.h.bf16 %v10114_v18  ;;  %v10029_v8 = vpop.permute.xlu1 %10028 }
 0x824   : > { %7666 = vmatprep.subr.bf16.mxu0 %v7656_v60  ;;  %v10115_v60 = vunpack.i.l.bf16 %v10114_v18  ;;  %v7660_v25 = vpack.c.bf16 %v7646_v20, %v7645_v49  ;;  %v7799_v33 = vsel %vm920_vm6, %v9956_v26, %v9881_v35  ;;  %v10001_v27 = vunpack.i.h.bf16 %v13482_v43  ;;  %v8385_v26 = vld [vmem:[%s13823_s4 + $0x18] sm:$0xf]  ;;  %v8388_v20 = vld [vmem:[%s13823_s4 + $0x1c] sm:$0xf] }
 0x825   : > { %7563 = vmatpush1.bf16.msra.mxu1 %v7514_v12  ;;  %v10000_v1 = vunpack.i.l.bf16 %v13482_v43  ;;  %v10076_v54 = vunpack.i.h.bf16 %v13497_v44  ;;  %v10075_v53 = vunpack.i.l.bf16 %v13497_v44  ;;  %v7659_v55 = vpack.c.bf16 %v7650_v39, %v7649_v7  ;;  %v10119_v5 = vpop.permute.xlu0 %10118 }
 0x826   : > { %7707 = vmatprep.subr.bf16.mxu1 %v7658_v34  ;;  %8383 = vmatmul.mubr.msk.bf16.vlgmr.msra.gmra.mrb[44].mxu0 %vm1367_vm8, %v8382_v22  ;;  %v7642_v17 = vsel %vm834_vm5, %v10021_v59, %v10116_v0  ;;  %v7641_v35 = vsel %vm834_vm5, %v10020_v9, %v10115_v60  ;;  %v10031_v43 = vunpack.i.h.bf16 %v10029_v8  ;;  %v10030_v44 = vunpack.i.l.bf16 %v10029_v8 }
 0x827   : > { %7667 = vmatpush1.bf16.msra.mxu0 %v7655_v50  ;;  %7698 = vmatprep.mubr.bf16.mxu0 %v13899_v31  ;;  %v7661_v58 = vpack.c.bf16 %v7642_v17, %v7641_v35  ;;  %v7653_v37 = vsel %vm834_vm5, %v10115_v60, %v10015_v16  ;;  %v7654_v50 = vsel %vm834_vm5, %v10116_v0, %v10016_v46  ;;  %v10085_v63 = vunpack.i.l.bf16 %v13554_v11  ;;  %v10079_v41 = vpop.permute.xlu1 %10078 }
 0x828   : > { %8384 = vmatmul.mubr.msk.bf16.vlgmr.msra.gmra.mrb[44].mxu1 %vm1367_vm8, %v8382_v22  ;;  %7668 = vmatprep.subr.bf16.mxu0 %v7660_v25  ;;  %v10121_v62 = vunpack.i.h.bf16 %v10119_v5  ;;  %v10120_v47 = vunpack.i.l.bf16 %v10119_v5  ;;  %v7662_v51 = vpack.c.bf16 %v7654_v50, %v7653_v37  ;;  %v7804_v3 = vpack.c.bf16 %v13683_v14, %v13687_v40 }
 0x829   : > { %7708 = vmatpush1.bf16.msra.mxu1 %v7657_v38  ;;  %7739 = vmatprep.mubr.bf16.mxu1 %v13899_v31  ;;  %v10086_v10 = vunpack.i.h.bf16 %v13554_v11  ;;  %v10026_v42 = vunpack.i.h.bf16 %v13674_v6  ;;  %v10025_v38 = vunpack.i.l.bf16 %v13674_v6  ;;  %v13741_v4 = vsel %vm1006_vm7, %v10001_v27, %v10076_v54  ;;  %v10124_v56 = vpop.permute.xlu0 %10123 }
 0x82a   : > { %7709 = vmatprep.subr.bf16.mxu1 %v7662_v51  ;;  %v10081_v36 = vunpack.i.h.bf16 %v10079_v41  ;;  %v10080_v52 = vunpack.i.l.bf16 %v10079_v41  ;;  %v7805_v24 = vpack.c.bf16 %v7799_v33, %v7798_v30  ;;  %v7792_v48 = vsel %vm920_vm6, %v10120_v47, %v10030_v44  ;;  %v8391_v51 = vld [vmem:[%s13823_s4 + $0x20] sm:$0xf] }
 0x82b   : > { %7669 = vmatpush1.bf16.msra.mxu0 %v7659_v55  ;;  %v7797_v11 = vsel %vm920_vm6, %v10026_v42, %v10121_v62  ;;  %v7796_v2 = vsel %vm920_vm6, %v10025_v38, %v10120_v47  ;;  %v7793_v59 = vsel %vm920_vm6, %v10121_v62, %v10031_v43  ;;  %v7941_v12 = vsel %vm1006_vm7, %v10000_v1, %v10075_v53  ;;  %v10089_v13 = vpop.permute.xlu1 %10088 }
 0x82c   : > { %7813 = vmatprep.subr.bf16.mxu0 %v7803_v19  ;;  %v10126_v9 = vunpack.i.h.bf16 %v10124_v56  ;;  %v10125_v45 = vunpack.i.l.bf16 %v10124_v56  ;;  %v7945_v21 = vsel %vm1006_vm7, %v10085_v63, %v10000_v1  ;;  %v7807_v29 = vpack.c.bf16 %v7793_v59, %v7792_v48 }
 0x82d   : > { %7710 = vmatpush1.bf16.msra.mxu1 %v7661_v58  ;;  %v7937_v57 = vsel %vm1006_vm7, %v10075_v53, %v10080_v52  ;;  %v7938_v15 = vsel %vm1006_vm7, %v10076_v54, %v10081_v36  ;;  %v7946_v34 = vsel %vm1006_vm7, %v10086_v10, %v10001_v27  ;;  %v7806_v46 = vpack.c.bf16 %v7797_v11, %v7796_v2  ;;  %v10129_v22 = vpop.permute.xlu0 %10128 }
 0x82e   : > { %7854 = vmatprep.subr.bf16.mxu1 %v7805_v24  ;;  %8386 = vmatmul.mubr.msk.bf16.vlgmr.msra.gmra.mrb[48].mxu0 %vm1367_vm8, %v8385_v26  ;;  %v7789_v16 = vsel %vm920_vm6, %v10031_v43, %v10126_v9  ;;  %v7788_v6 = vsel %vm920_vm6, %v10030_v44, %v10125_v45  ;;  %v10091_v61 = vunpack.i.h.bf16 %v10089_v13  ;;  %v7800_v19 = vsel %vm920_vm6, %v10125_v45, %v10025_v38 }
 0x82f   : > { %7814 = vmatpush1.bf16.msra.mxu0 %v7802_v32  ;;  %7845 = vmatprep.mubr.bf16.mxu0 %v13899_v31  ;;  %v7808_v23 = vpack.c.bf16 %v7789_v16, %v7788_v6  ;;  %v10090_v32 = vunpack.i.l.bf16 %v10089_v13  ;;  %v7801_v14 = vsel %vm920_vm6, %v10126_v9, %v10026_v42  ;;  %v10131_v40 = vunpack.i.h.bf16 %v10129_v22  ;;  %v10094_v18 = vpop.permute.xlu1 %10093 }
 0x830   : > { %8387 = vmatmul.mubr.msk.bf16.vlgmr.msra.gmra.mrb[48].mxu1 %vm1367_vm8, %v8385_v26  ;;  %7815 = vmatprep.subr.bf16.mxu0 %v7807_v29  ;;  %v10130_v30 = vunpack.i.l.bf16 %v10129_v22  ;;  %v7809_v39 = vpack.c.bf16 %v7801_v14, %v7800_v19  ;;  %v7950_v7 = vpack.c.bf16 %v7938_v15, %v7937_v57  ;;  %v7952_v49 = vpack.c.bf16 %v7946_v34, %v7945_v21 }
 0x831   : > { %7855 = vmatpush1.bf16.msra.mxu1 %v7804_v3  ;;  %7886 = vmatprep.mubr.bf16.mxu1 %v13899_v31  ;;  %v7933_v0 = vsel %vm1006_vm7, %v10080_v52, %v10085_v63  ;;  %v7934_v60 = vsel %vm1006_vm7, %v10081_v36, %v10086_v10  ;;  %v10096_v25 = vunpack.i.h.bf16 %v10094_v18  ;;  %v10095_v33 = vunpack.i.l.bf16 %v10094_v18  ;;  %v10134_v53 = vpop.permute.xlu0 %10133 }
 0x832   : > { %7856 = vmatprep.subr.bf16.mxu1 %v7809_v39  ;;  %v7949_v27 = vpack.c.bf16 %v13741_v4, %v7941_v12  ;;  %v7944_v1 = vsel %vm1006_vm7, %v10091_v61, %v10131_v40  ;;  %v7943_v54 = vsel %vm1006_vm7, %v10090_v32, %v10130_v30  ;;  %v10136_v8 = vunpack.i.h.bf16 %v10134_v53 }
 0x833   : > { %7816 = vmatpush1.bf16.msra.mxu0 %v7806_v46  ;;  %v10135_v55 = vunpack.i.l.bf16 %v10134_v53  ;;  %v7939_v17 = vsel %vm1006_vm7, %v10130_v30, %v10095_v33  ;;  %v7940_v35 = vsel %vm1006_vm7, %v10131_v40, %v10096_v25  ;;  %v7951_v43 = vpack.c.bf16 %v7934_v60, %v7933_v0 }
 0x834   : > { %7960 = vmatprep.subr.bf16.mxu0 %v7950_v7  ;;  %v7954_v58 = vpack.c.bf16 %v7940_v35, %v7939_v17  ;;  %v7936_v44 = vsel %vm1006_vm7, %v10096_v25, %v10136_v8  ;;  %v7948_v50 = vsel %vm1006_vm7, %v10136_v8, %v10091_v61  ;;  %v7953_v63 = vpack.c.bf16 %v7944_v1, %v7943_v54 }
 0x835   : > { %7857 = vmatpush1.bf16.msra.mxu1 %v7808_v23  ;;  %v7935_v5 = vsel %vm1006_vm7, %v10095_v33, %v10135_v55  ;;  %v7947_v37 = vsel %vm1006_vm7, %v10135_v55, %v10090_v32 }
 0x836   : > { %8001 = vmatprep.subr.bf16.mxu1 %v7952_v49  ;;  %8389 = vmatmul.mubr.msk.bf16.vlgmr.msra.gmra.mrb[52].mxu0 %vm1367_vm8, %v8388_v20  ;;  %v7955_v62 = vpack.c.bf16 %v7936_v44, %v7935_v5  ;;  %v7956_v47 = vpack.c.bf16 %v7948_v50, %v7947_v37 }
 0x837   : > { %7961 = vmatpush1.bf16.msra.mxu0 %v7949_v27  ;;  %7992 = vmatprep.mubr.bf16.mxu0 %v13899_v31 }
 0x838   : > { %8390 = vmatmul.mubr.msk.bf16.vlgmr.msra.gmra.mrb[52].mxu1 %vm1367_vm8, %v8388_v20  ;;  %7962 = vmatprep.subr.bf16.mxu0 %v7954_v58 }
 0x839   : > { %8002 = vmatpush1.bf16.msra.mxu1 %v7951_v43  ;;  %8033 = vmatprep.mubr.bf16.mxu1 %v13899_v31 }
 0x83a   : > { %8003 = vmatprep.subr.bf16.mxu1 %v7956_v47 }
 0x83b   : > { %7963 = vmatpush1.bf16.msra.mxu0 %v7953_v63 }
 0x83d   : > { %8004 = vmatpush1.bf16.msra.mxu1 %v7955_v62 }
 0x83e   : > { %8392 = vmatmul.mubr.msk.bf16.vlgmr.msra.gmra.mrb[56].mxu0 %vm1367_vm8, %v8391_v51 }
 0x840   : > { %8393 = vmatmul.mubr.msk.bf16.vlgmr.msra.gmra.mrb[56].mxu1 %vm1367_vm8, %v8391_v51 }
 0x8cd   : > { %v6932_v28 = vpop.f32.mrb[24].mxu0 }
 0x8ce   : > { %v6934_v3 = vpop.f32.mrb[25].mxu0 }
 0x8cf   : > { %v6973_v10 = vpop.f32.mrb[24].mxu1  ;;  %v6936_v42 = vpop.f32.mrb[26].mxu0 }
 0x8d0   : > { %v6975_v38 = vpop.f32.mrb[25].mxu1  ;;  %v6937_v41 = vpop.f32.mrb[27].mxu0 }
 0x8d1   : > { %v6977_v26 = vpop.f32.mrb[26].mxu1 }
 0x8d2   : > { %v6978_v4 = vpop.f32.mrb[27].mxu1 }
 0x8d7   : > { %v7017_v31 = vpop.f32.mrb[28].mxu0 }
 0x8d8   : > { %v7018_v36 = vadd.f32 %v7017_v31, %v6932_v28  ;;  %v7019_v52 = vpop.f32.mrb[29].mxu0 }
 0x8d9   : > { %v7020_v24 = vadd.f32 %v7019_v52, %v6934_v3  ;;  %v7058_v11 = vpop.f32.mrb[28].mxu1  ;;  %v7021_v2 = vpop.f32.mrb[30].mxu0 }
 0x8da   : > { %v7059_v56 = vadd.f32 %v7058_v11, %v6973_v10  ;;  %v7060_v48 = vpop.f32.mrb[29].mxu1  ;;  %v7022_v59 = vpop.f32.mrb[31].mxu0 }
 0x8db   : > { %v7061_v12 = vadd.f32 %v7060_v48, %v6975_v38  ;;  %v7062_v9 = vpop.f32.mrb[30].mxu1 }
 0x8dc   : > { %v7063_v45 = vpop.f32.mrb[31].mxu1 }
 0x8df   : > { %v7160_v21 = vpop.f32.mrb[32].mxu0 }
 0x8e0   : > { %v7208_v13 = vadd.f32 %v7160_v21, %v7018_v36  ;;  %v7162_v29 = vpop.f32.mrb[33].mxu0 }
 0x8e1   : > { %v7209_v57 = vadd.f32 %v7162_v29, %v7020_v24  ;;  %v7164_v34 = vpop.f32.mrb[34].mxu0 }
 0x8e2   : > { %v7201_v15 = vpop.f32.mrb[32].mxu1  ;;  %v7165_v6 = vpop.f32.mrb[35].mxu0 }
 0x8e3   : > { %v7210_v46 = vadd.f32 %v7201_v15, %v7059_v56  ;;  %v7203_v16 = vpop.f32.mrb[33].mxu1  ;;  %v10282_v6 = vmov 1966171168  }
 0x8e4   : > { %v7211_v61 = vadd.f32 %v7203_v16, %v7061_v12  ;;  %v7205_v23 = vpop.f32.mrb[34].mxu1  ;;  %v8050_v16 = vpop.permute.xlu1 %8049 }
 0x8e5   : > { %v7206_v32 = vpop.f32.mrb[35].mxu1 }
 0x8e6   : > { %v13932_v32 = vld [vmem:[#allocation10_spill] sm:$0xff] }
 0x8e8   : > { %v7307_v22 = vpop.f32.mrb[36].mxu0 }
 0x8e9   : > { %v7355_v19 = vadd.f32 %v7307_v22, %v7208_v13  ;;  %v7309_v14 = vpop.f32.mrb[37].mxu0  ;;  %v8055_v22 = vrot.slane %v8050_v16, %v13932_v32 }
 0x8ea   : > { %v7356_v40 = vadd.f32 %v7309_v14, %v7209_v57  ;;  %v7348_v30 = vpop.f32.mrb[36].mxu1  ;;  %v7311_v39 = vpop.f32.mrb[38].mxu0 }
 0x8eb   : > { %v7357_v7 = vadd.f32 %v7348_v30, %v7210_v46  ;;  %v7350_v18 = vpop.f32.mrb[37].mxu1  ;;  %v7312_v49 = vpop.f32.mrb[39].mxu0 }
 0x8ec   : > { %v7358_v20 = vadd.f32 %v7350_v18, %v7211_v61  ;;  %v7352_v0 = vpop.f32.mrb[38].mxu1  ;;  %v8067_v61 = vunpack.c.l.s4 %v10282_v6 }
 0x8ed   : > { %v7353_v60 = vpop.f32.mrb[39].mxu1 }
 0x8ee   : > { %v8068_v14 = vunpack.c.0.s8 %v8067_v61 }
 0x8f1   : > { %v7406_v25 = vpop.f32.mrb[40].mxu0 }
 0x8f2   : > { %v7454_v33 = vadd.f32 %v7406_v25, %v7355_v19  ;;  %v7408_v27 = vpop.f32.mrb[41].mxu0 }
 0x8f3   : > { %v7455_v1 = vadd.f32 %v7408_v27, %v7356_v40  ;;  %v7447_v54 = vpop.f32.mrb[40].mxu1  ;;  %v7410_v53 = vpop.f32.mrb[42].mxu0 }
 0x8f4   : > { %v7456_v8 = vadd.f32 %v7447_v54, %v7357_v7  ;;  %v7449_v55 = vpop.f32.mrb[41].mxu1  ;;  %v7411_v17 = vpop.f32.mrb[43].mxu0 }
 0x8f5   : > { %v7457_v35 = vadd.f32 %v7449_v55, %v7358_v20  ;;  %v7451_v43 = vpop.f32.mrb[42].mxu1 }
 0x8f6   : > { %v7452_v58 = vpop.f32.mrb[43].mxu1 }
 0x8f9   : > { %v7553_v44 = vpop.f32.mrb[44].mxu0 }
 0x8fa   : > { %v7601_v5 = vadd.f32 %v7553_v44, %v7454_v33  ;;  %v7555_v37 = vpop.f32.mrb[45].mxu0  ;;  %v13933_v33 = vld [vmem:[#allocation9_spill] sm:$0xff] }
 0x8fb   : > { %v7602_v50 = vadd.f32 %v7555_v37, %v7455_v1  ;;  %v7594_v63 = vpop.f32.mrb[44].mxu1  ;;  %v7557_v62 = vpop.f32.mrb[46].mxu0  ;;  %v8071_v27 = vsub.s32 %v8068_v14, %v13933_v33 }
 0x8fc   : > { %v7603_v47 = vadd.f32 %v7594_v63, %v7456_v8  ;;  %v7596_v51 = vpop.f32.mrb[45].mxu1  ;;  %v7558_v28 = vpop.f32.mrb[47].mxu0 }
 0x8fd   : > { %v7604_v3 = vadd.f32 %v7596_v51, %v7457_v35  ;;  %v7598_v10 = vpop.f32.mrb[46].mxu1 }
 0x8fe   : > { %v7599_v42 = vpop.f32.mrb[47].mxu1 }
 0x901   : > { %v7700_v38 = vpop.f32.mrb[48].mxu0 }
 0x902   : > { %v7748_v41 = vadd.f32 %v7700_v38, %v7601_v5  ;;  %v7702_v26 = vpop.f32.mrb[49].mxu0  ;;  %v13934_v5 = vlaneseq }
 0x903   : > { %v7749_v4 = vadd.f32 %v7702_v26, %v7602_v50  ;;  %v7741_v31 = vpop.f32.mrb[48].mxu1  ;;  %v7704_v36 = vpop.f32.mrb[50].mxu0 }
 0x904   : > { %v7750_v52 = vadd.f32 %v7741_v31, %v7603_v47  ;;  %v7743_v24 = vpop.f32.mrb[49].mxu1  ;;  %v7705_v11 = vpop.f32.mrb[51].mxu0  ;;  %vm8091_vm9 = vcmp.lt.s32.totalorder %v13934_v5, 512 }
 0x905   : > { %v7751_v2 = vadd.f32 %v7743_v24, %v7604_v3  ;;  %v7745_v56 = vpop.f32.mrb[50].mxu1 }
 0x906   : > { %v7746_v48 = vpop.f32.mrb[51].mxu1 }
 0x909   : > { %v7847_v59 = vpop.f32.mrb[52].mxu0 }
 0x90a   : > { %v7895_v12 = vadd.f32 %v7847_v59, %v7748_v41  ;;  %v7849_v9 = vpop.f32.mrb[53].mxu0 }
 0x90b   : > { %v7896_v45 = vadd.f32 %v7849_v9, %v7749_v4  ;;  %v7888_v21 = vpop.f32.mrb[52].mxu1  ;;  %v7851_v13 = vpop.f32.mrb[54].mxu0 }
 0x90c   : > { %v7897_v29 = vadd.f32 %v7888_v21, %v7750_v52  ;;  %v7890_v57 = vpop.f32.mrb[53].mxu1  ;;  %v7852_v15 = vpop.f32.mrb[55].mxu0 }
 0x90d   : > { %v7898_v34 = vadd.f32 %v7890_v57, %v7751_v2  ;;  %v7892_v46 = vpop.f32.mrb[54].mxu1 }
 0x90e   : > { %v7893_v23 = vpop.f32.mrb[55].mxu1 }
 0x911   : > { %v7994_v19 = vpop.f32.mrb[56].mxu0 }
 0x912   : > { %v8042_v40 = vadd.f32 %v7994_v19, %v7895_v12  ;;  %v7996_v30 = vpop.f32.mrb[57].mxu0 }
 0x913   : > { %v8043_v39 = vadd.f32 %v7996_v30, %v7896_v45  ;;  %v8035_v7 = vpop.f32.mrb[56].mxu1  ;;  %v7998_v18 = vpop.f32.mrb[58].mxu0 }
 0x914   : > { %v8056_v49 = vadd.f32 %v8055_v22, %v8042_v40  ;;  %v8044_v20 = vadd.f32 %v8035_v7, %v7897_v29  ;;  %v8037_v0 = vpop.f32.mrb[57].mxu1  ;;  %v7999_v60 = vpop.f32.mrb[59].mxu0 }
 0x915   : > { %v8057_v25 = vadd.f32 %v8055_v22, %v8043_v39  ;;  %v8045_v1 = vadd.f32 %v8037_v0, %v7898_v34  ;;  %v8039_v54 = vpop.f32.mrb[58].mxu1 }
 0x916   : > { %v8058_v53 = vadd.f32 %v8055_v22, %v8044_v20  ;;  %v8040_v8 = vpop.f32.mrb[59].mxu1 }
 0x917   : > { %v8064_v55 = vcombine.low %v8056_v49, %v8057_v25  ;;  %v8059_v17 = vadd.f32 %v8055_v22, %v8045_v1 }
 0x919   : > { %v8072_v35 = vrot.slane %v8064_v55, %v8071_v27  ;;  %v8065_v43 = vcombine.low %v8058_v53, %v8059_v17 }
 0x91b   : > { %v8079_v58 = vrot.slane %v8065_v43, %v8071_v27 }
 0x91d   : > { %v8080_v44 = vcombine.low %v8072_v35, %v8079_v58 }
 0x91f   : > { %v8087_v37 = vrot.slane %v8080_v44, %v8071_v27 }
 0x921   : > { %8093 = vst.msk [vmem:[%s307_s21] sm:$0xf] %vm8091_vm9, %v8087_v37 }
 0x922 PF: > { %s21_s26 = sadd.s32 1, %s10263_s26  }
 0x923   : > { %p18_p2 = scmp.ge.s32.totalorder %s21_s26, 4  }
 0x925   :  { %20 = sbr.rel (!%p18_p2) target bundleno = 5 (0x5), region = 132 }
 0x92c   :  { %8114 = vsyncpa [#allocation4], 1 }
 0x92d   :  { %8116 = vsyncpa [#allocation4 + $0x1], 1 }
 0x92e   :  { %8117 = vsyncpa [#allocation6], 1 }

</bundles_post_ra>
